<compile_context>
chip_gen: v6e
topology: v6e:2x2x1
jax: 0.10.0
libtpu: 0.0.40
codegen_flags: <defaults>
</compile_context>

<pallas_src>
import functools

import jax
import jax.numpy as jnp
import numpy as np
from jax import lax
from jax.experimental import pallas as pl
from jax.experimental.pallas import tpu as pltpu

LANE = 128


def _round_up(n, m):
    return ((n + m - 1) // m) * m


# ---------------------------------------------------------------------------
# In-kernel helpers.  All activations live as a flat (n_img*S, Cpad) slab with the
# (zero-padded) channels on the lane axis.
# ---------------------------------------------------------------------------
def _roll(x, shift, axis):
    """pltpu.roll with the shift normalized into [0, axis_size)."""
    n = x.shape[axis]
    return pltpu.roll(x, shift % n, axis)


def _mod_const(a, n):
    """a mod n for a static n; bitwise (always VPU-supported) when n is a power of two."""
    if n & (n - 1) == 0:
        return a & (n - 1)
    return a % n


def _combine(a, b):
    if a is None:
        return b
    if b is None:
        return a
    return a & b


def _group_sum_lanes(s, group_size):
    """Sum within contiguous lane-groups of `group_size` (a power of two).

    Butterfly of XLU lane rotations: after log2(g) rounds every lane holds its group total.
    Replaces the old (1,C)x(C,C) 'gmat' matmul (a 1-useful-row MXU push per statistic).
    Zero-padded channels form their own all-zero groups, so they stay exactly zero.
    """
    if group_size == 1:
        return s
    lane = lax.broadcasted_iota(jnp.int32, s.shape, s.ndim - 1)
    shift = 1
    while shift < group_size:
        hi = _roll(s, -shift, s.ndim - 1)          # value from lane + shift
        lo = _roll(s, shift, s.ndim - 1)           # value from lane - shift
        s = s + jnp.where((lane & shift) == 0, hi, lo)
        shift *= 2
    return s


def _gn_swish(hf, gamma, beta, cond_ref, *, n_img, S, group_size, eps=1e-5):
    """Per-image GroupNorm (biased variance, like torch) + Swish on a flat (n_img*S, C) slab.

    If cond_ref is not None, cond_ref[b] (the hoisted cond embedding of image b) is added
    before the statistics are taken — identical to `h += cond_emb(cond)[:, :, None, None]`
    immediately before norm2 in the PyTorch module.
    Padded channels have gamma == beta == 0, so they stay exactly zero.
    """
    inv_n = 1.0 / (group_size * S)
    outs = []
    for b in range(n_img):                                         # static, small
        xb = hf[b * S:(b + 1) * S, :]
        if cond_ref is not None:
            xb = xb + cond_ref[b]                                  # (1, C) lane-aligned add
        s1 = _group_sum_lanes(jnp.sum(xb, axis=0, keepdims=True), group_size)
        s2 = _group_sum_lanes(jnp.sum(xb * xb, axis=0, keepdims=True), group_size)
        mean = s1 * inv_n
        var = s2 * inv_n - mean * mean
        scale = lax.rsqrt(var + eps) * gamma                       # (1, C)
        shift = beta - mean * scale
        hb = xb * scale + shift                                    # GroupNorm affine
        outs.append(hb * (1.0 / (1.0 + jnp.exp(-hb))))             # Swish (f32 VPU/EUP)
    return outs[0] if n_img == 1 else jnp.concatenate(outs, axis=0)


def _conv3x3(hf, w_ref, bias, *, n_img, S, img_h, img_w):
    """3x3 'same' conv on the flat (n_img*S, Cin) slab -> (n_img*S, Cout).

    Each tap = one pltpu.roll of the flat slab along sublanes (XLU) + a boundary mask + one
    (M, Cin)x(Cin, Cout) MXU matmul.  Every out-of-image read of the rolled flat slab (image
    borders, cross-image rows, end wrap-around) is exactly a masked position, so a single
    roll serves the whole image chunk — no per-image loop and no (S, S) shift matrices.
    """
    total = n_img * S
    row = lax.broadcasted_iota(jnp.int32, (total, 1), 0)
    s_in = _mod_const(row, S)                                      # index within the image
    xcol = _mod_const(s_in, img_w)                                 # column within the row

    acc = None
    tap = 0
    for dy in (-1, 0, 1):
        if dy < 0:
            row_ok = s_in >= img_w
        elif dy > 0:
            row_ok = s_in < S - img_w
        else:
            row_ok = None
        for dx in (-1, 0, 1):
            if dx < 0:
                col_ok = xcol >= 1
            elif dx > 0:
                col_ok = xcol < img_w - 1
            else:
                col_ok = None
            ok = _combine(row_ok, col_ok)
            d = dy * img_w + dx
            if d == 0:
                shifted = hf
            else:
                shifted = jnp.where(ok, _roll(hf, -d, 0), 0.0)
            part = jnp.dot(shifted.astype(w_ref.dtype), w_ref[tap],
                           preferred_element_type=jnp.float32)
            acc = part if acc is None else acc + part
            tap += 1
    return acc + bias


def _attention(xa, wqkv_ref, bqkv_ref, wo_ref, bo_ref, *, n_img, S, n_heads, dk_pad,
               approx_recip):
    """AttentionBlock.forward on the flat (n_img*S, C) slab.

    softmax is over torch dim=1 of attn[b, i, j, h] == the QUERY index i (axis 0 of the
    per-image (S_i, S_j) score matrix).  1/sqrt(d_k) is already folded into the q columns
    of wqkv on the host.  Per-head outputs accumulate through row-slabs of W_out (no
    per-head lane concat); per-image head outputs are stacked so the output projection
    runs on the full (n_img*S, d_k) slab.
    """
    mxu = wqkv_ref.dtype
    qkv = jnp.dot(xa.astype(mxu), wqkv_ref[...],
                  preferred_element_type=jnp.float32) + bqkv_ref[...]
    head_out = [[None] * n_heads for _ in range(n_img)]
    for b in range(n_img):                                         # static, small
        r0 = b * S
        for h in range(n_heads):
            c0 = 3 * dk_pad * h                                    # head-major [q|k|v] slabs
            q = qkv[r0:r0 + S, c0:c0 + dk_pad]
            k = qkv[r0:r0 + S, c0 + dk_pad:c0 + 2 * dk_pad]
            v = qkv[r0:r0 + S, c0 + 2 * dk_pad:c0 + 3 * dk_pad]
            scores = lax.dot_general(q.astype(mxu), k.astype(mxu),
                                     (((1,), (1,)), ((), ())),
                                     preferred_element_type=jnp.float32)   # (S_i, S_j)
            scores = scores - jnp.max(scores, axis=0, keepdims=True)       # over queries i
            e = jnp.exp(scores)
            inv = pl.reciprocal(jnp.sum(e, axis=0, keepdims=True), approx=approx_recip)
            probs = (e * inv).astype(mxu)
            head_out[b][h] = jnp.dot(probs, v.astype(mxu),
                                     preferred_element_type=jnp.float32)   # (S, dk_pad)
    acc = None
    for h in range(n_heads):
        ho = (head_out[0][h] if n_img == 1
              else jnp.concatenate([head_out[b][h] for b in range(n_img)], axis=0))
        part = jnp.dot(ho.astype(mxu), wo_ref[h * dk_pad:(h + 1) * dk_pad, :],
                       preferred_element_type=jnp.float32)
        acc = part if acc is None else acc + part
    return acc + bo_ref[...] + xa                                  # output bias + residual


# ---------------------------------------------------------------------------
# Fused DownBlock kernel: one grid step per chunk of Bc images.
# ---------------------------------------------------------------------------
def _down_block_kernel(x_ref, cond_ref,
                       gn1_w_ref, gn1_b_ref, c1w_ref, c1b_ref,
                       gn2_w_ref, gn2_b_ref, c2w_ref, c2b_ref,
                       *rest,
                       n_img, S, img_h, img_w, g1, g2, n_heads, dk_pad,
                       has_attn, identity_shortcut, approx_recip):
    idx = 0
    if not identity_shortcut:
        scw_ref, scb_ref = rest[0], rest[1]
        idx = 2
    if has_attn:
        wqkv_ref, bqkv_ref, wo_ref, bo_ref = rest[idx:idx + 4]
        idx += 4
    o_ref = rest[idx]

    xf = x_ref[...]                                                # (n_img*S, Cp_in) f32

    # --- ResidualBlock ---
    h = _gn_swish(xf, gn1_w_ref[...], gn1_b_ref[...], None,
                  n_img=n_img, S=S, group_size=g1)
    h = _conv3x3(h, c1w_ref, c1b_ref[...], n_img=n_img, S=S, img_h=img_h, img_w=img_w)
    # cond_emb add is folded into the input of the second GroupNorm (identical math).
    h = _gn_swish(h, gn2_w_ref[...], gn2_b_ref[...], cond_ref,
                  n_img=n_img, S=S, group_size=g2)
    h = _conv3x3(h, c2w_ref, c2b_ref[...], n_img=n_img, S=S, img_h=img_h, img_w=img_w)
    if identity_shortcut:
        res = h + xf
    else:                                                          # 1x1 conv shortcut
        res = h + jnp.dot(xf.astype(scw_ref.dtype), scw_ref[...],
                          preferred_element_type=jnp.float32) + scb_ref[...]

    # --- AttentionBlock (or Identity) ---
    if has_attn:
        res = _attention(res, wqkv_ref, bqkv_ref, wo_ref, bo_ref,
                         n_img=n_img, S=S, n_heads=n_heads, dk_pad=dk_pad,
                         approx_recip=approx_recip)
    o_ref[...] = res


# ---------------------------------------------------------------------------
# Host-side weight reshaping / padding and the wrapper.
# ---------------------------------------------------------------------------
def _conv_taps(w):
    """(Cout, Cin, 3, 3) -> (9, Cin, Cout) in the kernel's (dy, dx) tap order."""
    taps = [w[:, :, dy + 1, dx + 1].T for dy in (-1, 0, 1) for dx in (-1, 0, 1)]
    return jnp.stack(taps, axis=0)


def _pad2(a, rows, cols):
    return jnp.pad(a, ((0, rows - a.shape[0]), (0, cols - a.shape[1])))


def _wspec(arr):
    nd = arr.ndim
    return pl.BlockSpec(arr.shape, lambda i, _nd=nd: (0,) * _nd)


def _pick_batch_block(B, S):
    """Largest image chunk per grid step that divides B, keeps >= 2 grid steps when the batch
    allows it (so both v7x TensorCores get work) and keeps the activation slab modest."""
    best = 1
    for bc in range(1, B + 1):
        if B % bc:
            continue
        if B >= 2 and B // bc < 2:
            break
        if bc * S <= 2048:
            best = bc
    return best


def down_block_pallas(x_nchw, cond, params, *, n_groups=32, has_attn=True,
                      n_heads=1, d_k=None, mxu_dtype=jnp.bfloat16, batch_block=None):
    B, Cin, Hh, Ww = x_nchw.shape
    Cout = params["conv1_w"].shape[0]
    S = Hh * Ww
    if d_k is None:
        d_k = Cout                                   # AttentionBlock(out_channels) default
    identity_shortcut = (Cin == Cout)
    assert Cin % n_groups == 0 and Cout % n_groups == 0
    g1, g2 = Cin // n_groups, Cout // n_groups
    assert g1 & (g1 - 1) == 0 and g2 & (g2 - 1) == 0, "lane-butterfly GN needs pow2 group size"
    assert S % 8 == 0, "H*W must be a sublane multiple"

    Cp_in, Cp_out, dk_pad = _round_up(Cin, LANE), _round_up(Cout, LANE), _round_up(d_k, LANE)
    f32 = jnp.float32
    approx_recip = np.dtype(mxu_dtype) != np.dtype(np.float32)

    Bc = _pick_batch_block(B, S) if batch_block is None else batch_block
    assert B % Bc == 0

    # --- activations: NCHW -> flat (B*S, Cp_in), channels zero-padded onto the lane axis ---
    x_bsc = jnp.transpose(x_nchw.reshape(B, Cin, S), (0, 2, 1)).astype(f32)
    x_flat = jnp.pad(x_bsc, ((0, 0), (0, 0), (0, Cp_in - Cin))).reshape(B * S, Cp_in)

    # cond_emb hoisted out of the kernel (tiny (B,Tc)x(Tc,Cout) matmul that fuses with the
    # transpose above instead of being a 1-useful-row MXU push every grid step).
    cond_add = cond.astype(f32) @ params["cond_w"].T.astype(f32) + params["cond_b"].astype(f32)
    cond_add = jnp.pad(cond_add, ((0, 0), (0, Cp_out - Cout))).reshape(B, 1, Cp_out)

    # --- weights (zero-padded to 128-lane multiples; MXU operands pre-cast) ---
    gn1_w = _pad2(params["gn1_w"].reshape(1, Cin).astype(f32), 1, Cp_in)
    gn1_b = _pad2(params["gn1_b"].reshape(1, Cin).astype(f32), 1, Cp_in)
    gn2_w = _pad2(params["gn2_w"].reshape(1, Cout).astype(f32), 1, Cp_out)
    gn2_b = _pad2(params["gn2_b"].reshape(1, Cout).astype(f32), 1, Cp_out)
    c1w = jnp.pad(_conv_taps(params["conv1_w"]).astype(f32),
                  ((0, 0), (0, Cp_in - Cin), (0, Cp_out - Cout))).astype(mxu_dtype)
    c1b = _pad2(params["conv1_b"].reshape(1, Cout).astype(f32), 1, Cp_out)
    c2w = jnp.pad(_conv_taps(params["conv2_w"]).astype(f32),
                  ((0, 0), (0, Cp_out - Cout), (0, Cp_out - Cout))).astype(mxu_dtype)
    c2b = _pad2(params["conv2_b"].reshape(1, Cout).astype(f32), 1, Cp_out)

    inputs = [x_flat, cond_add, gn1_w, gn1_b, c1w, c1b, gn2_w, gn2_b, c2w, c2b]
    in_specs = [pl.BlockSpec((Bc * S, Cp_in), lambda i: (i, 0)),
                pl.BlockSpec((Bc, 1, Cp_out), lambda i: (i, 0, 0))]
    in_specs += [_wspec(a) for a in inputs[2:]]

    if not identity_shortcut:
        scw = _pad2(params["sc_w"][:, :, 0, 0].T.astype(f32), Cp_in, Cp_out).astype(mxu_dtype)
        scb = _pad2(params["sc_b"].reshape(1, Cout).astype(f32), 1, Cp_out)
        inputs += [scw, scb]
        in_specs += [_wspec(scw), _wspec(scb)]

    if has_attn:
        scale = float(d_k) ** -0.5
        wq = params["attn_proj_w"].astype(f32).T     # (Cout, 3*n_heads*d_k), head-major [q|k|v]
        bq = params["attn_proj_b"].astype(f32)
        wqkv = jnp.zeros((Cp_out, n_heads * 3 * dk_pad), f32)
        bqkv = jnp.zeros((1, n_heads * 3 * dk_pad), f32)
        for h in range(n_heads):
            for j in range(3):                       # 0:q 1:k 2:v
                s = scale if j == 0 else 1.0         # fold 1/sqrt(d_k) into q weight + bias
                src = slice(h * 3 * d_k + j * d_k, h * 3 * d_k + (j + 1) * d_k)
                dst = slice(h * 3 * dk_pad + j * dk_pad, h * 3 * dk_pad + j * dk_pad + d_k)
                wqkv = wqkv.at[:Cout, dst].set(wq[:, src] * s)
                bqkv = bqkv.at[:, dst].set(bq[src] * s)
        wo_src = params["attn_out_w"].astype(f32).T  # (n_heads*d_k, Cout)
        wo = jnp.zeros((n_heads * dk_pad, Cp_out), f32)
        for h in range(n_heads):
            wo = wo.at[h * dk_pad:h * dk_pad + d_k, :Cout].set(wo_src[h * d_k:(h + 1) * d_k, :])
        bo = _pad2(params["attn_out_b"].reshape(1, Cout).astype(f32), 1, Cp_out)
        inputs += [wqkv.astype(mxu_dtype), bqkv, wo.astype(mxu_dtype), bo]
        in_specs += [_wspec(a) for a in inputs[-4:]]

    kernel = functools.partial(
        _down_block_kernel, n_img=Bc, S=S, img_h=Hh, img_w=Ww, g1=g1, g2=g2,
        n_heads=n_heads, dk_pad=dk_pad, has_attn=has_attn,
        identity_shortcut=identity_shortcut, approx_recip=approx_recip)

    out_flat = pl.pallas_call(
        kernel,
        out_shape=jax.ShapeDtypeStruct((B * S, Cp_out), f32),
        grid=(B // Bc,),
        in_specs=in_specs,
        out_specs=pl.BlockSpec((Bc * S, Cp_out), lambda i: (i, 0)),
        compiler_params=pltpu.CompilerParams(
            dimension_semantics=("parallel",),
            vmem_limit_bytes=64 * 1024 * 1024),
    )(*inputs)

    # flat padded (B*S, Cp_out) -> NCHW (real channels only)
    out = out_flat.reshape(B, S, Cp_out)[:, :, :Cout]
    return jnp.transpose(out, (0, 2, 1)).reshape(B, Cout, Hh, Ww)


# ---------------------------------------------------------------------------
# Pure-JAX reference mirroring the PyTorch DownBlock.forward exactly.
# ---------------------------------------------------------------------------
def _group_norm_ref(x, gamma, beta, G, eps=1e-5):
    B, C, H, W = x.shape
    xg = x.reshape(B, G, C // G, H, W)
    mean = xg.mean(axis=(2, 3, 4), keepdims=True)
    var = xg.var(axis=(2, 3, 4), keepdims=True)
    xn = ((xg - mean) / jnp.sqrt(var + eps)).reshape(B, C, H, W)
    return xn * gamma[None, :, None, None] + beta[None, :, None, None]


def _conv2d_ref(x, w, b=None, padding=1):
    out = lax.conv_general_dilated(x, w, window_strides=(1, 1),
                                   padding=((padding, padding), (padding, padding)),
                                   dimension_numbers=("NCHW", "OIHW", "NCHW"))
    if b is not None:
        out = out + b[None, :, None, None]
    return out


def down_block_reference(x, cond, params, *, n_groups=32, has_attn=True,
                         n_heads=1, d_k=None):
    swish = lambda t: t * jax.nn.sigmoid(t)
    # ResidualBlock
    h = _conv2d_ref(swish(_group_norm_ref(x, params["gn1_w"], params["gn1_b"], n_groups)),
                    params["conv1_w"], params["conv1_b"])
    h = h + (cond @ params["cond_w"].T + params["cond_b"])[:, :, None, None]
    h = _conv2d_ref(swish(_group_norm_ref(h, params["gn2_w"], params["gn2_b"], n_groups)),
                    params["conv2_w"], params["conv2_b"])
    if x.shape[1] == params["conv1_w"].shape[0]:
        sc = x
    else:
        sc = _conv2d_ref(x, params["sc_w"], params["sc_b"], padding=0)
    h = h + sc
    if not has_attn:
        return h
    # AttentionBlock (its GroupNorm is never used in forward()).
    B, C, H, W = h.shape
    S = H * W
    if d_k is None:
        d_k = C
    xa = jnp.transpose(h.reshape(B, C, S), (0, 2, 1))
    qkv = (xa @ params["attn_proj_w"].T + params["attn_proj_b"]).reshape(B, S, n_heads, 3 * d_k)
    q, k, v = jnp.split(qkv, 3, axis=-1)
    attn = jnp.einsum("bihd,bjhd->bijh", q, k) * (d_k ** -0.5)
    attn = jax.nn.softmax(attn, axis=1)              # dim=1 == query index, as in the module
    res = jnp.einsum("bijh,bjhd->bihd", attn, v).reshape(B, S, n_heads * d_k)
    res = res @ params["attn_out_w"].T + params["attn_out_b"]
    res = res + xa
    return jnp.transpose(res, (0, 2, 1)).reshape(B, C, H, W)


if __name__ == "__main__":
    # DownBlock(in_channels=32, out_channels=64, time_channels=16, has_attn=True) at 8x8.
    # n_groups=32 (GroupNorm default) divides both 32 and 64; Cin != Cout exercises the
    # 1x1 conv shortcut; has_attn=True exercises AttentionBlock(64) (n_heads=1, d_k=64).
    # B=4 -> two images per grid step (fills MXU rows) while keeping a 2-long parallel grid.
    B, Cin, Cout, Hh, Ww, Tc = 4, 32, 64, 8, 8, 16
    n_groups = 32
    f = Cout                                         # n_heads=1, d_k=Cout

    key = jax.random.PRNGKey(0)
    ks = jax.random.split(key, 18)
    x = jax.random.normal(ks[0], (B, Cin, Hh, Ww), dtype=jnp.float32)
    cond = jax.random.normal(ks[1], (B, Tc), dtype=jnp.float32)
    params = {
        # ResidualBlock
        "gn1_w": 1.0 + 0.1 * jax.random.normal(ks[2], (Cin,), jnp.float32),
        "gn1_b": 0.1 * jax.random.normal(ks[3], (Cin,), jnp.float32),
        "conv1_w": 0.1 * jax.random.normal(ks[4], (Cout, Cin, 3, 3), jnp.float32),
        "conv1_b": 0.1 * jax.random.normal(ks[5], (Cout,), jnp.float32),
        "cond_w": 0.1 * jax.random.normal(ks[6], (Cout, Tc), jnp.float32),
        "cond_b": 0.1 * jax.random.normal(ks[7], (Cout,), jnp.float32),
        "gn2_w": 1.0 + 0.1 * jax.random.normal(ks[8], (Cout,), jnp.float32),
        "gn2_b": 0.1 * jax.random.normal(ks[9], (Cout,), jnp.float32),
        "conv2_w": 0.1 * jax.random.normal(ks[10], (Cout, Cout, 3, 3), jnp.float32),
        "conv2_b": 0.1 * jax.random.normal(ks[11], (Cout,), jnp.float32),
        "sc_w": 0.1 * jax.random.normal(ks[12], (Cout, Cin, 1, 1), jnp.float32),
        "sc_b": 0.1 * jax.random.normal(ks[13], (Cout,), jnp.float32),
        # AttentionBlock: projection Linear(Cout, 3*f), output Linear(f, Cout).
        "attn_proj_w": 0.1 * jax.random.normal(ks[14], (3 * f, Cout), jnp.float32),
        "attn_proj_b": 0.1 * jax.random.normal(ks[15], (3 * f,), jnp.float32),
        "attn_out_w": 0.1 * jax.random.normal(ks[16], (Cout, f), jnp.float32),
        "attn_out_b": 0.1 * jax.random.normal(ks[17], (Cout,), jnp.float32),
        # The AttentionBlock's GroupNorm params exist in __init__ but are unused in forward().
    }

    ref = down_block_reference(x, cond, params, n_groups=n_groups, has_attn=True)

    # Performance path: bf16 MXU operands (f32 accumulate).  Tolerance is loose by design —
    # tight correctness is asserted on the f32 path below.
    out_bf16 = jax.block_until_ready(
        down_block_pallas(x, cond, params, n_groups=n_groups, has_attn=True,
                          mxu_dtype=jnp.bfloat16))
    np.testing.assert_allclose(np.asarray(out_bf16), np.asarray(ref), atol=1e-1, rtol=5e-2)

    # Exactness check: identical kernel with f32 MXU operands matches the f32 reference.
    out_f32 = jax.block_until_ready(
        down_block_pallas(x, cond, params, n_groups=n_groups, has_attn=True,
                          mxu_dtype=jnp.float32))
    np.testing.assert_allclose(np.asarray(out_f32), np.asarray(ref), atol=2e-3, rtol=2e-3)

    print("KERNEL_OK")
</pallas_src>

<mosaic_0001>
module attributes {stable_mosaic.version = 11 : i64} {
  func.func @_down_block_kernel(%arg0: i32, %arg1: memref<128x128xf32, #tpu.memory_space<vmem>>, %arg2: memref<2x1x128xf32, #tpu.memory_space<vmem>>, %arg3: memref<1x128xf32, #tpu.memory_space<vmem>>, %arg4: memref<1x128xf32, #tpu.memory_space<vmem>>, %arg5: memref<9x128x128xbf16, #tpu.memory_space<vmem>>, %arg6: memref<1x128xf32, #tpu.memory_space<vmem>>, %arg7: memref<1x128xf32, #tpu.memory_space<vmem>>, %arg8: memref<1x128xf32, #tpu.memory_space<vmem>>, %arg9: memref<9x128x128xbf16, #tpu.memory_space<vmem>>, %arg10: memref<1x128xf32, #tpu.memory_space<vmem>>, %arg11: memref<128x128xbf16, #tpu.memory_space<vmem>>, %arg12: memref<1x128xf32, #tpu.memory_space<vmem>>, %arg13: memref<128x384xbf16, #tpu.memory_space<vmem>>, %arg14: memref<1x384xf32, #tpu.memory_space<vmem>>, %arg15: memref<128x128xbf16, #tpu.memory_space<vmem>>, %arg16: memref<1x128xf32, #tpu.memory_space<vmem>>, %arg17: memref<128x128xf32, #tpu.memory_space<vmem>>) attributes {dimension_semantics = [#tpu.dimension_semantics<parallel>], iteration_bounds = array<i64: 2>, scalar_prefetch = 0 : i64, scratch_operands = 0 : i64, tpu.core_type = #tpu.core_type<tc>, window_params = [{transform_indices = @transform_0, window_bounds = array<i64: 128, 128>}, {transform_indices = @transform_1, window_bounds = array<i64: 2, 1, 128>}, {pipeline_mode = #tpu.pipeline_mode<synchronous>, transform_indices = @transform_2, window_bounds = array<i64: 1, 128>}, {pipeline_mode = #tpu.pipeline_mode<synchronous>, transform_indices = @transform_3, window_bounds = array<i64: 1, 128>}, {pipeline_mode = #tpu.pipeline_mode<synchronous>, transform_indices = @transform_4, window_bounds = array<i64: 9, 128, 128>}, {pipeline_mode = #tpu.pipeline_mode<synchronous>, transform_indices = @transform_5, window_bounds = array<i64: 1, 128>}, {pipeline_mode = #tpu.pipeline_mode<synchronous>, transform_indices = @transform_6, window_bounds = array<i64: 1, 128>}, {pipeline_mode = #tpu.pipeline_mode<synchronous>, transform_indices = @transform_7, window_bounds = array<i64: 1, 128>}, {pipeline_mode = #tpu.pipeline_mode<synchronous>, transform_indices = @transform_8, window_bounds = array<i64: 9, 128, 128>}, {pipeline_mode = #tpu.pipeline_mode<synchronous>, transform_indices = @transform_9, window_bounds = array<i64: 1, 128>}, {pipeline_mode = #tpu.pipeline_mode<synchronous>, transform_indices = @transform_10, window_bounds = array<i64: 128, 128>}, {pipeline_mode = #tpu.pipeline_mode<synchronous>, transform_indices = @transform_11, window_bounds = array<i64: 1, 128>}, {pipeline_mode = #tpu.pipeline_mode<synchronous>, transform_indices = @transform_12, window_bounds = array<i64: 128, 384>}, {pipeline_mode = #tpu.pipeline_mode<synchronous>, transform_indices = @transform_13, window_bounds = array<i64: 1, 384>}, {pipeline_mode = #tpu.pipeline_mode<synchronous>, transform_indices = @transform_14, window_bounds = array<i64: 128, 128>}, {pipeline_mode = #tpu.pipeline_mode<synchronous>, transform_indices = @transform_15, window_bounds = array<i64: 1, 128>}, {transform_indices = @transform_16, window_bounds = array<i64: 128, 128>}]} {
    %c0 = arith.constant 0 : index
    %c0_0 = arith.constant 0 : index
    %0 = vector.load %arg1[%c0, %c0_0] : memref<128x128xf32, #tpu.memory_space<vmem>>, vector<128x128xf32>
    %c0_1 = arith.constant 0 : index
    %c0_2 = arith.constant 0 : index
    %1 = vector.load %arg3[%c0_1, %c0_2] : memref<1x128xf32, #tpu.memory_space<vmem>>, vector<1x128xf32>
    %c0_3 = arith.constant 0 : index
    %c0_4 = arith.constant 0 : index
    %2 = vector.load %arg4[%c0_3, %c0_4] : memref<1x128xf32, #tpu.memory_space<vmem>>, vector<1x128xf32>
    %3 = vector.extract_strided_slice %0 {offsets = [0, 0], sizes = [64, 128], strides = [1, 1]} : vector<128x128xf32> to vector<64x128xf32>
    %cst = arith.constant dense<0.000000e+00> : vector<128xf32>
    %4 = vector.multi_reduction <add>, %3, %cst [0] : vector<64x128xf32> to vector<128xf32>
    %5 = vector.shape_cast %4 : vector<128xf32> to vector<1x128xf32>
    %6 = arith.mulf %3, %3 : vector<64x128xf32>
    %cst_5 = arith.constant dense<0.000000e+00> : vector<128xf32>
    %7 = vector.multi_reduction <add>, %6, %cst_5 [0] : vector<64x128xf32> to vector<128xf32>
    %8 = vector.shape_cast %7 : vector<128xf32> to vector<1x128xf32>
    %cst_6 = arith.constant 1.562500e-02 : f32
    %9 = vector.broadcast %cst_6 : f32 to vector<1x128xf32>
    %10 = arith.mulf %5, %9 : vector<1x128xf32>
    %cst_7 = arith.constant 1.562500e-02 : f32
    %11 = vector.broadcast %cst_7 : f32 to vector<1x128xf32>
    %12 = arith.mulf %8, %11 : vector<1x128xf32>
    %13 = arith.mulf %10, %10 : vector<1x128xf32>
    %14 = arith.subf %12, %13 : vector<1x128xf32>
    %cst_8 = arith.constant 9.99999974E-6 : f32
    %15 = vector.broadcast %cst_8 : f32 to vector<1x128xf32>
    %16 = arith.addf %14, %15 : vector<1x128xf32>
    %17 = math.rsqrt %16 : vector<1x128xf32>
    %18 = arith.mulf %17, %1 : vector<1x128xf32>
    %19 = arith.mulf %10, %18 : vector<1x128xf32>
    %20 = arith.subf %2, %19 : vector<1x128xf32>
    %21 = vector.broadcast %18 : vector<1x128xf32> to vector<64x128xf32>
    %22 = arith.mulf %3, %21 : vector<64x128xf32>
    %23 = vector.broadcast %20 : vector<1x128xf32> to vector<64x128xf32>
    %24 = arith.addf %22, %23 : vector<64x128xf32>
    %cst_9 = arith.constant 0.000000e+00 : f32
    %25 = vector.broadcast %cst_9 : f32 to vector<64x128xf32>
    %26 = arith.subf %25, %24 : vector<64x128xf32>
    %27 = math.exp %26 : vector<64x128xf32>
    %cst_10 = arith.constant 1.000000e+00 : f32
    %28 = vector.broadcast %cst_10 : f32 to vector<64x128xf32>
    %29 = arith.addf %28, %27 : vector<64x128xf32>
    %cst_11 = arith.constant 1.000000e+00 : f32
    %30 = vector.broadcast %cst_11 : f32 to vector<64x128xf32>
    %31 = arith.divf %30, %29 : vector<64x128xf32>
    %32 = arith.mulf %24, %31 : vector<64x128xf32>
    %33 = vector.extract_strided_slice %0 {offsets = [64, 0], sizes = [64, 128], strides = [1, 1]} : vector<128x128xf32> to vector<64x128xf32>
    %cst_12 = arith.constant dense<0.000000e+00> : vector<128xf32>
    %34 = vector.multi_reduction <add>, %33, %cst_12 [0] : vector<64x128xf32> to vector<128xf32>
    %35 = vector.shape_cast %34 : vector<128xf32> to vector<1x128xf32>
    %36 = arith.mulf %33, %33 : vector<64x128xf32>
    %cst_13 = arith.constant dense<0.000000e+00> : vector<128xf32>
    %37 = vector.multi_reduction <add>, %36, %cst_13 [0] : vector<64x128xf32> to vector<128xf32>
    %38 = vector.shape_cast %37 : vector<128xf32> to vector<1x128xf32>
    %cst_14 = arith.constant 1.562500e-02 : f32
    %39 = vector.broadcast %cst_14 : f32 to vector<1x128xf32>
    %40 = arith.mulf %35, %39 : vector<1x128xf32>
    %cst_15 = arith.constant 1.562500e-02 : f32
    %41 = vector.broadcast %cst_15 : f32 to vector<1x128xf32>
    %42 = arith.mulf %38, %41 : vector<1x128xf32>
    %43 = arith.mulf %40, %40 : vector<1x128xf32>
    %44 = arith.subf %42, %43 : vector<1x128xf32>
    %cst_16 = arith.constant 9.99999974E-6 : f32
    %45 = vector.broadcast %cst_16 : f32 to vector<1x128xf32>
    %46 = arith.addf %44, %45 : vector<1x128xf32>
    %47 = math.rsqrt %46 : vector<1x128xf32>
    %48 = arith.mulf %47, %1 : vector<1x128xf32>
    %49 = arith.mulf %40, %48 : vector<1x128xf32>
    %50 = arith.subf %2, %49 : vector<1x128xf32>
    %51 = vector.broadcast %48 : vector<1x128xf32> to vector<64x128xf32>
    %52 = arith.mulf %33, %51 : vector<64x128xf32>
    %53 = vector.broadcast %50 : vector<1x128xf32> to vector<64x128xf32>
    %54 = arith.addf %52, %53 : vector<64x128xf32>
    %cst_17 = arith.constant 0.000000e+00 : f32
    %55 = vector.broadcast %cst_17 : f32 to vector<64x128xf32>
    %56 = arith.subf %55, %54 : vector<64x128xf32>
    %57 = math.exp %56 : vector<64x128xf32>
    %cst_18 = arith.constant 1.000000e+00 : f32
    %58 = vector.broadcast %cst_18 : f32 to vector<64x128xf32>
    %59 = arith.addf %58, %57 : vector<64x128xf32>
    %cst_19 = arith.constant 1.000000e+00 : f32
    %60 = vector.broadcast %cst_19 : f32 to vector<64x128xf32>
    %61 = arith.divf %60, %59 : vector<64x128xf32>
    %62 = arith.mulf %54, %61 : vector<64x128xf32>
    %63 = tpu.concatenate %32, %62 in 0 : vector<64x128xf32>, vector<64x128xf32> -> vector<128x128xf32>
    %c0_20 = arith.constant 0 : index
    %c0_21 = arith.constant 0 : index
    %64 = vector.load %arg6[%c0_20, %c0_21] : memref<1x128xf32, #tpu.memory_space<vmem>>, vector<1x128xf32>
    %65 = tpu.iota {dimensions = array<i32: 0>} : vector<128x1xi32>
    %c63_i32 = arith.constant 63 : i32
    %66 = vector.broadcast %c63_i32 : i32 to vector<128x1xi32>
    %67 = arith.andi %65, %66 : vector<128x1xi32>
    %c7_i32 = arith.constant 7 : i32
    %68 = vector.broadcast %c7_i32 : i32 to vector<128x1xi32>
    %69 = arith.andi %67, %68 : vector<128x1xi32>
    %c8_i32 = arith.constant 8 : i32
    %70 = vector.broadcast %c8_i32 : i32 to vector<128x1xi32>
    %71 = arith.cmpi sge, %67, %70 : vector<128x1xi32>
    %c1_i32 = arith.constant 1 : i32
    %72 = vector.broadcast %c1_i32 : i32 to vector<128x1xi32>
    %73 = arith.cmpi sge, %69, %72 : vector<128x1xi32>
    %74 = arith.andi %71, %73 : vector<128x1xi1>
    %c9_i32 = arith.constant 9 : i32
    %75 = tpu.dynamic_rotate %63 by %c9_i32 dim 0 : vector<128x128xf32>, i32 -> vector<128x128xf32>
    %cst_22 = arith.constant 0.000000e+00 : f32
    %76 = vector.shape_cast %74 : vector<128x1xi1> to vector<128x1xi1>
    %77 = vector.broadcast %76 : vector<128x1xi1> to vector<128x128xi1>
    %78 = vector.broadcast %cst_22 : f32 to vector<128x128xf32>
    %79 = arith.select %77, %75, %78 : vector<128x128xi1>, vector<128x128xf32>
    %80 = arith.truncf %79 : vector<128x128xf32> to vector<128x128xbf16>
    %c0_23 = arith.constant 0 : index
    %c0_24 = arith.constant 0 : index
    %c0_25 = arith.constant 0 : index
    %81 = vector.load %arg5[%c0_23, %c0_24, %c0_25] : memref<9x128x128xbf16, #tpu.memory_space<vmem>>, vector<1x128x128xbf16>
    %82 = vector.shape_cast %81 : vector<1x128x128xbf16> to vector<128x128xbf16>
    %cst_26 = arith.constant dense<0.000000e+00> : vector<128x128xf32>
    %83 = tpu.matmul %80, %82, %cst_26 {dimension_numbers = #tpu.dot_dimension_numbers<[1], [0], [0], [1], [0, 0, 1, 1], [], []>} : vector<128x128xbf16>, vector<128x128xbf16>, vector<128x128xf32> -> vector<128x128xf32>
    %c8_i32_27 = arith.constant 8 : i32
    %84 = tpu.dynamic_rotate %63 by %c8_i32_27 dim 0 : vector<128x128xf32>, i32 -> vector<128x128xf32>
    %cst_28 = arith.constant 0.000000e+00 : f32
    %85 = vector.shape_cast %71 : vector<128x1xi1> to vector<128x1xi1>
    %86 = vector.broadcast %85 : vector<128x1xi1> to vector<128x128xi1>
    %87 = vector.broadcast %cst_28 : f32 to vector<128x128xf32>
    %88 = arith.select %86, %84, %87 : vector<128x128xi1>, vector<128x128xf32>
    %89 = arith.truncf %88 : vector<128x128xf32> to vector<128x128xbf16>
    %c1 = arith.constant 1 : index
    %c0_29 = arith.constant 0 : index
    %c0_30 = arith.constant 0 : index
    %90 = vector.load %arg5[%c1, %c0_29, %c0_30] : memref<9x128x128xbf16, #tpu.memory_space<vmem>>, vector<1x128x128xbf16>
    %91 = vector.shape_cast %90 : vector<1x128x128xbf16> to vector<128x128xbf16>
    %cst_31 = arith.constant dense<0.000000e+00> : vector<128x128xf32>
    %92 = tpu.matmul %89, %91, %cst_31 {dimension_numbers = #tpu.dot_dimension_numbers<[1], [0], [0], [1], [0, 0, 1, 1], [], []>} : vector<128x128xbf16>, vector<128x128xbf16>, vector<128x128xf32> -> vector<128x128xf32>
    %93 = arith.addf %83, %92 : vector<128x128xf32>
    %c7_i32_32 = arith.constant 7 : i32
    %94 = vector.broadcast %c7_i32_32 : i32 to vector<128x1xi32>
    %95 = arith.cmpi slt, %69, %94 : vector<128x1xi32>
    %96 = arith.andi %71, %95 : vector<128x1xi1>
    %c7_i32_33 = arith.constant 7 : i32
    %97 = tpu.dynamic_rotate %63 by %c7_i32_33 dim 0 : vector<128x128xf32>, i32 -> vector<128x128xf32>
    %cst_34 = arith.constant 0.000000e+00 : f32
    %98 = vector.shape_cast %96 : vector<128x1xi1> to vector<128x1xi1>
    %99 = vector.broadcast %98 : vector<128x1xi1> to vector<128x128xi1>
    %100 = vector.broadcast %cst_34 : f32 to vector<128x128xf32>
    %101 = arith.select %99, %97, %100 : vector<128x128xi1>, vector<128x128xf32>
    %102 = arith.truncf %101 : vector<128x128xf32> to vector<128x128xbf16>
    %c2 = arith.constant 2 : index
    %c0_35 = arith.constant 0 : index
    %c0_36 = arith.constant 0 : index
    %103 = vector.load %arg5[%c2, %c0_35, %c0_36] : memref<9x128x128xbf16, #tpu.memory_space<vmem>>, vector<1x128x128xbf16>
    %104 = vector.shape_cast %103 : vector<1x128x128xbf16> to vector<128x128xbf16>
    %cst_37 = arith.constant dense<0.000000e+00> : vector<128x128xf32>
    %105 = tpu.matmul %102, %104, %cst_37 {dimension_numbers = #tpu.dot_dimension_numbers<[1], [0], [0], [1], [0, 0, 1, 1], [], []>} : vector<128x128xbf16>, vector<128x128xbf16>, vector<128x128xf32> -> vector<128x128xf32>
    %106 = arith.addf %93, %105 : vector<128x128xf32>
    %c1_i32_38 = arith.constant 1 : i32
    %107 = vector.broadcast %c1_i32_38 : i32 to vector<128x1xi32>
    %108 = arith.cmpi sge, %69, %107 : vector<128x1xi32>
    %c1_i32_39 = arith.constant 1 : i32
    %109 = tpu.dynamic_rotate %63 by %c1_i32_39 dim 0 : vector<128x128xf32>, i32 -> vector<128x128xf32>
    %cst_40 = arith.constant 0.000000e+00 : f32
    %110 = vector.shape_cast %108 : vector<128x1xi1> to vector<128x1xi1>
    %111 = vector.broadcast %110 : vector<128x1xi1> to vector<128x128xi1>
    %112 = vector.broadcast %cst_40 : f32 to vector<128x128xf32>
    %113 = arith.select %111, %109, %112 : vector<128x128xi1>, vector<128x128xf32>
    %114 = arith.truncf %113 : vector<128x128xf32> to vector<128x128xbf16>
    %c3 = arith.constant 3 : index
    %c0_41 = arith.constant 0 : index
    %c0_42 = arith.constant 0 : index
    %115 = vector.load %arg5[%c3, %c0_41, %c0_42] : memref<9x128x128xbf16, #tpu.memory_space<vmem>>, vector<1x128x128xbf16>
    %116 = vector.shape_cast %115 : vector<1x128x128xbf16> to vector<128x128xbf16>
    %cst_43 = arith.constant dense<0.000000e+00> : vector<128x128xf32>
    %117 = tpu.matmul %114, %116, %cst_43 {dimension_numbers = #tpu.dot_dimension_numbers<[1], [0], [0], [1], [0, 0, 1, 1], [], []>} : vector<128x128xbf16>, vector<128x128xbf16>, vector<128x128xf32> -> vector<128x128xf32>
    %118 = arith.addf %106, %117 : vector<128x128xf32>
    %119 = arith.truncf %63 : vector<128x128xf32> to vector<128x128xbf16>
    %c4 = arith.constant 4 : index
    %c0_44 = arith.constant 0 : index
    %c0_45 = arith.constant 0 : index
    %120 = vector.load %arg5[%c4, %c0_44, %c0_45] : memref<9x128x128xbf16, #tpu.memory_space<vmem>>, vector<1x128x128xbf16>
    %121 = vector.shape_cast %120 : vector<1x128x128xbf16> to vector<128x128xbf16>
    %cst_46 = arith.constant dense<0.000000e+00> : vector<128x128xf32>
    %122 = tpu.matmul %119, %121, %cst_46 {dimension_numbers = #tpu.dot_dimension_numbers<[1], [0], [0], [1], [0, 0, 1, 1], [], []>} : vector<128x128xbf16>, vector<128x128xbf16>, vector<128x128xf32> -> vector<128x128xf32>
    %123 = arith.addf %118, %122 : vector<128x128xf32>
    %c7_i32_47 = arith.constant 7 : i32
    %124 = vector.broadcast %c7_i32_47 : i32 to vector<128x1xi32>
    %125 = arith.cmpi slt, %69, %124 : vector<128x1xi32>
    %c127_i32 = arith.constant 127 : i32
    %126 = tpu.dynamic_rotate %63 by %c127_i32 dim 0 : vector<128x128xf32>, i32 -> vector<128x128xf32>
    %cst_48 = arith.constant 0.000000e+00 : f32
    %127 = vector.shape_cast %125 : vector<128x1xi1> to vector<128x1xi1>
    %128 = vector.broadcast %127 : vector<128x1xi1> to vector<128x128xi1>
    %129 = vector.broadcast %cst_48 : f32 to vector<128x128xf32>
    %130 = arith.select %128, %126, %129 : vector<128x128xi1>, vector<128x128xf32>
    %131 = arith.truncf %130 : vector<128x128xf32> to vector<128x128xbf16>
    %c5 = arith.constant 5 : index
    %c0_49 = arith.constant 0 : index
    %c0_50 = arith.constant 0 : index
    %132 = vector.load %arg5[%c5, %c0_49, %c0_50] : memref<9x128x128xbf16, #tpu.memory_space<vmem>>, vector<1x128x128xbf16>
    %133 = vector.shape_cast %132 : vector<1x128x128xbf16> to vector<128x128xbf16>
    %cst_51 = arith.constant dense<0.000000e+00> : vector<128x128xf32>
    %134 = tpu.matmul %131, %133, %cst_51 {dimension_numbers = #tpu.dot_dimension_numbers<[1], [0], [0], [1], [0, 0, 1, 1], [], []>} : vector<128x128xbf16>, vector<128x128xbf16>, vector<128x128xf32> -> vector<128x128xf32>
    %135 = arith.addf %123, %134 : vector<128x128xf32>
    %c56_i32 = arith.constant 56 : i32
    %136 = vector.broadcast %c56_i32 : i32 to vector<128x1xi32>
    %137 = arith.cmpi slt, %67, %136 : vector<128x1xi32>
    %c1_i32_52 = arith.constant 1 : i32
    %138 = vector.broadcast %c1_i32_52 : i32 to vector<128x1xi32>
    %139 = arith.cmpi sge, %69, %138 : vector<128x1xi32>
    %140 = arith.andi %137, %139 : vector<128x1xi1>
    %c121_i32 = arith.constant 121 : i32
    %141 = tpu.dynamic_rotate %63 by %c121_i32 dim 0 : vector<128x128xf32>, i32 -> vector<128x128xf32>
    %cst_53 = arith.constant 0.000000e+00 : f32
    %142 = vector.shape_cast %140 : vector<128x1xi1> to vector<128x1xi1>
    %143 = vector.broadcast %142 : vector<128x1xi1> to vector<128x128xi1>
    %144 = vector.broadcast %cst_53 : f32 to vector<128x128xf32>
    %145 = arith.select %143, %141, %144 : vector<128x128xi1>, vector<128x128xf32>
    %146 = arith.truncf %145 : vector<128x128xf32> to vector<128x128xbf16>
    %c6 = arith.constant 6 : index
    %c0_54 = arith.constant 0 : index
    %c0_55 = arith.constant 0 : index
    %147 = vector.load %arg5[%c6, %c0_54, %c0_55] : memref<9x128x128xbf16, #tpu.memory_space<vmem>>, vector<1x128x128xbf16>
    %148 = vector.shape_cast %147 : vector<1x128x128xbf16> to vector<128x128xbf16>
    %cst_56 = arith.constant dense<0.000000e+00> : vector<128x128xf32>
    %149 = tpu.matmul %146, %148, %cst_56 {dimension_numbers = #tpu.dot_dimension_numbers<[1], [0], [0], [1], [0, 0, 1, 1], [], []>} : vector<128x128xbf16>, vector<128x128xbf16>, vector<128x128xf32> -> vector<128x128xf32>
    %150 = arith.addf %135, %149 : vector<128x128xf32>
    %c120_i32 = arith.constant 120 : i32
    %151 = tpu.dynamic_rotate %63 by %c120_i32 dim 0 : vector<128x128xf32>, i32 -> vector<128x128xf32>
    %cst_57 = arith.constant 0.000000e+00 : f32
    %152 = vector.shape_cast %137 : vector<128x1xi1> to vector<128x1xi1>
    %153 = vector.broadcast %152 : vector<128x1xi1> to vector<128x128xi1>
    %154 = vector.broadcast %cst_57 : f32 to vector<128x128xf32>
    %155 = arith.select %153, %151, %154 : vector<128x128xi1>, vector<128x128xf32>
    %156 = arith.truncf %155 : vector<128x128xf32> to vector<128x128xbf16>
    %c7 = arith.constant 7 : index
    %c0_58 = arith.constant 0 : index
    %c0_59 = arith.constant 0 : index
    %157 = vector.load %arg5[%c7, %c0_58, %c0_59] : memref<9x128x128xbf16, #tpu.memory_space<vmem>>, vector<1x128x128xbf16>
    %158 = vector.shape_cast %157 : vector<1x128x128xbf16> to vector<128x128xbf16>
    %cst_60 = arith.constant dense<0.000000e+00> : vector<128x128xf32>
    %159 = tpu.matmul %156, %158, %cst_60 {dimension_numbers = #tpu.dot_dimension_numbers<[1], [0], [0], [1], [0, 0, 1, 1], [], []>} : vector<128x128xbf16>, vector<128x128xbf16>, vector<128x128xf32> -> vector<128x128xf32>
    %160 = arith.addf %150, %159 : vector<128x128xf32>
    %c7_i32_61 = arith.constant 7 : i32
    %161 = vector.broadcast %c7_i32_61 : i32 to vector<128x1xi32>
    %162 = arith.cmpi slt, %69, %161 : vector<128x1xi32>
    %163 = arith.andi %137, %162 : vector<128x1xi1>
    %c119_i32 = arith.constant 119 : i32
    %164 = tpu.dynamic_rotate %63 by %c119_i32 dim 0 : vector<128x128xf32>, i32 -> vector<128x128xf32>
    %cst_62 = arith.constant 0.000000e+00 : f32
    %165 = vector.shape_cast %163 : vector<128x1xi1> to vector<128x1xi1>
    %166 = vector.broadcast %165 : vector<128x1xi1> to vector<128x128xi1>
    %167 = vector.broadcast %cst_62 : f32 to vector<128x128xf32>
    %168 = arith.select %166, %164, %167 : vector<128x128xi1>, vector<128x128xf32>
    %169 = arith.truncf %168 : vector<128x128xf32> to vector<128x128xbf16>
    %c8 = arith.constant 8 : index
    %c0_63 = arith.constant 0 : index
    %c0_64 = arith.constant 0 : index
    %170 = vector.load %arg5[%c8, %c0_63, %c0_64] : memref<9x128x128xbf16, #tpu.memory_space<vmem>>, vector<1x128x128xbf16>
    %171 = vector.shape_cast %170 : vector<1x128x128xbf16> to vector<128x128xbf16>
    %cst_65 = arith.constant dense<0.000000e+00> : vector<128x128xf32>
    %172 = tpu.matmul %169, %171, %cst_65 {dimension_numbers = #tpu.dot_dimension_numbers<[1], [0], [0], [1], [0, 0, 1, 1], [], []>} : vector<128x128xbf16>, vector<128x128xbf16>, vector<128x128xf32> -> vector<128x128xf32>
    %173 = arith.addf %160, %172 : vector<128x128xf32>
    %174 = vector.broadcast %64 : vector<1x128xf32> to vector<128x128xf32>
    %175 = arith.addf %173, %174 : vector<128x128xf32>
    %c0_66 = arith.constant 0 : index
    %c0_67 = arith.constant 0 : index
    %176 = vector.load %arg7[%c0_66, %c0_67] : memref<1x128xf32, #tpu.memory_space<vmem>>, vector<1x128xf32>
    %c0_68 = arith.constant 0 : index
    %c0_69 = arith.constant 0 : index
    %177 = vector.load %arg8[%c0_68, %c0_69] : memref<1x128xf32, #tpu.memory_space<vmem>>, vector<1x128xf32>
    %178 = vector.extract_strided_slice %175 {offsets = [0, 0], sizes = [64, 128], strides = [1, 1]} : vector<128x128xf32> to vector<64x128xf32>
    %c0_70 = arith.constant 0 : index
    %c0_71 = arith.constant 0 : index
    %c0_72 = arith.constant 0 : index
    %179 = vector.load %arg2[%c0_70, %c0_71, %c0_72] : memref<2x1x128xf32, #tpu.memory_space<vmem>>, vector<1x1x128xf32>
    %180 = vector.shape_cast %179 : vector<1x1x128xf32> to vector<1x128xf32>
    %181 = vector.broadcast %180 : vector<1x128xf32> to vector<64x128xf32>
    %182 = arith.addf %178, %181 : vector<64x128xf32>
    %cst_73 = arith.constant dense<0.000000e+00> : vector<128xf32>
    %183 = vector.multi_reduction <add>, %182, %cst_73 [0] : vector<64x128xf32> to vector<128xf32>
    %184 = vector.shape_cast %183 : vector<128xf32> to vector<1x128xf32>
    %185 = tpu.iota {dimensions = array<i32: 1>} : vector<1x128xi32>
    %c127_i32_74 = arith.constant 127 : i32
    %186 = tpu.dynamic_rotate %184 by %c127_i32_74 dim 1 : vector<1x128xf32>, i32 -> vector<1x128xf32>
    %c1_i32_75 = arith.constant 1 : i32
    %187 = tpu.dynamic_rotate %184 by %c1_i32_75 dim 1 : vector<1x128xf32>, i32 -> vector<1x128xf32>
    %c1_i32_76 = arith.constant 1 : i32
    %188 = vector.broadcast %c1_i32_76 : i32 to vector<1x128xi32>
    %189 = arith.andi %185, %188 : vector<1x128xi32>
    %c0_i32 = arith.constant 0 : i32
    %190 = vector.broadcast %c0_i32 : i32 to vector<1x128xi32>
    %191 = arith.cmpi eq, %189, %190 : vector<1x128xi32>
    %192 = arith.select %191, %186, %187 : vector<1x128xi1>, vector<1x128xf32>
    %193 = arith.addf %184, %192 : vector<1x128xf32>
    %194 = arith.mulf %182, %182 : vector<64x128xf32>
    %cst_77 = arith.constant dense<0.000000e+00> : vector<128xf32>
    %195 = vector.multi_reduction <add>, %194, %cst_77 [0] : vector<64x128xf32> to vector<128xf32>
    %196 = vector.shape_cast %195 : vector<128xf32> to vector<1x128xf32>
    %197 = tpu.iota {dimensions = array<i32: 1>} : vector<1x128xi32>
    %c127_i32_78 = arith.constant 127 : i32
    %198 = tpu.dynamic_rotate %196 by %c127_i32_78 dim 1 : vector<1x128xf32>, i32 -> vector<1x128xf32>
    %c1_i32_79 = arith.constant 1 : i32
    %199 = tpu.dynamic_rotate %196 by %c1_i32_79 dim 1 : vector<1x128xf32>, i32 -> vector<1x128xf32>
    %c1_i32_80 = arith.constant 1 : i32
    %200 = vector.broadcast %c1_i32_80 : i32 to vector<1x128xi32>
    %201 = arith.andi %197, %200 : vector<1x128xi32>
    %c0_i32_81 = arith.constant 0 : i32
    %202 = vector.broadcast %c0_i32_81 : i32 to vector<1x128xi32>
    %203 = arith.cmpi eq, %201, %202 : vector<1x128xi32>
    %204 = arith.select %203, %198, %199 : vector<1x128xi1>, vector<1x128xf32>
    %205 = arith.addf %196, %204 : vector<1x128xf32>
    %cst_82 = arith.constant 7.812500e-03 : f32
    %206 = vector.broadcast %cst_82 : f32 to vector<1x128xf32>
    %207 = arith.mulf %193, %206 : vector<1x128xf32>
    %cst_83 = arith.constant 7.812500e-03 : f32
    %208 = vector.broadcast %cst_83 : f32 to vector<1x128xf32>
    %209 = arith.mulf %205, %208 : vector<1x128xf32>
    %210 = arith.mulf %207, %207 : vector<1x128xf32>
    %211 = arith.subf %209, %210 : vector<1x128xf32>
    %cst_84 = arith.constant 9.99999974E-6 : f32
    %212 = vector.broadcast %cst_84 : f32 to vector<1x128xf32>
    %213 = arith.addf %211, %212 : vector<1x128xf32>
    %214 = math.rsqrt %213 : vector<1x128xf32>
    %215 = arith.mulf %214, %176 : vector<1x128xf32>
    %216 = arith.mulf %207, %215 : vector<1x128xf32>
    %217 = arith.subf %177, %216 : vector<1x128xf32>
    %218 = vector.broadcast %215 : vector<1x128xf32> to vector<64x128xf32>
    %219 = arith.mulf %182, %218 : vector<64x128xf32>
    %220 = vector.broadcast %217 : vector<1x128xf32> to vector<64x128xf32>
    %221 = arith.addf %219, %220 : vector<64x128xf32>
    %cst_85 = arith.constant 0.000000e+00 : f32
    %222 = vector.broadcast %cst_85 : f32 to vector<64x128xf32>
    %223 = arith.subf %222, %221 : vector<64x128xf32>
    %224 = math.exp %223 : vector<64x128xf32>
    %cst_86 = arith.constant 1.000000e+00 : f32
    %225 = vector.broadcast %cst_86 : f32 to vector<64x128xf32>
    %226 = arith.addf %225, %224 : vector<64x128xf32>
    %cst_87 = arith.constant 1.000000e+00 : f32
    %227 = vector.broadcast %cst_87 : f32 to vector<64x128xf32>
    %228 = arith.divf %227, %226 : vector<64x128xf32>
    %229 = arith.mulf %221, %228 : vector<64x128xf32>
    %230 = vector.extract_strided_slice %175 {offsets = [64, 0], sizes = [64, 128], strides = [1, 1]} : vector<128x128xf32> to vector<64x128xf32>
    %c1_88 = arith.constant 1 : index
    %c0_89 = arith.constant 0 : index
    %c0_90 = arith.constant 0 : index
    %231 = vector.load %arg2[%c1_88, %c0_89, %c0_90] : memref<2x1x128xf32, #tpu.memory_space<vmem>>, vector<1x1x128xf32>
    %232 = vector.shape_cast %231 : vector<1x1x128xf32> to vector<1x128xf32>
    %233 = vector.broadcast %232 : vector<1x128xf32> to vector<64x128xf32>
    %234 = arith.addf %230, %233 : vector<64x128xf32>
    %cst_91 = arith.constant dense<0.000000e+00> : vector<128xf32>
    %235 = vector.multi_reduction <add>, %234, %cst_91 [0] : vector<64x128xf32> to vector<128xf32>
    %236 = vector.shape_cast %235 : vector<128xf32> to vector<1x128xf32>
    %237 = tpu.iota {dimensions = array<i32: 1>} : vector<1x128xi32>
    %c127_i32_92 = arith.constant 127 : i32
    %238 = tpu.dynamic_rotate %236 by %c127_i32_92 dim 1 : vector<1x128xf32>, i32 -> vector<1x128xf32>
    %c1_i32_93 = arith.constant 1 : i32
    %239 = tpu.dynamic_rotate %236 by %c1_i32_93 dim 1 : vector<1x128xf32>, i32 -> vector<1x128xf32>
    %c1_i32_94 = arith.constant 1 : i32
    %240 = vector.broadcast %c1_i32_94 : i32 to vector<1x128xi32>
    %241 = arith.andi %237, %240 : vector<1x128xi32>
    %c0_i32_95 = arith.constant 0 : i32
    %242 = vector.broadcast %c0_i32_95 : i32 to vector<1x128xi32>
    %243 = arith.cmpi eq, %241, %242 : vector<1x128xi32>
    %244 = arith.select %243, %238, %239 : vector<1x128xi1>, vector<1x128xf32>
    %245 = arith.addf %236, %244 : vector<1x128xf32>
    %246 = arith.mulf %234, %234 : vector<64x128xf32>
    %cst_96 = arith.constant dense<0.000000e+00> : vector<128xf32>
    %247 = vector.multi_reduction <add>, %246, %cst_96 [0] : vector<64x128xf32> to vector<128xf32>
    %248 = vector.shape_cast %247 : vector<128xf32> to vector<1x128xf32>
    %249 = tpu.iota {dimensions = array<i32: 1>} : vector<1x128xi32>
    %c127_i32_97 = arith.constant 127 : i32
    %250 = tpu.dynamic_rotate %248 by %c127_i32_97 dim 1 : vector<1x128xf32>, i32 -> vector<1x128xf32>
    %c1_i32_98 = arith.constant 1 : i32
    %251 = tpu.dynamic_rotate %248 by %c1_i32_98 dim 1 : vector<1x128xf32>, i32 -> vector<1x128xf32>
    %c1_i32_99 = arith.constant 1 : i32
    %252 = vector.broadcast %c1_i32_99 : i32 to vector<1x128xi32>
    %253 = arith.andi %249, %252 : vector<1x128xi32>
    %c0_i32_100 = arith.constant 0 : i32
    %254 = vector.broadcast %c0_i32_100 : i32 to vector<1x128xi32>
    %255 = arith.cmpi eq, %253, %254 : vector<1x128xi32>
    %256 = arith.select %255, %250, %251 : vector<1x128xi1>, vector<1x128xf32>
    %257 = arith.addf %248, %256 : vector<1x128xf32>
    %cst_101 = arith.constant 7.812500e-03 : f32
    %258 = vector.broadcast %cst_101 : f32 to vector<1x128xf32>
    %259 = arith.mulf %245, %258 : vector<1x128xf32>
    %cst_102 = arith.constant 7.812500e-03 : f32
    %260 = vector.broadcast %cst_102 : f32 to vector<1x128xf32>
    %261 = arith.mulf %257, %260 : vector<1x128xf32>
    %262 = arith.mulf %259, %259 : vector<1x128xf32>
    %263 = arith.subf %261, %262 : vector<1x128xf32>
    %cst_103 = arith.constant 9.99999974E-6 : f32
    %264 = vector.broadcast %cst_103 : f32 to vector<1x128xf32>
    %265 = arith.addf %263, %264 : vector<1x128xf32>
    %266 = math.rsqrt %265 : vector<1x128xf32>
    %267 = arith.mulf %266, %176 : vector<1x128xf32>
    %268 = arith.mulf %259, %267 : vector<1x128xf32>
    %269 = arith.subf %177, %268 : vector<1x128xf32>
    %270 = vector.broadcast %267 : vector<1x128xf32> to vector<64x128xf32>
    %271 = arith.mulf %234, %270 : vector<64x128xf32>
    %272 = vector.broadcast %269 : vector<1x128xf32> to vector<64x128xf32>
    %273 = arith.addf %271, %272 : vector<64x128xf32>
    %cst_104 = arith.constant 0.000000e+00 : f32
    %274 = vector.broadcast %cst_104 : f32 to vector<64x128xf32>
    %275 = arith.subf %274, %273 : vector<64x128xf32>
    %276 = math.exp %275 : vector<64x128xf32>
    %cst_105 = arith.constant 1.000000e+00 : f32
    %277 = vector.broadcast %cst_105 : f32 to vector<64x128xf32>
    %278 = arith.addf %277, %276 : vector<64x128xf32>
    %cst_106 = arith.constant 1.000000e+00 : f32
    %279 = vector.broadcast %cst_106 : f32 to vector<64x128xf32>
    %280 = arith.divf %279, %278 : vector<64x128xf32>
    %281 = arith.mulf %273, %280 : vector<64x128xf32>
    %282 = tpu.concatenate %229, %281 in 0 : vector<64x128xf32>, vector<64x128xf32> -> vector<128x128xf32>
    %c0_107 = arith.constant 0 : index
    %c0_108 = arith.constant 0 : index
    %283 = vector.load %arg10[%c0_107, %c0_108] : memref<1x128xf32, #tpu.memory_space<vmem>>, vector<1x128xf32>
    %284 = tpu.iota {dimensions = array<i32: 0>} : vector<128x1xi32>
    %c63_i32_109 = arith.constant 63 : i32
    %285 = vector.broadcast %c63_i32_109 : i32 to vector<128x1xi32>
    %286 = arith.andi %284, %285 : vector<128x1xi32>
    %c7_i32_110 = arith.constant 7 : i32
    %287 = vector.broadcast %c7_i32_110 : i32 to vector<128x1xi32>
    %288 = arith.andi %286, %287 : vector<128x1xi32>
    %c8_i32_111 = arith.constant 8 : i32
    %289 = vector.broadcast %c8_i32_111 : i32 to vector<128x1xi32>
    %290 = arith.cmpi sge, %286, %289 : vector<128x1xi32>
    %c1_i32_112 = arith.constant 1 : i32
    %291 = vector.broadcast %c1_i32_112 : i32 to vector<128x1xi32>
    %292 = arith.cmpi sge, %288, %291 : vector<128x1xi32>
    %293 = arith.andi %290, %292 : vector<128x1xi1>
    %c9_i32_113 = arith.constant 9 : i32
    %294 = tpu.dynamic_rotate %282 by %c9_i32_113 dim 0 : vector<128x128xf32>, i32 -> vector<128x128xf32>
    %cst_114 = arith.constant 0.000000e+00 : f32
    %295 = vector.shape_cast %293 : vector<128x1xi1> to vector<128x1xi1>
    %296 = vector.broadcast %295 : vector<128x1xi1> to vector<128x128xi1>
    %297 = vector.broadcast %cst_114 : f32 to vector<128x128xf32>
    %298 = arith.select %296, %294, %297 : vector<128x128xi1>, vector<128x128xf32>
    %299 = arith.truncf %298 : vector<128x128xf32> to vector<128x128xbf16>
    %c0_115 = arith.constant 0 : index
    %c0_116 = arith.constant 0 : index
    %c0_117 = arith.constant 0 : index
    %300 = vector.load %arg9[%c0_115, %c0_116, %c0_117] : memref<9x128x128xbf16, #tpu.memory_space<vmem>>, vector<1x128x128xbf16>
    %301 = vector.shape_cast %300 : vector<1x128x128xbf16> to vector<128x128xbf16>
    %cst_118 = arith.constant dense<0.000000e+00> : vector<128x128xf32>
    %302 = tpu.matmul %299, %301, %cst_118 {dimension_numbers = #tpu.dot_dimension_numbers<[1], [0], [0], [1], [0, 0, 1, 1], [], []>} : vector<128x128xbf16>, vector<128x128xbf16>, vector<128x128xf32> -> vector<128x128xf32>
    %c8_i32_119 = arith.constant 8 : i32
    %303 = tpu.dynamic_rotate %282 by %c8_i32_119 dim 0 : vector<128x128xf32>, i32 -> vector<128x128xf32>
    %cst_120 = arith.constant 0.000000e+00 : f32
    %304 = vector.shape_cast %290 : vector<128x1xi1> to vector<128x1xi1>
    %305 = vector.broadcast %304 : vector<128x1xi1> to vector<128x128xi1>
    %306 = vector.broadcast %cst_120 : f32 to vector<128x128xf32>
    %307 = arith.select %305, %303, %306 : vector<128x128xi1>, vector<128x128xf32>
    %308 = arith.truncf %307 : vector<128x128xf32> to vector<128x128xbf16>
    %c1_121 = arith.constant 1 : index
    %c0_122 = arith.constant 0 : index
    %c0_123 = arith.constant 0 : index
    %309 = vector.load %arg9[%c1_121, %c0_122, %c0_123] : memref<9x128x128xbf16, #tpu.memory_space<vmem>>, vector<1x128x128xbf16>
    %310 = vector.shape_cast %309 : vector<1x128x128xbf16> to vector<128x128xbf16>
    %cst_124 = arith.constant dense<0.000000e+00> : vector<128x128xf32>
    %311 = tpu.matmul %308, %310, %cst_124 {dimension_numbers = #tpu.dot_dimension_numbers<[1], [0], [0], [1], [0, 0, 1, 1], [], []>} : vector<128x128xbf16>, vector<128x128xbf16>, vector<128x128xf32> -> vector<128x128xf32>
    %312 = arith.addf %302, %311 : vector<128x128xf32>
    %c7_i32_125 = arith.constant 7 : i32
    %313 = vector.broadcast %c7_i32_125 : i32 to vector<128x1xi32>
    %314 = arith.cmpi slt, %288, %313 : vector<128x1xi32>
    %315 = arith.andi %290, %314 : vector<128x1xi1>
    %c7_i32_126 = arith.constant 7 : i32
    %316 = tpu.dynamic_rotate %282 by %c7_i32_126 dim 0 : vector<128x128xf32>, i32 -> vector<128x128xf32>
    %cst_127 = arith.constant 0.000000e+00 : f32
    %317 = vector.shape_cast %315 : vector<128x1xi1> to vector<128x1xi1>
    %318 = vector.broadcast %317 : vector<128x1xi1> to vector<128x128xi1>
    %319 = vector.broadcast %cst_127 : f32 to vector<128x128xf32>
    %320 = arith.select %318, %316, %319 : vector<128x128xi1>, vector<128x128xf32>
    %321 = arith.truncf %320 : vector<128x128xf32> to vector<128x128xbf16>
    %c2_128 = arith.constant 2 : index
    %c0_129 = arith.constant 0 : index
    %c0_130 = arith.constant 0 : index
    %322 = vector.load %arg9[%c2_128, %c0_129, %c0_130] : memref<9x128x128xbf16, #tpu.memory_space<vmem>>, vector<1x128x128xbf16>
    %323 = vector.shape_cast %322 : vector<1x128x128xbf16> to vector<128x128xbf16>
    %cst_131 = arith.constant dense<0.000000e+00> : vector<128x128xf32>
    %324 = tpu.matmul %321, %323, %cst_131 {dimension_numbers = #tpu.dot_dimension_numbers<[1], [0], [0], [1], [0, 0, 1, 1], [], []>} : vector<128x128xbf16>, vector<128x128xbf16>, vector<128x128xf32> -> vector<128x128xf32>
    %325 = arith.addf %312, %324 : vector<128x128xf32>
    %c1_i32_132 = arith.constant 1 : i32
    %326 = vector.broadcast %c1_i32_132 : i32 to vector<128x1xi32>
    %327 = arith.cmpi sge, %288, %326 : vector<128x1xi32>
    %c1_i32_133 = arith.constant 1 : i32
    %328 = tpu.dynamic_rotate %282 by %c1_i32_133 dim 0 : vector<128x128xf32>, i32 -> vector<128x128xf32>
    %cst_134 = arith.constant 0.000000e+00 : f32
    %329 = vector.shape_cast %327 : vector<128x1xi1> to vector<128x1xi1>
    %330 = vector.broadcast %329 : vector<128x1xi1> to vector<128x128xi1>
    %331 = vector.broadcast %cst_134 : f32 to vector<128x128xf32>
    %332 = arith.select %330, %328, %331 : vector<128x128xi1>, vector<128x128xf32>
    %333 = arith.truncf %332 : vector<128x128xf32> to vector<128x128xbf16>
    %c3_135 = arith.constant 3 : index
    %c0_136 = arith.constant 0 : index
    %c0_137 = arith.constant 0 : index
    %334 = vector.load %arg9[%c3_135, %c0_136, %c0_137] : memref<9x128x128xbf16, #tpu.memory_space<vmem>>, vector<1x128x128xbf16>
    %335 = vector.shape_cast %334 : vector<1x128x128xbf16> to vector<128x128xbf16>
    %cst_138 = arith.constant dense<0.000000e+00> : vector<128x128xf32>
    %336 = tpu.matmul %333, %335, %cst_138 {dimension_numbers = #tpu.dot_dimension_numbers<[1], [0], [0], [1], [0, 0, 1, 1], [], []>} : vector<128x128xbf16>, vector<128x128xbf16>, vector<128x128xf32> -> vector<128x128xf32>
    %337 = arith.addf %325, %336 : vector<128x128xf32>
    %338 = arith.truncf %282 : vector<128x128xf32> to vector<128x128xbf16>
    %c4_139 = arith.constant 4 : index
    %c0_140 = arith.constant 0 : index
    %c0_141 = arith.constant 0 : index
    %339 = vector.load %arg9[%c4_139, %c0_140, %c0_141] : memref<9x128x128xbf16, #tpu.memory_space<vmem>>, vector<1x128x128xbf16>
    %340 = vector.shape_cast %339 : vector<1x128x128xbf16> to vector<128x128xbf16>
    %cst_142 = arith.constant dense<0.000000e+00> : vector<128x128xf32>
    %341 = tpu.matmul %338, %340, %cst_142 {dimension_numbers = #tpu.dot_dimension_numbers<[1], [0], [0], [1], [0, 0, 1, 1], [], []>} : vector<128x128xbf16>, vector<128x128xbf16>, vector<128x128xf32> -> vector<128x128xf32>
    %342 = arith.addf %337, %341 : vector<128x128xf32>
    %c7_i32_143 = arith.constant 7 : i32
    %343 = vector.broadcast %c7_i32_143 : i32 to vector<128x1xi32>
    %344 = arith.cmpi slt, %288, %343 : vector<128x1xi32>
    %c127_i32_144 = arith.constant 127 : i32
    %345 = tpu.dynamic_rotate %282 by %c127_i32_144 dim 0 : vector<128x128xf32>, i32 -> vector<128x128xf32>
    %cst_145 = arith.constant 0.000000e+00 : f32
    %346 = vector.shape_cast %344 : vector<128x1xi1> to vector<128x1xi1>
    %347 = vector.broadcast %346 : vector<128x1xi1> to vector<128x128xi1>
    %348 = vector.broadcast %cst_145 : f32 to vector<128x128xf32>
    %349 = arith.select %347, %345, %348 : vector<128x128xi1>, vector<128x128xf32>
    %350 = arith.truncf %349 : vector<128x128xf32> to vector<128x128xbf16>
    %c5_146 = arith.constant 5 : index
    %c0_147 = arith.constant 0 : index
    %c0_148 = arith.constant 0 : index
    %351 = vector.load %arg9[%c5_146, %c0_147, %c0_148] : memref<9x128x128xbf16, #tpu.memory_space<vmem>>, vector<1x128x128xbf16>
    %352 = vector.shape_cast %351 : vector<1x128x128xbf16> to vector<128x128xbf16>
    %cst_149 = arith.constant dense<0.000000e+00> : vector<128x128xf32>
    %353 = tpu.matmul %350, %352, %cst_149 {dimension_numbers = #tpu.dot_dimension_numbers<[1], [0], [0], [1], [0, 0, 1, 1], [], []>} : vector<128x128xbf16>, vector<128x128xbf16>, vector<128x128xf32> -> vector<128x128xf32>
    %354 = arith.addf %342, %353 : vector<128x128xf32>
    %c56_i32_150 = arith.constant 56 : i32
    %355 = vector.broadcast %c56_i32_150 : i32 to vector<128x1xi32>
    %356 = arith.cmpi slt, %286, %355 : vector<128x1xi32>
    %c1_i32_151 = arith.constant 1 : i32
    %357 = vector.broadcast %c1_i32_151 : i32 to vector<128x1xi32>
    %358 = arith.cmpi sge, %288, %357 : vector<128x1xi32>
    %359 = arith.andi %356, %358 : vector<128x1xi1>
    %c121_i32_152 = arith.constant 121 : i32
    %360 = tpu.dynamic_rotate %282 by %c121_i32_152 dim 0 : vector<128x128xf32>, i32 -> vector<128x128xf32>
    %cst_153 = arith.constant 0.000000e+00 : f32
    %361 = vector.shape_cast %359 : vector<128x1xi1> to vector<128x1xi1>
    %362 = vector.broadcast %361 : vector<128x1xi1> to vector<128x128xi1>
    %363 = vector.broadcast %cst_153 : f32 to vector<128x128xf32>
    %364 = arith.select %362, %360, %363 : vector<128x128xi1>, vector<128x128xf32>
    %365 = arith.truncf %364 : vector<128x128xf32> to vector<128x128xbf16>
    %c6_154 = arith.constant 6 : index
    %c0_155 = arith.constant 0 : index
    %c0_156 = arith.constant 0 : index
    %366 = vector.load %arg9[%c6_154, %c0_155, %c0_156] : memref<9x128x128xbf16, #tpu.memory_space<vmem>>, vector<1x128x128xbf16>
    %367 = vector.shape_cast %366 : vector<1x128x128xbf16> to vector<128x128xbf16>
    %cst_157 = arith.constant dense<0.000000e+00> : vector<128x128xf32>
    %368 = tpu.matmul %365, %367, %cst_157 {dimension_numbers = #tpu.dot_dimension_numbers<[1], [0], [0], [1], [0, 0, 1, 1], [], []>} : vector<128x128xbf16>, vector<128x128xbf16>, vector<128x128xf32> -> vector<128x128xf32>
    %369 = arith.addf %354, %368 : vector<128x128xf32>
    %c120_i32_158 = arith.constant 120 : i32
    %370 = tpu.dynamic_rotate %282 by %c120_i32_158 dim 0 : vector<128x128xf32>, i32 -> vector<128x128xf32>
    %cst_159 = arith.constant 0.000000e+00 : f32
    %371 = vector.shape_cast %356 : vector<128x1xi1> to vector<128x1xi1>
    %372 = vector.broadcast %371 : vector<128x1xi1> to vector<128x128xi1>
    %373 = vector.broadcast %cst_159 : f32 to vector<128x128xf32>
    %374 = arith.select %372, %370, %373 : vector<128x128xi1>, vector<128x128xf32>
    %375 = arith.truncf %374 : vector<128x128xf32> to vector<128x128xbf16>
    %c7_160 = arith.constant 7 : index
    %c0_161 = arith.constant 0 : index
    %c0_162 = arith.constant 0 : index
    %376 = vector.load %arg9[%c7_160, %c0_161, %c0_162] : memref<9x128x128xbf16, #tpu.memory_space<vmem>>, vector<1x128x128xbf16>
    %377 = vector.shape_cast %376 : vector<1x128x128xbf16> to vector<128x128xbf16>
    %cst_163 = arith.constant dense<0.000000e+00> : vector<128x128xf32>
    %378 = tpu.matmul %375, %377, %cst_163 {dimension_numbers = #tpu.dot_dimension_numbers<[1], [0], [0], [1], [0, 0, 1, 1], [], []>} : vector<128x128xbf16>, vector<128x128xbf16>, vector<128x128xf32> -> vector<128x128xf32>
    %379 = arith.addf %369, %378 : vector<128x128xf32>
    %c7_i32_164 = arith.constant 7 : i32
    %380 = vector.broadcast %c7_i32_164 : i32 to vector<128x1xi32>
    %381 = arith.cmpi slt, %288, %380 : vector<128x1xi32>
    %382 = arith.andi %356, %381 : vector<128x1xi1>
    %c119_i32_165 = arith.constant 119 : i32
    %383 = tpu.dynamic_rotate %282 by %c119_i32_165 dim 0 : vector<128x128xf32>, i32 -> vector<128x128xf32>
    %cst_166 = arith.constant 0.000000e+00 : f32
    %384 = vector.shape_cast %382 : vector<128x1xi1> to vector<128x1xi1>
    %385 = vector.broadcast %384 : vector<128x1xi1> to vector<128x128xi1>
    %386 = vector.broadcast %cst_166 : f32 to vector<128x128xf32>
    %387 = arith.select %385, %383, %386 : vector<128x128xi1>, vector<128x128xf32>
    %388 = arith.truncf %387 : vector<128x128xf32> to vector<128x128xbf16>
    %c8_167 = arith.constant 8 : index
    %c0_168 = arith.constant 0 : index
    %c0_169 = arith.constant 0 : index
    %389 = vector.load %arg9[%c8_167, %c0_168, %c0_169] : memref<9x128x128xbf16, #tpu.memory_space<vmem>>, vector<1x128x128xbf16>
    %390 = vector.shape_cast %389 : vector<1x128x128xbf16> to vector<128x128xbf16>
    %cst_170 = arith.constant dense<0.000000e+00> : vector<128x128xf32>
    %391 = tpu.matmul %388, %390, %cst_170 {dimension_numbers = #tpu.dot_dimension_numbers<[1], [0], [0], [1], [0, 0, 1, 1], [], []>} : vector<128x128xbf16>, vector<128x128xbf16>, vector<128x128xf32> -> vector<128x128xf32>
    %392 = arith.addf %379, %391 : vector<128x128xf32>
    %393 = vector.broadcast %283 : vector<1x128xf32> to vector<128x128xf32>
    %394 = arith.addf %392, %393 : vector<128x128xf32>
    %395 = arith.truncf %0 : vector<128x128xf32> to vector<128x128xbf16>
    %c0_171 = arith.constant 0 : index
    %c0_172 = arith.constant 0 : index
    %396 = vector.load %arg11[%c0_171, %c0_172] : memref<128x128xbf16, #tpu.memory_space<vmem>>, vector<128x128xbf16>
    %cst_173 = arith.constant dense<0.000000e+00> : vector<128x128xf32>
    %397 = tpu.matmul %395, %396, %cst_173 {dimension_numbers = #tpu.dot_dimension_numbers<[1], [0], [0], [1], [0, 0, 1, 1], [], []>} : vector<128x128xbf16>, vector<128x128xbf16>, vector<128x128xf32> -> vector<128x128xf32>
    %398 = arith.addf %394, %397 : vector<128x128xf32>
    %c0_174 = arith.constant 0 : index
    %c0_175 = arith.constant 0 : index
    %399 = vector.load %arg12[%c0_174, %c0_175] : memref<1x128xf32, #tpu.memory_space<vmem>>, vector<1x128xf32>
    %400 = vector.broadcast %399 : vector<1x128xf32> to vector<128x128xf32>
    %401 = arith.addf %398, %400 : vector<128x128xf32>
    %402 = arith.truncf %401 : vector<128x128xf32> to vector<128x128xbf16>
    %c0_176 = arith.constant 0 : index
    %c0_177 = arith.constant 0 : index
    %403 = vector.load %arg13[%c0_176, %c0_177] : memref<128x384xbf16, #tpu.memory_space<vmem>>, vector<128x384xbf16>
    %cst_178 = arith.constant dense<0.000000e+00> : vector<128x384xf32>
    %404 = tpu.matmul %402, %403, %cst_178 {dimension_numbers = #tpu.dot_dimension_numbers<[1], [0], [0], [1], [0, 0, 1, 1], [], []>} : vector<128x128xbf16>, vector<128x384xbf16>, vector<128x384xf32> -> vector<128x384xf32>
    %c0_179 = arith.constant 0 : index
    %c0_180 = arith.constant 0 : index
    %405 = vector.load %arg14[%c0_179, %c0_180] : memref<1x384xf32, #tpu.memory_space<vmem>>, vector<1x384xf32>
    %406 = vector.broadcast %405 : vector<1x384xf32> to vector<128x384xf32>
    %407 = arith.addf %404, %406 : vector<128x384xf32>
    %408 = vector.extract_strided_slice %407 {offsets = [0, 0], sizes = [64, 128], strides = [1, 1]} : vector<128x384xf32> to vector<64x128xf32>
    %409 = vector.extract_strided_slice %407 {offsets = [0, 128], sizes = [64, 128], strides = [1, 1]} : vector<128x384xf32> to vector<64x128xf32>
    %410 = vector.extract_strided_slice %407 {offsets = [0, 256], sizes = [64, 128], strides = [1, 1]} : vector<128x384xf32> to vector<64x128xf32>
    %411 = arith.truncf %408 : vector<64x128xf32> to vector<64x128xbf16>
    %412 = arith.truncf %409 : vector<64x128xf32> to vector<64x128xbf16>
    %cst_181 = arith.constant dense<0.000000e+00> : vector<64x64xf32>
    %413 = tpu.matmul %411, %412, %cst_181 {dimension_numbers = #tpu.dot_dimension_numbers<[1], [1], [0], [0], [0, 0, 1, 0], [], []>} : vector<64x128xbf16>, vector<64x128xbf16>, vector<64x64xf32> -> vector<64x64xf32>
    %cst_182 = arith.constant dense<0xFF800000> : vector<64xf32>
    %414 = vector.multi_reduction <maximumf>, %413, %cst_182 [0] : vector<64x64xf32> to vector<64xf32>
    %415 = vector.shape_cast %414 : vector<64xf32> to vector<1x64xf32>
    %416 = vector.broadcast %415 : vector<1x64xf32> to vector<64x64xf32>
    %417 = arith.subf %413, %416 : vector<64x64xf32>
    %418 = math.exp %417 : vector<64x64xf32>
    %cst_183 = arith.constant dense<0.000000e+00> : vector<64xf32>
    %419 = vector.multi_reduction <add>, %418, %cst_183 [0] : vector<64x64xf32> to vector<64xf32>
    %420 = vector.shape_cast %419 : vector<64xf32> to vector<1x64xf32>
    %421 = tpu.reciprocal %420 {approx = true} : vector<1x64xf32> -> vector<1x64xf32>
    %422 = vector.broadcast %421 : vector<1x64xf32> to vector<64x64xf32>
    %423 = arith.mulf %418, %422 : vector<64x64xf32>
    %424 = arith.truncf %423 : vector<64x64xf32> to vector<64x64xbf16>
    %425 = arith.truncf %410 : vector<64x128xf32> to vector<64x128xbf16>
    %cst_184 = arith.constant dense<0.000000e+00> : vector<64x128xf32>
    %426 = tpu.matmul %424, %425, %cst_184 {dimension_numbers = #tpu.dot_dimension_numbers<[1], [0], [0], [1], [0, 0, 1, 1], [], []>} : vector<64x64xbf16>, vector<64x128xbf16>, vector<64x128xf32> -> vector<64x128xf32>
    %427 = vector.extract_strided_slice %407 {offsets = [64, 0], sizes = [64, 128], strides = [1, 1]} : vector<128x384xf32> to vector<64x128xf32>
    %428 = vector.extract_strided_slice %407 {offsets = [64, 128], sizes = [64, 128], strides = [1, 1]} : vector<128x384xf32> to vector<64x128xf32>
    %429 = vector.extract_strided_slice %407 {offsets = [64, 256], sizes = [64, 128], strides = [1, 1]} : vector<128x384xf32> to vector<64x128xf32>
    %430 = arith.truncf %427 : vector<64x128xf32> to vector<64x128xbf16>
    %431 = arith.truncf %428 : vector<64x128xf32> to vector<64x128xbf16>
    %cst_185 = arith.constant dense<0.000000e+00> : vector<64x64xf32>
    %432 = tpu.matmul %430, %431, %cst_185 {dimension_numbers = #tpu.dot_dimension_numbers<[1], [1], [0], [0], [0, 0, 1, 0], [], []>} : vector<64x128xbf16>, vector<64x128xbf16>, vector<64x64xf32> -> vector<64x64xf32>
    %cst_186 = arith.constant dense<0xFF800000> : vector<64xf32>
    %433 = vector.multi_reduction <maximumf>, %432, %cst_186 [0] : vector<64x64xf32> to vector<64xf32>
    %434 = vector.shape_cast %433 : vector<64xf32> to vector<1x64xf32>
    %435 = vector.broadcast %434 : vector<1x64xf32> to vector<64x64xf32>
    %436 = arith.subf %432, %435 : vector<64x64xf32>
    %437 = math.exp %436 : vector<64x64xf32>
    %cst_187 = arith.constant dense<0.000000e+00> : vector<64xf32>
    %438 = vector.multi_reduction <add>, %437, %cst_187 [0] : vector<64x64xf32> to vector<64xf32>
    %439 = vector.shape_cast %438 : vector<64xf32> to vector<1x64xf32>
    %440 = tpu.reciprocal %439 {approx = true} : vector<1x64xf32> -> vector<1x64xf32>
    %441 = vector.broadcast %440 : vector<1x64xf32> to vector<64x64xf32>
    %442 = arith.mulf %437, %441 : vector<64x64xf32>
    %443 = arith.truncf %442 : vector<64x64xf32> to vector<64x64xbf16>
    %444 = arith.truncf %429 : vector<64x128xf32> to vector<64x128xbf16>
    %cst_188 = arith.constant dense<0.000000e+00> : vector<64x128xf32>
    %445 = tpu.matmul %443, %444, %cst_188 {dimension_numbers = #tpu.dot_dimension_numbers<[1], [0], [0], [1], [0, 0, 1, 1], [], []>} : vector<64x64xbf16>, vector<64x128xbf16>, vector<64x128xf32> -> vector<64x128xf32>
    %446 = tpu.concatenate %426, %445 in 0 : vector<64x128xf32>, vector<64x128xf32> -> vector<128x128xf32>
    %447 = arith.truncf %446 : vector<128x128xf32> to vector<128x128xbf16>
    %c0_189 = arith.constant 0 : index
    %c0_190 = arith.constant 0 : index
    %448 = vector.load %arg15[%c0_189, %c0_190] : memref<128x128xbf16, #tpu.memory_space<vmem>>, vector<128x128xbf16>
    %cst_191 = arith.constant dense<0.000000e+00> : vector<128x128xf32>
    %449 = tpu.matmul %447, %448, %cst_191 {dimension_numbers = #tpu.dot_dimension_numbers<[1], [0], [0], [1], [0, 0, 1, 1], [], []>} : vector<128x128xbf16>, vector<128x128xbf16>, vector<128x128xf32> -> vector<128x128xf32>
    %c0_192 = arith.constant 0 : index
    %c0_193 = arith.constant 0 : index
    %450 = vector.load %arg16[%c0_192, %c0_193] : memref<1x128xf32, #tpu.memory_space<vmem>>, vector<1x128xf32>
    %451 = vector.broadcast %450 : vector<1x128xf32> to vector<128x128xf32>
    %452 = arith.addf %449, %451 : vector<128x128xf32>
    %453 = arith.addf %452, %401 : vector<128x128xf32>
    %c0_194 = arith.constant 0 : index
    %c0_195 = arith.constant 0 : index
    %454 = vector.load %arg17[%c0_194, %c0_195] : memref<128x128xf32, #tpu.memory_space<vmem>>, vector<128x128xf32>
    tpu.vector_store %arg17[%c0_194, %c0_195], %453 {strides = array<i32>} : memref<128x128xf32, #tpu.memory_space<vmem>>, vector<128x128xf32>,
    return
  }
  func.func @transform_0(%arg0: i32) -> (i32, i32) {
    %c0_i32 = arith.constant 0 : i32
    %c0_i32_0 = arith.constant 0 : i32
    return %arg0, %c0_i32 : i32, i32
  }
  func.func @transform_1(%arg0: i32) -> (i32, i32, i32) {
    %c0_i32 = arith.constant 0 : i32
    %c0_i32_0 = arith.constant 0 : i32
    %c0_i32_1 = arith.constant 0 : i32
    return %arg0, %c0_i32, %c0_i32_0 : i32, i32, i32
  }
  func.func @transform_2(%arg0: i32) -> (i32, i32) {
    %c0_i32 = arith.constant 0 : i32
    %c0_i32_0 = arith.constant 0 : i32
    %c0_i32_1 = arith.constant 0 : i32
    return %c0_i32, %c0_i32_0 : i32, i32
  }
  func.func @transform_3(%arg0: i32) -> (i32, i32) {
    %c0_i32 = arith.constant 0 : i32
    %c0_i32_0 = arith.constant 0 : i32
    %c0_i32_1 = arith.constant 0 : i32
    return %c0_i32, %c0_i32_0 : i32, i32
  }
  func.func @transform_4(%arg0: i32) -> (i32, i32, i32) {
    %c0_i32 = arith.constant 0 : i32
    %c0_i32_0 = arith.constant 0 : i32
    %c0_i32_1 = arith.constant 0 : i32
    %c0_i32_2 = arith.constant 0 : i32
    return %c0_i32, %c0_i32_0, %c0_i32_1 : i32, i32, i32
  }
  func.func @transform_5(%arg0: i32) -> (i32, i32) {
    %c0_i32 = arith.constant 0 : i32
    %c0_i32_0 = arith.constant 0 : i32
    %c0_i32_1 = arith.constant 0 : i32
    return %c0_i32, %c0_i32_0 : i32, i32
  }
  func.func @transform_6(%arg0: i32) -> (i32, i32) {
    %c0_i32 = arith.constant 0 : i32
    %c0_i32_0 = arith.constant 0 : i32
    %c0_i32_1 = arith.constant 0 : i32
    return %c0_i32, %c0_i32_0 : i32, i32
  }
  func.func @transform_7(%arg0: i32) -> (i32, i32) {
    %c0_i32 = arith.constant 0 : i32
    %c0_i32_0 = arith.constant 0 : i32
    %c0_i32_1 = arith.constant 0 : i32
    return %c0_i32, %c0_i32_0 : i32, i32
  }
  func.func @transform_8(%arg0: i32) -> (i32, i32, i32) {
    %c0_i32 = arith.constant 0 : i32
    %c0_i32_0 = arith.constant 0 : i32
    %c0_i32_1 = arith.constant 0 : i32
    %c0_i32_2 = arith.constant 0 : i32
    return %c0_i32, %c0_i32_0, %c0_i32_1 : i32, i32, i32
  }
  func.func @transform_9(%arg0: i32) -> (i32, i32) {
    %c0_i32 = arith.constant 0 : i32
    %c0_i32_0 = arith.constant 0 : i32
    %c0_i32_1 = arith.constant 0 : i32
    return %c0_i32, %c0_i32_0 : i32, i32
  }
  func.func @transform_10(%arg0: i32) -> (i32, i32) {
    %c0_i32 = arith.constant 0 : i32
    %c0_i32_0 = arith.constant 0 : i32
    %c0_i32_1 = arith.constant 0 : i32
    return %c0_i32, %c0_i32_0 : i32, i32
  }
  func.func @transform_11(%arg0: i32) -> (i32, i32) {
    %c0_i32 = arith.constant 0 : i32
    %c0_i32_0 = arith.constant 0 : i32
    %c0_i32_1 = arith.constant 0 : i32
    return %c0_i32, %c0_i32_0 : i32, i32
  }
  func.func @transform_12(%arg0: i32) -> (i32, i32) {
    %c0_i32 = arith.constant 0 : i32
    %c0_i32_0 = arith.constant 0 : i32
    %c0_i32_1 = arith.constant 0 : i32
    return %c0_i32, %c0_i32_0 : i32, i32
  }
  func.func @transform_13(%arg0: i32) -> (i32, i32) {
    %c0_i32 = arith.constant 0 : i32
    %c0_i32_0 = arith.constant 0 : i32
    %c0_i32_1 = arith.constant 0 : i32
    return %c0_i32, %c0_i32_0 : i32, i32
  }
  func.func @transform_14(%arg0: i32) -> (i32, i32) {
    %c0_i32 = arith.constant 0 : i32
    %c0_i32_0 = arith.constant 0 : i32
    %c0_i32_1 = arith.constant 0 : i32
    return %c0_i32, %c0_i32_0 : i32, i32
  }
  func.func @transform_15(%arg0: i32) -> (i32, i32) {
    %c0_i32 = arith.constant 0 : i32
    %c0_i32_0 = arith.constant 0 : i32
    %c0_i32_1 = arith.constant 0 : i32
    return %c0_i32, %c0_i32_0 : i32, i32
  }
  func.func @transform_16(%arg0: i32) -> (i32, i32) {
    %c0_i32 = arith.constant 0 : i32
    %c0_i32_0 = arith.constant 0 : i32
    return %arg0, %c0_i32 : i32, i32
  }
}

</mosaic_0001>

<bundles_post_ra>
// kernel: tpu_custom_call.1
= control target key start
LH: loop header
LB: loop body
LE: loop exit
PB: predicated region body
PF: predicated region fallthrough
CT: control target
= control target key end

     0   :  { %s12355_s0 = inlined_call_operand.hbm [shape: f32[256,128], index: 0, kind: input, shape index: {}]   ;;  %s12356_s1 = inlined_call_operand.hbm [shape: f32[4,1,128], index: 1, kind: input, shape index: {}]   ;;  %s12357_s2 = inlined_call_operand.vmem [shape: f32[1,128], index: 2, kind: input, shape index: {}]   ;;  %s12358_s3 = inlined_call_operand.vmem [shape: f32[1,128], index: 3, kind: input, shape index: {}]   ;;  %s12359_s4 = inlined_call_operand.hbm [shape: bf16[9,128,128], index: 4, kind: input, shape index: {}]   ;;  %s12360_s5 = inlined_call_operand.vmem [shape: f32[1,128], index: 5, kind: input, shape index: {}]   ;;  %s12361_s6 = inlined_call_operand.vmem [shape: f32[1,128], index: 6, kind: input, shape index: {}]   ;;  %s12362_s7 = inlined_call_operand.vmem [shape: f32[1,128], index: 7, kind: input, shape index: {}]   ;;  %s12363_s8 = inlined_call_operand.hbm [shape: bf16[9,128,128], index: 8, kind: input, shape index: {}]   ;;  %s12364_s9 = inlined_call_operand.vmem [shape: f32[1,128], index: 9, kind: input, shape index: {}]   ;;  %s12365_s10 = inlined_call_operand.hbm [shape: bf16[128,128], index: 10, kind: input, shape index: {}]   ;;  %s12366_s11 = inlined_call_operand.vmem [shape: f32[1,128], index: 11, kind: input, shape index: {}]   ;;  %s12367_s12 = inlined_call_operand.hbm [shape: bf16[128,384], index: 12, kind: input, shape index: {}]   ;;  %s12368_s13 = inlined_call_operand.vmem [shape: f32[1,384], index: 13, kind: input, shape index: {}]   ;;  %s12369_s14 = inlined_call_operand.hbm [shape: bf16[128,128], index: 14, kind: input, shape index: {}]   ;;  %s12370_s15 = inlined_call_operand.vmem [shape: f32[1,128], index: 15, kind: input, shape index: {}]   ;;  %s12371_s16 = inlined_call_operand.hbm [shape: f32[256,128], index: 16, kind: output, shape index: {}]  }
   0x1   :  { %12518 = sst [smem:[#allocation79_spill]] %s12355_s0 }
   0x2   :  { %12519 = sst [smem:[#allocation80_spill]] %s12359_s4 }
   0x3   :  { %12520 = sst [smem:[#allocation81_spill]] %s12363_s8 }
   0x4   :  { %12521 = sst [smem:[#allocation82_spill]] %s12365_s10 }
   0x5   :  { %12522 = sst [smem:[#allocation83_spill]] %s12367_s12 }
   0x6   :  { %12523 = sst [smem:[#allocation84_spill]] %s12369_s14 }
   0x7   :  { %12524 = sst [smem:[#allocation85_spill]] %s12370_s15 }
   0x8   :  { %12525 = sst [smem:[#allocation86_spill]] %s12371_s16 }
   0x9   :  { %21 = vsyncpa [#allocation3], 0 }
   0xa   :  { %23 = vsyncpa [#allocation3 + $0x1], 0 }
   0xb   :  { %24 = vsyncpa [#allocation6], 0 }
   0xc   :  { %26 = vsyncpa [#allocation6 + $0x1], 0 }
   0xd   :  { %27 = vsyncpa [#allocation9], 0 }
   0xe   :  { %28 = vsyncpa [#allocation12], 0 }
   0xf   :  { %29 = vsyncpa [#allocation4], 0 }
  0x10   :  { %31 = vsyncpa [#allocation4 + $0x1], 0  ;;  %s9312_s21 = smov 0   ;;  %s9314_s22 = smov 0  }
  0x11   :  { %s9316_s23 = smov 0   ;;  %s9318_s24 = smov 0  }
  0x12 LB: > { %12526 = sst [smem:[#allocation21_spill]] %s9190_s21  ;;  %s9204_s25 = smov [#allocation7]   ;;  %s9202_s24 = sphi %s9318_s24, %s13015_s24   ;;  %s9198_s23 = sphi %s9316_s23, %s13017_s23   ;;  %s9194_s22 = sphi %s9314_s22, %s13019_s22   ;;  %s9190_s21 = sphi %s9312_s21, %s13018_s21  }
  0x13   : > { %12527 = sst [smem:[#allocation22_spill]] %s9198_s23  ;;  %s432_s26 = sshll.u32 %s9204_s25, 4  ;;  %s433_s26 = int_to_ptr.vmem [resolvable:$true] %s432_s26 }
  0x14   : > { %s9333_s27 = sadd.s32 4294967295, %s9202_s24   ;;  %p6818_p0 = scmp.ge.s32.totalorder %s9202_s24, 1 }
  0x15   : > { %p12378_p1 = scmp.eq.s32.totalorder %s9333_s27, 0  ;;  %p414_p2 = scmp.lt.s32.totalorder %s9202_s24, 3 }
  0x16   : > { %s9205_s29 = smov [#allocation8]   ;;  %s9206_s17 = smov [#allocation11]  }
  0x17   : > { %p9338_p3 = pnand %p6818_p0, %p414_p2  ;;  %s454_s30 = sshll.u32 %s9205_s29, 4  ;;  %s9351_s30 = int_to_ptr.vmem [resolvable:$true] %s454_s30 }
  0x18   : > { %s486_s18 = sshll.u32 %s9206_s17, 4  ;;  %s8947_s20 = scalar_lea.vmem %s433_s26, 9216  ;;  %s9353_s18 = int_to_ptr.vmem [resolvable:$true] %s486_s18 }
  0x19   : > { %p8465_p5 = pneg %p9338_p3  ;;  %p8948_p8 = scmp.ne.s32.totalorder %s433_s26, %s8947_s20 }
  0x1a   : > { %p8955_p11 = scmp.lt.s32.totalorder %s433_s26, %s433_s26  ;;  %p8956_p12 = scmp.lt.s32.totalorder %s8947_s20, %s8947_s20 }
  0x1b   : > { %p9347_p6 = pnand %p8465_p5, %p12378_p1 }
  0x1c   : > { %p8957_p13 = por %p8956_p12, %p8955_p11 }
  0x1d   : > { %p9357_p7 = pneg %p9347_p6 }
  0x1f   : > { %p8950_p9 = pnand %p8948_p8, %p9357_p7 }
  0x21   : > { %p8951_p10 = pneg %p8950_p9 }
  0x23   : > { %p8958_p0 = pnand %p8957_p13, %p8951_p10 }
  0x25   : > { %8961 = shalt.err (!%p8958_p0)
}
  0x26   : > { %s12374_s25 = smov 64   ;;  %s12376_s29 = smov 4  }
  0x27   : > { %s12531_s4 = sld [smem:[#allocation80_spill]]  ;;  %s8973_s15 = scalar_lea.vmem %s9351_s30, 9216 }
  0x28   : > { %p8974_p2 = scmp.ne.s32.totalorder %s9351_s30, %s8973_s15  ;;  %p8981_p9 = scmp.lt.s32.totalorder %s9351_s30, %s9351_s30 }
  0x29   : > { %p8982_p10 = scmp.lt.s32.totalorder %s8973_s15, %s8973_s15 }
  0x2a   : > { %p8976_p5 = pnand %p8974_p2, %p9357_p7 }
  0x2b   : > { %p8983_p11 = por %p8982_p10, %p8981_p9 }
  0x2c   : > { %p8977_p8 = pneg %p8976_p5 }
  0x2d   : > { %8468 = dma.hbm_to_vmem [thread:$0]  (!%p9347_p6), %s12531_s4, 9216, %s433_s26, [#allocation6], %s12374_s25, %s12374_s25, %s12376_s29  }
  0x2e   : > { %p8984_p12 = pnand %p8983_p11, %p8977_p8 }
  0x30   : > { %8987 = shalt.err (!%p8984_p12)
}
  0x31   : > { %s12532_s8 = sld [smem:[#allocation81_spill]]  ;;  %s8999_s26 = scalar_lea.vmem %s9353_s18, 3072 }
  0x32   : > { %p9000_p13 = scmp.ne.s32.totalorder %s9353_s18, %s8999_s26  ;;  %p9007_p5 = scmp.lt.s32.totalorder %s9353_s18, %s9353_s18 }
  0x33   : > { %p9008_p8 = scmp.lt.s32.totalorder %s8999_s26, %s8999_s26 }
  0x34   : > { %p9002_p0 = pnand %p9000_p13, %p9357_p7 }
  0x35   : > { %p9009_p9 = por %p9008_p8, %p9007_p5 }
  0x36   : > { %p9003_p2 = pneg %p9002_p0 }
  0x37   : > { %8471 = dma.hbm_to_vmem [thread:$0]  (!%p9347_p6), %s12532_s8, 9216, %s9351_s30, [#allocation9], %s12374_s25, %s12374_s25, %s12376_s29  }
  0x38   : > { %p9010_p10 = pnand %p9009_p9, %p9003_p2 }
  0x3a   : > { %9013 = shalt.err (!%p9010_p10)
}
  0x3b   : > { %s9209_s15 = smov 192   ;;  %s9210_s17 = smov 12  }
  0x3c   : > { %s12533_s12 = sld [smem:[#allocation83_spill]]  ;;  %s9211_s30 = smov [#allocation10]  }
  0x3d   : > { %s470_s25 = sshll.u32 %s9211_s30, 4  ;;  %s9212_s29 = smov [#allocation13]   ;;  %s471_s25 = int_to_ptr.vmem [resolvable:$true] %s470_s25 }
  0x3e   : > { %s502_s4 = sshll.u32 %s9212_s29, 4  ;;  %s9025_s8 = scalar_lea.vmem %s471_s25, 1024  ;;  %s503_s4 = int_to_ptr.vmem [resolvable:$true] %s502_s4 }
  0x3f   : > { %p9026_p11 = scmp.ne.s32.totalorder %s471_s25, %s9025_s8  ;;  %p9033_p0 = scmp.lt.s32.totalorder %s471_s25, %s471_s25 }
  0x40   : > { %p9034_p2 = scmp.lt.s32.totalorder %s9025_s8, %s9025_s8 }
  0x41   : > { %p9028_p12 = pnand %p9026_p11, %p9357_p7 }
  0x42   : > { %8477 = dma.hbm_to_vmem [thread:$0]  (!%p9347_p6), %s12533_s12, 3072, %s9353_s18, [#allocation12], %s9209_s15, %s9209_s15, %s9210_s17  }
  0x43   : > { %p9029_p13 = pneg %p9028_p12  ;;  %p9035_p5 = por %p9034_p2, %p9033_p0 }
  0x45   : > { %p9036_p8 = pnand %p9035_p5, %p9029_p13 }
  0x47   : > { %9039 = shalt.err (!%p9036_p8)
}
  0x48   : > { %s12534_s26 = smov 4   ;;  %s12535_s20 = smov 64  }
  0x49   : > { %s12536_s10 = sld [smem:[#allocation82_spill]]  ;;  %s9051_s29 = scalar_lea.vmem %s503_s4, 1024 }
  0x4a   : > { %p9052_p9 = scmp.ne.s32.totalorder %s503_s4, %s9051_s29  ;;  %p9059_p12 = scmp.lt.s32.totalorder %s503_s4, %s503_s4 }
  0x4b   : > { %p9060_p0 = scmp.lt.s32.totalorder %s9051_s29, %s9051_s29 }
  0x4c   : > { %p9054_p10 = pnand %p9052_p9, %p9357_p7 }
  0x4d   : > { %p9061_p13 = por %p9060_p0, %p9059_p12 }
  0x4e   : > { %p9055_p11 = pneg %p9054_p10 }
  0x4f   : > { %8474 = dma.hbm_to_vmem [thread:$0]  (!%p9347_p6), %s12536_s10, 1024, %s471_s25, [#allocation9], %s12535_s20, %s12535_s20, %s12534_s26  }
  0x50   : > { %p9062_p2 = pnand %p9061_p13, %p9055_p11 }
  0x52   : > { %9065 = shalt.err (!%p9062_p2)
}
  0x53   : > { %s12537_s14 = sld [smem:[#allocation84_spill]]  ;;  %s6817_s0 = sadd.s32 4294967294, %s9202_s24  }
  0x54   : > { %s9420_s19 = sadd.s32 1, %s9202_s24   ;;  %s44_s25 = sadd.s32 1, %s9198_s23 }
  0x55   : > { %12538 = sst [smem:[#allocation23_spill]] %s9420_s19  ;;  %s41_s16 = ssub.s32 %s9202_s24, %s9420_s19 }
  0x56   : > { %p51_p7 = scmp.ne.s32.totalorder %s9198_s23, %s9194_s22  ;;  %p42_p5 = scmp.eq.s32.totalorder %s41_s16, 0 }
  0x57   : > { %p52_p8 = scmp.eq.s32.totalorder %s9202_s24, 0  ;;  %p57_p9 = scmp.ne.s32.totalorder %s9194_s22, %s9190_s21 }
  0x58   : > { %p401_p10 = scmp.eq.s32.totalorder %s9333_s27, 1  ;;  %p407_p0 = scmp.eq.s32.totalorder %s6817_s0, 1 }
  0x59   : > { %8480 = dma.hbm_to_vmem [thread:$0]  (!%p9347_p6), %s12537_s14, 1024, %s503_s4, [#allocation12], %s12535_s20, %s12535_s20, %s12534_s26  }
  0x5a   : > { %s9432_s30 = scalar_select %p42_p5, %s9198_s23, %s44_s25  }
  0x5b   : > { %p53_p11 = por %p52_p8, %p51_p7  ;;  %p9436_p12 = por %p12378_p1, %p57_p9 }
  0x5c   : > { %12539 = sst [smem:[#allocation24_spill]] %s9432_s30  ;;  %p9440_p6 = por %p401_p10, %p51_p7 }
  0x5d   : > { %s12540_s18 = scalar_select %p9436_p12, 1, 0 }
  0x5e   : > { %s12541_s4 = scalar_select %p9440_p6, 1, 0 }
  0x5f   : > { %p8497_p13 = scmp.lt.s32.totalorder %s9202_s24, 2  ;;  %s9446_s26 = sand.u32 1, %s9198_s23  }
  0x60   : > { %12542 = sst [smem:[#allocation25_spill]] %s12541_s4  ;;  %p9448_p2 = por %p407_p0, %p57_p9 }
  0x61   : > { %s6825_s15 = sshll.u32 %s9446_s26, 7  ;;  %s7332_s29 = sshll.u32 %s9202_s24, 11 }
  0x62   : > { %s12543_s20 = scalar_select %p9448_p2, 1, 0 }
  0x63   : > { %s12545_s25 = sld [smem:[#allocation79_spill]]  ;;  %s523_s0 = scalar_lea.vmem [#allocation2], %s6825_s15 }
  0x64   : > { %12544 = sst [smem:[#allocation26_spill]] %s12543_s20  ;;  %s530_s10 = sshll.u32 %s523_s0, 4  ;;  %s9463_s10 = int_to_ptr.vmem [resolvable:$true] %s530_s10 }
  0x65   : > { %p9459_p7 = pnand %p8497_p13, %p53_p11 }
  0x67   : > { %p9068_p8 = pneg %p9459_p7 }
  0x69   : > { %s9457_s16 = scalar_lea.hbm %s12545_s25, %s7332_s29  ;;  %s9071_s8 = scalar_lea.hbm %s12545_s25, 4096 }
  0x6a   : > { %s9066_s30 = scalar_lea.hbm %s9457_s16, 2048  ;;  %p9072_p11 = scmp.lt.s32.totalorder %s9457_s16, %s12545_s25 }
  0x6b   : > { %p9067_p5 = scmp.ne.s32.totalorder %s9457_s16, %s9066_s30  ;;  %p9073_p0 = scmp.lt.s32.totalorder %s9071_s8, %s9066_s30 }
  0x6d   : > { %p9069_p9 = pnand %p9068_p8, %p9067_p5  ;;  %p9074_p13 = por %p9073_p0, %p9072_p11 }
  0x6f   : > { %p9070_p10 = pneg %p9069_p9 }
  0x71   : > { %p9075_p4 = pnand %p9074_p13, %p9070_p10 }
  0x73   : > { %9078 = shalt.err (!%p9075_p4)
}
  0x74   : > { %s9079_s14 = scalar_lea.vmem %s9463_s10, 2048  ;;  %s9213_s29 = smov [#allocation2]  }
  0x75   : > { %p9080_p1 = scmp.ne.s32.totalorder %s9463_s10, %s9079_s14  ;;  %s9084_s15 = sshll.u32 %s9213_s29, 4  ;;  %s9085_s15 = int_to_ptr.vmem [resolvable:$false] %s9084_s15 }
  0x76   : > { %s9086_s23 = scalar_lea.vmem %s9085_s15, 4096  ;;  %p9087_p2 = scmp.lt.s32.totalorder %s9463_s10, %s9085_s15 }
  0x77   : > { %p9082_p5 = pnand %p9080_p1, %p9068_p8  ;;  %p9088_p6 = scmp.lt.s32.totalorder %s9086_s23, %s9079_s14 }
  0x79   : > { %p9083_p9 = pneg %p9082_p5  ;;  %p9089_p12 = por %p9088_p6, %p9087_p2 }
  0x7b   : > { %p9090_p11 = pnand %p9089_p12, %p9083_p9 }
  0x7d   : > { %9093 = shalt.err (!%p9090_p11)
}
  0x7e   : > { %s9214_s30 = smov 128   ;;  %s9215_s8 = smov 8  }
  0x7f   : > { %s12547_s17 = scalar_lea.sflag [#allocation3], %s9446_s26  ;;  %s540_s0 = sand.u32 1, %s9202_s24  }
  0x80   : > { %8484 = dma.hbm_to_vmem [thread:$0]  (!%p9459_p7), %s9457_s16, 2048, %s9463_s10, %s12547_s17, %s9214_s30, %s9214_s30, %s9215_s8  }
  0x81   : > { %s6828_s29 = sshll.u32 %s9446_s26, 1  ;;  %s7333_s15 = sshll.u32 %s9202_s24, 5 }
  0x82   : > { %s544_s14 = scalar_lea.vmem [#allocation5], %s6828_s29  ;;  %s9498_s20 = scalar_lea.hbm %s12356_s1, %s7333_s15 }
  0x83   : > { %s551_s23 = sshll.u32 %s544_s14, 4  ;;  %s9502_s21 = scalar_lea.sflag [#allocation6], %s540_s0  ;;  %s9500_s23 = int_to_ptr.vmem [resolvable:$true] %s551_s23 }
  0x84   : > { %s9094_s4 = scalar_lea.hbm %s9498_s20, 32  ;;  %s9099_s16 = scalar_lea.hbm %s12356_s1, 64 }
  0x85   : > { %p9095_p1 = scmp.ne.s32.totalorder %s9498_s20, %s9094_s4  ;;  %p9100_p6 = scmp.lt.s32.totalorder %s9498_s20, %s12356_s1 }
  0x86   : > { %p9101_p2 = scmp.lt.s32.totalorder %s9099_s16, %s9094_s4 }
  0x87   : > { %p9097_p4 = pnand %p9095_p1, %p9068_p8 }
  0x88   : > { %p9102_p10 = por %p9101_p2, %p9100_p6 }
  0x89   : > { %p9098_p12 = pneg %p9097_p4 }
  0x8b   : > { %p9103_p0 = pnand %p9102_p10, %p9098_p12 }
  0x8d   : > { %9106 = shalt.err (!%p9103_p0)
}
  0x8e   : > { %s9107_s30 = scalar_lea.vmem %s9500_s23, 32  ;;  %s9216_s8 = smov [#allocation5]  }
  0x8f   : > { %p9108_p13 = scmp.ne.s32.totalorder %s9500_s23, %s9107_s30  ;;  %s9112_s17 = sshll.u32 %s9216_s8, 4  ;;  %s9113_s17 = int_to_ptr.vmem [resolvable:$false] %s9112_s17 }
  0x90   : > { %s9114_s0 = scalar_lea.vmem %s9113_s17, 64  ;;  %p9115_p11 = scmp.lt.s32.totalorder %s9500_s23, %s9113_s17 }
  0x91   : > { %p9110_p5 = pnand %p9108_p13, %p9068_p8  ;;  %p9116_p1 = scmp.lt.s32.totalorder %s9114_s0, %s9107_s30 }
  0x93   : > { %p9111_p9 = pneg %p9110_p5  ;;  %p9117_p4 = por %p9116_p1, %p9115_p11 }
  0x95   : > { %p9118_p6 = pnand %p9117_p4, %p9111_p9 }
  0x97   : > { %9121 = shalt.err (!%p9118_p6)
}
  0x98   : > { %s9217_s4 = smov 16   ;;  %s9218_s29 = smov 1  }
  0x99   : > { %8487 = dma.hbm_to_vmem [thread:$0]  (!%p9459_p7), %s9498_s20, 32, %s9500_s23, %s9502_s21, %s9217_s4, %s9217_s4, %s9218_s29  }
  0x9a   : > { %563 = sbr.rel (%p9338_p3) target bundleno = 2504 (0x9c8), region = 84 }
  0x9f   : > { %s9530_s15 = sand.u32 1, %s9194_s22   ;;  %p12548_p8 = scmp.ne.s32.totalorder %s12540_s18, 0 }
  0xa0   : > { %s6832_s14 = sshll.u32 %s9530_s15, 7  ;;  %s566_s10 = scalar_lea.sflag [#allocation3], %s9530_s15 }
  0xa1   : > { %s9536_s26 = scalar_lea.vmem [#allocation2], %s6832_s14 }
  0xa2   : > { %9165 = dma.done.wait (%p12548_p8), %s566_s10, 2048  }
  0xa3   : > { %9167 = vsyncadd (%p12548_p8), %s566_s10, 4294965248  ;;  %s574_s12 = sand.u32 1, %s9333_s27   ;;  %s6833_s21 = sshll.u32 %s9530_s15, 1 }
  0xa4   : > { %s575_s28 = scalar_lea.sflag [#allocation6], %s574_s12  ;;  %s9544_s20 = scalar_lea.vmem [#allocation5], %s6833_s21 }
  0xa5   : > { %9169 = dma.done.wait (%p12548_p8), %s575_s28, 32  }
  0xa6   : > { %9171 = vsyncadd (%p12548_p8), %s575_s28, 4294967264  ;;  %p12549_p3 = scmp.eq.s32.totalorder %s9333_s27, 0 }
  0xa8   : > { %9173 = dma.done.wait (%p12549_p3), [#allocation6], 9216   ;;  %p12550_p7 = pmov %p12549_p3 }
  0xa9   : > { %p12551_p12 = pmov %p12549_p3 }
  0xaa   : > { %9175 = vsyncadd (%p12550_p7), [#allocation6], 4294958080 }
  0xab   : > { %9177 = dma.done.wait (%p12551_p12), [#allocation9], 10240   ;;  %p12552_p2 = pmov %p12549_p3 }
  0xad   : > { %9179 = vsyncadd (%p12552_p2), [#allocation9], 4294957056  ;;  %p12553_p10 = pmov %p12552_p2 }
  0xae   : > { %p12554_p0 = pmov %p12552_p2 }
  0xaf   : > { %9181 = dma.done.wait (%p12553_p10), [#allocation12], 4096  }
  0xb0   : > { %9183 = vsyncadd (%p12554_p0), [#allocation12], 4294963200  ;;  %v8556_v0 = vld [vmem:[#allocation7 + $0x78] sm:$0xff]   ;;  %v8558_v2 = vld [vmem:[#allocation7 + $0x70] sm:$0xff]   ;;  %vm12411_vm8 = vmmov 1   ;;  %s9221_s8 = smov 127  }
  0xb1   : > { %v8557_v1 = vld [vmem:[#allocation7 + $0x38] sm:$0xff]   ;;  %7703 = vmatprep.subr.bf16.mxu0 %v8556_v0  ;;  %v8559_v3 = vld [vmem:[#allocation7 + $0x30] sm:$0xff]   ;;  %v8560_v4 = vld [vmem:[#allocation7 + $0x68] sm:$0xff]   ;;  %s9222_s17 = smov 1   ;;  %s13007_s19 = sld [smem:[#allocation85_spill]] }
  0xb2   : > { %7704 = vmatpush3.bf16.msra.mxu0 %v8556_v0  ;;  %7735 = vmatprep.subr.bf16.mxu1 %v8557_v1  ;;  %v8561_v5 = vld [vmem:[#allocation7 + $0x28] sm:$0xff]   ;;  %v8562_v6 = vld [vmem:[#allocation7 + $0x60] sm:$0xff]   ;;  %v8564_v8 = vld [vmem:[#allocation7 + $0x58] sm:$0xff]   ;;  %s12258_s25 = scalar_lea.vmem [#allocation14], %s6832_s14  ;;  %s13008_s14 = sld [smem:[#allocation25_spill]] }
  0xb3   : > { %7705 = vmatprep.subr.bf16.mxu0 %v8558_v2  ;;  %7736 = vmatpush3.bf16.msra.mxu1 %v8557_v1  ;;  %v8563_v7 = vld [vmem:[#allocation7 + $0x20] sm:$0xff]   ;;  %v8565_v9 = vld [vmem:[#allocation7 + $0x18] sm:$0xff]   ;;  %v9569_v12 = vld [vmem:[%s9536_s26 + $0x10] sm:$0xff]  ;;  %s7334_s30 = sshll.u32 %s9333_s27, 11  ;;  %s13009_s4 = sld [smem:[#allocation86_spill]] }
  0xb4   : > { %7737 = vmatprep.subr.bf16.mxu1 %v8559_v3  ;;  %v9563_v10 = vld [vmem:[%s9536_s26] sm:$0xff]  ;;  %v9566_v11 = vld [vmem:[%s9536_s26 + $0x8] sm:$0xff]  ;;  %v8566_v13 = vld [vmem:[#allocation7 + $0x50] sm:$0xff]   ;;  %v689_v20 = vmul.f32 %v9569_v12, %v9569_v12  ;;  %s6661_s27 = scalar_lea.sflag [#allocation4], %s9530_s15 }
  0xb5   : > { %v9572_v14 = vld [vmem:[%s9536_s26 + $0x18] sm:$0xff]  ;;  %v674_v15 = vadd.f32 %v9566_v11, %v9563_v10  ;;  %v687_v16 = vmul.f32 %v9563_v10, %v9563_v10  ;;  %v688_v17 = vmul.f32 %v9566_v11, %v9566_v11  ;;  %v9581_v19 = vld [vmem:[%s9536_s26 + $0x20] sm:$0xff]  ;;  %v9586_v21 = vld [vmem:[%s9536_s26 + $0x28] sm:$0xff] }
  0xb6   : > { %7706 = vmatpush3.bf16.msra.mxu0 %v8558_v2  ;;  %v8567_v18 = vld [vmem:[#allocation7 + $0x10] sm:$0xff]   ;;  %v690_v23 = vmul.f32 %v9572_v14, %v9572_v14  ;;  %v8568_v25 = vld [vmem:[#allocation7 + $0x48] sm:$0xff]   ;;  %v691_v28 = vmul.f32 %v9581_v19, %v9581_v19  ;;  %v9598_v30 = vld [vmem:[%s9536_s26 + $0x40] sm:$0xff]  ;;  %v692_v32 = vmul.f32 %v9586_v21, %v9586_v21 }
  0xb7   : > { %7707 = vmatprep.subr.bf16.mxu0 %v8560_v4  ;;  %7738 = vmatpush3.bf16.msra.mxu1 %v8559_v3  ;;  %v675_v22 = vadd.f32 %v674_v15, %v9569_v12  ;;  %v695_v24 = vadd.f32 %v688_v17, %v687_v16  ;;  %v9592_v26 = vld [vmem:[%s9536_s26 + $0x30] sm:$0xff]  ;;  %v9603_v33 = vld [vmem:[%s9536_s26 + $0x48] sm:$0xff]  ;;  %v812_v35 = vmul.f32 %v9598_v30, %v9598_v30  ;;  %v9612_v38 = vld [vmem:[%s9536_s26 + $0x58] sm:$0xff] }
  0xb8   : > { %7739 = vmatprep.subr.bf16.mxu1 %v8561_v5  ;;  %v8569_v31 = vld [vmem:[#allocation7 + $0x8] sm:$0xff]   ;;  %v799_v39 = vadd.f32 %v9603_v33, %v9598_v30  ;;  %v813_v40 = vmul.f32 %v9603_v33, %v9603_v33  ;;  %v9619_v41 = vld [vmem:[%s9536_s26 + $0x38] sm:$0xff]  ;;  %v693_v42 = vmul.f32 %v9592_v26, %v9592_v26  ;;  %v8570_v44 = vld [vmem:[#allocation7 + $0x40] sm:$0xff]   ;;  %v815_v50 = vmul.f32 %v9612_v38, %v9612_v38  ;;  %p13010_p5 = scmp.ne.s32.totalorder %s13008_s14, 0 }
  0xb9   : > { %v676_v27 = vadd.f32 %v675_v22, %v9572_v14  ;;  %v696_v29 = vadd.f32 %v695_v24, %v689_v20  ;;  %v9606_v34 = vld [vmem:[%s9536_s26 + $0x50] sm:$0xff]  ;;  %v9627_v47 = vld [vmem:[%s9536_s26 + $0x60] sm:$0xff]  ;;  %v694_v53 = vmul.f32 %v9619_v41, %v9619_v41  ;;  %v9636_v55 = vld [vmem:[%s9536_s26 + $0x68] sm:$0xff]  ;;  %s12307_s29 = scalar_lea.hbm %s13009_s4, %s7334_s30 }
  0xba   : > { %7708 = vmatpush3.bf16.msra.mxu0 %v8560_v4  ;;  %v814_v43 = vmul.f32 %v9606_v34, %v9606_v34  ;;  %v800_v48 = vadd.f32 %v799_v39, %v9606_v34  ;;  %v8571_v49 = vld [vmem:[#allocation7] sm:$0xff]   ;;  %v820_v51 = vadd.f32 %v813_v40, %v812_v35  ;;  %v816_v57 = vmul.f32 %v9627_v47, %v9627_v47  ;;  %v9642_v61 = vld [vmem:[#allocation7 + $0xb8] sm:$0xff]   ;;  %v9645_v62 = vld [vmem:[%s9536_s26 + $0x70] sm:$0xff] }
  0xbb   : > { %7709 = vmatprep.subr.bf16.mxu0 %v8562_v6  ;;  %7740 = vmatpush3.bf16.msra.mxu1 %v8561_v5  ;;  %v677_v36 = vadd.f32 %v676_v27, %v9581_v19  ;;  %v697_v37 = vadd.f32 %v696_v29, %v690_v23  ;;  %v817_v0 = vmul.f32 %v9636_v55, %v9636_v55  ;;  %v9650_v2 = vld [vmem:[#allocation7 + $0xf8] sm:$0xff]  }
  0xbc   : > { %7741 = vmatprep.subr.bf16.mxu1 %v8563_v7  ;;  %v801_v56 = vadd.f32 %v800_v48, %v9612_v38  ;;  %v821_v58 = vadd.f32 %v820_v51, %v814_v43  ;;  %v9653_v5 = vld [vmem:[%s9536_s26 + $0x78] sm:$0xff] }
  0xbd   : > { %v678_v45 = vadd.f32 %v677_v36, %v9586_v21  ;;  %v698_v46 = vadd.f32 %v697_v37, %v691_v28  ;;  %v819_v16 = vmul.f32 %v9653_v5, %v9653_v5 }
  0xbe   : > { %7710 = vmatpush3.bf16.msra.mxu0 %v8562_v6  ;;  %v802_v63 = vadd.f32 %v801_v56, %v9627_v47  ;;  %v822_v1 = vadd.f32 %v821_v58, %v815_v50  ;;  %v12389_v56 = vlaneseq }
  0xbf   : > { %7711 = vmatprep.subr.bf16.mxu0 %v8564_v8  ;;  %7742 = vmatpush3.bf16.msra.mxu1 %v8563_v7  ;;  %v679_v52 = vadd.f32 %v678_v45, %v9592_v26  ;;  %v699_v54 = vadd.f32 %v698_v46, %v692_v32  ;;  %v818_v7 = vmul.f32 %v9645_v62, %v9645_v62 }
  0xc0   : > { %7743 = vmatprep.subr.bf16.mxu1 %v8565_v9  ;;  %v803_v6 = vadd.f32 %v802_v63, %v9636_v55  ;;  %v9665_v63 = vshrl.u32 %v12389_v56, 7 }
  0xc1   : > { %v680_v59 = vadd.f32 %v679_v52, %v9619_v41  ;;  %v700_v60 = vadd.f32 %v699_v54, %v693_v42 }
  0xc2   : > { %7712 = vmatpush3.bf16.msra.mxu0 %v8564_v8  ;;  %v823_v8 = vadd.f32 %v822_v1, %v816_v57  ;;  %v804_v15 = vadd.f32 %v803_v6, %v9645_v62  ;;  %12555 = vst [vmem:[#allocation27_spill] sm:$0xff] %v9665_v63  ;;  %v927_v1 = vadd.s32 8, %v9665_v63  ;;  %v929_v6 = vadd.s32 24, %v9665_v63 }
  0xc3   : > { %7713 = vmatprep.subr.bf16.mxu0 %v8566_v13  ;;  %7744 = vmatpush3.bf16.msra.mxu1 %v8565_v9  ;;  %v681_v3 = vrot.slane %v680_v59, 4  ;;  %v701_v4 = vadd.f32 %v700_v60, %v694_v53  ;;  %vm12414_vm0 = vcmp.lt.s32.totalorder %v9665_v63, 1 }
  0xc4   : > { %7745 = vmatprep.subr.bf16.mxu1 %v8567_v18  ;;  %v824_v17 = vadd.f32 %v823_v8, %v817_v0  ;;  %v805_v22 = vadd.f32 %v804_v15, %v9653_v5  ;;  %v9672_v8 = vsub.s32 0, %v9665_v63  ;;  %v943_v15 = vand.u32 63, %v927_v1 }
  0xc5   : > { %v682_v9 = vadd.f32 %v681_v3, %v680_v59  ;;  %v9716_v1 = vadd.s32 88, %v9665_v63 }
  0xc6   : > { %7714 = vmatpush3.bf16.msra.mxu0 %v8566_v13  ;;  %v702_v13 = vrot.slane %v701_v4, 4  ;;  %v825_v23 = vadd.f32 %v824_v17, %v818_v7  ;;  %v806_v27 = vrot.slane %v805_v22, 4  ;;  %v930_v7 = vadd.s32 32, %v9665_v63  ;;  %12556 = vst [vmem:[#allocation28_spill] sm:$0xff] %v9672_v8 }
  0xc7   : > { %7715 = vmatprep.subr.bf16.mxu0 %v8568_v25  ;;  %7746 = vmatpush3.bf16.msra.mxu1 %v8567_v18  ;;  %v683_v18 = vrot.slane %v682_v9, 2  ;;  %v945_v17 = vand.u32 63, %v929_v6 }
  0xc8   : > { %7747 = vmatprep.subr.bf16.mxu1 %v8569_v31  ;;  %v703_v20 = vadd.f32 %v702_v13, %v701_v4  ;;  %v826_v28 = vadd.f32 %v825_v23, %v819_v16  ;;  %v807_v32 = vadd.f32 %v806_v27, %v805_v22  ;;  %v928_v4 = vadd.s32 16, %v9665_v63  ;;  %v672_v23 = vld [vmem:[%s12357_s2] sm:$0x1] }
  0xc9   : > { %v684_v24 = vadd.f32 %v683_v18, %v682_v9  ;;  %v942_v9 = vand.u32 63, %v9665_v63  ;;  %v931_v13 = vadd.s32 40, %v9665_v63  ;;  %v932_v18 = vadd.s32 48, %v9665_v63 }
  0xca   : > { %7716 = vmatpush3.bf16.msra.mxu0 %v8568_v25  ;;  %v704_v25 = vrot.slane %v703_v20, 2  ;;  %v827_v35 = vrot.slane %v826_v28, 4  ;;  %v808_v39 = vrot.slane %v807_v32, 2  ;;  %v944_v16 = vand.u32 63, %v928_v4 }
  0xcb   : > { %7717 = vmatprep.subr.bf16.mxu0 %v8570_v44  ;;  %7748 = vmatpush3.bf16.msra.mxu1 %v8569_v31  ;;  %v685_v29 = vrot.slane %v684_v24, 1  ;;  %v933_v22 = vadd.s32 56, %v9665_v63 }
  0xcc   : > { %7749 = vmatprep.subr.bf16.mxu1 %v8571_v49  ;;  %v705_v31 = vadd.f32 %v704_v25, %v703_v20  ;;  %v828_v40 = vadd.f32 %v827_v35, %v826_v28  ;;  %v946_v20 = vand.u32 63, %v930_v7  ;;  %v947_v25 = vand.u32 63, %v931_v13 }
  0xcd   : > { %v686_v36 = vadd.f32 %v685_v29, %v684_v24  ;;  %v9681_v24 = vand.u32 7, %v942_v9  ;;  %v9683_v28 = vand.u32 7, %v943_v15  ;;  %v9685_v29 = vand.u32 7, %v944_v16 }
  0xce   : > { %7718 = vmatpush3.bf16.msra.mxu0 %v8570_v44  ;;  %v706_v37 = vrot.slane %v705_v31, 1  ;;  %v809_v44 = vadd.f32 %v808_v39, %v807_v32  ;;  %v829_v45 = vrot.slane %v828_v40, 2  ;;  %v948_v32 = vand.u32 63, %v932_v18  ;;  %v673_v39 = vld [vmem:[%s12358_s3] sm:$0x1] }
  0xcf   : > { %7750 = vmatpush3.bf16.msra.mxu1 %v8571_v49  ;;  %7767 = vmatprep.subr.bf16.mxu0 %v9642_v61  ;;  %v708_v43 = vmul.f32 0.015625, %v686_v36  ;;  %12557 = vst [vmem:[#allocation29_spill] sm:$0xff] %v9681_v24  ;;  %12558 = vst [vmem:[#allocation30_spill] sm:$0xff] %v9683_v28  ;;  %v9689_v36 = vand.u32 7, %v946_v20  ;;  %vm12394_vm1 = vcmp.ge.s32.totalorder %v9683_v28, 1  ;;  %vm992_vm2 = vcmp.ge.s32.totalorder %v9685_v29, 1 }
  0xd0   : > { %7799 = vmatprep.subr.bf16.mxu1 %v9650_v2  ;;  %v707_v42 = vadd.f32 %v706_v37, %v705_v31  ;;  %v810_v49 = vrot.slane %v809_v44, 1  ;;  %v830_v50 = vadd.f32 %v829_v45, %v828_v40  ;;  %v9687_v31 = vand.u32 7, %v945_v17  ;;  %vm9873_vm9 = vmpackc.low %vm12394_vm1, %vm12411_vm8 }
  0xd1   : > { %v710_v48 = vmul.f32 %v708_v43, %v708_v43  ;;  %v949_v37 = vand.u32 63, %v933_v22  ;;  %v9698_v45 = vadd.s32 72, %v9665_v63  ;;  %vm994_vm4 = vcmp.ge.s32.totalorder %v9689_v36, 1 }
  0xd2   : > { %v709_v46 = vmul.f32 0.015625, %v707_v42  ;;  %v811_v52 = vadd.f32 %v810_v49, %v809_v44  ;;  %v831_v53 = vrot.slane %v830_v50, 1  ;;  %v9695_v44 = vand.u32 7, %v947_v25 }
  0xd3   : > { %vm993_vm3 = vcmp.ge.s32.totalorder %v9687_v31, 1 }
  0xd4   : > { %v711_v51 = vsub.f32 %v709_v46, %v710_v48  ;;  %v833_v57 = vmul.f32 0.015625, %v811_v52  ;;  %v832_v58 = vadd.f32 %v831_v53, %v830_v50  ;;  %v9700_v46 = vand.u32 7, %v948_v32  ;;  %vm9910_vm11 = vmpackc.low %vm993_vm3, %vm992_vm2 }
  0xd5   : > { %v9703_v48 = vadd.s32 80, %v9665_v63  ;;  %vm995_vm5 = vcmp.ge.s32.totalorder %v9695_v44, 1  ;;  %vm12624_vm3 = vcmp.lt.s32.totalorder %v9695_v44, 7 }
  0xd6   : > { %v712_v54 = vadd.f32 1e-05, %v711_v51  ;;  %v835_v59 = vmul.f32 %v833_v57, %v833_v57  ;;  %v834_v60 = vmul.f32 0.015625, %v832_v58  ;;  %v9711_v58 = vand.u32 7, %v949_v37  ;;  %vm9924_vm12 = vmpackc.low %vm995_vm5, %vm994_vm4 }
  0xd7   : > { %vm12398_vm6 = vcmp.ge.s32.totalorder %v9700_v46, 1 }
  0xd8   : > { %8748 = vrsqrt.f32 %v712_v54  ;;  %v836_v0 = vsub.f32 %v834_v60, %v835_v59  ;;  %vm997_vm7 = vcmp.ge.s32.totalorder %v9711_v58, 1 }
  0xd9   : > { %vm10002_vm5 = vmpackc.low %vm997_vm7, %vm12398_vm6  ;;  %vm12611_vm6 = vcmp.ge.s32.totalorder %v9681_v24, 1  ;;  %v8585_v24 = vld [vmem:[#allocation7 + $0xc8] sm:$0xff]  }
  0xda   : > { %v837_v3 = vadd.f32 1e-05, %v836_v0  ;;  %v951_v0 = vand.u32 63, %v9698_v45 }
  0xdc   : > { %8750 = vrsqrt.f32 %v837_v3 }
  0xe5   : > { %v8749_v27 = vpop.eup %8748 }
  0xe6   : > { %v714_v35 = vmul.f32 %v8749_v27, %v672_v23 }
  0xe8   : > { %v715_v40 = vmul.f32 %v714_v35, %v708_v43  ;;  %v720_v42 = vrot.slane %v714_v35, %v9672_v8 }
  0xe9   : > { %v8751_v59 = vpop.eup %8750 }
  0xea   : > { %v716_v49 = vsub.f32 %v673_v39, %v715_v40  ;;  %v721_v50 = vmul.f32 %v720_v42, %v9563_v10  ;;  %v722_v51 = vmul.f32 %v720_v42, %v9566_v11  ;;  %v723_v52 = vmul.f32 %v720_v42, %v9569_v12 }
  0xeb   : > { %v724_v43 = vmul.f32 %v720_v42, %v9572_v14  ;;  %v725_v53 = vmul.f32 %v720_v42, %v9581_v19  ;;  %v726_v54 = vmul.f32 %v720_v42, %v9586_v21  ;;  %v839_v10 = vmul.f32 %v8751_v59, %v672_v23 }
  0xec   : > { %v733_v60 = vrot.slane %v716_v49, %v9672_v8  ;;  %v727_v11 = vmul.f32 %v720_v42, %v9592_v26  ;;  %v728_v12 = vmul.f32 %v720_v42, %v9619_v41  ;;  %v952_v14 = vand.u32 63, %v9703_v48 }
  0xed   : > { %v840_v6 = vmul.f32 %v839_v10, %v833_v57  ;;  %v845_v7 = vrot.slane %v839_v10, %v9672_v8  ;;  %v9787_v48 = vadd.s32 96, %v9665_v63 }
  0xee   : > { %v9721_v19 = vadd.f32 %v733_v60, %v721_v50  ;;  %v9723_v21 = vadd.f32 %v733_v60, %v722_v51  ;;  %v9725_v3 = vadd.f32 %v733_v60, %v723_v52  ;;  %v9727_v4 = vadd.f32 %v733_v60, %v724_v43 }
  0xef   : > { %v9730_v9 = vadd.f32 %v733_v60, %v725_v53  ;;  %v9732_v13 = vadd.f32 %v733_v60, %v726_v54  ;;  %v841_v17 = vsub.f32 %v673_v39, %v840_v6  ;;  %v853_v18 = vmul.f32 %v845_v7, %v9653_v5 }
  0xf0   : > { %v743_v26 = vsub.f32 0.0, %v9721_v19  ;;  %v744_v41 = vsub.f32 0.0, %v9723_v21  ;;  %v745_v15 = vsub.f32 0.0, %v9725_v3  ;;  %v746_v16 = vsub.f32 0.0, %v9727_v4 }
  0xf1   : > { %v747_v20 = vsub.f32 0.0, %v9730_v9  ;;  %v9740_v57 = vadd.f32 %v733_v60, %v727_v11  ;;  %v846_v27 = vmul.f32 %v845_v7, %v9598_v30  ;;  %v858_v35 = vrot.slane %v841_v17, %v9672_v8 }
  0xf2   : > { %v751_v22 = vmul.f32 1.442695, %v743_v26  ;;  %v753_v23 = vmul.f32 1.442695, %v744_v41  ;;  %v755_v25 = vmul.f32 1.442695, %v745_v15  ;;  %v847_v5 = vmul.f32 %v845_v7, %v9603_v33 }
  0xf3   : > { %v757_v32 = vmul.f32 1.442695, %v746_v16  ;;  %v759_v37 = vmul.f32 1.442695, %v747_v20  ;;  %v748_v40 = vsub.f32 0.0, %v9732_v13  ;;  %v749_v39 = vsub.f32 0.0, %v9740_v57 }
  0xf4   : > { %8752 = vpow2.f32 %v751_v22  ;;  %v848_v42 = vmul.f32 %v845_v7, %v9606_v34  ;;  %v9748_v45 = vadd.f32 %v858_v35, %v853_v18  ;;  %v9750_v50 = vadd.f32 %v858_v35, %v846_v27 }
  0xf5   : > { %8754 = vpow2.f32 %v753_v23  ;;  %v761_v49 = vmul.f32 1.442695, %v748_v40  ;;  %v763_v30 = vmul.f32 1.442695, %v749_v39  ;;  %v9752_v51 = vadd.f32 %v858_v35, %v847_v5 }
  0xf6   : > { %8756 = vpow2.f32 %v755_v25  ;;  %v9754_v52 = vadd.f32 %v858_v35, %v848_v42  ;;  %v875_v43 = vsub.f32 0.0, %v9748_v45  ;;  %v868_v53 = vsub.f32 0.0, %v9750_v50 }
  0xf7   : > { %8758 = vpow2.f32 %v757_v32  ;;  %v9758_v33 = vadd.f32 %v733_v60, %v728_v12  ;;  %v869_v34 = vsub.f32 0.0, %v9752_v51  ;;  %v849_v59 = vmul.f32 %v845_v7, %v9612_v38 }
  0xf8   : > { %8760 = vpow2.f32 %v759_v37  ;;  %v870_v54 = vsub.f32 0.0, %v9754_v52  ;;  %v890_v10 = vmul.f32 1.442695, %v875_v43  ;;  %v876_v11 = vmul.f32 1.442695, %v868_v53 }
  0xf9   : > { %8762 = vpow2.f32 %v761_v49  ;;  %v750_v6 = vsub.f32 0.0, %v9758_v33  ;;  %v878_v26 = vmul.f32 1.442695, %v869_v34  ;;  %v850_v15 = vmul.f32 %v845_v7, %v9627_v47 }
  0xfa   : > { %8764 = vpow2.f32 %v763_v30  ;;  %v880_v41 = vmul.f32 1.442695, %v870_v54  ;;  %v9765_v12 = vadd.f32 %v858_v35, %v849_v59  ;;  %v851_v16 = vmul.f32 %v845_v7, %v9636_v55 }
  0xfb   : > { %8766 = vpow2.f32 %v890_v10  ;;  %v765_v60 = vmul.f32 1.442695, %v750_v6  ;;  %v9768_v17 = vand.u32 7, %v951_v0  ;;  %v9770_v38 = vadd.f32 %v858_v35, %v850_v15 }
  0xfc   : > { %8768 = vpow2.f32 %v876_v11  ;;  %v852_v18 = vmul.f32 %v845_v7, %v9645_v62  ;;  %v953_v20 = vand.u32 63, %v9716_v1  ;;  %v871_v22 = vsub.f32 0.0, %v9765_v12 }
  0xfd   : > { %8770 = vpow2.f32 %v878_v26  ;;  %v9775_v23 = vadd.f32 %v858_v35, %v851_v16  ;;  %v872_v47 = vsub.f32 0.0, %v9770_v38  ;;  %v9783_v27 = vand.u32 7, %v952_v14 }
  0xfe   : > { %8772 = vpow2.f32 %v880_v41  ;;  %v9778_v25 = vadd.f32 %v858_v35, %v852_v18  ;;  %v882_v55 = vmul.f32 1.442695, %v871_v22  ;;  %v9790_v11 = vadd.s32 104, %v9665_v63 }
  0xff   : > { %8774 = vpow2.f32 %v765_v60  ;;  %v873_v0 = vsub.f32 0.0, %v9775_v23  ;;  %v884_v62 = vmul.f32 1.442695, %v872_v47  ;;  %v9792_v47 = vand.u32 7, %v953_v20 }
 0x100   : > { %v874_v1 = vsub.f32 0.0, %v9778_v25  ;;  %8776 = vpow2.f32 %v882_v55  ;;  %v940_v20 = vadd.s32 112, %v9665_v63  ;;  %vm12407_vm10 = vcmp.ge.s32.totalorder %v9768_v17, 1 }
 0x101   : > { %v8753_v7 = vpop.eup %8752  ;;  %v886_v32 = vmul.f32 1.442695, %v873_v0  ;;  %8778 = vpow2.f32 %v884_v62  ;;  %v954_v0 = vand.u32 63, %v9787_v48  ;;  %vm1000_vm13 = vcmp.ge.s32.totalorder %v9783_v27, 1  ;;  %vm10015_vm7 = vmpackc.low %vm12407_vm10, %vm12411_vm8 }
 0x102   : > { %v8755_v37 = vpop.eup %8754  ;;  %v767_v40 = vadd.f32 1.0, %v8753_v7  ;;  %v888_v39 = vmul.f32 1.442695, %v874_v1  ;;  %vm1001_vm14 = vcmp.ge.s32.totalorder %v9792_v47, 1 }
 0x103   : > { %v8757_v35 = vpop.eup %8756  ;;  %v768_v5 = vadd.f32 1.0, %v8755_v37  ;;  %8780 = vpow2.f32 %v886_v32  ;;  %v955_v32 = vand.u32 63, %v9790_v11  ;;  %vm10055_vm10 = vmpackc.low %vm1001_vm14, %vm1000_vm13  ;;  %vm12598_vm14 = vcmp.lt.s32.totalorder %v9683_v28, 7 }
 0x104   : > { %v8759_v42 = vpop.eup %8758  ;;  %8782 = vrcp.f32 %v767_v40  ;;  %v769_v49 = vadd.f32 1.0, %v8757_v35 }
 0x105   : > { %v8761_v14 = vpop.eup %8760  ;;  %8784 = vrcp.f32 %v768_v5  ;;  %v770_v30 = vadd.f32 1.0, %v8759_v42  ;;  %v941_v42 = vadd.s32 120, %v9665_v63 }
 0x106   : > { %v8763_v43 = vpop.eup %8762  ;;  %8786 = vrcp.f32 %v769_v49  ;;  %v771_v53 = vadd.f32 1.0, %v8761_v14 }
 0x107   : > { %v8765_v34 = vpop.eup %8764  ;;  %8788 = vrcp.f32 %v770_v30  ;;  %v772_v54 = vadd.f32 1.0, %v8763_v43  ;;  %v12392_v43 = vmov 0.0   ;;  %v957_v11 = vand.u32 63, %v941_v42 }
 0x108   : > { %v8767_v59 = vpop.eup %8766  ;;  %8790 = vrcp.f32 %v771_v53  ;;  %v773_v10 = vadd.f32 1.0, %v8765_v34  ;;  %v12562_v42 = vmov 0 }
 0x109   : > { %v8769_v6 = vpop.eup %8768  ;;  %v899_v26 = vadd.f32 1.0, %v8767_v59  ;;  %8792 = vrcp.f32 %v772_v54  ;;  %v8574_v54 = vld [vmem:[#allocation7 + $0xb0] sm:$0xff]   ;;  %v12563_v42 = vsel %vm9873_vm9, 4294967295, %v12562_v42 }
 0x10a   : > { %v8771_v41 = vpop.eup %8770  ;;  %8794 = vrcp.f32 %v773_v10  ;;  %v892_v15 = vadd.f32 1.0, %v8769_v6  ;;  %12564 = vst [vmem:[#allocation34_spill] sm:$0xff] %v12563_v42  ;;  %v12586_v42 = vmov 0.0  }
 0x10b   : > { %v8773_v60 = vpop.eup %8772  ;;  %8796 = vrcp.f32 %v899_v26  ;;  %v893_v16 = vadd.f32 1.0, %v8771_v41 }
 0x10c   : > { %v8775_v18 = vpop.eup %8774  ;;  %8798 = vrcp.f32 %v892_v15  ;;  %v894_v22 = vadd.f32 1.0, %v8773_v60 }
 0x10d   : > { %8800 = vrcp.f32 %v893_v16  ;;  %v774_v55 = vadd.f32 1.0, %v8775_v18  ;;  %v8777_v62 = vpop.eup %8776  ;;  %v9829_v16 = vand.u32 7, %v954_v0 }
 0x10e   : > { %8802 = vrcp.f32 %v894_v22  ;;  %v8779_v1 = vpop.eup %8778  ;;  %v895_v7 = vadd.f32 1.0, %v8777_v62 }
 0x10f   : > { %8804 = vrcp.f32 %v774_v55  ;;  %v896_v40 = vadd.f32 1.0, %v8779_v1  ;;  %vm1002_vm15 = vcmp.ge.s32.totalorder %v9829_v16, 1 }
 0x110   : > { %v8781_v37 = vpop.eup %8780  ;;  %8806 = vpow2.f32 %v888_v39 }
 0x111   : > { %v8783_v35 = vpop.eup %8782  ;;  %8808 = vrcp.f32 %v895_v7  ;;  %v897_v5 = vadd.f32 1.0, %v8781_v37  ;;  %v9847_v37 = vand.u32 7, %v955_v32 }
 0x112   : > { %v8785_v49 = vpop.eup %8784  ;;  %v9801_v48 = vmul.f32 %v8783_v35, %v9721_v19  ;;  %8810 = vrcp.f32 %v896_v40  ;;  %v956_v19 = vand.u32 63, %v940_v20  ;;  %v934_v40 = vadd.s32 64, %v9665_v63 }
 0x113   : > { %v8787_v14 = vpop.eup %8786  ;;  %v9804_v30 = vmul.f32 %v8785_v49, %v9723_v21  ;;  %8812 = vrcp.f32 %v897_v5  ;;  %vm1003_vm2 = vcmp.ge.s32.totalorder %v9847_v37, 1 }
 0x114   : > { %12559 = vst [vmem:[#allocation31_spill] sm:$0xff] %v9801_v48  ;;  %v8789_v39 = vpop.eup %8788  ;;  %v1175_v53 = vpack.c.bf16 %v9801_v48, %v12392_v43  ;;  %v9811_v34 = vmul.f32 %v8787_v14, %v9725_v3  ;;  %v1022_v10 = vrot.slane %v9801_v48, 7  ;;  %vm10073_vm13 = vmpackc.low %vm1003_vm2, %vm1002_vm15 }
 0x115   : > { %v8791_v21 = vpop.eup %8790  ;;  %v9816_v59 = vmul.f32 %v8789_v39, %v9727_v4  ;;  %v1023_v26 = vrot.slane %v9804_v30, 7  ;;  %vm10089_vm15 = vmpackc.low %vm12598_vm14, %vm12411_vm8  ;;  %vm12610_vm14 = vcmp.lt.s32.totalorder %v9665_v63, 7 }
 0x116   : > { %v8793_v6 = vpop.eup %8792  ;;  %7719 = vmatprep.mubr.bf16.mxu0 %v1175_v53  ;;  %v9821_v3 = vpack.c.bf16 %v9811_v34, %v9804_v30  ;;  %v1024_v41 = vrot.slane %v9811_v34, 7  ;;  %v9826_v15 = vmul.f32 %v8791_v21, %v9730_v9  ;;  %v8576_v9 = vld [vmem:[#allocation7 + $0xa8] sm:$0xff]  }
 0x117   : > { %v8795_v60 = vpop.eup %8794  ;;  %v1025_v4 = vrot.slane %v9816_v59, 7  ;;  %v9837_v55 = vmul.f32 %v8793_v6, %v9732_v13 }
 0x118   : > { %12560 = vst [vmem:[#allocation32_spill] sm:$0xff] %v9821_v3  ;;  %v8797_v18 = vpop.eup %8796  ;;  %7720 = vmatmul.mubr.bf16.vlgmr.msra.gmra.mxu0 %v9821_v3  ;;  %v9834_v22 = vpack.c.bf16 %v9826_v15, %v9816_v59  ;;  %v9840_v62 = vmul.f32 %v8795_v60, %v9740_v57  ;;  %v12391_v1 = vrot.slane %v9826_v15, 7  ;;  %v9852_v13 = vsel %vm12414_vm0, %v1023_v26, %v1024_v41 }
 0x119   : > { %v8799_v7 = vpop.eup %8798  ;;  %7768 = vmatpush3.bf16.msra.mxu0 %v9642_v61  ;;  %v9845_v0 = vmul.f32 %v8797_v18, %v9748_v45  ;;  %v9856_v57 = vsel %vm12414_vm0, %v1022_v10, %v1023_v26  ;;  %v9861_v61 = vand.u32 7, %v956_v19  ;;  %v9863_v45 = vand.u32 7, %v957_v11 }
 0x11a   : > { %12561 = vst [vmem:[#allocation33_spill] sm:$0xff] %v9834_v22  ;;  %v8801_v20 = vpop.eup %8800  ;;  %7769 = vmatprep.subr.bf16.mxu0 %v8574_v54  ;;  %7723 = vmatprep.mubr.bf16.mxu0 %v9834_v22  ;;  %v9868_v5 = vsel %vm12414_vm0, %v1024_v41, %v1025_v4  ;;  %v9881_v49 = vsel %vm12414_vm0, %v1025_v4, %v12391_v1  ;;  %v950_v26 = vand.u32 63, %v934_v40  ;;  %v8578_v40 = vld [vmem:[#allocation7 + $0xa0] sm:$0xff]   ;;  %v12574_v1 = vrot.slane %v9840_v62, 7  ;;  %v8584_v22 = vld [vmem:[#allocation7 + $0x88] sm:$0xff]  }
 0x11b   : > { %v8803_v32 = vpop.eup %8802  ;;  %v12390_v35 = vrot.slane %v9845_v0, 7  ;;  %v9884_v14 = vmul.f32 %v8799_v7, %v9750_v50  ;;  %v9889_v53 = vpack.c.bf16 %v9840_v62, %v9837_v55  ;;  %v9899_v11 = vpack.c.bf16 %v9852_v13, %v9856_v57  ;;  %v8575_v50 = vld [vmem:[#allocation7 + $0xf0] sm:$0xff]  }
 0x11c   : > { %v8805_v39 = vpop.eup %8804  ;;  %v12571_v7 = vmov 0  ;;  %v9932_v56 = vmul.f32 %v8803_v32, %v9754_v52  ;;  %v8577_v32 = vld [vmem:[#allocation7 + $0xe8] sm:$0xff]   ;;  %vm12603_vm2 = vcmp.ge.s32.totalorder %v9861_v61, 1  ;;  %vm12604_vm4 = vcmp.ge.s32.totalorder %v9863_v45, 1 }
 0x11d   : > { %12565 = vst [vmem:[#allocation35_spill] sm:$0xff] %v9889_v53  ;;  %v8807_v19 = vpop.eup %8806  ;;  %v9895_v21 = vsel %vm12414_vm0, %v12390_v35, %v1022_v10  ;;  %12566 = vst [vmem:[#allocation36_spill] sm:$0xff] %v9899_v11  ;;  %7770 = vmatpush3.bf16.msra.mxu0 %v8574_v54  ;;  %v9902_v6 = vmul.f32 %v8805_v39, %v9758_v33  ;;  %v12567_v10 = vmov 0  ;;  %v9916_v54 = vpack.c.bf16 %v9881_v49, %v9868_v5 }
 0x11e   : > { %v8809_v41 = vpop.eup %8808  ;;  %v6857_v60 = vpack.c.bf16 %v9895_v21, %v12392_v43  ;;  %v12568_v10 = vsel %vm9910_vm11, 4294967295, %v12567_v10  ;;  %7771 = vmatprep.subr.bf16.mxu0 %v8576_v9  ;;  %v1027_v33 = vrot.slane %v9837_v55, 7  ;;  %v12572_v7 = vsel %vm9924_vm12, 4294967295, %v12571_v7  ;;  %vm10103_vm1 = vmpackc.low %vm12604_vm4, %vm12603_vm2 }
 0x11f   : > { %12569 = vst [vmem:[#allocation37_spill] sm:$0xff] %v12568_v10  ;;  %12570 = vst [vmem:[#allocation38_spill] sm:$0xff] %v9916_v54  ;;  %v8811_v18 = vpop.eup %8810  ;;  %v9929_v39 = vmul.f32 %v8801_v20, %v9752_v51  ;;  %v1179_v51 = vpack.c.bf16 %v9884_v14, %v12392_v43  ;;  %v8580_v20 = vld [vmem:[#allocation7 + $0x98] sm:$0xff]   ;;  %v898_v4 = vadd.f32 1.0, %v8807_v19  ;;  %v9955_v19 = vand.u32 7, %v950_v26  ;;  %v8579_v43 = vld [vmem:[#allocation7 + $0xe0] sm:$0xff]  }
 0x120   : > { %12573 = vst [vmem:[#allocation39_spill] sm:$0xff] %v12572_v7  ;;  %7751 = vmatprep.mubr.msk.bf16.mxu1 %vm9873_vm9, %v6857_v60  ;;  %7724 = vmatmul.mubr.bf16.gmra.mxu0 %v9889_v53  ;;  %v8813_v52 = vpop.eup %8812  ;;  %v9949_v60 = vmul.f32 %v8809_v41, %v9765_v12  ;;  %v9952_v35 = vmul.f32 %v8811_v18, %v9770_v38  ;;  %v12575_v12 = vrot.slane %v9826_v15, 7  ;;  %v12578_v41 = vrot.slane %v9902_v6, 7 }
 0x121   : > { %7752 = vmatmul.mubr.msk.bf16.vlgmr.msra.gmra.mxu1 %vm9910_vm11, %v9899_v11  ;;  %7772 = vmatpush3.bf16.msra.mxu0 %v8576_v9  ;;  %v9965_v9 = vsel %vm12414_vm0, %v1027_v33, %v12574_v1  ;;  %8814 = vrcp.f32 %v898_v4  ;;  %v9977_v26 = vpack.c.bf16 %v9932_v56, %v9929_v39  ;;  %v12577_v1 = vrot.slane %v9884_v14, 7 }
 0x122   : > { %7800 = vmatpush3.bf16.msra.mxu1 %v9650_v2  ;;  %7755 = vmatprep.mubr.msk.bf16.mxu1 %vm9924_vm12, %v9916_v54  ;;  %v9971_v38 = vsel %vm12414_vm0, %v12575_v12, %v1027_v33  ;;  %v1031_v4 = vrot.slane %v9929_v39, 7  ;;  %v1032_v12 = vrot.slane %v9932_v56, 7  ;;  %v9995_v2 = vmul.f32 %v8813_v52, %v9775_v23  ;;  %v8582_v33 = vld [vmem:[#allocation7 + $0x90] sm:$0xff]  }
 0x123   : > { %7801 = vmatprep.subr.bf16.mxu1 %v8575_v50  ;;  %7773 = vmatprep.subr.bf16.mxu0 %v8578_v40  ;;  %12576 = vst [vmem:[#allocation40_spill] sm:$0xff] %v9977_v26  ;;  %v9985_v18 = vsel %vm12414_vm0, %v12578_v41, %v12577_v1  ;;  %v12579_v41 = vmov 0  ;;  %v1033_v23 = vrot.slane %v9949_v60, 7  ;;  %v1034_v52 = vrot.slane %v9952_v35, 7 }
 0x124   : > { %7727 = vmatprep.mubr.bf16.mxu0 %v1179_v51  ;;  %v12580_v41 = vsel %vm10002_vm5, 4294967295, %v12579_v41  ;;  %v10008_v51 = vpack.c.bf16 %v9965_v9, %v9971_v38  ;;  %v12583_v1 = vmov 0  ;;  %v6869_v8 = vpack.c.bf16 %v9985_v18, %v12586_v42 }
 0x125   : > { %12581 = vst [vmem:[#allocation41_spill] sm:$0xff] %v12580_v41  ;;  %7774 = vmatpush3.bf16.msra.mxu0 %v8578_v40  ;;  %v12584_v1 = vsel %vm10015_vm7, 4294967295, %v12583_v1  ;;  %v1035_v54 = vrot.slane %v9995_v2, 7  ;;  %v8581_v40 = vld [vmem:[#allocation7 + $0xd8] sm:$0xff]   ;;  %v12588_v3 = vrot.slane %v9884_v14, 7  ;;  %v10063_v11 = vsel %vm12414_vm0, %v1033_v23, %v1034_v52 }
 0x126   : > { %12582 = vst [vmem:[#allocation42_spill] sm:$0xff] %v10008_v51  ;;  %7802 = vmatpush3.bf16.msra.mxu1 %v8575_v50  ;;  %7775 = vmatprep.subr.bf16.mxu0 %v8580_v20  ;;  %12585 = vst [vmem:[#allocation43_spill] sm:$0xff] %v12584_v1  ;;  %v10030_v50 = vpack.c.bf16 %v9952_v35, %v9949_v60  ;;  %v8586_v1 = vld [vmem:[#allocation7 + $0x80] sm:$0xff]   ;;  %vm12612_vm4 = vcmp.ge.s32.totalorder %v9683_v28, 1 }
 0x127   : > { %7803 = vmatprep.subr.bf16.mxu1 %v8577_v32  ;;  %v10049_v41 = vsel %vm12414_vm0, %v12588_v3, %v1031_v4  ;;  %12592 = vst [vmem:[#allocation46_spill] sm:$0xff] %v10063_v11  ;;  %v10067_v3 = vsel %vm12414_vm0, %v1032_v12, %v1033_v23  ;;  %v8583_v23 = vld [vmem:[#allocation7 + $0xd0] sm:$0xff]   ;;  %vm10121_vm2 = vmpackc.low %vm12612_vm4, %vm12611_vm6  ;;  %vm12616_vm6 = vcmp.lt.s32.totalorder %v9665_v63, 1  ;;  %vm12618_vm4 = vcmp.lt.s32.totalorder %v9687_v31, 7  ;;  %v8587_v31 = vld [vmem:[#allocation7 + $0xc0] sm:$0xff]  }
 0x128   : > { %7728 = vmatmul.mubr.bf16.gmra.mxu0 %v9977_v26  ;;  %12587 = vst [vmem:[#allocation44_spill] sm:$0xff] %v10030_v50  ;;  %v10043_v26 = vsel %vm12414_vm0, %v1031_v4, %v1032_v12  ;;  %12593 = vst [vmem:[#allocation47_spill] sm:$0xff] %v10067_v3  ;;  %v12594_v4 = vmov 0  ;;  %v10097_v53 = vpack.c.bf16 %v10063_v11, %v10067_v3  ;;  %v12613_v11 = vmov 0 }
 0x129   : > { %7756 = vmatmul.mubr.msk.bf16.gmra.mxu1 %vm10002_vm5, %v10008_v51  ;;  %7776 = vmatpush3.bf16.msra.mxu0 %v8580_v20  ;;  %v12589_v20 = vmov 0  ;;  %v12595_v4 = vsel %vm10073_vm13, 4294967295, %v12594_v4  ;;  %v10084_v12 = vpack.c.bf16 %v10043_v26, %v10049_v41  ;;  %v12599_v51 = vmov 0 }
 0x12a   : > { %7804 = vmatpush3.bf16.msra.mxu1 %v8577_v32  ;;  %7759 = vmatprep.mubr.msk.bf16.mxu1 %vm10015_vm7, %v6869_v8  ;;  %v12590_v20 = vsel %vm10055_vm10, 4294967295, %v12589_v20  ;;  %12596 = vst [vmem:[#allocation48_spill] sm:$0xff] %v12595_v4  ;;  %v12600_v51 = vsel %vm10089_vm15, 4294967295, %v12599_v51  ;;  %12602 = vst [vmem:[#allocation51_spill] sm:$0xff] %v10097_v53  ;;  %v12609_v8 = vrot.slane %v9801_v48, 1  ;;  %v12614_v11 = vsel %vm10121_vm2, 4294967295, %v12613_v11 }
 0x12b   : > { %12591 = vst [vmem:[#allocation45_spill] sm:$0xff] %v12590_v20  ;;  %7805 = vmatprep.subr.bf16.mxu1 %v8579_v43  ;;  %7777 = vmatprep.subr.bf16.mxu0 %v8582_v33  ;;  %12597 = vst [vmem:[#allocation49_spill] sm:$0xff] %v10084_v12  ;;  %v8588_v48 = vld [vmem:[#allocation7 + $0x138] sm:$0xff]   ;;  %v10136_v28 = vsel %vm12616_vm6, %v1034_v52, %v1035_v54  ;;  %vm12623_vm6 = vcmp.lt.s32.totalorder %v9689_v36, 7 }
 0x12c   : > { %7731 = vmatprep.mubr.bf16.mxu0 %v10030_v50  ;;  %12601 = vst [vmem:[#allocation50_spill] sm:$0xff] %v12600_v51  ;;  %v12608_v50 = vrot.slane %v9804_v30, 1  ;;  %12615 = vst [vmem:[#allocation53_spill] sm:$0xff] %v12614_v11 }
 0x12d   : > { %7778 = vmatpush3.bf16.msra.mxu0 %v8582_v33  ;;  %v12605_v33 = vmov 0  ;;  %vm10160_vm8 = vmpackc.low %vm12624_vm3, %vm12623_vm6  ;;  %vm12631_vm3 = vcmp.lt.s32.totalorder %v9665_v63, 7  ;;  %vm12648_vm6 = vcmp.lt.s32.totalorder %v9768_v17, 7 }
 0x12e   : > { %7806 = vmatpush3.bf16.msra.mxu1 %v8579_v43  ;;  %7779 = vmatprep.subr.bf16.mxu0 %v8584_v22  ;;  %v12606_v33 = vsel %vm10103_vm1, 4294967295, %v12605_v33  ;;  %v10113_v43 = vsel %vm12610_vm14, %v12609_v8, %v12608_v50  ;;  %v8815_v32 = vpop.eup %8814  ;;  %vm12617_vm14 = vcmp.lt.s32.totalorder %v9685_v29, 7  ;;  %v12625_v29 = vmov 0 }
 0x12f   : > { %12607 = vst [vmem:[#allocation52_spill] sm:$0xff] %v12606_v33  ;;  %7807 = vmatprep.subr.bf16.mxu1 %v8581_v40  ;;  %v10129_v8 = vmul.f32 %v8815_v32, %v9778_v25  ;;  %v6889_v3 = vpack.c.bf16 %v10113_v43, %v12586_v42  ;;  %vm10144_vm0 = vmpackc.low %vm12618_vm4, %vm12617_vm14  ;;  %v12619_v25 = vmov 0  ;;  %v12626_v29 = vsel %vm10160_vm8, 4294967295, %v12625_v29 }
 0x130   : > { %v12620_v25 = vsel %vm10144_vm0, 4294967295, %v12619_v25  ;;  %12627 = vst [vmem:[#allocation56_spill] sm:$0xff] %v12626_v29  ;;  %vm12628_vm14 = vcmp.lt.s32.totalorder %v9665_v63, 1  ;;  %v12630_v32 = vrot.slane %v9811_v34, 1  ;;  %vm12634_vm4 = vmmov %vm12631_vm3 }
 0x131   : > { %7760 = vmatmul.mubr.msk.bf16.gmra.mxu1 %vm10055_vm10, %v10084_v12  ;;  %7780 = vmatpush3.bf16.msra.mxu0 %v8584_v22  ;;  %12621 = vst [vmem:[#allocation54_spill] sm:$0xff] %v12620_v25  ;;  %v10150_v22 = vpack.c.bf16 %v10129_v8, %v9995_v2  ;;  %v12420_v52 = vrot.slane %v10129_v8, 7  ;;  %v12656_v12 = vrot.slane %v9837_v55, 1 }
 0x132   : > { %7808 = vmatpush3.bf16.msra.mxu1 %v8581_v40  ;;  %7763 = vmatprep.mubr.msk.bf16.mxu1 %vm10073_vm13, %v10097_v53  ;;  %v10184_v40 = vsel %vm12631_vm3, %v12608_v50, %v12630_v32  ;;  %v12635_v50 = vrot.slane %v9837_v55, 1 }
 0x133   : > { %12622 = vst [vmem:[#allocation55_spill] sm:$0xff] %v10150_v22  ;;  %7809 = vmatprep.subr.bf16.mxu1 %v8583_v23  ;;  %7781 = vmatprep.subr.bf16.mxu0 %v8586_v1  ;;  %v10172_v36 = vsel %vm12628_vm14, %v1035_v54, %v12420_v52  ;;  %v12632_v54 = vrot.slane %v9816_v59, 1  ;;  %v12633_v52 = vmov %v12630_v32  ;;  %vm12637_vm14 = vmmov %vm12631_vm3 }
 0x134   : > { %7732 = vmatmul.mubr.bf16.gmra.mxu0 %v10150_v22  ;;  %v10176_v44 = vpack.c.bf16 %v10172_v36, %v10136_v28 }
 0x135   : > { %7782 = vmatpush3.bf16.msra.mxu0 %v8586_v1  ;;  %7783 = vmatprep.mubr.msk.bf16.mxu0 %vm10089_vm15, %v6889_v3  ;;  %v10194_v22 = vsel %vm12634_vm4, %v12633_v52, %v12632_v54  ;;  %v6921_v1 = vpack.c.bf16 %v9856_v57, %v9895_v21  ;;  %v12636_v3 = vrot.slane %v9826_v15, 1  ;;  %v12639_v52 = vmov %v12632_v54  ;;  %v8590_v21 = vld [vmem:[#allocation7 + $0x130] sm:$0xff]  }
 0x136   : > { %12629 = vst [vmem:[#allocation57_spill] sm:$0xff] %v10176_v44  ;;  %7810 = vmatpush3.bf16.msra.mxu1 %v8583_v23  ;;  %7831 = vmatprep.subr.bf16.mxu0 %v8588_v48  ;;  %v10221_v57 = vpack.c.bf16 %v10194_v22, %v10184_v40  ;;  %vm12647_vm15 = vmmov 1  }
 0x137   : > { %v10205_v32 = vsel %vm12637_vm14, %v12636_v3, %v12635_v50  ;;  %v12638_v51 = vmov %v12636_v3  ;;  %7811 = vmatprep.subr.bf16.mxu1 %v8585_v24  ;;  %vm12642_vm14 = vcmp.lt.s32.totalorder %v9700_v46, 7  ;;  %v12644_v50 = vmov 0  ;;  %vm10243_vm4 = vmpackc.low %vm12648_vm6, %vm12647_vm15 }
 0x138   : > { %v10213_v54 = vsel %vm12631_vm3, %v12639_v52, %v12638_v51  ;;  %12640 = vst [vmem:[#allocation58_spill] sm:$0xff] %v10221_v57  ;;  %v8589_v51 = vld [vmem:[#allocation7 + $0x178] sm:$0xff]   ;;  %vm12643_vm3 = vcmp.lt.s32.totalorder %v9711_v58, 7  ;;  %v12649_v3 = vmov 0  ;;  %v8592_v58 = vld [vmem:[#allocation7 + $0x128] sm:$0xff]   ;;  %v6924_v52 = vpack.c.bf16 %v9868_v5, %v9852_v13 }
 0x139   : > { %7764 = vmatmul.mubr.msk.bf16.gmra.mxu1 %vm10103_vm1, %v10176_v44  ;;  %v10228_v23 = vpack.c.bf16 %v10205_v32, %v10213_v54  ;;  %vm10234_vm7 = vmpackc.low %vm12643_vm3, %vm12642_vm14  ;;  %v12650_v3 = vsel %vm10243_vm4, 4294967295, %v12649_v3  ;;  %v12653_v44 = vrot.slane %v9840_v62, 1  ;;  %vm12654_vm6 = vcmp.lt.s32.totalorder %v9665_v63, 7 }
 0x13a   : > { %v12645_v50 = vsel %vm10234_vm7, 4294967295, %v12644_v50  ;;  %7812 = vmatpush3.bf16.msra.mxu1 %v8585_v24  ;;  %7815 = vmatprep.mubr.msk.bf16.mxu1 %vm10121_vm2, %v6921_v1  ;;  %12651 = vst [vmem:[#allocation61_spill] sm:$0xff] %v12650_v3  ;;  %v8591_v24 = vld [vmem:[#allocation7 + $0x170] sm:$0xff]   ;;  %v12652_v1 = vrot.slane %v9902_v6, 1  ;;  %vm12657_vm14 = vmmov %vm12654_vm6  ;;  %v12658_v13 = vrot.slane %v9929_v39, 1  ;;  %v12659_v5 = vrot.slane %v9884_v14, 1 }
 0x13b   : > { %12641 = vst [vmem:[#allocation59_spill] sm:$0xff] %v10228_v23  ;;  %12646 = vst [vmem:[#allocation60_spill] sm:$0xff] %v12645_v50  ;;  %7813 = vmatprep.subr.bf16.mxu1 %v8587_v31  ;;  %vm12668_vm15 = vcmp.lt.s32.totalorder %v9792_v47, 7  ;;  %v8596_v47 = vld [vmem:[#allocation7 + $0x118] sm:$0xff]  }
 0x13c   : > { %7784 = vmatmul.mubr.msk.bf16.vlgmr.msra.gmra.mxu0 %vm10144_vm0, %v10221_v57  ;;  %v10261_v53 = vsel %vm12654_vm6, %v12653_v44, %v12652_v1  ;;  %v12655_v57 = vmov %v12653_v44  ;;  %vm12660_vm3 = vmmov %vm12654_vm6  ;;  %v6927_v44 = vpack.c.bf16 %v9971_v38, %v9881_v49  ;;  %vm12662_vm6 = vcmp.ge.s32.totalorder %v9955_v19, 1 }
 0x13d   : > { %7832 = vmatpush3.bf16.msra.mxu0 %v8588_v48  ;;  %7787 = vmatprep.mubr.msk.bf16.mxu0 %vm10160_vm8, %v10228_v23  ;;  %v10269_v48 = vsel %vm12657_vm14, %v12656_v12, %v12655_v57  ;;  %v10277_v23 = vsel %vm12660_vm3, %v12659_v5, %v12658_v13  ;;  %v8594_v12 = vld [vmem:[#allocation7 + $0x120] sm:$0xff]   ;;  %vm12663_vm14 = vcmp.ge.s32.totalorder %v9768_v17, 1  ;;  %v8593_v57 = vld [vmem:[#allocation7 + $0x168] sm:$0xff]   ;;  %vm12667_vm3 = vcmp.lt.s32.totalorder %v9783_v27, 7 }
 0x13e   : > { %7814 = vmatpush3.bf16.msra.mxu1 %v8587_v31  ;;  %7833 = vmatprep.subr.bf16.mxu0 %v8590_v21  ;;  %v10283_v1 = vpack.c.bf16 %v10261_v53, %v10269_v48  ;;  %vm10289_vm9 = vmpackc.low %vm12663_vm14, %vm12662_vm6  ;;  %v12664_v31 = vmov 0  ;;  %v6901_v49 = vpack.c.bf16 %v10277_v23, %v12586_v42  ;;  %v12669_v38 = vmov 0 }
 0x13f   : > { %7863 = vmatprep.subr.bf16.mxu1 %v8589_v51  ;;  %v12665_v31 = vsel %vm10289_vm9, 4294967295, %v12664_v31  ;;  %vm10301_vm2 = vmpackc.low %vm12668_vm15, %vm12667_vm3  ;;  %v12672_v13 = vrot.slane %v9902_v6, 7  ;;  %v12673_v5 = vrot.slane %v9840_v62, 7  ;;  %vm12674_vm6 = vcmp.lt.s32.totalorder %v9665_v63, 1 }
 0x140   : > { %12661 = vst [vmem:[#allocation62_spill] sm:$0xff] %v10283_v1  ;;  %12666 = vst [vmem:[#allocation63_spill] sm:$0xff] %v12665_v31  ;;  %v12670_v38 = vsel %vm10301_vm2, 4294967295, %v12669_v38  ;;  %vm12675_vm14 = vcmp.lt.s32.totalorder %v9829_v16, 7  ;;  %v12677_v27 = vmov 0  ;;  %v8595_v16 = vld [vmem:[#allocation7 + $0x160] sm:$0xff]  }
 0x141   : > { %7816 = vmatmul.mubr.msk.bf16.vlgmr.msra.gmra.mxu1 %vm9910_vm11, %v6924_v52  ;;  %7834 = vmatpush3.bf16.msra.mxu0 %v8590_v21  ;;  %12671 = vst [vmem:[#allocation64_spill] sm:$0xff] %v12670_v38  ;;  %v10311_v21 = vsel %vm12674_vm6, %v12673_v5, %v12672_v13  ;;  %vm12676_vm11 = vcmp.lt.s32.totalorder %v9847_v37, 7  ;;  %v12680_v37 = vrot.slane %v9949_v60, 1  ;;  %v12681_v52 = vrot.slane %v9932_v56, 1 }
 0x142   : > { %7864 = vmatpush3.bf16.msra.mxu1 %v8589_v51  ;;  %7835 = vmatprep.subr.bf16.mxu0 %v8592_v58  ;;  %vm10317_vm8 = vmpackc.low %vm12676_vm11, %vm12675_vm14  ;;  %v6930_v51 = vpack.c.bf16 %v10311_v21, %v9965_v9  ;;  %vm12682_vm11 = vcmp.lt.s32.totalorder %v9665_v63, 7  ;;  %v12684_v5 = vrot.slane %v9929_v39, 1  ;;  %v12686_v9 = vrot.slane %v9995_v2, 1 }
 0x143   : > { %v12678_v27 = vsel %vm10317_vm8, 4294967295, %v12677_v27  ;;  %7865 = vmatprep.subr.bf16.mxu1 %v8591_v24  ;;  %7819 = vmatprep.mubr.msk.bf16.mxu1 %vm9924_vm12, %v6927_v44  ;;  %v10336_v44 = vsel %vm12682_vm11, %v12681_v52, %v12680_v37  ;;  %v12683_v13 = vmov %v12681_v52  ;;  %vm12685_vm15 = vmmov %vm12682_vm11  ;;  %v12690_v52 = vrot.slane %v9949_v60, 1 }
 0x144   : > { %12679 = vst [vmem:[#allocation65_spill] sm:$0xff] %v12678_v27  ;;  %7788 = vmatmul.mubr.msk.bf16.gmra.mxu0 %vm10234_vm7, %v10283_v1  ;;  %vm12688_vm3 = vmmov %vm12682_vm11  ;;  %vm12441_vm14 = vcmp.lt.s32.totalorder %v9861_v61, 7  ;;  %vm1505_vm11 = vcmp.lt.s32.totalorder %v9863_v45, 7  ;;  %v8601_v45 = vld [vmem:[#allocation7 + $0x148] sm:$0xff]  }
 0x145   : > { %7836 = vmatpush3.bf16.msra.mxu0 %v8592_v58  ;;  %7791 = vmatprep.mubr.msk.bf16.mxu0 %vm10243_vm4, %v6901_v49  ;;  %v10344_v58 = vsel %vm12685_vm15, %v12684_v5, %v12683_v13  ;;  %v12687_v49 = vrot.slane %v9952_v35, 1  ;;  %vm12691_vm6 = vmmov %vm12688_vm3  ;;  %v8598_v5 = vld [vmem:[#allocation7 + $0x110] sm:$0xff]  }
 0x146   : > { %7866 = vmatpush3.bf16.msra.mxu1 %v8591_v24  ;;  %7837 = vmatprep.subr.bf16.mxu0 %v8594_v12  ;;  %v6933_v24 = vpack.c.bf16 %v10049_v41, %v9985_v18  ;;  %v10368_v13 = vpack.c.bf16 %v10336_v44, %v10344_v58  ;;  %v8600_v18 = vld [vmem:[#allocation7 + $0x108] sm:$0xff]   ;;  %v12695_v41 = vld [vmem:[#allocation47_spill] sm:$0xff]  ;;  %vm12698_vm15 = vmmov %vm12688_vm3 }
 0x147   : > { %v10352_v3 = vsel %vm12688_vm3, %v12687_v49, %v12686_v9  ;;  %v12689_v37 = vmov %v12687_v49  ;;  %7867 = vmatprep.subr.bf16.mxu1 %v8593_v57  ;;  %v8597_v49 = vld [vmem:[#allocation7 + $0x158] sm:$0xff]  }
 0x148   : > { %v10360_v1 = vsel %vm12691_vm6, %v12690_v52, %v12689_v37  ;;  %12692 = vst [vmem:[#allocation66_spill] sm:$0xff] %v10368_v13  ;;  %v12697_v52 = vrot.slane %v10129_v8, 1  ;;  %vm10414_vm6 = vmpackc.low %vm1505_vm11, %vm12441_vm14  ;;  %vm1498_vm14 = vcmp.lt.s32.totalorder %v9955_v19, 7  ;;  %v8614_v19 = vld [vmem:[#allocation7 + $0x190] sm:$0xff]  }
 0x149   : > { %7820 = vmatmul.mubr.msk.bf16.gmra.mxu1 %vm10002_vm5, %v6930_v51  ;;  %7838 = vmatpush3.bf16.msra.mxu0 %v8594_v12  ;;  %v10374_v37 = vpack.c.bf16 %v10352_v3, %v10360_v1  ;;  %v6936_v12 = vpack.c.bf16 %v12695_v41, %v10043_v26  ;;  %v8599_v51 = vld [vmem:[#allocation7 + $0x150] sm:$0xff]   ;;  %v12701_v41 = vld [vmem:[#allocation46_spill] sm:$0xff] }
 0x14a   : > { %7868 = vmatpush3.bf16.msra.mxu1 %v8593_v57  ;;  %7839 = vmatprep.subr.bf16.mxu0 %v8596_v47  ;;  %v12696_v57 = vrot.slane %v9845_v0, 1  ;;  %v12699_v9 = vmov %v12697_v52 }
 0x14b   : > { %12694 = vst [vmem:[#allocation67_spill] sm:$0xff] %v10374_v37  ;;  %7869 = vmatprep.subr.bf16.mxu1 %v8595_v16  ;;  %7823 = vmatprep.mubr.msk.bf16.mxu1 %vm10289_vm9, %v6933_v24 }
 0x14c   : > { %7792 = vmatmul.mubr.msk.bf16.gmra.mxu0 %vm10301_vm2, %v10368_v13  ;;  %v10392_v24 = vsel %vm12698_vm15, %v12697_v52, %v12696_v57  ;;  %v12707_v52 = vrot.slane %v10129_v8, 7  ;;  %vm12708_vm15 = vcmp.lt.s32.totalorder %v9665_v63, 1 }
 0x14d   : > { %7840 = vmatpush3.bf16.msra.mxu0 %v8596_v47  ;;  %7795 = vmatprep.mubr.msk.bf16.mxu0 %vm10317_vm8, %v10374_v37  ;;  %v12700_v47 = vrot.slane %v9995_v2, 1  ;;  %v6939_v37 = vpack.c.bf16 %v10136_v28, %v12701_v41  ;;  %v12706_v28 = vrot.slane %v9845_v0, 7  ;;  %v8603_v41 = vld [vmem:[#allocation7 + $0x140] sm:$0xff]  }
 0x14e   : > { %7870 = vmatpush3.bf16.msra.mxu1 %v8595_v16  ;;  %7841 = vmatprep.subr.bf16.mxu0 %v8598_v5  ;;  %v12705_v16 = vld [vmem:[#allocation31_spill] sm:$0xff] }
 0x14f   : > { %v10400_v26 = vsel %vm12688_vm3, %v12700_v47, %v12699_v9  ;;  %7871 = vmatprep.subr.bf16.mxu1 %v8597_v49  ;;  %v12702_v9 = vmov 0  ;;  %v2023_v57 = vpack.c.bf16 %v9804_v30, %v12705_v16  ;;  %v8604_v47 = vld [vmem:[#allocation7 + $0x1b8] sm:$0xff]  }
 0x150   : > { %v10406_v13 = vpack.c.bf16 %v10392_v24, %v10400_v26  ;;  %v12703_v9 = vsel %vm10414_vm6, 4294967295, %v12702_v9 }
 0x151   : > { %7824 = vmatmul.mubr.msk.bf16.gmra.mxu1 %vm10055_vm10, %v6936_v12  ;;  %7842 = vmatpush3.bf16.msra.mxu0 %v8598_v5  ;;  %12704 = vst [vmem:[#allocation47_spill] sm:$0xff] %v12703_v9  ;;  %v10426_v5 = vsel %vm12708_vm15, %v12707_v52, %v12706_v28  ;;  %v8602_v12 = vld [vmem:[#allocation7 + $0x100] sm:$0xff]   ;;  %v12710_v28 = vld [vmem:[#allocation30_spill] sm:$0xff]  ;;  %v12712_v52 = vmov 0 }
 0x152   : > { %7872 = vmatpush3.bf16.msra.mxu1 %v8597_v49  ;;  %7843 = vmatprep.subr.bf16.mxu0 %v8600_v18  ;;  %v6942_v30 = vpack.c.bf16 %v10426_v5, %v10172_v36  ;;  %v12709_v49 = vld [vmem:[#allocation29_spill] sm:$0xff]  ;;  %vm12711_vm3 = vcmp.lt.s32.totalorder %v12710_v28, 7  ;;  %v2025_v36 = vpack.c.bf16 %v9837_v55, %v9826_v15  ;;  %v8608_v15 = vld [vmem:[#allocation7 + $0x1a8] sm:$0xff]  }
 0x153   : > { %7873 = vmatprep.subr.bf16.mxu1 %v8599_v51  ;;  %7827 = vmatprep.mubr.msk.bf16.mxu1 %vm10073_vm13, %v6939_v37  ;;  %vm1490_vm11 = vcmp.lt.s32.totalorder %v12709_v49, 7  ;;  %v6961_v37 = vpack.c.bf16 %v10184_v40, %v10113_v43  ;;  %v8605_v43 = vld [vmem:[#allocation7 + $0x1f8] sm:$0xff]   ;;  %v12715_v40 = vpack.c.bf16 %v9816_v59, %v9811_v34  ;;  %v8607_v55 = vld [vmem:[#allocation7 + $0x1f0] sm:$0xff]   ;;  %v2027_v34 = vpack.c.bf16 %v9929_v39, %v9884_v14  ;;  %v12731_v28 = vld [vmem:[#allocation32_spill] sm:$0xff] }
 0x154   : > { %7796 = vmatmul.mubr.msk.bf16.gmra.mxu0 %vm10414_vm6, %v10406_v13  ;;  %vm10440_vm15 = vmpackc.low %vm12711_vm3, %vm1490_vm11  ;;  %v12716_v59 = vrot.slane %v9884_v14, 1  ;;  %vm12718_vm11 = vcmp.lt.s32.totalorder %v9665_v63, 7  ;;  %vm12719_vm3 = vnez %v12626_v29  ;;  %v8612_v14 = vld [vmem:[#allocation7 + $0x198] sm:$0xff]   ;;  %v6979_v49 = vpack.c.bf16 %v10400_v26, %v10352_v3  ;;  %v8617_v3 = vld [vmem:[#allocation7 + $0x1c8] sm:$0xff]  }
 0x155   : > { %7844 = vmatpush3.bf16.msra.mxu0 %v8600_v18  ;;  %7847 = vmatprep.mubr.bf16.mxu0 %v2023_v57  ;;  %v12713_v52 = vsel %vm10440_vm15, 4294967295, %v12712_v52  ;;  %v8606_v18 = vld [vmem:[#allocation7 + $0x1b0] sm:$0xff]   ;;  %v6967_v57 = vpack.c.bf16 %v10269_v48, %v10205_v32  ;;  %v8610_v32 = vld [vmem:[#allocation7 + $0x1a0] sm:$0xff]   ;;  %v12728_v26 = vpack.c.bf16 %v9845_v0, %v10129_v8 }
 0x156   : > { %7874 = vmatpush3.bf16.msra.mxu1 %v8599_v51  ;;  %7845 = vmatprep.subr.bf16.mxu0 %v8602_v12  ;;  %12714 = vst [vmem:[#allocation46_spill] sm:$0xff] %v12713_v52  ;;  %v6964_v51 = vpack.c.bf16 %v10213_v54, %v10194_v22  ;;  %v12717_v22 = vrot.slane %v9902_v6, 1  ;;  %v8611_v48 = vld [vmem:[#allocation7 + $0x1e0] sm:$0xff]   ;;  %v8621_v8 = vld [vmem:[#allocation7 + $0x230] sm:$0xff]  }
 0x157   : > { %7875 = vmatprep.subr.bf16.mxu1 %v8601_v45 }
 0x158   : > { %v10469_v54 = vsel %vm12718_vm11, %v12717_v22, %v12716_v59  ;;  %vm12720_vm11 = vcmp.lt.s32.totalorder %v9768_v17, 7  ;;  %v12724_v17 = vpack.c.bf16 %v9949_v60, %v9932_v56  ;;  %v12725_v56 = vrot.slane %v12705_v16, 1  ;;  %v8625_v59 = vld [vmem:[#allocation7 + $0x210] sm:$0xff]   ;;  %v12744_v22 = vld [vmem:[#allocation51_spill] sm:$0xff] }
 0x159   : > { %7828 = vmatmul.mubr.msk.bf16.gmra.mxu1 %vm10103_vm1, %v6942_v30  ;;  %7846 = vmatpush3.bf16.msra.mxu0 %v8602_v12  ;;  %v2026_v12 = vpack.c.bf16 %v9902_v6, %v9840_v62  ;;  %v8609_v62 = vld [vmem:[#allocation7 + $0x1e8] sm:$0xff]   ;;  %v6970_v39 = vpack.c.bf16 %v10469_v54, %v10261_v53  ;;  %vm10480_vm1 = vmpackc.low %vm12720_vm11, %vm1498_vm14  ;;  %v12721_v30 = vmov 0  ;;  %v2029_v53 = vpack.c.bf16 %v9995_v2, %v9952_v35  ;;  %v8615_v2 = vld [vmem:[#allocation7 + $0x1d0] sm:$0xff]  }
 0x15a   : > { %7876 = vmatpush3.bf16.msra.mxu1 %v8601_v45  ;;  %7895 = vmatprep.subr.bf16.mxu0 %v8604_v47  ;;  %v6973_v45 = vpack.c.bf16 %v10344_v58, %v10277_v23  ;;  %v12722_v30 = vsel %vm10480_vm1, 4294967295, %v12721_v30  ;;  %v8613_v23 = vld [vmem:[#allocation7 + $0x1d8] sm:$0xff]   ;;  %v6976_v58 = vpack.c.bf16 %v10360_v1, %v10336_v44  ;;  %v8616_v35 = vld [vmem:[#allocation7 + $0x188] sm:$0xff]   ;;  %v12726_v60 = vrot.slane %v9845_v0, 1  ;;  %v8618_v44 = vld [vmem:[#allocation7 + $0x180] sm:$0xff]  }
 0x15b   : > { %7877 = vmatprep.subr.bf16.mxu1 %v8603_v41  ;;  %7879 = vmatprep.mubr.msk.bf16.mxu1 %vm10440_vm15, %v6961_v37  ;;  %12723 = vst [vmem:[#allocation31_spill] sm:$0xff] %v12722_v30  ;;  %vm12727_vm14 = vcmp.lt.s32.totalorder %v9665_v63, 7  ;;  %vm12730_vm11 = vnez %v12614_v11  ;;  %v8619_v37 = vld [vmem:[#allocation7 + $0x1c0] sm:$0xff]  }
 0x15c   : > { %7848 = vmatmul.mubr.bf16.vlgmr.msra.gmra.mxu0 %v12715_v40  ;;  %v10505_v1 = vsel %vm12727_vm14, %v12726_v60, %v12725_v56  ;;  %vm12733_vm14 = vnez %v12568_v10  ;;  %v12735_v40 = vld [vmem:[#allocation33_spill] sm:$0xff] }
 0x15d   : > { %7896 = vmatpush3.bf16.msra.mxu0 %v8604_v47  ;;  %7851 = vmatprep.mubr.bf16.mxu0 %v2025_v36  ;;  %v6982_v16 = vpack.c.bf16 %v10505_v1, %v10392_v24  ;;  %v12729_v47 = vld [vmem:[#allocation36_spill] sm:$0xff]  ;;  %v12732_v24 = vld [vmem:[#allocation38_spill] sm:$0xff] }
 0x15e   : > { %7878 = vmatpush3.bf16.msra.mxu1 %v8603_v41  ;;  %7897 = vmatprep.subr.bf16.mxu0 %v8606_v18  ;;  %v8620_v41 = vld [vmem:[#allocation7 + $0x238] sm:$0xff]  }
 0x15f   : > { %7927 = vmatprep.subr.bf16.mxu1 %v8605_v43  ;;  %v12734_v36 = vld [vmem:[#allocation42_spill] sm:$0xff] }
 0x161   : > { %7880 = vmatmul.mubr.msk.bf16.vlgmr.msra.gmra.mxu1 %vm10144_vm0, %v6964_v51  ;;  %7898 = vmatpush3.bf16.msra.mxu0 %v8606_v18  ;;  %v8622_v18 = vld [vmem:[#allocation7 + $0x228] sm:$0xff]   ;;  %v12738_v51 = vmov 0 }
 0x162   : > { %7928 = vmatpush3.bf16.msra.mxu1 %v8605_v43  ;;  %7899 = vmatprep.subr.bf16.mxu0 %v8608_v15  ;;  %v7002_v43 = vpack.c.bf16 %v12586_v42, %v10311_v21  ;;  %v2760_v21 = vpack.c.bf16 %v12586_v42, %v9902_v6  ;;  %v8626_v6 = vld [vmem:[#allocation7 + $0x208] sm:$0xff]  }
 0x163   : > { %7929 = vmatprep.subr.bf16.mxu1 %v8607_v55  ;;  %7883 = vmatprep.mubr.msk.bf16.mxu1 %vm12719_vm3, %v6967_v57  ;;  %v12742_v57 = vld [vmem:[#allocation49_spill] sm:$0xff] }
 0x164   : > { %7852 = vmatmul.mubr.bf16.gmra.mxu0 %v2026_v12  ;;  %v8624_v12 = vld [vmem:[#allocation7 + $0x218] sm:$0xff]  }
 0x165   : > { %7900 = vmatpush3.bf16.msra.mxu0 %v8608_v15  ;;  %7855 = vmatprep.mubr.bf16.mxu0 %v2027_v34  ;;  %v12741_v15 = vld [vmem:[#allocation35_spill] sm:$0xff]  ;;  %v12743_v34 = vld [vmem:[#allocation40_spill] sm:$0xff] }
 0x166   : > { %7930 = vmatpush3.bf16.msra.mxu1 %v8607_v55  ;;  %7901 = vmatprep.subr.bf16.mxu0 %v8610_v32  ;;  %v8623_v55 = vld [vmem:[#allocation7 + $0x220] sm:$0xff]  }
 0x167   : > { %7931 = vmatprep.subr.bf16.mxu1 %v8609_v62 }
 0x169   : > { %7884 = vmatmul.mubr.msk.bf16.gmra.mxu1 %vm10234_vm7, %v6970_v39  ;;  %7902 = vmatpush3.bf16.msra.mxu0 %v8610_v32  ;;  %v12745_v32 = vld [vmem:[#allocation57_spill] sm:$0xff]  ;;  %v12746_v39 = vld [vmem:[#allocation44_spill] sm:$0xff] }
 0x16a   : > { %7932 = vmatpush3.bf16.msra.mxu1 %v8609_v62  ;;  %7903 = vmatprep.subr.bf16.mxu0 %v8612_v14  ;;  %v7014_v62 = vpack.c.bf16 %v12586_v42, %v10426_v5  ;;  %v2764_v5 = vpack.c.bf16 %v12586_v42, %v9845_v0  ;;  %v12756_v0 = vmov 0 }
 0x16b   : > { %7933 = vmatprep.subr.bf16.mxu1 %v8611_v48  ;;  %7887 = vmatprep.mubr.msk.bf16.mxu1 %vm10480_vm1, %v6973_v45  ;;  %v8627_v45 = vld [vmem:[#allocation7 + $0x200] sm:$0xff]  }
 0x16c   : > { %7856 = vmatmul.mubr.bf16.gmra.mxu0 %v12724_v17  ;;  %v7042_v17 = vpack.c.bf16 %v12586_v42, %v10469_v54  ;;  %v12762_v54 = vmov 0 }
 0x16d   : > { %7904 = vmatpush3.bf16.msra.mxu0 %v8612_v14  ;;  %7859 = vmatprep.mubr.bf16.mxu0 %v2029_v53  ;;  %v12748_v14 = vmov 0  ;;  %v12752_v53 = vld [vmem:[#allocation58_spill] sm:$0xff] }
 0x16e   : > { %7934 = vmatpush3.bf16.msra.mxu1 %v8611_v48  ;;  %7905 = vmatprep.subr.bf16.mxu0 %v8614_v19  ;;  %v12751_v48 = vld [vmem:[#allocation55_spill] sm:$0xff] }
 0x16f   : > { %7935 = vmatprep.subr.bf16.mxu1 %v8613_v23 }
 0x171   : > { %7888 = vmatmul.mubr.msk.bf16.gmra.mxu1 %vm10301_vm2, %v6976_v58  ;;  %7906 = vmatpush3.bf16.msra.mxu0 %v8614_v19  ;;  %v12753_v19 = vld [vmem:[#allocation59_spill] sm:$0xff]  ;;  %v12759_v58 = vld [vmem:[#allocation66_spill] sm:$0xff] }
 0x172   : > { %7936 = vmatpush3.bf16.msra.mxu1 %v8613_v23  ;;  %7907 = vmatprep.subr.bf16.mxu0 %v8616_v35  ;;  %v12754_v23 = vld [vmem:[#allocation62_spill] sm:$0xff] }
 0x173   : > { %7937 = vmatprep.subr.bf16.mxu1 %v8615_v2  ;;  %7891 = vmatprep.mubr.msk.bf16.mxu1 %vm10317_vm8, %v6979_v49 }
 0x174   : > { %7860 = vmatmul.mubr.bf16.gmra.mxu0 %v12728_v26 }
 0x175   : > { %7908 = vmatpush3.bf16.msra.mxu0 %v8616_v35  ;;  %7911 = vmatprep.mubr.msk.bf16.mxu0 %vm12730_vm11, %v12729_v47  ;;  %vm12737_vm11 = vmmov 1   ;;  %v12760_v35 = vld [vmem:[#allocation67_spill] sm:$0xff] }
 0x176   : > { %7938 = vmatpush3.bf16.msra.mxu1 %v8615_v2  ;;  %7909 = vmatprep.subr.bf16.mxu0 %v8618_v44 }
 0x177   : > { %7939 = vmatprep.subr.bf16.mxu1 %v8617_v3 }
 0x179   : > { %7892 = vmatmul.mubr.msk.bf16.gmra.mxu1 %vm10414_vm6, %v6982_v16  ;;  %7910 = vmatpush3.bf16.msra.mxu0 %v8618_v44  ;;  %vm12736_vm6 = vcmp.ge.s32.totalorder %v9700_v46, 1 }
 0x17a   : > { %7940 = vmatpush3.bf16.msra.mxu1 %v8617_v3  ;;  %7959 = vmatprep.subr.bf16.mxu0 %v8620_v41  ;;  %vm10532_vm4 = vmpackc.low %vm12737_vm11, %vm12736_vm6  ;;  %vm12747_vm6 = vcmp.ge.s32.totalorder %v9861_v61, 1 }
 0x17b   : > { %7941 = vmatprep.subr.bf16.mxu1 %v8619_v37  ;;  %7943 = vmatprep.mubr.bf16.mxu1 %v12731_v28  ;;  %v12739_v51 = vsel %vm10532_vm4, 4294967295, %v12738_v51 }
 0x17c   : > { %7912 = vmatmul.mubr.msk.bf16.vlgmr.msra.gmra.mxu0 %vm12733_vm14, %v12732_v24  ;;  %12740 = vst [vmem:[#allocation29_spill] sm:$0xff] %v12739_v51 }
 0x17d   : > { %7960 = vmatpush3.bf16.msra.mxu0 %v8620_v41  ;;  %7915 = vmatprep.mubr.msk.bf16.mxu0 %vm9924_vm12, %v12734_v36 }
 0x17e   : > { %7942 = vmatpush3.bf16.msra.mxu1 %v8619_v37  ;;  %7961 = vmatprep.subr.bf16.mxu0 %v8621_v8 }
 0x181   : > { %7944 = vmatmul.mubr.bf16.vlgmr.msra.gmra.mxu1 %v12735_v40  ;;  %7962 = vmatpush3.bf16.msra.mxu0 %v8621_v8 }
 0x182   : > { %7963 = vmatprep.subr.bf16.mxu0 %v8622_v18  ;;  %7947 = vmatprep.mubr.bf16.mxu1 %v12741_v15 }
 0x184   : > { %7916 = vmatmul.mubr.msk.bf16.gmra.mxu0 %vm10532_vm4, %v7002_v43  ;;  %vm10557_vm4 = vmpackc.low %vm12737_vm11, %vm12747_vm6  ;;  %vm12755_vm6 = vcmp.lt.s32.totalorder %v9700_v46, 7  ;;  %v7054_v46 = vpack.c.bf16 %v12586_v42, %v10505_v1 }
 0x185   : > { %7964 = vmatpush3.bf16.msra.mxu0 %v8622_v18  ;;  %7919 = vmatprep.mubr.msk.bf16.mxu0 %vm10289_vm9, %v12742_v57  ;;  %v12749_v14 = vsel %vm10557_vm4, 4294967295, %v12748_v14 }
 0x186   : > { %7965 = vmatprep.subr.bf16.mxu0 %v8623_v55  ;;  %12750 = vst [vmem:[#allocation30_spill] sm:$0xff] %v12749_v14 }
 0x189   : > { %7948 = vmatmul.mubr.bf16.gmra.mxu1 %v2760_v21  ;;  %7966 = vmatpush3.bf16.msra.mxu0 %v8623_v55 }
 0x18a   : > { %7967 = vmatprep.subr.bf16.mxu0 %v8624_v12  ;;  %7951 = vmatprep.mubr.bf16.mxu1 %v12743_v34 }
 0x18c   : > { %7920 = vmatmul.mubr.msk.bf16.gmra.mxu0 %vm10055_vm10, %v12744_v22 }
 0x18d   : > { %7968 = vmatpush3.bf16.msra.mxu0 %v8624_v12  ;;  %7923 = vmatprep.mubr.msk.bf16.mxu0 %vm10073_vm13, %v12745_v32 }
 0x18e   : > { %7969 = vmatprep.subr.bf16.mxu0 %v8625_v59 }
 0x191   : > { %7952 = vmatmul.mubr.bf16.gmra.mxu1 %v12746_v39  ;;  %7970 = vmatpush3.bf16.msra.mxu0 %v8625_v59 }
 0x192   : > { %7971 = vmatprep.subr.bf16.mxu0 %v8626_v6  ;;  %7955 = vmatprep.mubr.bf16.mxu1 %v12751_v48 }
 0x194   : > { %7924 = vmatmul.mubr.msk.bf16.gmra.mxu0 %vm10557_vm4, %v7014_v62  ;;  %vm10580_vm4 = vmpackc.low %vm12737_vm11, %vm12755_vm6  ;;  %vm12761_vm6 = vcmp.lt.s32.totalorder %v9861_v61, 7 }
 0x195   : > { %7972 = vmatpush3.bf16.msra.mxu0 %v8626_v6  ;;  %7975 = vmatprep.mubr.msk.bf16.mxu0 %vm10440_vm15, %v12752_v53  ;;  %v12757_v0 = vsel %vm10580_vm4, 4294967295, %v12756_v0  ;;  %vm10600_vm15 = vmpackc.low %vm12737_vm11, %vm12761_vm6 }
 0x196   : > { %7973 = vmatprep.subr.bf16.mxu0 %v8627_v45  ;;  %12758 = vst [vmem:[#allocation36_spill] sm:$0xff] %v12757_v0  ;;  %v12763_v54 = vsel %vm10600_vm15, 4294967295, %v12762_v54 }
 0x197   : > { %12764 = vst [vmem:[#allocation32_spill] sm:$0xff] %v12763_v54 }
 0x199   : > { %7956 = vmatmul.mubr.bf16.gmra.mxu1 %v2764_v5  ;;  %7974 = vmatpush3.bf16.msra.mxu0 %v8627_v45 }
 0x19c   : > { %7976 = vmatmul.mubr.msk.bf16.vlgmr.msra.gmra.mxu0 %vm10144_vm0, %v12753_v19 }
 0x19d   : > { %7979 = vmatprep.mubr.msk.bf16.mxu0 %vm12719_vm3, %v12754_v23 }
 0x1a4   : > { %7980 = vmatmul.mubr.msk.bf16.gmra.mxu0 %vm10580_vm4, %v7042_v17 }
 0x1a5   : > { %7983 = vmatprep.mubr.msk.bf16.mxu0 %vm10480_vm1, %v12759_v58 }
 0x1ac   : > { %7984 = vmatmul.mubr.msk.bf16.gmra.mxu0 %vm10301_vm2, %v12760_v35 }
 0x1ad   : > { %7987 = vmatprep.mubr.msk.bf16.mxu0 %vm10317_vm8, %v10406_v13 }
 0x1b4   : > { %7988 = vmatmul.mubr.msk.bf16.gmra.mxu0 %vm10600_vm15, %v7054_v46 }
 0x1d8   : > { %v7721_v2 = vpop.f32.mrf.mxu0 }
 0x1da   : > { %v1282_v49 = vpop.f32.mrf.mxu0 }
 0x1dc   : > { %v7722_v56 = vpop.f32.mrf.mxu0 }
 0x1de   : > { %v10606_v60 = vpop.f32.mrf.mxu0 }
 0x1e0   : > { %v7725_v44 = vpop.f32.mrf.mxu0 }
 0x1e1   : > { %v7753_v13 = vpop.f32.mrf.mxu1 }
 0x1e2   : > { %v1436_v3 = vadd.f32 %v7753_v13, %v7721_v2  ;;  %v1298_v26 = vpop.f32.mrf.mxu0 }
 0x1e3   : > { %v1427_v1 = vpop.f32.mrf.mxu1 }
 0x1e4   : > { %v1428_v16 = vadd.f32 %v1427_v1, %v1282_v49  ;;  %v7726_v61 = vpop.f32.mrf.mxu0 }
 0x1e5   : > { %v7754_v47 = vpop.f32.mrf.mxu1 }
 0x1e6   : > { %v1439_v41 = vadd.f32 %v7754_v47, %v7722_v56  ;;  %v10608_v37 = vpop.f32.mrf.mxu0 }
 0x1e7   : > { %v10610_v8 = vpop.f32.mrf.mxu1 }
 0x1e8   : > { %v7729_v28 = vpop.f32.mrf.mxu0 }
 0x1e9   : > { %v7757_v24 = vpop.f32.mrf.mxu1 }
 0x1ea   : > { %v1452_v36 = vadd.f32 %v7757_v24, %v7725_v44  ;;  %v1314_v18 = vpop.f32.mrf.mxu0 }
 0x1eb   : > { %v1443_v43 = vpop.f32.mrf.mxu1 }
 0x1ec   : > { %v1444_v40 = vadd.f32 %v1443_v43, %v1298_v26  ;;  %v7730_v15 = vpop.f32.mrf.mxu0 }
 0x1ed   : > { %v7758_v55 = vpop.f32.mrf.mxu1 }
 0x1ee   : > { %v1455_v21 = vadd.f32 %v7758_v55, %v7726_v61  ;;  %v10614_v12 = vpop.f32.mrf.mxu0 }
 0x1ef   : > { %v10612_v57 = vpop.f32.mrf.mxu1 }
 0x1f1   : > { %v7761_v34 = vpop.f32.mrf.mxu1 }
 0x1f2   : > { %v1468_v59 = vadd.f32 %v7761_v34, %v7729_v28 }
 0x1f3   : > { %v1459_v22 = vpop.f32.mrf.mxu1 }
 0x1f4   : > { %v1460_v32 = vadd.f32 %v1459_v22, %v1314_v18  ;;  %v7733_v6 = vpop.f32.mrf.mxu0 }
 0x1f5   : > { %v7762_v62 = vpop.f32.mrf.mxu1 }
 0x1f6   : > { %v1471_v39 = vadd.f32 %v7762_v62, %v7730_v15  ;;  %v1330_v48 = vpop.f32.mrf.mxu0 }
 0x1f7   : > { %v10616_v45 = vpop.f32.mrf.mxu1 }
 0x1f8   : > { %v7734_v5 = vpop.f32.mrf.mxu0 }
 0x1f9   : > { %v7765_v53 = vpop.f32.mrf.mxu1 }
 0x1fa   : > { %v1484_v19 = vadd.f32 %v7765_v53, %v7733_v6  ;;  %v10618_v23 = vpop.f32.mrf.mxu0 }
 0x1fb   : > { %v1475_v17 = vpop.f32.mrf.mxu1 }
 0x1fc   : > { %v1476_v58 = vadd.f32 %v1475_v17, %v1330_v48  ;;  %v7785_v35 = vpop.f32.mrf.mxu0 }
 0x1fd   : > { %v7766_v46 = vpop.f32.mrf.mxu1  ;;  %v1775_v2 = vadd.f32 %v7785_v35, %v1436_v3 }
 0x1fe   : > { %v1487_v49 = vadd.f32 %v7766_v46, %v7734_v5  ;;  %v1710_v56 = vpop.f32.mrf.mxu0 }
 0x1ff   : > { %v10620_v44 = vpop.f32.mrf.mxu1  ;;  %v10622_v13 = vadd.f32 %v1710_v56, %v1428_v16 }
 0x200   : > { %v7786_v26 = vpop.f32.mrf.mxu0 }
 0x201   : > { %v7817_v1 = vpop.f32.mrf.mxu1  ;;  %v10624_v61 = vadd.f32 %v7786_v26, %v1439_v41 }
 0x202   : > { %v2009_v47 = vadd.f32 %v7817_v1, %v1775_v2  ;;  %v10626_v28 = vpop.f32.mrf.mxu0 }
 0x203   : > { %v10628_v24 = vpop.f32.mrf.mxu1 }
 0x204   : > { %v7789_v18 = vpop.f32.mrf.mxu0 }
 0x205   : > { %v10630_v43 = vpop.f32.mrf.mxu1  ;;  %v1779_v15 = vadd.f32 %v7789_v18, %v1452_v36 }
 0x206   : > { %v1726_v3 = vpop.f32.mrf.mxu0 }
 0x207   : > { %v10632_v55 = vpop.f32.mrf.mxu1  ;;  %v10634_v34 = vadd.f32 %v1726_v3, %v1444_v40 }
 0x208   : > { %v7790_v16 = vpop.f32.mrf.mxu0 }
 0x209   : > { %v7821_v22 = vpop.f32.mrf.mxu1  ;;  %v10636_v6 = vadd.f32 %v7790_v16, %v1455_v21 }
 0x20a   : > { %v2013_v41 = vadd.f32 %v7821_v22, %v1779_v15  ;;  %v10638_v62 = vpop.f32.mrf.mxu0 }
 0x20b   : > { %v10640_v48 = vpop.f32.mrf.mxu1 }
 0x20c   : > { %v7793_v5 = vpop.f32.mrf.mxu0 }
 0x20d   : > { %v10642_v53 = vpop.f32.mrf.mxu1  ;;  %v1783_v17 = vadd.f32 %v7793_v5, %v1468_v59 }
 0x20e   : > { %v1742_v35 = vpop.f32.mrf.mxu0 }
 0x20f   : > { %v10644_v36 = vpop.f32.mrf.mxu1  ;;  %v10646_v46 = vadd.f32 %v1742_v35, %v1460_v32 }
 0x210   : > { %v7794_v40 = vpop.f32.mrf.mxu0 }
 0x211   : > { %v7825_v2 = vpop.f32.mrf.mxu1  ;;  %v10648_v56 = vadd.f32 %v7794_v40, %v1471_v39 }
 0x212   : > { %v2017_v21 = vadd.f32 %v7825_v2, %v1783_v17  ;;  %v10650_v26 = vpop.f32.mrf.mxu0 }
 0x213   : > { %v10652_v1 = vpop.f32.mrf.mxu1 }
 0x214   : > { %v7797_v18 = vpop.f32.mrf.mxu0 }
 0x215   : > { %v10654_v15 = vpop.f32.mrf.mxu1  ;;  %v1787_v3 = vadd.f32 %v7797_v18, %v1484_v19 }
 0x216   : > { %v1758_v16 = vpop.f32.mrf.mxu0 }
 0x217   : > { %v10656_v59 = vpop.f32.mrf.mxu1  ;;  %v10658_v22 = vadd.f32 %v1758_v16, %v1476_v58 }
 0x218   : > { %v7798_v32 = vpop.f32.mrf.mxu0 }
 0x219   : > { %v7829_v5 = vpop.f32.mrf.mxu1  ;;  %v10660_v35 = vadd.f32 %v7798_v32, %v1487_v49 }
 0x21a   : > { %v2021_v39 = vadd.f32 %v7829_v5, %v1787_v3  ;;  %v10662_v40 = vpop.f32.mrf.mxu0 }
 0x21b   : > { %v10664_v17 = vpop.f32.mrf.mxu1 }
 0x21c   : > { %v7849_v2 = vpop.f32.mrf.mxu0 }
 0x21d   : > { %v10666_v54 = vpop.f32.mrf.mxu1  ;;  %v10668_v0 = vadd.f32 %v7849_v2, %v2009_v47 }
 0x21e   : > { %v2130_v19 = vpop.f32.mrf.mxu0 }
 0x21f   : > { %v10670_v18 = vpop.f32.mrf.mxu1 }
 0x220   : > { %v7850_v14 = vpop.f32.mrf.mxu0 }
 0x221   : > { %v10672_v58 = vpop.f32.mrf.mxu1 }
 0x222   : > { %v10674_v16 = vpop.f32.mrf.mxu0 }
 0x223   : > { %v2364_v49 = vpop.f32.mrf.mxu1 }
 0x224   : > { %v7853_v32 = vpop.f32.mrf.mxu0 }
 0x225   : > { %v10676_v3 = vpop.f32.mrf.mxu1  ;;  %v10678_v5 = vadd.f32 %v7853_v32, %v2013_v41 }
 0x226   : > { %v10680_v51 = vpop.f32.mrf.mxu0 }
 0x227   : > { %v10682_v30 = vpop.f32.mrf.mxu1 }
 0x228   : > { %v10684_v47 = vpop.f32.mrf.mxu0 }
 0x229   : > { %v10686_v2 = vpop.f32.mrf.mxu1 }
 0x22a   : > { %12765 = vst [vmem:[#allocation38_spill] sm:$0xff] %v10686_v2  ;;  %v10688_v52 = vpop.f32.mrf.mxu0 }
 0x22b   : > { %v10690_v31 = vpop.f32.mrf.mxu1 }
 0x22c   : > { %v7857_v9 = vpop.f32.mrf.mxu0 }
 0x22d   : > { %v10692_v27 = vpop.f32.mrf.mxu1  ;;  %v10694_v38 = vadd.f32 %v7857_v9, %v2017_v21 }
 0x22e   : > { %12766 = vst [vmem:[#allocation42_spill] sm:$0xff] %v10692_v27  ;;  %v10696_v11 = vpop.f32.mrf.mxu0  ;;  %v1431_v27 = vadd.f32 %v10610_v8, %v10606_v60  ;;  %v1447_v60 = vadd.f32 %v10612_v57, %v10608_v37  ;;  %v2011_v37 = vadd.f32 %v10640_v48, %v10634_v34 }
 0x22f   : > { %12767 = vst [vmem:[#allocation33_spill] sm:$0xff] %v10694_v38  ;;  %v10698_v41 = vpop.f32.mrf.mxu1 }
 0x230   : > { %12768 = vst [vmem:[#allocation35_spill] sm:$0xff] %v10698_v41  ;;  %v10700_v32 = vpop.f32.mrf.mxu0 }
 0x231   : > { %v10702_v33 = vpop.f32.mrf.mxu1 }
 0x232   : > { %12769 = vst [vmem:[#allocation49_spill] sm:$0xff] %v10702_v33  ;;  %v10704_v50 = vpop.f32.mrf.mxu0 }
 0x233   : > { %12770 = vst [vmem:[#allocation40_spill] sm:$0xff] %v10704_v50  ;;  %v10706_v4 = vpop.f32.mrf.mxu1 }
 0x234   : > { %12771 = vst [vmem:[#allocation51_spill] sm:$0xff] %v10706_v4  ;;  %v7861_v20 = vpop.f32.mrf.mxu0 }
 0x235   : > { %v10708_v29 = vpop.f32.mrf.mxu1  ;;  %v10710_v25 = vadd.f32 %v7861_v20, %v2021_v39 }
 0x236   : > { %12772 = vst [vmem:[#allocation57_spill] sm:$0xff] %v10708_v29  ;;  %v10712_v7 = vpop.f32.mrf.mxu0 }
 0x237   : > { %12773 = vst [vmem:[#allocation44_spill] sm:$0xff] %v10710_v25  ;;  %12774 = vst [vmem:[#allocation55_spill] sm:$0xff] %v10712_v7  ;;  %v10714_v9 = vpop.f32.mrf.mxu1 }
 0x238   : > { %12775 = vst [vmem:[#allocation58_spill] sm:$0xff] %v10714_v9  ;;  %v10716_v21 = vpop.f32.mrf.mxu0 }
 0x239   : > { %12776 = vst [vmem:[#allocation59_spill] sm:$0xff] %v10716_v21  ;;  %v10718_v10 = vpop.f32.mrf.mxu1 }
 0x23a   : > { %12777 = vst [vmem:[#allocation62_spill] sm:$0xff] %v10718_v10  ;;  %v10720_v63 = vpop.f32.mrf.mxu0 }
 0x23b   : > { %12778 = vst [vmem:[#allocation66_spill] sm:$0xff] %v10720_v63  ;;  %v10722_v42 = vpop.f32.mrf.mxu1 }
 0x23c   : > { %12779 = vst [vmem:[#allocation67_spill] sm:$0xff] %v10722_v42  ;;  %v7913_v33 = vpop.f32.mrf.mxu0 }
 0x23d   : > { %v10724_v38 = vpop.f32.mrf.mxu1 }
 0x23e   : > { %12780 = vst [vmem:[#allocation68_spill] sm:$0xff] %v10724_v38  ;;  %v2630_v4 = vpop.f32.mrf.mxu0 }
 0x23f   : > { %v10726_v41 = vpop.f32.mrf.mxu1 }
 0x240   : > { %12781 = vst [vmem:[#allocation69_spill] sm:$0xff] %v10726_v41  ;;  %v7914_v20 = vpop.f32.mrf.mxu0 }
 0x241   : > { %v7945_v39 = vpop.f32.mrf.mxu1 }
 0x242   : > { %v2633_v25 = vpop.f32.mrf.mxu0 }
 0x243   : > { %v2864_v29 = vpop.f32.mrf.mxu1 }
 0x244   : > { %v10728_v7 = vpop.f32.mrf.mxu0 }
 0x245   : > { %12782 = vst [vmem:[#allocation70_spill] sm:$0xff] %v10728_v7  ;;  %v7946_v9 = vpop.f32.mrf.mxu1 }
 0x246   : > { %v10730_v21 = vpop.f32.mrf.mxu0 }
 0x247   : > { %12783 = vst [vmem:[#allocation71_spill] sm:$0xff] %v10730_v21  ;;  %v10732_v10 = vpop.f32.mrf.mxu1  ;;  %v2007_v21 = vadd.f32 %v10628_v24, %v10622_v13  ;;  %v1463_v13 = vadd.f32 %v10616_v45, %v10614_v12  ;;  %v1479_v45 = vadd.f32 %v10620_v44, %v10618_v23 }
 0x248   : > { %12784 = vst [vmem:[#allocation72_spill] sm:$0xff] %v10732_v10  ;;  %v10734_v63 = vpop.f32.mrf.mxu0 }
 0x249   : > { %12785 = vst [vmem:[#allocation73_spill] sm:$0xff] %v10734_v63  ;;  %v10738_v50 = vpop.f32.mrf.mxu1  ;;  %v1774_v63 = vadd.f32 %v10626_v28, %v1431_v27  ;;  %v1778_v28 = vadd.f32 %v10638_v62, %v1447_v60  ;;  %v2015_v62 = vadd.f32 %v10652_v1, %v10646_v46  ;;  %v1786_v44 = vadd.f32 %v10662_v40, %v1479_v45  ;;  %v12797_v60 = vld [vmem:[#allocation33_spill] sm:$0xff] }
 0x24a   : > { %v10736_v42 = vpop.f32.mrf.mxu0  ;;  %12787 = vst [vmem:[#allocation75_spill] sm:$0xff] %v10738_v50 }
 0x24b   : > { %12786 = vst [vmem:[#allocation74_spill] sm:$0xff] %v10736_v42  ;;  %v10746_v2 = vpop.f32.mrf.mxu1  ;;  %v2010_v42 = vadd.f32 %v10630_v43, %v10624_v61  ;;  %v2008_v8 = vadd.f32 %v10632_v55, %v1774_v63  ;;  %v2429_v61 = vadd.f32 %v10672_v58, %v10668_v0  ;;  %v1782_v63 = vadd.f32 %v10650_v26, %v1463_v13 }
 0x24c   : > { %v10740_v38 = vpop.f32.mrf.mxu0  ;;  %v2197_v0 = vadd.f32 %v10680_v51, %v2011_v37  ;;  %v2012_v34 = vadd.f32 %v10644_v36, %v1778_v28  ;;  %v12799_v28 = vld [vmem:[#allocation55_spill] sm:$0xff] }
 0x24d   : > { %12788 = vst [vmem:[#allocation76_spill] sm:$0xff] %v10740_v38  ;;  %v2193_v38 = vadd.f32 %v2130_v19, %v2007_v21  ;;  %v10757_v50 = vpop.f32.mrf.mxu1  ;;  %v2194_v43 = vadd.f32 %v10674_v16, %v2008_v8  ;;  %v2695_v57 = vadd.f32 %v7913_v33, %v2429_v61  ;;  %v2016_v23 = vadd.f32 %v10656_v59, %v1782_v63  ;;  %v12798_v8 = vld [vmem:[#allocation49_spill] sm:$0xff]  ;;  %v12801_v63 = vld [vmem:[#allocation51_spill] sm:$0xff] }
 0x24e   : > { %v10742_v41 = vpop.f32.mrf.mxu0  ;;  %v2431_v1 = vadd.f32 %v10690_v31, %v2197_v0  ;;  %v12793_v31 = vld [vmem:[#allocation40_spill] sm:$0xff]  ;;  %v2437_v13 = vadd.f32 %v12798_v8, %v12797_v60  ;;  %v10830_v0 = vld [vmem:[%s9544_s20] ss:$0 sm:$0xff] }
 0x24f   : > { %12789 = vst [vmem:[#allocation77_spill] sm:$0xff] %v10742_v41  ;;  %v2427_v24 = vadd.f32 %v2364_v49, %v2193_v38  ;;  %v10772_v19 = vpop.f32.mrf.mxu1  ;;  %v2014_v38 = vadd.f32 %v10642_v53, %v10636_v6  ;;  %v2428_v48 = vadd.f32 %v10682_v30, %v2194_v43  ;;  %v2019_v53 = vadd.f32 %v10664_v17, %v10658_v22  ;;  %v12814_v8 = vld [vmem:[#allocation68_spill] sm:$0xff] }
 0x250   : > { %v10748_v7 = vpop.f32.mrf.mxu0  ;;  %v2929_v36 = vadd.f32 %v7945_v39, %v2695_v57  ;;  %v2022_v30 = vadd.f32 %v10666_v54, %v10660_v35  ;;  %v12792_v54 = vld [vmem:[#allocation42_spill] sm:$0xff]  ;;  %v12796_v39 = vld [vmem:[#allocation35_spill] sm:$0xff]  ;;  %v12802_v57 = vld [vmem:[#allocation57_spill] sm:$0xff] }
 0x251   : > { %12790 = vst [vmem:[#allocation78_spill] sm:$0xff] %v10748_v7  ;;  %v2196_v7 = vadd.f32 %v7850_v14, %v2010_v42  ;;  %v2693_v12 = vadd.f32 %v2630_v4, %v2427_v24  ;;  %v10791_v33 = vpop.f32.mrf.mxu1  ;;  %v2018_v4 = vadd.f32 %v10654_v15, %v10648_v56  ;;  %v2200_v51 = vadd.f32 %v10684_v47, %v2014_v38  ;;  %v12794_v47 = vld [vmem:[#allocation72_spill] sm:$0xff]  ;;  %v12800_v24 = vld [vmem:[#allocation70_spill] sm:$0xff] }
 0x252   : > { %v10753_v10 = vpop.f32.mrf.mxu0  ;;  %v2694_v26 = vadd.f32 %v2633_v25, %v2428_v48  ;;  %v2198_v56 = vadd.f32 %v10688_v52, %v2012_v34  ;;  %v2201_v15 = vadd.f32 %v10696_v11, %v2015_v62  ;;  %v12791_v25 = vld [vmem:[#allocation38_spill] sm:$0xff]  ;;  %v2205_v61 = vadd.f32 %v12799_v28, %v2019_v53  ;;  %v12806_v53 = vld [vmem:[#allocation44_spill] sm:$0xff] }
 0x253   : > { %v2430_v14 = vadd.f32 %v10676_v3, %v2196_v7  ;;  %v2927_v46 = vadd.f32 %v2864_v29, %v2693_v12  ;;  %v2204_v40 = vadd.f32 %v10700_v32, %v2018_v4  ;;  %v10806_v16 = vpop.f32.mrf.mxu1  ;;  %v2020_v29 = vadd.f32 %v10670_v18, %v1786_v44  ;;  %v10816_v11 = vld [vmem:[%s12360_s5] ss:$0 sm:$0xff] }
 0x254   : > { %v10759_v41 = vpop.f32.mrf.mxu0  ;;  %v2433_v17 = vadd.f32 %v12791_v25, %v10678_v5  ;;  %v2434_v35 = vadd.f32 %v12792_v54, %v2200_v51  ;;  %v2202_v3 = vadd.f32 %v12793_v31, %v2016_v23  ;;  %v2928_v32 = vadd.f32 %v12794_v47, %v2694_v26  ;;  %v12803_v62 = vld [vmem:[#allocation58_spill] sm:$0xff]  ;;  %v12805_v23 = vld [vmem:[#allocation73_spill] sm:$0xff]  ;;  %v12812_v54 = vld [vmem:[#allocation76_spill] sm:$0xff] }
 0x255   : > { %v2696_v7 = vadd.f32 %v7914_v20, %v2430_v14  ;;  %v2432_v5 = vadd.f32 %v12796_v39, %v2198_v56  ;;  %v2435_v14 = vadd.f32 %v12801_v63, %v2201_v15  ;;  %v2438_v12 = vadd.f32 %v12802_v57, %v2204_v40  ;;  %v7954_v45 = vpop.f32.mrf.mxu1  ;;  %v12808_v15 = vld [vmem:[#allocation67_spill] sm:$0xff]  ;;  %v12809_v40 = vld [vmem:[#allocation66_spill] sm:$0xff] }
 0x256   : > { %v10766_v27 = vpop.f32.mrf.mxu0  ;;  %v2699_v43 = vadd.f32 %v12800_v24, %v2433_v17  ;;  %v2436_v48 = vadd.f32 %v12803_v62, %v2202_v3  ;;  %v2700_v44 = vadd.f32 %v12805_v23, %v2434_v35  ;;  %v2703_v35 = vadd.f32 %v12812_v54, %v2437_v13 }
 0x257   : > { %v2930_v58 = vadd.f32 %v7946_v9, %v2696_v7  ;;  %v12795_v9 = vld [vmem:[#allocation71_spill] sm:$0xff]  ;;  %v2899_v31 = vpop.f32.mrf.mxu1 }
 0x258   : > { %v10777_v42 = vpop.f32.mrf.mxu0  ;;  %v2697_v21 = vadd.f32 %v12795_v9, %v2431_v1  ;;  %v12804_v7 = vld [vmem:[#allocation59_spill] sm:$0xff]  ;;  %v2934_v47 = vadd.f32 %v10757_v50, %v2700_v44  ;;  %v12815_v28 = vld [vmem:[#allocation78_spill] sm:$0xff]  ;;  %v2702_v62 = vadd.f32 %v10753_v10, %v2436_v48 }
 0x259   : > { %v2208_v4 = vadd.f32 %v12804_v7, %v2022_v30  ;;  %v12810_v30 = vld [vmem:[#allocation75_spill] sm:$0xff] }
 0x25a   : > { %v10785_v55 = vpop.f32.mrf.mxu0  ;;  %v2931_v26 = vadd.f32 %v10746_v2, %v2697_v21 }
 0x25b   : > { %v2442_v50 = vadd.f32 %v12814_v8, %v2208_v4 }
 0x25c   : > { %v7977_v6 = vpop.f32.mrf.mxu0 }
 0x25d   : > { %v3179_v49 = vadd.f32 %v7977_v6, %v2929_v36  ;;  %v12807_v36 = vld [vmem:[#allocation62_spill] sm:$0xff] }
 0x25e   : > { %v3114_v59 = vpop.f32.mrf.mxu0 }
 0x25f   : > { %v3177_v22 = vadd.f32 %v3114_v59, %v2927_v46  ;;  %v3201_v38 = vadd.f32 %v10816_v11, %v3179_v49  ;;  %v2441_v46 = vadd.f32 %v12807_v36, %v12806_v53  ;;  %v2439_v59 = vadd.f32 %v12808_v15, %v2205_v61 }
 0x260   : > { %v7978_v52 = vpop.f32.mrf.mxu0  ;;  %v2933_v49 = vadd.f32 %v12810_v30, %v2699_v43  ;;  %v2704_v61 = vadd.f32 %v12815_v28, %v2438_v12 }
 0x261   : > { %v3199_v18 = vadd.f32 %v10816_v11, %v3177_v22  ;;  %v3180_v20 = vadd.f32 %v7978_v52, %v2930_v58  ;;  %v2206_v58 = vadd.f32 %v12809_v40, %v2020_v29  ;;  %v12811_v22 = vld [vmem:[#allocation74_spill] sm:$0xff]  ;;  %v10849_v3 = vadd.f32 %v10830_v0, %v3201_v38 }
 0x262   : > { %v3117_v37 = vpop.f32.mrf.mxu0  ;;  %v2698_v25 = vadd.f32 %v12811_v22, %v2432_v5  ;;  %v2938_v53 = vadd.f32 %v7954_v45, %v2704_v61  ;;  %v2707_v40 = vadd.f32 %v10759_v41, %v2441_v46  ;;  %v2705_v30 = vadd.f32 %v10766_v27, %v2439_v59  ;;  %v12816_v59 = vld [vmem:[#allocation69_spill] sm:$0xff] }
 0x263   : > { %v3178_v34 = vadd.f32 %v3117_v37, %v2928_v32  ;;  %v10836_v51 = vadd.f32 %v10830_v0, %v3199_v18  ;;  %v3202_v1 = vadd.f32 %v10816_v11, %v3180_v20  ;;  %v12813_v32 = vld [vmem:[#allocation77_spill] sm:$0xff]  ;;  %v7957_v37 = vpop.f32.mrf.mxu1  ;;  %v3257_v63 = vmul.f32 %v10849_v3, %v10849_v3 }
 0x264   : > { %v7981_v6 = vpop.f32.mrf.mxu0  ;;  %v2701_v9 = vadd.f32 %v12813_v32, %v2435_v14  ;;  %v2932_v13 = vadd.f32 %v10772_v19, %v2698_v25  ;;  %v2936_v25 = vadd.f32 %v2899_v31, %v2702_v62  ;;  %v2708_v32 = vadd.f32 %v10777_v42, %v2442_v50 }
 0x265   : > { %v3200_v56 = vadd.f32 %v10816_v11, %v3178_v34  ;;  %v3255_v29 = vmul.f32 %v10836_v51, %v10836_v51  ;;  %v3183_v21 = vadd.f32 %v7981_v6, %v2933_v49  ;;  %v10859_v20 = vadd.f32 %v10830_v0, %v3202_v1 }
 0x266   : > { %v3130_v17 = vpop.f32.mrf.mxu0  ;;  %v2937_v34 = vadd.f32 %v10791_v33, %v2703_v35  ;;  %v2935_v4 = vadd.f32 %v10806_v16, %v2701_v9  ;;  %v2941_v8 = vadd.f32 %v7957_v37, %v2707_v40 }
 0x267   : > { %v10852_v2 = vadd.f32 %v10830_v0, %v3200_v56  ;;  %v3181_v52 = vadd.f32 %v3130_v17, %v2931_v26  ;;  %v3205_v19 = vadd.f32 %v10816_v11, %v3183_v21  ;;  %v3258_v23 = vmul.f32 %v10859_v20, %v10859_v20  ;;  %v2912_v26 = vpop.f32.mrf.mxu1 }
 0x268   : > { %v7982_v18 = vpop.f32.mrf.mxu0 }
 0x269   : > { %v3232_v39 = vadd.f32 %v10852_v2, %v10836_v51  ;;  %v3256_v5 = vmul.f32 %v10852_v2, %v10852_v2  ;;  %v3203_v60 = vadd.f32 %v10816_v11, %v3181_v52  ;;  %v3184_v24 = vadd.f32 %v7982_v18, %v2934_v47  ;;  %v7958_v9 = vpop.f32.mrf.mxu1 }
 0x26a   : > { %v3133_v43 = vpop.f32.mrf.mxu0  ;;  %v10890_v45 = vadd.f32 %v10830_v0, %v3205_v19  ;;  %v2440_v47 = vadd.f32 %v12816_v59, %v2206_v58 }
 0x26b   : > { %v3233_v14 = vadd.f32 %v3232_v39, %v10849_v3  ;;  %v3263_v57 = vadd.f32 %v3256_v5, %v3255_v29  ;;  %v10873_v38 = vadd.f32 %v10830_v0, %v3203_v60  ;;  %v3182_v7 = vadd.f32 %v3133_v43, %v2932_v13  ;;  %v7059_v29 = vld [vmem:[%s9544_s20 + $0x1] ss:$0 sm:$0xff] }
 0x26c   : > { %v7985_v12 = vpop.f32.mrf.mxu0  ;;  %v3206_v33 = vadd.f32 %v10816_v11, %v3184_v24  ;;  %v3261_v18 = vmul.f32 %v10890_v45, %v10890_v45  ;;  %v2939_v13 = vadd.f32 %v2912_v26, %v2705_v30  ;;  %v2706_v50 = vadd.f32 %v10785_v55, %v2440_v47 }
 0x26d   : > { %v3264_v44 = vadd.f32 %v3263_v57, %v3257_v63  ;;  %v3234_v6 = vadd.f32 %v3233_v14, %v10859_v20  ;;  %v3259_v36 = vmul.f32 %v10873_v38, %v10873_v38  ;;  %v3204_v10 = vadd.f32 %v10816_v11, %v3182_v7  ;;  %v2915_v14 = vpop.f32.mrf.mxu1 }
 0x26e   : > { %v3146_v48 = vpop.f32.mrf.mxu0  ;;  %v3187_v16 = vadd.f32 %v7985_v12, %v2937_v34  ;;  %v10897_v52 = vadd.f32 %v10830_v0, %v3206_v33  ;;  %v2942_v63 = vadd.f32 %v7958_v9, %v2708_v32 }
 0x26f   : > { %v3235_v1 = vadd.f32 %v3234_v6, %v10873_v38  ;;  %v3265_v56 = vadd.f32 %v3264_v44, %v3258_v23  ;;  %v3185_v15 = vadd.f32 %v3146_v48, %v2935_v4  ;;  %v10893_v49 = vadd.f32 %v10830_v0, %v3204_v10 }
 0x270   : > { %v7986_v22 = vpop.f32.mrf.mxu0  ;;  %v3209_v31 = vadd.f32 %v10816_v11, %v3187_v16  ;;  %v3262_v28 = vmul.f32 %v10897_v52, %v10897_v52 }
 0x271   : > { %v3266_v17 = vadd.f32 %v3265_v56, %v3259_v36  ;;  %v3207_v54 = vadd.f32 %v10816_v11, %v3185_v15  ;;  %v3188_v35 = vadd.f32 %v7986_v22, %v2938_v53  ;;  %v3236_v41 = vadd.f32 %v3235_v1, %v10893_v49 }
 0x272   : > { %v3260_v27 = vmul.f32 %v10893_v49, %v10893_v49  ;;  %v3149_v46 = vpop.f32.mrf.mxu0  ;;  %v10917_v57 = vadd.f32 %v7059_v29, %v3209_v31  ;;  %v2940_v53 = vadd.f32 %v2915_v14, %v2706_v50 }
 0x273   : > { %v3186_v21 = vadd.f32 %v3149_v46, %v2936_v25  ;;  %v10908_v39 = vadd.f32 %v7059_v29, %v3207_v54  ;;  %v3237_v60 = vadd.f32 %v3236_v41, %v10890_v45  ;;  %v3210_v58 = vadd.f32 %v10816_v11, %v3188_v35 }
 0x274   : > { %v3267_v0 = vadd.f32 %v3266_v17, %v3260_v27  ;;  %v7989_v5 = vpop.f32.mrf.mxu0  ;;  %v3410_v26 = vmul.f32 %v10917_v57, %v10917_v57 }
 0x275   : > { %v3208_v42 = vadd.f32 %v10816_v11, %v3186_v21  ;;  %v3238_v24 = vadd.f32 %v3237_v60, %v10897_v52  ;;  %v3408_v62 = vmul.f32 %v10908_v39, %v10908_v39  ;;  %v3191_v19 = vadd.f32 %v7989_v5, %v2941_v8 }
 0x276   : > { %v3162_v61 = vpop.f32.mrf.mxu0  ;;  %v3268_v43 = vadd.f32 %v3267_v0, %v3261_v18  ;;  %v10923_v4 = vadd.f32 %v7059_v29, %v3210_v58 }
 0x277   : > { %v10919_v34 = vadd.f32 %v7059_v29, %v3208_v42  ;;  %v3189_v37 = vadd.f32 %v3162_v61, %v2939_v13  ;;  %v3239_v55 = vrot.slane %v3238_v24, 4  ;;  %v3213_v15 = vadd.f32 %v10816_v11, %v3191_v19 }
 0x278   : > { %v7990_v7 = vpop.f32.mrf.mxu0  ;;  %v3269_v12 = vadd.f32 %v3268_v43, %v3262_v28  ;;  %v3411_v25 = vmul.f32 %v10923_v4, %v10923_v4 }
 0x279   : > { %v3389_v23 = vadd.f32 %v10919_v34, %v10908_v39  ;;  %v3409_v44 = vmul.f32 %v10919_v34, %v10919_v34  ;;  %v3211_v6 = vadd.f32 %v10816_v11, %v3189_v37  ;;  %v3192_v36 = vadd.f32 %v7990_v7, %v2942_v63 }
 0x27a   : > { %v3165_v33 = vpop.f32.mrf.mxu0  ;;  %v3240_v10 = vadd.f32 %v3239_v55, %v3238_v24  ;;  %v3270_v48 = vrot.slane %v3269_v12, 4  ;;  %v10944_v9 = vadd.f32 %v7059_v29, %v3213_v15  ;;  %v8632_v15 = vld [vmem:[#allocation8 + $0x58] sm:$0xff]  }
 0x27b   : > { %v3390_v1 = vadd.f32 %v3389_v23, %v10917_v57  ;;  %v3416_v56 = vadd.f32 %v3409_v44, %v3408_v62  ;;  %v10933_v16 = vadd.f32 %v7059_v29, %v3211_v6  ;;  %v3190_v40 = vadd.f32 %v3165_v33, %v2940_v53  ;;  %v8629_v33 = vld [vmem:[#allocation8 + $0x70] sm:$0xff]  }
 0x27c   : > { %v3241_v30 = vrot.slane %v3240_v10, 2  ;;  %v3271_v22 = vadd.f32 %v3270_v48, %v3269_v12  ;;  %v3214_v35 = vadd.f32 %v10816_v11, %v3192_v36  ;;  %v3414_v58 = vmul.f32 %v10944_v9, %v10944_v9  ;;  %v8628_v36 = vld [vmem:[#allocation8 + $0x78] sm:$0xff]  }
 0x27d   : > { %v3417_v17 = vadd.f32 %v3416_v56, %v3410_v26  ;;  %v3391_v54 = vadd.f32 %v3390_v1, %v10923_v4  ;;  %v3212_v41 = vadd.f32 %v10816_v11, %v3190_v40  ;;  %v3412_v47 = vmul.f32 %v10933_v16, %v10933_v16  ;;  %7991 = vmatprep.subr.bf16.mxu1 %v8628_v36  ;;  %v8633_v48 = vld [vmem:[#allocation8 + $0x38] sm:$0xff]   ;;  %v8635_v26 = vld [vmem:[#allocation8 + $0x30] sm:$0xff]   ;;  %v8631_v1 = vld [vmem:[#allocation8 + $0x60] sm:$0xff]  }
 0x27e   : > { %v3242_v27 = vadd.f32 %v3241_v30, %v3240_v10  ;;  %v3272_v46 = vrot.slane %v3271_v22, 2  ;;  %v10948_v5 = vadd.f32 %v7059_v29, %v3214_v35  ;;  %7992 = vmatpush3.bf16.msra.mxu1 %v8628_v36  ;;  %v8630_v10 = vld [vmem:[#allocation8 + $0x68] sm:$0xff]   ;;  %8023 = vmatprep.subr.bf16.mxu0 %v8633_v48  ;;  %v8634_v40 = vld [vmem:[#allocation8 + $0x50] sm:$0xff]   ;;  %v3215_v36 = vld [vmem:[%s12361_s6] sm:$0x1] }
 0x27f   : > { %v3392_v59 = vadd.f32 %v3391_v54, %v10933_v16  ;;  %v3418_v32 = vadd.f32 %v3417_v17, %v3411_v25  ;;  %v10946_v31 = vadd.f32 %v7059_v29, %v3212_v41  ;;  %7993 = vmatprep.subr.bf16.mxu1 %v8629_v33  ;;  %8024 = vmatpush3.bf16.msra.mxu0 %v8633_v48  ;;  %v8637_v56 = vld [vmem:[#allocation8 + $0x28] sm:$0xff]   ;;  %v8639_v25 = vld [vmem:[#allocation8 + $0x20] sm:$0xff]   ;;  %v10975_v17 = vld [vmem:[#allocation8 + $0xb8] sm:$0xff]  }
 0x280   : > { %v3243_v21 = vrot.slane %v3242_v27, 1  ;;  %v3273_v18 = vadd.f32 %v3272_v46, %v3271_v22  ;;  %v3415_v28 = vmul.f32 %v10948_v5, %v10948_v5  ;;  %8025 = vmatprep.subr.bf16.mxu0 %v8635_v26  ;;  %v8636_v30 = vld [vmem:[#allocation8 + $0x48] sm:$0xff]   ;;  %v8638_v22 = vld [vmem:[#allocation8 + $0x40] sm:$0xff]   ;;  %v8641_v54 = vld [vmem:[#allocation8 + $0x18] sm:$0xff]  }
 0x281   : > { %v3419_v0 = vadd.f32 %v3418_v32, %v3412_v47  ;;  %v3393_v60 = vadd.f32 %v3392_v59, %v10946_v31  ;;  %v3413_v11 = vmul.f32 %v10946_v31, %v10946_v31  ;;  %v8643_v35 = vld [vmem:[#allocation8 + $0x10] sm:$0xff]   ;;  %v8645_v41 = vld [vmem:[#allocation8 + $0x8] sm:$0xff]   ;;  %v10978_v46 = vld [vmem:[#allocation8 + $0xf8] sm:$0xff]   ;;  %v12817_v59 = vlaneseq }
 0x282   : > { %v10953_v8 = vadd.f32 %v3243_v21, %v3242_v27  ;;  %v3274_v13 = vrot.slane %v3273_v18, 1  ;;  %7994 = vmatpush3.bf16.msra.mxu1 %v8629_v33  ;;  %v8647_v27 = vld [vmem:[#allocation8] sm:$0xff]  }
 0x283   : > { %v3420_v42 = vadd.f32 %v3419_v0, %v3413_v11  ;;  %v3394_v29 = vadd.f32 %v3393_v60, %v10944_v9  ;;  %7995 = vmatprep.subr.bf16.mxu1 %v8630_v10  ;;  %8026 = vmatpush3.bf16.msra.mxu0 %v8635_v26  ;;  %v3246_v47 = vand.u32 127, %v12817_v59 }
 0x284   : > { %3247 = vrot.lane.b32.xlu0 %v10953_v8, %s9221_s8  ;;  %v10958_v50 = vadd.f32 %v3274_v13, %v3273_v18  ;;  %8027 = vmatprep.subr.bf16.mxu0 %v8637_v56 }
 0x285   : > { %v3395_v61 = vadd.f32 %v3394_v29, %v10948_v5  ;;  %v3421_v24 = vadd.f32 %v3420_v42, %v3414_v58  ;;  %v3251_v32 = vand.u32 1, %v3246_v47 }
 0x286   : > { %3278 = vrot.lane.b32.xlu1 %v10958_v50, %s9222_s17  ;;  %7996 = vmatpush3.bf16.msra.mxu1 %v8630_v10 }
 0x287   : > { %v3396_v43 = vrot.slane %v3395_v61, 4  ;;  %v3422_v63 = vadd.f32 %v3421_v24, %v3415_v28  ;;  %7997 = vmatprep.subr.bf16.mxu1 %v8631_v1  ;;  %8028 = vmatpush3.bf16.msra.mxu0 %v8637_v56  ;;  %vm10982_vm11 = vcmp.eq.s32.totalorder %v3251_v32, 0  ;;  %v12820_v56 = vld [vmem:[#allocation28_spill] sm:$0xff] }
 0x288   : > { %3249 = vrot.lane.b32.xlu0 %v10953_v8, %s9222_s17  ;;  %8029 = vmatprep.subr.bf16.mxu0 %v8639_v25 }
 0x289   : > { %v3397_v14 = vadd.f32 %v3396_v43, %v3395_v61  ;;  %v3423_v37 = vrot.slane %v3422_v63, 4 }
 0x28a   : > { %7998 = vmatpush3.bf16.msra.mxu1 %v8631_v1 }
 0x28b   : > { %v3398_v62 = vrot.slane %v3397_v14, 2  ;;  %v3424_v19 = vadd.f32 %v3423_v37, %v3422_v63  ;;  %7999 = vmatprep.subr.bf16.mxu1 %v8632_v15  ;;  %8030 = vmatpush3.bf16.msra.mxu0 %v8639_v25 }
 0x28c   : > { %3276 = vrot.lane.b32.xlu0 %v10958_v50, %s9221_s8  ;;  %8031 = vmatprep.subr.bf16.mxu0 %v8641_v54 }
 0x28d   : > { %v3399_v7 = vadd.f32 %v3398_v62, %v3397_v14  ;;  %v3425_v55 = vrot.slane %v3424_v19, 2 }
 0x28e   : > { %8000 = vmatpush3.bf16.msra.mxu1 %v8632_v15 }
 0x28f   : > { %v3400_v12 = vrot.slane %v3399_v7, 1  ;;  %v3426_v23 = vadd.f32 %v3425_v55, %v3424_v19  ;;  %8001 = vmatprep.subr.bf16.mxu1 %v8634_v40  ;;  %8032 = vmatpush3.bf16.msra.mxu0 %v8641_v54 }
 0x290   : > { %8033 = vmatprep.subr.bf16.mxu0 %v8643_v35 }
 0x291   : > { %v10967_v44 = vadd.f32 %v3400_v12, %v3399_v7  ;;  %v3427_v6 = vrot.slane %v3426_v23, 1 }
 0x292   : > { %8002 = vmatpush3.bf16.msra.mxu1 %v8634_v40 }
 0x293   : > { %3402 = vrot.lane.b32.xlu1 %v10967_v44, %s9221_s8  ;;  %v10970_v53 = vadd.f32 %v3427_v6, %v3426_v23  ;;  %8003 = vmatprep.subr.bf16.mxu1 %v8636_v30 }
 0x294   : > { %8034 = vmatpush3.bf16.msra.mxu0 %v8643_v35 }
 0x295   : > { %3429 = vrot.lane.b32.xlu0 %v10970_v53, %s9221_s8  ;;  %8035 = vmatprep.subr.bf16.mxu0 %v8645_v41  ;;  %s6674_s8 = sshll.u32 %s12258_s25, 4  ;;  %s12309_s8 = int_to_ptr.vmem [resolvable:$true] %s6674_s8 }
 0x296   : > { %8004 = vmatpush3.bf16.msra.mxu1 %v8636_v30  ;;  %s9122_s10 = scalar_lea.vmem %s12309_s8, 2048 }
 0x297   : > { %3404 = vrot.lane.b32.xlu1 %v10967_v44, %s9222_s17  ;;  %8005 = vmatprep.subr.bf16.mxu1 %v8638_v22  ;;  %p9123_p13 = scmp.ne.s32.totalorder %s12309_s8, %s9122_s10 }
 0x298   : > { %8036 = vmatpush3.bf16.msra.mxu0 %v8645_v41 }
 0x299   : > { %8037 = vmatprep.subr.bf16.mxu0 %v8647_v27  ;;  %p9124_p9 = pnand %p9123_p13, %p13010_p5 }
 0x29a   : > { %8006 = vmatpush3.bf16.msra.mxu1 %v8638_v22 }
 0x29b   : > { %3431 = vrot.lane.b32.xlu1 %v10970_v53, %s9222_s17  ;;  %8055 = vmatprep.subr.bf16.mxu1 %v10975_v17  ;;  %p9125_p11 = pneg %p9124_p9 }
 0x29c   : > { %8038 = vmatpush3.bf16.msra.mxu0 %v8647_v27 }
 0x29d   : > { %8087 = vmatprep.subr.bf16.mxu0 %v10978_v46 }
 0x2f6   : > { %v3248_v21 = vpop.permute.xlu0 %3247 }
 0x2f8   : > { %v3279_v13 = vpop.permute.xlu1 %3278 }
 0x2fa   : > { %v3250_v0 = vpop.permute.xlu0 %3249 }
 0x2fb   : > { %v3253_v60 = vsel %vm10982_vm11, %v3248_v21, %v3250_v0 }
 0x2fc   : > { %v3254_v11 = vadd.f32 %v3253_v60, %v10953_v8 }
 0x2fe   : > { %v3282_v58 = vmul.f32 0.0078125, %v3254_v11  ;;  %v3277_v42 = vpop.permute.xlu0 %3276 }
 0x2ff   : > { %v3280_v29 = vsel %vm10982_vm11, %v3277_v42, %v3279_v13 }
 0x300   : > { %v3281_v28 = vadd.f32 %v3280_v29, %v10958_v50  ;;  %v3284_v61 = vmul.f32 %v3282_v58, %v3282_v58 }
 0x302   : > { %v3283_v24 = vmul.f32 0.0078125, %v3281_v28 }
 0x304   : > { %v3285_v43 = vsub.f32 %v3283_v24, %v3284_v61 }
 0x305   : > { %v3403_v14 = vpop.permute.xlu1 %3402 }
 0x306   : > { %v3286_v63 = vadd.f32 1e-05, %v3285_v43 }
 0x307   : > { %v3430_v19 = vpop.permute.xlu0 %3429 }
 0x308   : > { %8816 = vrsqrt.f32 %v3286_v63 }
 0x309   : > { %v3405_v37 = vpop.permute.xlu1 %3404 }
 0x30a   : > { %v3406_v62 = vsel %vm10982_vm11, %v3403_v14, %v3405_v37 }
 0x30b   : > { %v3407_v8 = vadd.f32 %v3406_v62, %v10967_v44  ;;  %v3216_v44 = vld [vmem:[%s12362_s7] sm:$0x1] }
 0x30d   : > { %v3435_v7 = vmul.f32 0.0078125, %v3407_v8  ;;  %v3432_v55 = vpop.permute.xlu1 %3431 }
 0x30e   : > { %v3433_v12 = vsel %vm10982_vm11, %v3430_v19, %v3432_v55 }
 0x30f   : > { %v3434_v50 = vadd.f32 %v3433_v12, %v10970_v53  ;;  %v3437_v23 = vmul.f32 %v3435_v7, %v3435_v7 }
 0x311   : > { %v3436_v6 = vmul.f32 0.0078125, %v3434_v50 }
 0x313   : > { %v3438_v33 = vsub.f32 %v3436_v6, %v3437_v23 }
 0x315   : > { %v8817_v10 = vpop.eup %8816  ;;  %v3439_v26 = vadd.f32 1e-05, %v3438_v33 }
 0x316   : > { %v3288_v48 = vmul.f32 %v8817_v10, %v3215_v36 }
 0x317   : > { %8818 = vrsqrt.f32 %v3439_v26 }
 0x318   : > { %v3289_v1 = vmul.f32 %v3288_v48, %v3282_v58  ;;  %v3294_v15 = vrot.slane %v3288_v48, %v12820_v56 }
 0x31a   : > { %v3290_v40 = vsub.f32 %v3216_v44, %v3289_v1  ;;  %v3295_v53 = vmul.f32 %v3294_v15, %v10836_v51  ;;  %v3296_v22 = vmul.f32 %v3294_v15, %v10852_v2  ;;  %v3297_v25 = vmul.f32 %v3294_v15, %v10849_v3 }
 0x31b   : > { %v3298_v54 = vmul.f32 %v3294_v15, %v10859_v20  ;;  %v3299_v35 = vmul.f32 %v3294_v15, %v10873_v38  ;;  %v3300_v41 = vmul.f32 %v3294_v15, %v10893_v49  ;;  %v3301_v27 = vmul.f32 %v3294_v15, %v10890_v45 }
 0x31c   : > { %v3307_v30 = vrot.slane %v3290_v40, %v12820_v56  ;;  %v3302_v24 = vmul.f32 %v3294_v15, %v10897_v52 }
 0x31e   : > { %v11013_v59 = vadd.f32 %v3307_v30, %v3295_v53  ;;  %v11015_v47 = vadd.f32 %v3307_v30, %v3296_v22  ;;  %v11017_v32 = vadd.f32 %v3307_v30, %v3297_v25  ;;  %v11019_v51 = vadd.f32 %v3307_v30, %v3298_v54 }
 0x31f   : > { %v11021_v21 = vadd.f32 %v3307_v30, %v3299_v35  ;;  %v11023_v2 = vadd.f32 %v3307_v30, %v3300_v41  ;;  %v11025_v3 = vadd.f32 %v3307_v30, %v3301_v27  ;;  %v11035_v14 = vadd.f32 %v3307_v30, %v3302_v24 }
 0x320   : > { %v3317_v20 = vsub.f32 0.0, %v11013_v59  ;;  %v3318_v38 = vsub.f32 0.0, %v11015_v47  ;;  %v3319_v45 = vsub.f32 0.0, %v11017_v32  ;;  %v3320_v49 = vsub.f32 0.0, %v11019_v51 }
 0x321   : > { %v3321_v18 = vsub.f32 0.0, %v11021_v21  ;;  %v3322_v0 = vsub.f32 0.0, %v11023_v2  ;;  %v3323_v60 = vsub.f32 0.0, %v11025_v3  ;;  %v3324_v19 = vsub.f32 0.0, %v11035_v14 }
 0x322   : > { %v3325_v11 = vmul.f32 1.442695, %v3317_v20  ;;  %v3327_v13 = vmul.f32 1.442695, %v3318_v38  ;;  %v3329_v58 = vmul.f32 1.442695, %v3319_v45 }
 0x323   : > { %v3331_v42 = vmul.f32 1.442695, %v3320_v49  ;;  %v3333_v29 = vmul.f32 1.442695, %v3321_v18  ;;  %v3335_v61 = vmul.f32 1.442695, %v3322_v0 }
 0x324   : > { %8820 = vpow2.f32 %v3325_v11  ;;  %v8819_v28 = vpop.eup %8818  ;;  %v3337_v63 = vmul.f32 1.442695, %v3323_v60  ;;  %v3339_v6 = vmul.f32 1.442695, %v3324_v19 }
 0x325   : > { %8822 = vpow2.f32 %v3327_v13  ;;  %v3441_v43 = vmul.f32 %v8819_v28, %v3215_v36 }
 0x326   : > { %8824 = vpow2.f32 %v3329_v58 }
 0x327   : > { %8826 = vpow2.f32 %v3331_v42  ;;  %v3442_v37 = vmul.f32 %v3441_v43, %v3435_v7  ;;  %v3447_v62 = vrot.slane %v3441_v43, %v12820_v56 }
 0x328   : > { %8828 = vpow2.f32 %v3333_v29 }
 0x329   : > { %8830 = vpow2.f32 %v3335_v61  ;;  %v3443_v8 = vsub.f32 %v3216_v44, %v3442_v37  ;;  %v3448_v12 = vmul.f32 %v3447_v62, %v10908_v39  ;;  %v3449_v52 = vmul.f32 %v3447_v62, %v10919_v34 }
 0x32a   : > { %8832 = vpow2.f32 %v3337_v63  ;;  %v3450_v23 = vmul.f32 %v3447_v62, %v10917_v57  ;;  %v3451_v36 = vmul.f32 %v3447_v62, %v10923_v4  ;;  %v3452_v48 = vmul.f32 %v3447_v62, %v10933_v16 }
 0x32b   : > { %v3460_v55 = vrot.slane %v3443_v8, %v12820_v56  ;;  %v3455_v26 = vmul.f32 %v3447_v62, %v10948_v5  ;;  %v3453_v34 = vmul.f32 %v3447_v62, %v10946_v31  ;;  %v3454_v57 = vmul.f32 %v3447_v62, %v10944_v9  ;;  %v8660_v56 = vld [vmem:[#allocation8 + $0x128] sm:$0xff]  }
 0x32c   : > { %8834 = vpow2.f32 %v3339_v6 }
 0x32d   : > { %v11042_v50 = vadd.f32 %v3460_v55, %v3448_v12  ;;  %v11045_v7 = vadd.f32 %v3460_v55, %v3449_v52  ;;  %v11048_v10 = vadd.f32 %v3460_v55, %v3450_v23  ;;  %v11052_v1 = vadd.f32 %v3460_v55, %v3451_v36 }
 0x32e   : > { %v11057_v4 = vadd.f32 %v3460_v55, %v3452_v48  ;;  %v11060_v22 = vadd.f32 %v3460_v55, %v3455_v26  ;;  %v11063_v9 = vadd.f32 %v3460_v55, %v3453_v34  ;;  %v11066_v20 = vadd.f32 %v3460_v55, %v3454_v57 }
 0x32f   : > { %v3470_v53 = vsub.f32 0.0, %v11042_v50  ;;  %v3471_v5 = vsub.f32 0.0, %v11045_v7  ;;  %v3472_v31 = vsub.f32 0.0, %v11048_v10  ;;  %v3473_v27 = vsub.f32 0.0, %v11052_v1 }
 0x330   : > { %v3474_v18 = vsub.f32 0.0, %v11057_v4  ;;  %v3477_v11 = vsub.f32 0.0, %v11060_v22  ;;  %v3475_v58 = vsub.f32 0.0, %v11063_v9  ;;  %v3476_v29 = vsub.f32 0.0, %v11066_v20 }
 0x331   : > { %v8821_v33 = vpop.eup %8820  ;;  %v3478_v49 = vmul.f32 1.442695, %v3470_v53  ;;  %v3480_v60 = vmul.f32 1.442695, %v3471_v5  ;;  %v3482_v13 = vmul.f32 1.442695, %v3472_v31 }
 0x332   : > { %v8823_v44 = vpop.eup %8822  ;;  %v3341_v39 = vadd.f32 1.0, %v8821_v33  ;;  %v3484_v42 = vmul.f32 1.442695, %v3473_v27  ;;  %v3486_v28 = vmul.f32 1.442695, %v3474_v18  ;;  %v12821_v52 = vmov 0.0  }
 0x333   : > { %v8825_v15 = vpop.eup %8824  ;;  %v3342_v40 = vadd.f32 1.0, %v8823_v44  ;;  %v3492_v61 = vmul.f32 1.442695, %v3477_v11  ;;  %v3488_v24 = vmul.f32 1.442695, %v3475_v58  ;;  %v8642_v44 = vld [vmem:[#allocation8 + $0xb0] sm:$0xff]  }
 0x334   : > { %v8827_v30 = vpop.eup %8826  ;;  %8836 = vrcp.f32 %v3341_v39  ;;  %v3343_v16 = vadd.f32 1.0, %v8825_v15  ;;  %v3490_v43 = vmul.f32 1.442695, %v3476_v29  ;;  %v8644_v53 = vld [vmem:[#allocation8 + $0xa8] sm:$0xff]   ;;  %v8648_v18 = vld [vmem:[#allocation8 + $0x98] sm:$0xff]   ;;  %v8650_v11 = vld [vmem:[#allocation8 + $0x90] sm:$0xff]  }
 0x335   : > { %v8829_v25 = vpop.eup %8828  ;;  %8838 = vrcp.f32 %v3342_v40  ;;  %v3344_v54 = vadd.f32 1.0, %v8827_v30 }
 0x336   : > { %v8831_v35 = vpop.eup %8830  ;;  %8840 = vrcp.f32 %v3343_v16  ;;  %v3345_v41 = vadd.f32 1.0, %v8829_v25 }
 0x337   : > { %v8833_v38 = vpop.eup %8832  ;;  %8842 = vrcp.f32 %v3344_v54  ;;  %v3346_v45 = vadd.f32 1.0, %v8831_v35 }
 0x338   : > { %8844 = vrcp.f32 %v3345_v41  ;;  %v3347_v0 = vadd.f32 1.0, %v8833_v38 }
 0x339   : > { %8846 = vrcp.f32 %v3346_v45  ;;  %v8835_v63 = vpop.eup %8834 }
 0x33a   : > { %8848 = vrcp.f32 %v3347_v0  ;;  %v12934_v0 = vld [vmem:[#allocation36_spill] sm:$0xff] }
 0x33b   : > { %8850 = vpow2.f32 %v3478_v49  ;;  %v3348_v49 = vadd.f32 1.0, %v8835_v63 }
 0x33c   : > { %8852 = vpow2.f32 %v3480_v60 }
 0x33d   : > { %8854 = vpow2.f32 %v3482_v13 }
 0x33e   : > { %8856 = vpow2.f32 %v3484_v42 }
 0x33f   : > { %8858 = vpow2.f32 %v3486_v28 }
 0x340   : > { %8860 = vpow2.f32 %v3492_v61  ;;  %v8652_v61 = vld [vmem:[#allocation8 + $0x88] sm:$0xff]  }
 0x341   : > { %v8837_v37 = vpop.eup %8836  ;;  %8862 = vpow2.f32 %v3488_v24 }
 0x342   : > { %v8839_v62 = vpop.eup %8838  ;;  %v11073_v8 = vmul.f32 %v8837_v37, %v11013_v59  ;;  %8864 = vpow2.f32 %v3490_v43 }
 0x343   : > { %v8841_v19 = vpop.eup %8840  ;;  %v11076_v55 = vmul.f32 %v8839_v62, %v11015_v47 }
 0x344   : > { %v8843_v12 = vpop.eup %8842  ;;  %v3615_v23 = vpack.c.bf16 %v11073_v8, %v12821_v52  ;;  %v11081_v6 = vmul.f32 %v8841_v19, %v11017_v32 }
 0x345   : > { %v8845_v36 = vpop.eup %8844  ;;  %v11084_v33 = vmul.f32 %v8843_v12, %v11019_v51  ;;  %v3528_v19 = vrot.slane %v11076_v55, 7 }
 0x346   : > { %v8847_v48 = vpop.eup %8846  ;;  %8007 = vmatprep.mubr.bf16.mxu1 %v3615_v23  ;;  %v11090_v47 = vpack.c.bf16 %v11081_v6, %v11076_v55  ;;  %v11093_v26 = vmul.f32 %v8845_v36, %v11021_v21 }
 0x347   : > { %v8849_v39 = vpop.eup %8848  ;;  %v11103_v21 = vmul.f32 %v8847_v48, %v11023_v2  ;;  %v3530_v36 = vrot.slane %v11084_v33, 7 }
 0x348   : > { %12822 = vst [vmem:[#allocation38_spill] sm:$0xff] %v11090_v47  ;;  %v8851_v32 = vpop.eup %8850  ;;  %8008 = vmatmul.mubr.bf16.vlgmr.msra.gmra.mxu1 %v11090_v47  ;;  %v11098_v51 = vpack.c.bf16 %v11093_v26, %v11084_v33  ;;  %v11106_v40 = vmul.f32 %v8849_v39, %v11025_v3  ;;  %v8646_v3 = vld [vmem:[#allocation8 + $0xa0] sm:$0xff]  }
 0x349   : > { %v8853_v34 = vpop.eup %8852  ;;  %8056 = vmatpush3.bf16.msra.mxu1 %v10975_v17  ;;  %v3494_v57 = vadd.f32 1.0, %v8851_v32  ;;  %v8654_v39 = vld [vmem:[#allocation8 + $0x80] sm:$0xff]  }
 0x34a   : > { %12823 = vst [vmem:[#allocation42_spill] sm:$0xff] %v11098_v51  ;;  %v8855_v15 = vpop.eup %8854  ;;  %8011 = vmatprep.mubr.bf16.mxu1 %v11098_v51  ;;  %8057 = vmatprep.subr.bf16.mxu1 %v8642_v44  ;;  %v3495_v30 = vadd.f32 1.0, %v8853_v34  ;;  %v11110_v2 = vpack.c.bf16 %v11106_v40, %v11103_v21  ;;  %v8661_v51 = vld [vmem:[#allocation8 + $0xc8] sm:$0xff]  }
 0x34b   : > { %v8857_v16 = vpop.eup %8856  ;;  %8866 = vrcp.f32 %v3494_v57  ;;  %v3496_v5 = vadd.f32 1.0, %v8855_v15  ;;  %v12492_v57 = vrot.slane %v11073_v8, 1  ;;  %v3931_v15 = vrot.slane %v11076_v55, 1 }
 0x34c   : > { %v8859_v25 = vpop.eup %8858  ;;  %8868 = vrcp.f32 %v3495_v30  ;;  %v3497_v54 = vadd.f32 1.0, %v8857_v16  ;;  %12824 = vst [vmem:[#allocation40_spill] sm:$0xff] %v11110_v2 }
 0x34d   : > { %v8861_v17 = vpop.eup %8860  ;;  %8058 = vmatpush3.bf16.msra.mxu1 %v8642_v44  ;;  %8870 = vrcp.f32 %v3496_v5  ;;  %v3498_v31 = vadd.f32 1.0, %v8859_v25  ;;  %v3531_v44 = vrot.slane %v11093_v26, 7 }
 0x34e   : > { %v8863_v35 = vpop.eup %8862  ;;  %8059 = vmatprep.subr.bf16.mxu1 %v8644_v53  ;;  %8872 = vrcp.f32 %v3497_v54  ;;  %v3501_v41 = vadd.f32 1.0, %v8861_v17 }
 0x34f   : > { %v8865_v27 = vpop.eup %8864  ;;  %8874 = vrcp.f32 %v3498_v31  ;;  %v3499_v38 = vadd.f32 1.0, %v8863_v35  ;;  %v8656_v35 = vld [vmem:[#allocation8 + $0x138] sm:$0xff]  }
 0x350   : > { %8012 = vmatmul.mubr.bf16.gmra.mxu1 %v11110_v2  ;;  %8876 = vrcp.f32 %v3501_v41  ;;  %v3500_v45 = vadd.f32 1.0, %v8865_v27  ;;  %v8651_v27 = vld [vmem:[#allocation8 + $0xf0] sm:$0xff]  }
 0x351   : > { %8060 = vmatpush3.bf16.msra.mxu1 %v8644_v53  ;;  %8878 = vrcp.f32 %v3499_v38  ;;  %v12883_v2 = vld [vmem:[#allocation53_spill] sm:$0xff] }
 0x352   : > { %8061 = vmatprep.subr.bf16.mxu1 %v8646_v3  ;;  %8880 = vrcp.f32 %v3500_v45 }
 0x353   : > { %8882 = vrcp.f32 %v3348_v49  ;;  %v3532_v49 = vrot.slane %v11103_v21, 7 }
 0x355   : > { %8062 = vmatpush3.bf16.msra.mxu1 %v8646_v3 }
 0x356   : > { %8063 = vmatprep.subr.bf16.mxu1 %v8648_v18 }
 0x358   : > { %v8867_v13 = vpop.eup %8866 }
 0x359   : > { %v8869_v58 = vpop.eup %8868  ;;  %v11118_v42 = vmul.f32 %v8867_v13, %v11042_v50  ;;  %8064 = vmatpush3.bf16.msra.mxu1 %v8648_v18  ;;  %v3527_v50 = vrot.slane %v11073_v8, 7  ;;  %v12494_v18 = vrot.slane %v11106_v40, 7 }
 0x35a   : > { %v8871_v29 = vpop.eup %8870  ;;  %v11121_v28 = vmul.f32 %v8869_v58, %v11045_v7  ;;  %8065 = vmatprep.subr.bf16.mxu1 %v8650_v11  ;;  %v3933_v58 = vrot.slane %v11084_v33, 1 }
 0x35b   : > { %v8873_v24 = vpop.eup %8872  ;;  %v3619_v43 = vpack.c.bf16 %v11118_v42, %v12821_v52  ;;  %v11126_v63 = vmul.f32 %v8871_v29, %v11048_v10  ;;  %v3529_v10 = vrot.slane %v11081_v6, 7  ;;  %v3535_v13 = vrot.slane %v11118_v42, 7  ;;  %v8694_v29 = vld [vmem:[#allocation8 + $0x220] sm:$0xff]  }
 0x35c   : > { %v8875_v37 = vpop.eup %8874  ;;  %v11129_v62 = vmul.f32 %v8873_v24, %v11052_v1 }
 0x35d   : > { %v8877_v12 = vpop.eup %8876  ;;  %8015 = vmatprep.mubr.bf16.mxu1 %v3619_v43  ;;  %v11135_v7 = vpack.c.bf16 %v11126_v63, %v11121_v28  ;;  %v11138_v23 = vmul.f32 %v8875_v37, %v11057_v4  ;;  %8066 = vmatpush3.bf16.msra.mxu1 %v8650_v11  ;;  %v8653_v43 = vld [vmem:[#allocation8 + $0xe8] sm:$0xff]   ;;  %v12913_v11 = vmov 0.0  }
 0x35e   : > { %v8879_v1 = vpop.eup %8878  ;;  %v11143_v48 = vmul.f32 %v8877_v12, %v11060_v22  ;;  %8067 = vmatprep.subr.bf16.mxu1 %v8652_v61  ;;  %v12827_v22 = vld [vmem:[#allocation27_spill] sm:$0xff]  ;;  %v12840_v12 = vld [vmem:[#allocation50_spill] sm:$0xff] }
 0x35f   : > { %12825 = vst [vmem:[#allocation72_spill] sm:$0xff] %v11135_v7  ;;  %v8881_v32 = vpop.eup %8880  ;;  %8016 = vmatmul.mubr.bf16.gmra.mxu1 %v11135_v7  ;;  %v11149_v4 = vpack.c.bf16 %v11138_v23, %v11129_v62  ;;  %vm12828_vm6 = vcmp.lt.s32.totalorder %v12827_v22, 1  ;;  %v11178_v17 = vmul.f32 %v8879_v1, %v11063_v9  ;;  %v3942_v47 = vrot.slane %v11138_v23, 1  ;;  %v12926_v7 = vld [vmem:[#allocation30_spill] sm:$0xff] }
 0x360   : > { %v12493_v34 = vrot.slane %v11143_v48, 7  ;;  %v8883_v53 = vpop.eup %8882  ;;  %v11157_v30 = vsel %vm12828_vm6, %v3527_v50, %v3528_v19  ;;  %vm12829_vm11 = vmmov %vm12828_vm6  ;;  %v11181_v31 = vmul.f32 %v8881_v32, %v11066_v20  ;;  %v12834_v20 = vld [vmem:[#allocation34_spill] sm:$0xff] }
 0x361   : > { %12826 = vst [vmem:[#allocation71_spill] sm:$0xff] %v11149_v4  ;;  %8019 = vmatprep.mubr.bf16.mxu1 %v11149_v4  ;;  %v11161_v16 = vsel %vm12829_vm11, %v3528_v19, %v3529_v10  ;;  %vm12830_vm15 = vmmov %vm12828_vm6  ;;  %8068 = vmatpush3.bf16.msra.mxu1 %v8652_v61  ;;  %v11196_v9 = vmul.f32 %v8883_v53, %v11035_v14  ;;  %v3932_v61 = vrot.slane %v11081_v6, 1  ;;  %v3935_v19 = vrot.slane %v11103_v21, 1  ;;  %v8702_v4 = vld [vmem:[#allocation8 + $0x200] sm:$0xff]  }
 0x362   : > { %v11165_v5 = vsel %vm12830_vm15, %v3529_v10, %v3530_v36  ;;  %vm12831_vm4 = vmmov %vm12828_vm6  ;;  %8069 = vmatprep.subr.bf16.mxu1 %v8654_v39  ;;  %v11187_v41 = vpack.c.bf16 %v11161_v16, %v11157_v30  ;;  %v11211_v14 = vpack.c.bf16 %v11181_v31, %v11178_v17  ;;  %vm12841_vm15 = vnez %v12840_v12 }
 0x363   : > { %v11171_v25 = vsel %vm12831_vm4, %v12493_v34, %v3527_v50  ;;  %vm12832_vm1 = vmmov %vm12831_vm4  ;;  %vm12835_vm4 = vnez %v12834_v20  ;;  %v12495_v37 = vrot.slane %v11196_v9, 7  ;;  %v3934_v50 = vrot.slane %v11093_v26, 1 }
 0x364   : > { %v11175_v54 = vsel %vm12832_vm1, %v3530_v36, %v3531_v44  ;;  %v7077_v3 = vpack.c.bf16 %v11171_v25, %v12821_v52  ;;  %vm12833_vm1 = vcmp.lt.s32.totalorder %v12827_v22, 7  ;;  %12838 = vst [vmem:[#allocation33_spill] sm:$0xff] %v11211_v14  ;;  %vm12842_vm11 = vmmov %vm12828_vm6  ;;  %v3936_v34 = vrot.slane %v11106_v40, 1 }
 0x365   : > { %v11193_v38 = vsel %vm12833_vm1, %v12492_v57, %v3931_v15  ;;  %v11202_v45 = vpack.c.bf16 %v11175_v54, %v11165_v5  ;;  %8070 = vmatpush3.bf16.msra.mxu1 %v8654_v39  ;;  %v11236_v10 = vsel %vm12842_vm11, %v3531_v44, %v3532_v49  ;;  %vm12843_vm1 = vmmov %vm12828_vm6  ;;  %v3538_v57 = vrot.slane %v11129_v62, 7  ;;  %v12851_v44 = vld [vmem:[#allocation43_spill] sm:$0xff] }
 0x366   : > { %8039 = vmatprep.mubr.msk.bf16.mxu0 %vm12835_vm4, %v7077_v3  ;;  %8119 = vmatprep.subr.bf16.mxu1 %v8656_v35  ;;  %v7109_v24 = vpack.c.bf16 %v11193_v38, %v12821_v52  ;;  %v11242_v36 = vsel %vm12843_vm1, %v12495_v37, %v3535_v13  ;;  %vm12844_vm4 = vcmp.lt.s32.totalorder %v12827_v22, 7  ;;  %v8655_v3 = vld [vmem:[#allocation8 + $0xe0] sm:$0xff]   ;;  %vm12852_vm1 = vnez %v12851_v44 }
 0x367   : > { %12836 = vst [vmem:[#allocation35_spill] sm:$0xff] %v11202_v45  ;;  %8040 = vmatmul.mubr.msk.bf16.vlgmr.msra.gmra.mxu0 %vm12733_vm14, %v11187_v41  ;;  %8020 = vmatmul.mubr.bf16.gmra.mxu1 %v11211_v14  ;;  %v11246_v1 = vsel %vm12844_vm4, %v3931_v15, %v3932_v61  ;;  %vm12848_vm11 = vmmov %vm12844_vm4  ;;  %v7089_v20 = vpack.c.bf16 %v11242_v36, %v12821_v52  ;;  %v3939_v44 = vrot.slane %v11121_v28, 1 }
 0x368   : > { %8043 = vmatprep.mubr.msk.bf16.mxu0 %vm9924_vm12, %v11202_v45  ;;  %8088 = vmatpush3.bf16.msra.mxu0 %v10978_v46  ;;  %v11232_v46 = vsel %vm12828_vm6, %v3532_v49, %v12494_v18  ;;  %vm12847_vm6 = vmmov %vm12844_vm4  ;;  %v3536_v49 = vrot.slane %v11121_v28, 7  ;;  %v8657_v18 = vld [vmem:[#allocation8 + $0xd8] sm:$0xff]  }
 0x369   : > { %8089 = vmatprep.subr.bf16.mxu0 %v8651_v27  ;;  %8071 = vmatprep.mubr.msk.bf16.mxu1 %vm12841_vm15, %v7109_v24  ;;  %vm12845_vm15 = vmmov %vm12844_vm4  ;;  %v11258_v53 = vpack.c.bf16 %v11232_v46, %v11236_v10  ;;  %v11262_v15 = vsel %vm12847_vm6, %v3934_v50, %v3935_v19  ;;  %vm12856_vm4 = vcmp.lt.s32.totalorder %v12827_v22, 1  ;;  %v8675_v24 = vld [vmem:[#allocation8 + $0x150] sm:$0xff]  }
 0x36a   : > { %v11250_v39 = vsel %vm12845_vm15, %v3932_v61, %v3933_v58  ;;  %v3537_v61 = vrot.slane %v11126_v63, 7  ;;  %vm12857_vm15 = vmmov %vm12856_vm4 }
 0x36b   : > { %12846 = vst [vmem:[#allocation49_spill] sm:$0xff] %v11258_v53  ;;  %v11277_v12 = vpack.c.bf16 %v11250_v39, %v11246_v1  ;;  %v11303_v59 = vsel %vm12857_vm15, %v3535_v13, %v3536_v49  ;;  %vm12858_vm6 = vmmov %vm12856_vm4 }
 0x36c   : > { %8090 = vmatpush3.bf16.msra.mxu0 %v8651_v27  ;;  %v11266_v27 = vsel %vm12848_vm11, %v3933_v58, %v3934_v50  ;;  %v3539_v58 = vrot.slane %v11138_v23, 7  ;;  %v8658_v50 = vld [vmem:[#allocation8 + $0x130] sm:$0xff]   ;;  %vm12859_vm11 = vmmov %vm12856_vm4 }
 0x36d   : > { %8091 = vmatprep.subr.bf16.mxu0 %v8653_v43  ;;  %12850 = vst [vmem:[#allocation55_spill] sm:$0xff] %v11277_v12  ;;  %v11285_v32 = vpack.c.bf16 %v11262_v15, %v11266_v27  ;;  %v11311_v37 = vsel %vm12859_vm11, %v3537_v61, %v3538_v57 }
 0x36e   : > { %v11307_v60 = vsel %vm12858_vm6, %v3538_v57, %v3539_v58  ;;  %v8659_v57 = vld [vmem:[#allocation8 + $0xd0] sm:$0xff]  }
 0x36f   : > { %8044 = vmatmul.mubr.msk.bf16.gmra.mxu0 %vm10002_vm5, %v11258_v53  ;;  %12853 = vst [vmem:[#allocation70_spill] sm:$0xff] %v11285_v32  ;;  %8072 = vmatmul.mubr.msk.bf16.vlgmr.msra.gmra.mxu1 %vm10144_vm0, %v11277_v12  ;;  %v3941_v12 = vrot.slane %v11129_v62, 1  ;;  %v12871_v53 = vld [vmem:[#allocation61_spill] sm:$0xff] }
 0x370   : > { %8047 = vmatprep.mubr.msk.bf16.mxu0 %vm12852_vm1, %v7089_v20  ;;  %8092 = vmatpush3.bf16.msra.mxu0 %v8653_v43  ;;  %v11299_v20 = vsel %vm12856_vm4, %v3536_v49, %v3537_v61  ;;  %vm12861_vm1 = vcmp.lt.s32.totalorder %v12827_v22, 7  ;;  %v12864_v61 = vrot.slane %v11118_v42, 1  ;;  %vm12872_vm6 = vnez %v12871_v53  ;;  %v8920_v43 = vld [vmem:[%s9536_s26] sm:$0xff] }
 0x371   : > { %8093 = vmatprep.subr.bf16.mxu0 %v8655_v3  ;;  %8075 = vmatprep.mubr.msk.bf16.mxu1 %vm12719_vm3, %v11285_v32  ;;  %vm12862_vm4 = vmmov %vm12861_vm1  ;;  %v11325_v49 = vpack.c.bf16 %v11299_v20, %v11303_v59 }
 0x372   : > { %8120 = vmatpush3.bf16.msra.mxu1 %v8656_v35  ;;  %v12860_v35 = vrot.slane %v11196_v9, 1  ;;  %v11321_v13 = vsel %vm12862_vm4, %v3935_v19, %v3936_v34  ;;  %vm12865_vm15 = vmmov %vm12861_vm1  ;;  %v3940_v19 = vrot.slane %v11126_v63, 1 }
 0x373   : > { %8121 = vmatprep.subr.bf16.mxu1 %v8658_v50  ;;  %12863 = vst [vmem:[#allocation51_spill] sm:$0xff] %v11325_v49 }
 0x374   : > { %8094 = vmatpush3.bf16.msra.mxu0 %v8655_v3  ;;  %v11317_v14 = vsel %vm12861_vm1, %v3936_v34, %v12860_v35  ;;  %v11331_v3 = vsel %vm12865_vm15, %v12864_v61, %v3939_v44  ;;  %v11335_v35 = vpack.c.bf16 %v11307_v60, %v11311_v37  ;;  %v3540_v34 = vrot.slane %v11178_v17, 7  ;;  %v8662_v61 = vld [vmem:[#allocation8 + $0x120] sm:$0xff]   ;;  %vm12874_vm1 = vmmov %vm12859_vm11 }
 0x375   : > { %8095 = vmatprep.subr.bf16.mxu0 %v8657_v18  ;;  %v11344_v32 = vpack.c.bf16 %v11317_v14, %v11321_v13  ;;  %v11372_v45 = vsel %vm12862_vm4, %v3940_v19, %v3941_v12  ;;  %vm12875_vm15 = vmmov %vm12862_vm4 }
 0x376   : > { %12866 = vst [vmem:[#allocation57_spill] sm:$0xff] %v11335_v35  ;;  %8122 = vmatpush3.bf16.msra.mxu1 %v8658_v50  ;;  %v7121_v50 = vpack.c.bf16 %v11331_v3, %v12821_v52  ;;  %v11368_v52 = vsel %vm12874_vm1, %v3539_v58, %v3540_v34 }
 0x377   : > { %8048 = vmatmul.mubr.msk.bf16.gmra.mxu0 %vm10055_vm10, %v11325_v49  ;;  %12868 = vst [vmem:[#allocation58_spill] sm:$0xff] %v11344_v32  ;;  %8123 = vmatprep.subr.bf16.mxu1 %v8660_v56  ;;  %v3943_v49 = vrot.slane %v11178_v17, 1 }
 0x378   : > { %8051 = vmatprep.mubr.msk.bf16.mxu0 %vm10073_vm13, %v11335_v35  ;;  %8096 = vmatpush3.bf16.msra.mxu0 %v8657_v18  ;;  %v12873_v18 = vrot.slane %v11181_v31, 7 }
 0x379   : > { %8097 = vmatprep.subr.bf16.mxu0 %v8659_v57  ;;  %8076 = vmatmul.mubr.msk.bf16.gmra.mxu1 %vm10234_vm7, %v11344_v32  ;;  %v8664_v32 = vld [vmem:[#allocation8 + $0x118] sm:$0xff]  }
 0x37a   : > { %8079 = vmatprep.mubr.msk.bf16.mxu1 %vm12872_vm6, %v7121_v50  ;;  %8124 = vmatpush3.bf16.msra.mxu1 %v8660_v56  ;;  %v11364_v35 = vsel %vm12859_vm11, %v3540_v34, %v12873_v18  ;;  %v11376_v56 = vsel %vm12875_vm15, %v3939_v44, %v3940_v19  ;;  %v8663_v50 = vld [vmem:[#allocation8 + $0xc0] sm:$0xff]   ;;  %vm12877_vm6 = vmmov %vm12862_vm4  ;;  %v7141_v34 = vpack.c.bf16 %v11157_v30, %v11171_v25  ;;  %v12880_v44 = vld [vmem:[#allocation52_spill] sm:$0xff]  ;;  %v3944_v30 = vrot.slane %v11181_v31, 1 }
 0x37b   : > { %8125 = vmatprep.subr.bf16.mxu1 %v8662_v61  ;;  %v11380_v53 = vpack.c.bf16 %v11364_v35, %v11368_v52  ;;  %v11384_v58 = vsel %vm12877_vm6, %v3942_v47, %v3943_v49  ;;  %vm12879_vm11 = vmmov %vm12862_vm4  ;;  %vm12881_vm1 = vnez %v12880_v44  ;;  %v11397_v19 = vpack.c.bf16 %v11372_v45, %v11376_v56  ;;  %v8666_v18 = vld [vmem:[#allocation8 + $0x110] sm:$0xff]  }
 0x37c   : > { %8098 = vmatpush3.bf16.msra.mxu0 %v8659_v57  ;;  %12878 = vst [vmem:[#allocation73_spill] sm:$0xff] %v11384_v58  ;;  %v11388_v57 = vsel %vm12879_vm11, %v3941_v12, %v3942_v47  ;;  %vm12884_vm4 = vnez %v12883_v2  ;;  %v12514_v25 = vrot.slane %v11143_v48, 1  ;;  %vm12887_vm15 = vmmov %vm12877_vm6  ;;  %v8683_v44 = vld [vmem:[#allocation8 + $0x1f0] sm:$0xff]   ;;  %v12910_v2 = vld [vmem:[#allocation35_spill] sm:$0xff] }
 0x37d   : > { %12876 = vst [vmem:[#allocation59_spill] sm:$0xff] %v11380_v53  ;;  %8099 = vmatprep.subr.bf16.mxu0 %v8661_v51  ;;  %12882 = vst [vmem:[#allocation44_spill] sm:$0xff] %v11397_v19  ;;  %v11403_v47 = vpack.c.bf16 %v11384_v58, %v11388_v57  ;;  %v11421_v58 = vsel %vm12877_vm6, %v3943_v49, %v3944_v30  ;;  %v12892_v49 = vrot.slane %v11106_v40, 7 }
 0x37e   : > { %8126 = vmatpush3.bf16.msra.mxu1 %v8662_v61  ;;  %v8665_v61 = vld [vmem:[#allocation8 + $0x178] sm:$0xff]  }
 0x37f   : > { %8052 = vmatmul.mubr.msk.bf16.gmra.mxu0 %vm12881_vm1, %v11380_v53  ;;  %8127 = vmatprep.subr.bf16.mxu1 %v8664_v32  ;;  %v8667_v53 = vld [vmem:[#allocation8 + $0x170] sm:$0xff]  }
 0x380   : > { %8100 = vmatpush3.bf16.msra.mxu0 %v8661_v51  ;;  %8103 = vmatprep.mubr.msk.bf16.mxu0 %vm12884_vm4, %v7141_v34  ;;  %v8668_v51 = vld [vmem:[#allocation8 + $0x108] sm:$0xff]   ;;  %v11417_v34 = vsel %vm12887_vm15, %v3944_v30, %v12514_v25  ;;  %v8670_v25 = vld [vmem:[#allocation8 + $0x100] sm:$0xff]   ;;  %vm12893_vm15 = vcmp.lt.s32.totalorder %v12827_v22, 1 }
 0x381   : > { %8101 = vmatprep.subr.bf16.mxu0 %v8663_v50  ;;  %8080 = vmatmul.mubr.msk.bf16.gmra.mxu1 %vm10301_vm2, %v11397_v19  ;;  %v7144_v19 = vpack.c.bf16 %v11165_v5, %v11161_v16  ;;  %v12888_v16 = vld [vmem:[#allocation47_spill] sm:$0xff]  ;;  %v8669_v5 = vld [vmem:[#allocation8 + $0x168] sm:$0xff]  }
 0x382   : > { %8083 = vmatprep.mubr.msk.bf16.mxu1 %vm10317_vm8, %v11403_v47  ;;  %8128 = vmatpush3.bf16.msra.mxu1 %v8664_v32  ;;  %v7147_v32 = vpack.c.bf16 %v11236_v10, %v11175_v54  ;;  %vm12889_vm11 = vnez %v12888_v16  ;;  %v12890_v54 = vpack.c.bf16 %v11076_v55, %v11073_v8  ;;  %v12891_v10 = vrot.slane %v11196_v9, 7  ;;  %v8699_v16 = vld [vmem:[#allocation10 + $0x30] sm:$0xff]  }
 0x383   : > { %8129 = vmatprep.subr.bf16.mxu1 %v8666_v18  ;;  %v7153_v55 = vpack.c.bf16 %v11303_v59, %v11242_v36  ;;  %v8676_v59 = vld [vmem:[#allocation8 + $0x1a8] sm:$0xff]   ;;  %v7156_v36 = vpack.c.bf16 %v11311_v37, %v11299_v20  ;;  %v8680_v37 = vld [vmem:[#allocation8 + $0x198] sm:$0xff]  }
 0x384   : > { %8102 = vmatpush3.bf16.msra.mxu0 %v8663_v50  ;;  %v11431_v50 = vpack.c.bf16 %v11417_v34, %v11421_v58 }
 0x385   : > { %8151 = vmatprep.subr.bf16.mxu0 %v8665_v61 }
 0x386   : > { %8130 = vmatpush3.bf16.msra.mxu1 %v8666_v18  ;;  %v8672_v18 = vld [vmem:[#allocation8 + $0x1b8] sm:$0xff]  }
 0x387   : > { %8104 = vmatmul.mubr.msk.bf16.vlgmr.msra.gmra.mxu0 %vm12733_vm14, %v7144_v19  ;;  %8131 = vmatprep.subr.bf16.mxu1 %v8668_v51  ;;  %v11447_v19 = vsel %vm12893_vm15, %v12892_v49, %v12891_v10  ;;  %v8682_v10 = vld [vmem:[#allocation8 + $0x190] sm:$0xff]   ;;  %v12900_v49 = vld [vmem:[#allocation46_spill] sm:$0xff] }
 0x388   : > { %8107 = vmatprep.mubr.msk.bf16.mxu0 %vm9924_vm12, %v7147_v32  ;;  %8152 = vmatpush3.bf16.msra.mxu0 %v8665_v61  ;;  %v7150_v30 = vpack.c.bf16 %v11447_v19, %v11232_v46  ;;  %v8671_v61 = vld [vmem:[#allocation8 + $0x160] sm:$0xff]   ;;  %v8673_v46 = vld [vmem:[#allocation8 + $0x158] sm:$0xff]   ;;  %vm12901_vm6 = vnez %v12900_v49  ;;  %v12922_v32 = vld [vmem:[#allocation57_spill] sm:$0xff] }
 0x389   : > { %8153 = vmatprep.subr.bf16.mxu0 %v8667_v53  ;;  %8084 = vmatmul.mubr.msk.bf16.gmra.mxu1 %vm12889_vm11, %v11431_v50  ;;  %v8704_v49 = vld [vmem:[#allocation10 + $0x18] sm:$0xff]  }
 0x38a   : > { %8132 = vmatpush3.bf16.msra.mxu1 %v8668_v51  ;;  %8135 = vmatprep.mubr.bf16.mxu1 %v12890_v54  ;;  %v8674_v51 = vld [vmem:[#allocation8 + $0x1b0] sm:$0xff]   ;;  %v12896_v54 = vpack.c.bf16 %v11103_v21, %v11093_v26  ;;  %v4370_v26 = vpack.c.bf16 %v11121_v28, %v11118_v42  ;;  %v8677_v21 = vld [vmem:[#allocation8 + $0x148] sm:$0xff]   ;;  %v8679_v28 = vld [vmem:[#allocation8 + $0x140] sm:$0xff]  }
 0x38b   : > { %8133 = vmatprep.subr.bf16.mxu1 %v8670_v25 }
 0x38c   : > { %8154 = vmatpush3.bf16.msra.mxu0 %v8667_v53  ;;  %v12895_v53 = vpack.c.bf16 %v11084_v33, %v11081_v6  ;;  %v4369_v6 = vpack.c.bf16 %v11196_v9, %v11106_v40  ;;  %v8678_v33 = vld [vmem:[#allocation8 + $0x1a0] sm:$0xff]  }
 0x38d   : > { %8155 = vmatprep.subr.bf16.mxu0 %v8669_v5 }
 0x38e   : > { %8134 = vmatpush3.bf16.msra.mxu1 %v8670_v25  ;;  %v7159_v25 = vpack.c.bf16 %v11368_v52, %v11307_v60  ;;  %v12897_v52 = vrot.slane %v11143_v48, 7  ;;  %v12898_v60 = vrot.slane %v11181_v31, 7 }
 0x38f   : > { %8108 = vmatmul.mubr.msk.bf16.gmra.mxu0 %vm10002_vm5, %v7150_v30  ;;  %8183 = vmatprep.subr.bf16.mxu1 %v8672_v18  ;;  %vm12899_vm5 = vmmov %vm12893_vm15  ;;  %v8681_v30 = vld [vmem:[#allocation8 + $0x1f8] sm:$0xff]  }
 0x390   : > { %8111 = vmatprep.mubr.msk.bf16.mxu0 %vm10289_vm9, %v7153_v55  ;;  %8156 = vmatpush3.bf16.msra.mxu0 %v8669_v5  ;;  %v11481_v40 = vsel %vm12899_vm5, %v12898_v60, %v12897_v52  ;;  %v7181_v5 = vpack.c.bf16 %v11246_v1, %v11193_v38  ;;  %v8684_v38 = vld [vmem:[#allocation8 + $0x188] sm:$0xff]   ;;  %v7184_v1 = vpack.c.bf16 %v11266_v27, %v11250_v39  ;;  %v12905_v39 = vrot.slane %v11196_v9, 1  ;;  %v8688_v27 = vld [vmem:[#allocation8 + $0x238] sm:$0xff]  }
 0x391   : > { %8157 = vmatprep.subr.bf16.mxu0 %v8671_v61  ;;  %8136 = vmatmul.mubr.bf16.vlgmr.msra.gmra.mxu1 %v12895_v53  ;;  %v7162_v20 = vpack.c.bf16 %v11481_v40, %v11364_v35  ;;  %v12902_v35 = vpack.c.bf16 %v11129_v62, %v11126_v63  ;;  %v8686_v63 = vld [vmem:[#allocation8 + $0x180] sm:$0xff]   ;;  %v12903_v62 = vpack.c.bf16 %v11143_v48, %v11181_v31  ;;  %v12921_v52 = vld [vmem:[#allocation38_spill] sm:$0xff] }
 0x392   : > { %8139 = vmatprep.mubr.bf16.mxu1 %v12896_v54  ;;  %8184 = vmatpush3.bf16.msra.mxu1 %v8672_v18  ;;  %v4372_v18 = vpack.c.bf16 %v11178_v17, %v11138_v23  ;;  %v8685_v23 = vld [vmem:[#allocation8 + $0x1e8] sm:$0xff]   ;;  %v12904_v17 = vrot.slane %v11118_v42, 1  ;;  %v7193_v42 = vpack.c.bf16 %v11376_v56, %v11331_v3  ;;  %v12908_v53 = vld [vmem:[#allocation31_spill] sm:$0xff]  ;;  %v7196_v56 = vpack.c.bf16 %v11388_v57, %v11372_v45  ;;  %v12912_v54 = vld [vmem:[#allocation73_spill] sm:$0xff] }
 0x393   : > { %8185 = vmatprep.subr.bf16.mxu1 %v8674_v51  ;;  %vm12909_vm15 = vnez %v12908_v53  ;;  %v8692_v3 = vld [vmem:[#allocation8 + $0x228] sm:$0xff]   ;;  %v12915_v45 = vld [vmem:[#allocation29_spill] sm:$0xff]  ;;  %v8697_v60 = vld [vmem:[#allocation10 + $0x38] sm:$0xff]  }
 0x394   : > { %8158 = vmatpush3.bf16.msra.mxu0 %v8671_v61  ;;  %v7187_v61 = vpack.c.bf16 %v11321_v13, %v11262_v15  ;;  %v8687_v13 = vld [vmem:[#allocation8 + $0x1e0] sm:$0xff]   ;;  %v8693_v57 = vld [vmem:[#allocation8 + $0x1c8] sm:$0xff]   ;;  %v8927_v53 = vld [vmem:[%s9536_s26 + $0x38] sm:$0xff] }
 0x395   : > { %8159 = vmatprep.subr.bf16.mxu0 %v8673_v46  ;;  %v8925_v55 = vld [vmem:[%s9536_s26 + $0x28] sm:$0xff] }
 0x396   : > { %8186 = vmatpush3.bf16.msra.mxu1 %v8674_v51  ;;  %v8690_v51 = vld [vmem:[#allocation8 + $0x230] sm:$0xff]  }
 0x397   : > { %8112 = vmatmul.mubr.msk.bf16.gmra.mxu0 %vm10055_vm10, %v7156_v36  ;;  %8187 = vmatprep.subr.bf16.mxu1 %v8676_v59  ;;  %v7222_v36 = vpack.c.bf16 %v12913_v11, %v11447_v19 }
 0x398   : > { %8115 = vmatprep.mubr.msk.bf16.mxu0 %vm10073_vm13, %v7159_v25  ;;  %8160 = vmatpush3.bf16.msra.mxu0 %v8673_v46  ;;  %v8691_v46 = vld [vmem:[#allocation8 + $0x1d0] sm:$0xff]   ;;  %v12918_v25 = vrot.slane %v11143_v48, 1 }
 0x399   : > { %8161 = vmatprep.subr.bf16.mxu0 %v8675_v24  ;;  %8140 = vmatmul.mubr.bf16.gmra.mxu1 %v4369_v6  ;;  %v12920_v6 = vld [vmem:[#allocation51_spill] sm:$0xff] }
 0x39a   : > { %8143 = vmatprep.mubr.bf16.mxu1 %v4370_v26  ;;  %8188 = vmatpush3.bf16.msra.mxu1 %v8676_v59  ;;  %v7199_v59 = vpack.c.bf16 %v11421_v58, %v12912_v54  ;;  %v12917_v58 = vrot.slane %v11073_v8, 1  ;;  %v8698_v8 = vld [vmem:[#allocation8 + $0x210] sm:$0xff]  }
 0x39b   : > { %8189 = vmatprep.subr.bf16.mxu1 %v8678_v33 }
 0x39c   : > { %8162 = vmatpush3.bf16.msra.mxu0 %v8675_v24  ;;  %v8935_v24 = vld [vmem:[%s9536_s26 + $0x78] sm:$0xff] }
 0x39d   : > { %8163 = vmatprep.subr.bf16.mxu0 %v8677_v21 }
 0x39e   : > { %8190 = vmatpush3.bf16.msra.mxu1 %v8678_v33  ;;  %v8696_v33 = vld [vmem:[#allocation8 + $0x218] sm:$0xff]  }
 0x39f   : > { %8116 = vmatmul.mubr.msk.bf16.gmra.mxu0 %vm12881_vm1, %v7162_v20  ;;  %8191 = vmatprep.subr.bf16.mxu1 %v8680_v37  ;;  %vm12906_vm1 = vcmp.lt.s32.totalorder %v12827_v22, 7  ;;  %v7234_v20 = vpack.c.bf16 %v12913_v11, %v11481_v40  ;;  %v4975_v40 = vpack.c.bf16 %v12913_v11, %v11196_v9  ;;  %v8705_v9 = vld [vmem:[#allocation10 + $0x10] sm:$0xff]  }
 0x3a0   : > { %8164 = vmatpush3.bf16.msra.mxu0 %v8677_v21  ;;  %8167 = vmatprep.mubr.msk.bf16.mxu0 %vm12901_vm6, %v7181_v5  ;;  %v11513_v15 = vsel %vm12906_vm1, %v12905_v39, %v12904_v17  ;;  %v8695_v21 = vld [vmem:[#allocation8 + $0x1c0] sm:$0xff]   ;;  %v12925_v5 = vld [vmem:[#allocation40_spill] sm:$0xff] }
 0x3a1   : > { %8165 = vmatprep.subr.bf16.mxu0 %v8679_v28  ;;  %8144 = vmatmul.mubr.bf16.gmra.mxu1 %v12902_v35  ;;  %v7190_v31 = vpack.c.bf16 %v11513_v15, %v11317_v14  ;;  %v12911_v14 = vld [vmem:[#allocation49_spill] sm:$0xff]  ;;  %v8703_v35 = vld [vmem:[#allocation10 + $0x20] sm:$0xff]  }
 0x3a2   : > { %8147 = vmatprep.mubr.bf16.mxu1 %v4372_v18  ;;  %8192 = vmatpush3.bf16.msra.mxu1 %v8680_v37  ;;  %v12923_v37 = vld [vmem:[#allocation59_spill] sm:$0xff] }
 0x3a3   : > { %8193 = vmatprep.subr.bf16.mxu1 %v8682_v10  ;;  %v12928_v18 = vld [vmem:[#allocation55_spill] sm:$0xff] }
 0x3a4   : > { %8166 = vmatpush3.bf16.msra.mxu0 %v8679_v28  ;;  %v12924_v28 = vld [vmem:[#allocation42_spill] sm:$0xff]  ;;  %v8921_v17 = vld [vmem:[%s9536_s26 + $0x8] sm:$0xff] }
 0x3a5   : > { %8215 = vmatprep.subr.bf16.mxu0 %v8681_v30  ;;  %v5382_v39 = vpack.c.bf16 %v8921_v17, %v8920_v43 }
 0x3a6   : > { %8194 = vmatpush3.bf16.msra.mxu1 %v8682_v10  ;;  %v8701_v10 = vld [vmem:[#allocation10 + $0x28] sm:$0xff]  }
 0x3a7   : > { %8168 = vmatmul.mubr.msk.bf16.vlgmr.msra.gmra.mxu0 %vm10144_vm0, %v7184_v1  ;;  %8195 = vmatprep.subr.bf16.mxu1 %v8684_v38  ;;  %v12931_v1 = vld [vmem:[#allocation58_spill] sm:$0xff] }
 0x3a8   : > { %8171 = vmatprep.mubr.msk.bf16.mxu0 %vm12719_vm3, %v7187_v61  ;;  %8216 = vmatpush3.bf16.msra.mxu0 %v8681_v30  ;;  %v12929_v30 = vld [vmem:[#allocation72_spill] sm:$0xff]  ;;  %v12932_v61 = vld [vmem:[#allocation71_spill] sm:$0xff] }
 0x3a9   : > { %8217 = vmatprep.subr.bf16.mxu0 %v8683_v44  ;;  %8148 = vmatmul.mubr.bf16.gmra.mxu1 %v12903_v62  ;;  %v8706_v62 = vld [vmem:[#allocation10 + $0x8] sm:$0xff]  }
 0x3aa   : > { %8196 = vmatpush3.bf16.msra.mxu1 %v8684_v38  ;;  %8199 = vmatprep.mubr.msk.bf16.mxu1 %vm12884_vm4, %v11187_v41  ;;  %v8689_v41 = vld [vmem:[#allocation8 + $0x1d8] sm:$0xff]  }
 0x3ab   : > { %8197 = vmatprep.subr.bf16.mxu1 %v8686_v63  ;;  %v12930_v38 = vld [vmem:[#allocation70_spill] sm:$0xff] }
 0x3ac   : > { %8218 = vmatpush3.bf16.msra.mxu0 %v8683_v44  ;;  %v7262_v44 = vpack.c.bf16 %v12913_v11, %v11513_v15  ;;  %v4979_v15 = vpack.c.bf16 %v12913_v11, %v11143_v48  ;;  %v8923_v48 = vld [vmem:[%s9536_s26 + $0x18] sm:$0xff] }
 0x3ad   : > { %8219 = vmatprep.subr.bf16.mxu0 %v8685_v23 }
 0x3ae   : > { %8198 = vmatpush3.bf16.msra.mxu1 %v8686_v63  ;;  %v12933_v63 = vld [vmem:[#allocation33_spill] sm:$0xff] }
 0x3af   : > { %8172 = vmatmul.mubr.msk.bf16.gmra.mxu0 %vm10234_vm7, %v7190_v31  ;;  %8247 = vmatprep.subr.bf16.mxu1 %v8688_v27  ;;  %vm12919_vm7 = vmmov %vm12906_vm1  ;;  %v8922_v31 = vld [vmem:[%s9536_s26 + $0x10] sm:$0xff] }
 0x3b0   : > { %8175 = vmatprep.mubr.msk.bf16.mxu0 %vm12909_vm15, %v7193_v42  ;;  %8220 = vmatpush3.bf16.msra.mxu0 %v8685_v23  ;;  %v11550_v19 = vsel %vm12919_vm7, %v12918_v25, %v12917_v58  ;;  %v12936_v23 = vld [vmem:[#allocation44_spill] sm:$0xff]  ;;  %v8924_v42 = vld [vmem:[%s9536_s26 + $0x20] sm:$0xff] }
 0x3b1   : > { %8221 = vmatprep.subr.bf16.mxu0 %v8687_v13  ;;  %8200 = vmatmul.mubr.msk.bf16.vlgmr.msra.gmra.mxu1 %vm12733_vm14, %v12910_v2  ;;  %v7202_v26 = vpack.c.bf16 %v11550_v19, %v11417_v34  ;;  %v8700_v34 = vld [vmem:[#allocation8 + $0x208] sm:$0xff]   ;;  %v7274_v12 = vpack.c.bf16 %v12913_v11, %v11550_v19 }
 0x3b2   : > { %8203 = vmatprep.mubr.msk.bf16.mxu1 %vm9924_vm12, %v12911_v14  ;;  %8248 = vmatpush3.bf16.msra.mxu1 %v8688_v27  ;;  %vm12916_vm12 = vnez %v12915_v45  ;;  %v8707_v27 = vld [vmem:[#allocation10] sm:$0xff]  }
 0x3b3   : > { %8249 = vmatprep.subr.bf16.mxu1 %v8690_v51  ;;  %v8929_v14 = vld [vmem:[%s9536_s26 + $0x48] sm:$0xff] }
 0x3b4   : > { %8222 = vmatpush3.bf16.msra.mxu0 %v8687_v13  ;;  %v5383_v13 = vpack.c.bf16 %v8923_v48, %v8922_v31  ;;  %v8933_v11 = vld [vmem:[%s9536_s26 + $0x68] sm:$0xff] }
 0x3b5   : > { %8223 = vmatprep.subr.bf16.mxu0 %v8689_v41 }
 0x3b6   : > { %8250 = vmatpush3.bf16.msra.mxu1 %v8690_v51  ;;  %v5384_v51 = vpack.c.bf16 %v8925_v55, %v8924_v42  ;;  %v8732_v42 = vld [vmem:[#allocation11 + $0x18] ss:$12 sps:$4 sm:$0xff]   ;;  %v8734_v55 = vld [vmem:[#allocation11 + $0x1c] ss:$12 sps:$4 sm:$0xff]  }
 0x3b7   : > { %8176 = vmatmul.mubr.msk.bf16.gmra.mxu0 %vm10301_vm2, %v7196_v56  ;;  %8251 = vmatprep.subr.bf16.mxu1 %v8692_v3  ;;  %v8930_v56 = vld [vmem:[%s9536_s26 + $0x50] sm:$0xff] }
 0x3b8   : > { %8179 = vmatprep.mubr.msk.bf16.mxu0 %vm10317_vm8, %v7199_v59  ;;  %8224 = vmatpush3.bf16.msra.mxu0 %v8689_v41  ;;  %v8928_v41 = vld [vmem:[%s9536_s26 + $0x40] sm:$0xff] }
 0x3b9   : > { %8225 = vmatprep.subr.bf16.mxu0 %v8691_v46  ;;  %8204 = vmatmul.mubr.msk.bf16.gmra.mxu1 %vm12916_vm12, %v7222_v36  ;;  %v8932_v59 = vld [vmem:[%s9536_s26 + $0x60] sm:$0xff] }
 0x3ba   : > { %8207 = vmatprep.mubr.msk.bf16.mxu1 %vm10289_vm9, %v12920_v6  ;;  %8252 = vmatpush3.bf16.msra.mxu1 %v8692_v3  ;;  %vm12927_vm9 = vnez %v12926_v7  ;;  %v5386_v3 = vpack.c.bf16 %v8929_v14, %v8928_v41  ;;  %v5388_v36 = vpack.c.bf16 %v8933_v11, %v8932_v59  ;;  %v8722_v7 = vld [vmem:[#allocation11 + $0x64] ss:$12 sps:$4 sm:$0xff]  }
 0x3bb   : > { %8253 = vmatprep.subr.bf16.mxu1 %v8694_v29 }
 0x3bc   : > { %8226 = vmatpush3.bf16.msra.mxu0 %v8691_v46  ;;  %v8931_v46 = vld [vmem:[%s9536_s26 + $0x58] sm:$0xff] }
 0x3bd   : > { %8227 = vmatprep.subr.bf16.mxu0 %v8693_v57  ;;  %v5387_v54 = vpack.c.bf16 %v8931_v46, %v8930_v56 }
 0x3be   : > { %8254 = vmatpush3.bf16.msra.mxu1 %v8694_v29  ;;  %v8934_v29 = vld [vmem:[%s9536_s26 + $0x70] sm:$0xff] }
 0x3bf   : > { %8180 = vmatmul.mubr.msk.bf16.gmra.mxu0 %vm12889_vm11, %v7202_v26  ;;  %8255 = vmatprep.subr.bf16.mxu1 %v8696_v33  ;;  %v5389_v45 = vpack.c.bf16 %v8935_v24, %v8934_v29  ;;  %v8708_v26 = vld [vmem:[#allocation11 + $0xa8] ss:$12 sps:$4 sm:$0xff]  }
 0x3c0   : > { %8228 = vmatpush3.bf16.msra.mxu0 %v8693_v57  ;;  %8231 = vmatprep.mubr.bf16.mxu0 %v12921_v52 }
 0x3c1   : > { %8229 = vmatprep.subr.bf16.mxu0 %v8695_v21  ;;  %8208 = vmatmul.mubr.msk.bf16.gmra.mxu1 %vm10055_vm10, %v12922_v32  ;;  %v8712_v32 = vld [vmem:[#allocation11 + $0x90] ss:$12 sps:$4 sm:$0xff]  }
 0x3c2   : > { %8211 = vmatprep.mubr.msk.bf16.mxu1 %vm10073_vm13, %v12923_v37  ;;  %8256 = vmatpush3.bf16.msra.mxu1 %v8696_v33  ;;  %v8715_v37 = vld [vmem:[#allocation11 + $0x98] ss:$12 sps:$4 sm:$0xff]  }
 0x3c3   : > { %8257 = vmatprep.subr.bf16.mxu1 %v8698_v8 }
 0x3c4   : > { %8230 = vmatpush3.bf16.msra.mxu0 %v8695_v21  ;;  %v8710_v21 = vld [vmem:[#allocation11 + $0xac] ss:$12 sps:$4 sm:$0xff]  }
 0x3c5   : > { %8279 = vmatprep.subr.bf16.mxu0 %v8697_v60 }
 0x3c6   : > { %8258 = vmatpush3.bf16.msra.mxu1 %v8698_v8  ;;  %v8711_v8 = vld [vmem:[#allocation11 + $0xb0] ss:$12 sps:$4 sm:$0xff]  }
 0x3c7   : > { %8232 = vmatmul.mubr.bf16.vlgmr.msra.gmra.mxu0 %v12924_v28  ;;  %8259 = vmatprep.subr.bf16.mxu1 %v8700_v34  ;;  %v8719_v28 = vld [vmem:[#allocation11 + $0x80] ss:$12 sps:$4 sm:$0xff]  }
 0x3c8   : > { %8235 = vmatprep.mubr.bf16.mxu0 %v12925_v5  ;;  %8280 = vmatpush3.bf16.msra.mxu0 %v8697_v60  ;;  %v8714_v60 = vld [vmem:[#allocation11 + $0x94] ss:$12 sps:$4 sm:$0xff]  }
 0x3c9   : > { %8281 = vmatprep.subr.bf16.mxu0 %v8699_v16  ;;  %8212 = vmatmul.mubr.msk.bf16.gmra.mxu1 %vm12927_vm9, %v7234_v20  ;;  %v8718_v20 = vld [vmem:[#allocation11 + $0x7c] ss:$12 sps:$4 sm:$0xff]   ;;  %v8720_v5 = vld [vmem:[#allocation11 + $0x60] ss:$12 sps:$4 sm:$0xff]  }
 0x3ca   : > { %8260 = vmatpush3.bf16.msra.mxu1 %v8700_v34  ;;  %8263 = vmatprep.mubr.msk.bf16.mxu1 %vm12901_vm6, %v12928_v18  ;;  %v8723_v18 = vld [vmem:[#allocation11 + $0x68] ss:$12 sps:$4 sm:$0xff]  }
 0x3cb   : > { %8261 = vmatprep.subr.bf16.mxu1 %v8702_v4 }
 0x3cc   : > { %8282 = vmatpush3.bf16.msra.mxu0 %v8699_v16  ;;  %v8716_v16 = vld [vmem:[#allocation11 + $0x78] ss:$12 sps:$4 sm:$0xff]  }
 0x3cd   : > { %8283 = vmatprep.subr.bf16.mxu0 %v8701_v10 }
 0x3ce   : > { %8262 = vmatpush3.bf16.msra.mxu1 %v8702_v4 }
 0x3cf   : > { %8236 = vmatmul.mubr.bf16.gmra.mxu0 %v4975_v40  ;;  %5775 = vmatprep.subr.bf16.mxu1 %v8710_v21 }
 0x3d0   : > { %8239 = vmatprep.mubr.bf16.mxu0 %v12929_v30  ;;  %8284 = vmatpush3.bf16.msra.mxu0 %v8701_v10  ;;  %v8726_v30 = vld [vmem:[#allocation11 + $0x4c] ss:$12 sps:$4 sm:$0xff]  }
 0x3d1   : > { %8285 = vmatprep.subr.bf16.mxu0 %v8703_v35  ;;  %8264 = vmatmul.mubr.msk.bf16.vlgmr.msra.gmra.mxu1 %vm10144_vm0, %v12930_v38  ;;  %vm12935_vm0 = vnez %v12934_v0  ;;  %v8728_v0 = vld [vmem:[#allocation11 + $0x30] ss:$12 sps:$4 sm:$0xff]  }
 0x3d2   : > { %8267 = vmatprep.mubr.msk.bf16.mxu1 %vm12719_vm3, %v12931_v1  ;;  %5776 = vmatpush1.bf16.msra.mxu1 %v8708_v26 }
 0x3d3   : > { %5777 = vmatprep.subr.bf16.mxu1 %v8714_v60 }
 0x3d4   : > { %8286 = vmatpush3.bf16.msra.mxu0 %v8703_v35  ;;  %v8724_v35 = vld [vmem:[#allocation11 + $0x48] ss:$12 sps:$4 sm:$0xff]  }
 0x3d5   : > { %8287 = vmatprep.subr.bf16.mxu0 %v8704_v49 }
 0x3d6   : > { %5778 = vmatpush1.bf16.msra.mxu1 %v8712_v32 }
 0x3d7   : > { %8240 = vmatmul.mubr.bf16.gmra.mxu0 %v12932_v61  ;;  %5779 = vmatprep.subr.bf16.mxu1 %v8718_v20 }
 0x3d8   : > { %8243 = vmatprep.mubr.bf16.mxu0 %v12933_v63  ;;  %8288 = vmatpush3.bf16.msra.mxu0 %v8704_v49  ;;  %v8727_v49 = vld [vmem:[#allocation11 + $0x50] ss:$12 sps:$4 sm:$0xff]  }
 0x3d9   : > { %8289 = vmatprep.subr.bf16.mxu0 %v8705_v9  ;;  %8268 = vmatmul.mubr.msk.bf16.gmra.mxu1 %vm12935_vm0, %v7262_v44 }
 0x3da   : > { %8271 = vmatprep.mubr.msk.bf16.mxu1 %vm12909_vm15, %v12936_v23  ;;  %5780 = vmatpush1.bf16.msra.mxu1 %v8716_v16 }
 0x3db   : > { %5781 = vmatprep.subr.bf16.mxu1 %v8722_v7 }
 0x3dc   : > { %8290 = vmatpush3.bf16.msra.mxu0 %v8705_v9 }
 0x3dd   : > { %8291 = vmatprep.subr.bf16.mxu0 %v8706_v62 }
 0x3de   : > { %5782 = vmatpush1.bf16.msra.mxu1 %v8720_v5 }
 0x3df   : > { %8244 = vmatmul.mubr.bf16.gmra.mxu0 %v4979_v15  ;;  %5783 = vmatprep.subr.bf16.mxu1 %v8726_v30 }
 0x3e0   : > { %8292 = vmatpush3.bf16.msra.mxu0 %v8706_v62  ;;  %8295 = vmatprep.mubr.bf16.mxu0 %v5382_v39  ;;  %v8730_v62 = vld [vmem:[#allocation11 + $0x34] ss:$12 sps:$4 sm:$0xff]   ;;  %v8731_v39 = vld [vmem:[#allocation11 + $0x38] ss:$12 sps:$4 sm:$0xff]  }
 0x3e1   : > { %8293 = vmatprep.subr.bf16.mxu0 %v8707_v27  ;;  %8272 = vmatmul.mubr.msk.bf16.gmra.mxu1 %vm10301_vm2, %v11403_v47  ;;  %v12937_v47 = vld [vmem:[#allocation32_spill] sm:$0xff] }
 0x3e2   : > { %8275 = vmatprep.mubr.msk.bf16.mxu1 %vm10317_vm8, %v11431_v50  ;;  %vm12938_vm10 = vnez %v12937_v47  ;;  %v8926_v50 = vld [vmem:[%s9536_s26 + $0x30] sm:$0xff]  ;;  %5784 = vmatpush1.bf16.msra.mxu1 %v8724_v35  ;;  %vm6058_vm8 = vcmask 523264   ;;  %s9224_s26 = smov [#allocation14]  }
 0x3e3   : > { %v5385_v2 = vpack.c.bf16 %v8927_v53, %v8926_v50  ;;  %5785 = vmatprep.subr.bf16.mxu1 %v8730_v62  ;;  %v8735_v53 = vld [vmem:[#allocation11 + $0x20] ss:$12 sps:$4 sm:$0xff]   ;;  %s9126_s12 = sshll.u32 %s9224_s26, 4  ;;  %s9127_s12 = int_to_ptr.vmem [resolvable:$false] %s9126_s12 }
 0x3e4   : > { %8294 = vmatpush3.bf16.msra.mxu0 %v8707_v27  ;;  %s9128_s21 = scalar_lea.vmem %s9127_s12, 4096  ;;  %p9129_p1 = scmp.lt.s32.totalorder %s12309_s8, %s9127_s12 }
 0x3e5   : > { %8311 = vmatprep.subr.bf16.mxu0 %v8711_v8  ;;  %p9130_p4 = scmp.lt.s32.totalorder %s9128_s21, %s9122_s10 }
 0x3e6   : > { %5786 = vmatpush1.bf16.msra.mxu1 %v8728_v0 }
 0x3e7   : > { %8296 = vmatmul.mubr.bf16.vlgmr.msra.gmra.mxu0 %v5383_v13  ;;  %5787 = vmatprep.subr.bf16.mxu1 %v8734_v55  ;;  %p9131_p6 = por %p9130_p4, %p9129_p1 }
 0x3e8   : > { %8299 = vmatprep.mubr.bf16.mxu0 %v5384_v51  ;;  %8312 = vmatpush3.bf16.msra.mxu0 %v8711_v8 }
 0x3e9   : > { %8276 = vmatmul.mubr.msk.bf16.gmra.mxu1 %vm12938_vm10, %v7274_v12  ;;  %8313 = vmatprep.subr.bf16.mxu0 %v8715_v37  ;;  %p9132_p8 = pnand %p9131_p6, %p9125_p11 }
 0x3ea   : > { %5788 = vmatpush1.bf16.msra.mxu1 %v8732_v42 }
 0x3ec   : > { %8314 = vmatpush3.bf16.msra.mxu0 %v8715_v37 }
 0x3ed   : > { %8315 = vmatprep.subr.bf16.mxu0 %v8719_v28 }
 0x3ef   : > { %8300 = vmatmul.mubr.bf16.gmra.mxu0 %v5385_v2  ;;  %v8738_v2 = vld [vmem:[#allocation11 + $0x4] ss:$12 sps:$4 sm:$0xff]  }
 0x3f0   : > { %8303 = vmatprep.mubr.bf16.mxu0 %v5386_v3  ;;  %8316 = vmatpush3.bf16.msra.mxu0 %v8719_v28  ;;  %v8736_v3 = vld [vmem:[#allocation11] ss:$12 sps:$4 sm:$0xff]  }
 0x3f1   : > { %8317 = vmatprep.subr.bf16.mxu0 %v8723_v18  ;;  %5789 = vmatprep.subr.bf16.mxu1 %v8738_v2 }
 0x3f2   : > { %5790 = vmatpush1.bf16.msra.mxu1 %v8736_v3 }
 0x3f4   : > { %8318 = vmatpush3.bf16.msra.mxu0 %v8723_v18 }
 0x3f5   : > { %8319 = vmatprep.subr.bf16.mxu0 %v8727_v49 }
 0x3f7   : > { %8304 = vmatmul.mubr.bf16.gmra.mxu0 %v5387_v54  ;;  %v8739_v54 = vld [vmem:[#allocation11 + $0x8] ss:$12 sps:$4 sm:$0xff]  }
 0x3f8   : > { %8307 = vmatprep.mubr.bf16.mxu0 %v5388_v36  ;;  %8320 = vmatpush3.bf16.msra.mxu0 %v8727_v49 }
 0x3f9   : > { %8321 = vmatprep.subr.bf16.mxu0 %v8731_v39 }
 0x3fc   : > { %8322 = vmatpush3.bf16.msra.mxu0 %v8731_v39 }
 0x3fd   : > { %8323 = vmatprep.subr.bf16.mxu0 %v8735_v53 }
 0x3ff   : > { %8308 = vmatmul.mubr.bf16.gmra.mxu0 %v5389_v45 }
 0x400   : > { %8324 = vmatpush3.bf16.msra.mxu0 %v8735_v53 }
 0x401   : > { %8325 = vmatprep.subr.bf16.mxu0 %v8739_v54 }
 0x404   : > { %8326 = vmatpush3.bf16.msra.mxu0 %v8739_v54 }
 0x408   : > { %v8009_v57 = vpop.f32.mrf.mxu1 }
 0x40a   : > { %v3722_v58 = vpop.f32.mrf.mxu1 }
 0x40c   : > { %v8010_v25 = vpop.f32.mrf.mxu1 }
 0x40e   : > { %v11621_v19 = vpop.f32.mrf.mxu1 }
 0x410   : > { %v8013_v6 = vpop.f32.mrf.mxu1 }
 0x412   : > { %v11623_v33 = vpop.f32.mrf.mxu1 }
 0x414   : > { %v11625_v52 = vpop.f32.mrf.mxu1 }
 0x416   : > { %v11627_v34 = vpop.f32.mrf.mxu1 }
 0x41f   : > { %v11629_v4 = vpop.f32.mrf.mxu1 }
 0x421   : > { %v11631_v10 = vpop.f32.mrf.mxu1 }
 0x423   : > { %v11633_v40 = vpop.f32.mrf.mxu1 }
 0x425   : > { %v11635_v38 = vpop.f32.mrf.mxu1 }
 0x427   : > { %v8041_v1 = vpop.f32.mrf.mxu0  ;;  %v8021_v61 = vpop.f32.mrf.mxu1 }
 0x428   : > { %v3876_v9 = vadd.f32 %v8041_v1, %v8009_v57 }
 0x429   : > { %v3867_v44 = vpop.f32.mrf.mxu0  ;;  %v3770_v43 = vpop.f32.mrf.mxu1 }
 0x42a   : > { %v3868_v63 = vadd.f32 %v3867_v44, %v3722_v58 }
 0x42b   : > { %v8042_v23 = vpop.f32.mrf.mxu0  ;;  %v8022_v27 = vpop.f32.mrf.mxu1 }
 0x42c   : > { %v3879_v17 = vadd.f32 %v8042_v23, %v8010_v25  ;;  %v12515_v25 = vmov 0  }
 0x42d   : > { %v11637_v15 = vpop.f32.mrf.mxu0  ;;  %v11639_v48 = vpop.f32.mrf.mxu1  ;;  %5807 = vmatprep.mubr.bf16.mxu1 %v12515_v25 }
 0x42f   : > { %v8045_v31 = vpop.f32.mrf.mxu0  ;;  %v8073_v12 = vpop.f32.mrf.mxu1 }
 0x430   : > { %v3892_v13 = vadd.f32 %v8045_v31, %v8013_v6  ;;  %v4150_v50 = vadd.f32 %v8073_v12, %v3876_v9 }
 0x431   : > { %v3883_v51 = vpop.f32.mrf.mxu0  ;;  %v4085_v14 = vpop.f32.mrf.mxu1 }
 0x432   : > { %v3884_v47 = vadd.f32 %v3883_v51, %v11623_v33  ;;  %v4148_v46 = vadd.f32 %v4085_v14, %v3868_v63 }
 0x433   : > { %v8046_v41 = vpop.f32.mrf.mxu0  ;;  %v8074_v11 = vpop.f32.mrf.mxu1 }
 0x434   : > { %v3895_v56 = vadd.f32 %v8046_v41, %v11625_v52  ;;  %v4151_v36 = vadd.f32 %v8074_v11, %v3879_v17 }
 0x435   : > { %v11643_v59 = vpop.f32.mrf.mxu0  ;;  %v11645_v24 = vpop.f32.mrf.mxu1 }
 0x437   : > { %v8049_v29 = vpop.f32.mrf.mxu0 }
 0x438   : > { %v3908_v45 = vadd.f32 %v8049_v29, %v11629_v4 }
 0x439   : > { %v3899_v57 = vpop.f32.mrf.mxu0  ;;  %v8077_v58 = vpop.f32.mrf.mxu1 }
 0x43a   : > { %v3900_v6 = vadd.f32 %v3899_v57, %v11631_v10  ;;  %v4154_v33 = vadd.f32 %v8077_v58, %v3892_v13 }
 0x43b   : > { %v8050_v26 = vpop.f32.mrf.mxu0  ;;  %v4101_v21 = vpop.f32.mrf.mxu1 }
 0x43c   : > { %v3911_v8 = vadd.f32 %v8050_v26, %v11633_v40  ;;  %v4152_v52 = vadd.f32 %v4101_v21, %v3884_v47 }
 0x43d   : > { %v3902_v32 = vpop.f32.mrf.mxu0  ;;  %v8078_v60 = vpop.f32.mrf.mxu1 }
 0x43e   : > { %v4155_v37 = vadd.f32 %v8078_v60, %v3895_v56  ;;  %v3903_v40 = vadd.f32 %v3902_v32, %v11635_v38 }
 0x43f   : > { %v8053_v16 = vpop.f32.mrf.mxu0  ;;  %v11651_v20 = vpop.f32.mrf.mxu1 }
 0x440   : > { %v3924_v28 = vadd.f32 %v8053_v16, %v8021_v61 }
 0x441   : > { %v3915_v4 = vpop.f32.mrf.mxu0  ;;  %v8081_v5 = vpop.f32.mrf.mxu1 }
 0x442   : > { %v3916_v7 = vadd.f32 %v3915_v4, %v3770_v43  ;;  %v4158_v18 = vadd.f32 %v8081_v5, %v3908_v45 }
 0x443   : > { %v8054_v35 = vpop.f32.mrf.mxu0  ;;  %v4117_v30 = vpop.f32.mrf.mxu1 }
 0x444   : > { %v3927_v10 = vadd.f32 %v8054_v35, %v8022_v27  ;;  %v4156_v49 = vadd.f32 %v4117_v30, %v3900_v6 }
 0x445   : > { %v3918_v1 = vpop.f32.mrf.mxu0  ;;  %v8082_v9 = vpop.f32.mrf.mxu1 }
 0x446   : > { %v4159_v44 = vadd.f32 %v8082_v9, %v3911_v8  ;;  %v3919_v38 = vadd.f32 %v3918_v1, %v11639_v48 }
 0x447   : > { %v8105_v63 = vpop.f32.mrf.mxu0  ;;  %v4120_v0 = vpop.f32.mrf.mxu1 }
 0x448   : > { %v11654_v62 = vadd.f32 %v8105_v63, %v4150_v50  ;;  %v4157_v23 = vadd.f32 %v4120_v0, %v3903_v40 }
 0x449   : > { %v4287_v17 = vpop.f32.mrf.mxu0  ;;  %v8085_v61 = vpop.f32.mrf.mxu1 }
 0x44a   : > { %v11656_v39 = vadd.f32 %v4287_v17, %v4148_v46  ;;  %v4162_v43 = vadd.f32 %v8085_v61, %v3924_v28 }
 0x44b   : > { %v8106_v31 = vpop.f32.mrf.mxu0  ;;  %v4133_v13 = vpop.f32.mrf.mxu1 }
 0x44c   : > { %v11658_v42 = vadd.f32 %v8106_v31, %v4151_v36  ;;  %v4160_v27 = vadd.f32 %v4133_v13, %v3916_v7 }
 0x44d   : > { %v11660_v55 = vpop.f32.mrf.mxu0  ;;  %v8086_v51 = vpop.f32.mrf.mxu1 }
 0x44e   : > { %v4163_v12 = vadd.f32 %v8086_v51, %v3927_v10 }
 0x44f   : > { %v8109_v47 = vpop.f32.mrf.mxu0  ;;  %v4136_v50 = vpop.f32.mrf.mxu1 }
 0x450   : > { %v11663_v53 = vadd.f32 %v8109_v47, %v4154_v33  ;;  %v4161_v2 = vadd.f32 %v4136_v50, %v3919_v38 }
 0x451   : > { %v4303_v41 = vpop.f32.mrf.mxu0  ;;  %v11665_v14 = vpop.f32.mrf.mxu1 }
 0x452   : > { %v11667_v3 = vadd.f32 %v4303_v41, %v4152_v52 }
 0x453   : > { %v8110_v56 = vpop.f32.mrf.mxu0  ;;  %v11669_v46 = vpop.f32.mrf.mxu1 }
 0x454   : > { %v11671_v54 = vadd.f32 %v8110_v56, %v4155_v37 }
 0x455   : > { %v11673_v11 = vpop.f32.mrf.mxu0  ;;  %v11675_v36 = vpop.f32.mrf.mxu1 }
 0x457   : > { %v8113_v48 = vpop.f32.mrf.mxu0  ;;  %v11677_v29 = vpop.f32.mrf.mxu1 }
 0x458   : > { %v11679_v45 = vadd.f32 %v8113_v48, %v4158_v18 }
 0x459   : > { %v4319_v57 = vpop.f32.mrf.mxu0  ;;  %v11681_v58 = vpop.f32.mrf.mxu1 }
 0x45a   : > { %v11683_v6 = vadd.f32 %v4319_v57, %v4156_v49 }
 0x45b   : > { %v8114_v33 = vpop.f32.mrf.mxu0  ;;  %v11685_v26 = vpop.f32.mrf.mxu1 }
 0x45c   : > { %v11687_v21 = vadd.f32 %v8114_v33, %v4159_v44 }
 0x45d   : > { %v4322_v8 = vpop.f32.mrf.mxu0  ;;  %v11689_v52 = vpop.f32.mrf.mxu1 }
 0x45e   : > { %v11691_v32 = vadd.f32 %v4322_v8, %v4157_v23 }
 0x45f   : > { %v8117_v60 = vpop.f32.mrf.mxu0  ;;  %v11693_v37 = vpop.f32.mrf.mxu1 }
 0x460   : > { %v11695_v16 = vadd.f32 %v8117_v60, %v4162_v43 }
 0x461   : > { %v4335_v28 = vpop.f32.mrf.mxu0  ;;  %v11697_v4 = vpop.f32.mrf.mxu1 }
 0x462   : > { %v11699_v5 = vadd.f32 %v4335_v28, %v4160_v27 }
 0x463   : > { %v8118_v7 = vpop.f32.mrf.mxu0  ;;  %v11701_v18 = vpop.f32.mrf.mxu1 }
 0x464   : > { %v11703_v35 = vadd.f32 %v8118_v7, %v4163_v12 }
 0x465   : > { %v4338_v30 = vpop.f32.mrf.mxu0  ;;  %v11705_v10 = vpop.f32.mrf.mxu1 }
 0x466   : > { %12939 = vst [vmem:[#allocation62_spill] sm:$0xff] %v11703_v35  ;;  %v11707_v49 = vadd.f32 %v4338_v30, %v4161_v2 }
 0x467   : > { %v11709_v1 = vpop.f32.mrf.mxu0  ;;  %v11711_v9 = vpop.f32.mrf.mxu1 }
 0x468   : > { %12940 = vst [vmem:[#allocation67_spill] sm:$0xff] %v11707_v49 }
 0x469   : > { %v11713_v40 = vpop.f32.mrf.mxu0  ;;  %v11715_v44 = vpop.f32.mrf.mxu1 }
 0x46b   : > { %v11717_v63 = vpop.f32.mrf.mxu0  ;;  %v11719_v0 = vpop.f32.mrf.mxu1 }
 0x46d   : > { %v11721_v23 = vpop.f32.mrf.mxu0  ;;  %v11723_v17 = vpop.f32.mrf.mxu1 }
 0x46e   : > { %12941 = vst [vmem:[#allocation66_spill] sm:$0xff] %v11723_v17 }
 0x46f   : > { %v11725_v61 = vpop.f32.mrf.mxu0  ;;  %v11727_v43 = vpop.f32.mrf.mxu1 }
 0x470   : > { %12942 = vst [vmem:[#allocation75_spill] sm:$0xff] %v11727_v43 }
 0x471   : > { %v11729_v31 = vpop.f32.mrf.mxu0  ;;  %v11731_v13 = vpop.f32.mrf.mxu1 }
 0x473   : > { %v11733_v27 = vpop.f32.mrf.mxu0  ;;  %v4877_v51 = vpop.f32.mrf.mxu1 }
 0x475   : > { %v11735_v38 = vpop.f32.mrf.mxu0  ;;  %v8202_v12 = vpop.f32.mrf.mxu1 }
 0x477   : > { %v11737_v47 = vpop.f32.mrf.mxu0  ;;  %v4880_v50 = vpop.f32.mrf.mxu1 }
 0x478   : > { %12943 = vst [vmem:[#allocation74_spill] sm:$0xff] %v11737_v47 }
 0x479   : > { %v11739_v2 = vpop.f32.mrf.mxu0  ;;  %v11741_v41 = vpop.f32.mrf.mxu1 }
 0x47a   : > { %12944 = vst [vmem:[#allocation76_spill] sm:$0xff] %v11739_v2  ;;  %12945 = vst [vmem:[#allocation77_spill] sm:$0xff] %v11741_v41 }
 0x47b   : > { %v11743_v56 = vpop.f32.mrf.mxu0  ;;  %v11745_v48 = vpop.f32.mrf.mxu1 }
 0x47c   : > { %12946 = vst [vmem:[#allocation68_spill] sm:$0xff] %v11743_v56 }
 0x47d   : > { %v11747_v57 = vpop.f32.mrf.mxu0  ;;  %v11749_v33 = vpop.f32.mrf.mxu1 }
 0x47e   : > { %12947 = vst [vmem:[#allocation78_spill] sm:$0xff] %v11747_v57  ;;  %12948 = vst [vmem:[#allocation69_spill] sm:$0xff] %v11749_v33 }
 0x47f   : > { %v11751_v8 = vpop.f32.mrf.mxu0  ;;  %v11753_v60 = vpop.f32.mrf.mxu1 }
 0x480   : > { %12949 = vst [vmem:[#allocation34_spill] sm:$0xff] %v11751_v8  ;;  %12950 = vst [vmem:[#allocation37_spill] sm:$0xff] %v11753_v60 }
 0x481   : > { %v11755_v28 = vpop.f32.mrf.mxu0  ;;  %v11757_v7 = vpop.f32.mrf.mxu1 }
 0x482   : > { %12951 = vst [vmem:[#allocation39_spill] sm:$0xff] %v11755_v28  ;;  %12952 = vst [vmem:[#allocation50_spill] sm:$0xff] %v11757_v7 }
 0x483   : > { %v11759_v30 = vpop.f32.mrf.mxu0  ;;  %v11761_v25 = vpop.f32.mrf.mxu1 }
 0x484   : > { %12953 = vst [vmem:[#allocation41_spill] sm:$0xff] %v11759_v30  ;;  %12954 = vst [vmem:[#allocation43_spill] sm:$0xff] %v11761_v25 }
 0x485   : > { %v11763_v22 = vpop.f32.mrf.mxu0  ;;  %v11765_v56 = vpop.f32.mrf.mxu1 }
 0x486   : > { %12955 = vst [vmem:[#allocation54_spill] sm:$0xff] %v11763_v22  ;;  %12956 = vst [vmem:[#allocation56_spill] sm:$0xff] %v11765_v56 }
 0x487   : > { %v8233_v2 = vpop.f32.mrf.mxu0  ;;  %v11767_v57 = vpop.f32.mrf.mxu1 }
 0x488   : > { %12957 = vst [vmem:[#allocation45_spill] sm:$0xff] %v11767_v57 }
 0x489   : > { %v5079_v47 = vpop.f32.mrf.mxu0  ;;  %v11769_v43 = vpop.f32.mrf.mxu1 }
 0x48a   : > { %12958 = vst [vmem:[#allocation48_spill] sm:$0xff] %v11769_v43 }
 0x48b   : > { %v8234_v8 = vpop.f32.mrf.mxu0  ;;  %v11771_v49 = vpop.f32.mrf.mxu1 }
 0x48c   : > { %12959 = vst [vmem:[#allocation61_spill] sm:$0xff] %v11771_v49 }
 0x48d   : > { %v5082_v28 = vpop.f32.mrf.mxu0  ;;  %v11773_v60 = vpop.f32.mrf.mxu1 }
 0x48e   : > { %12960 = vst [vmem:[#allocation52_spill] sm:$0xff] %v11773_v60  ;;  %v3871_v60 = vadd.f32 %v11637_v15, %v11621_v19  ;;  %v3887_v19 = vadd.f32 %v11643_v59, %v11627_v34  ;;  %v4538_v15 = vadd.f32 %v11665_v14, %v11654_v62 }
 0x48f   : > { %v11775_v7 = vpop.f32.mrf.mxu0  ;;  %v11777_v30 = vpop.f32.mrf.mxu1 }
 0x490   : > { %12961 = vst [vmem:[#allocation53_spill] sm:$0xff] %v11775_v7  ;;  %12962 = vst [vmem:[#allocation64_spill] sm:$0xff] %v11777_v30 }
 0x491   : > { %v11779_v25 = vpop.f32.mrf.mxu0  ;;  %v8265_v22 = vpop.f32.mrf.mxu1 }
 0x492   : > { %12963 = vst [vmem:[#allocation47_spill] sm:$0xff] %v11779_v25 }
 0x493   : > { %v11781_v56 = vpop.f32.mrf.mxu0  ;;  %v5281_v41 = vpop.f32.mrf.mxu1 }
 0x494   : > { %12964 = vst [vmem:[#allocation63_spill] sm:$0xff] %v11781_v56  ;;  %v4149_v56 = vadd.f32 %v11645_v24, %v3871_v60 }
 0x495   : > { %v11783_v57 = vpop.f32.mrf.mxu0  ;;  %v8266_v33 = vpop.f32.mrf.mxu1 }
 0x496   : > { %12965 = vst [vmem:[#allocation46_spill] sm:$0xff] %v11783_v57 }
 0x497   : > { %v11785_v43 = vpop.f32.mrf.mxu0  ;;  %v5284_v17 = vpop.f32.mrf.mxu1 }
 0x498   : > { %12966 = vst [vmem:[#allocation60_spill] sm:$0xff] %v11785_v43  ;;  %v4351_v43 = vadd.f32 %v11660_v55, %v4149_v56 }
 0x499   : > { %v11787_v49 = vpop.f32.mrf.mxu0  ;;  %v11789_v35 = vpop.f32.mrf.mxu1 }
 0x49a   : > { %12967 = vst [vmem:[#allocation31_spill] sm:$0xff] %v11787_v49  ;;  %12968 = vst [vmem:[#allocation35_spill] sm:$0xff] %v11789_v35  ;;  %v4536_v49 = vadd.f32 %v11669_v46, %v11656_v39  ;;  %v4539_v35 = vadd.f32 %v11675_v36, %v11658_v42  ;;  %v4537_v60 = vadd.f32 %v11677_v29, %v4351_v43 }
 0x49b   : > { %v11793_v30 = vpop.f32.mrf.mxu0  ;;  %v11795_v7 = vpop.f32.mrf.mxu1  ;;  %v4153_v39 = vadd.f32 %v11651_v20, %v3887_v19  ;;  %v4740_v42 = vadd.f32 %v11709_v1, %v4538_v15  ;;  %v12976_v15 = vld [vmem:[#allocation63_spill] sm:$0xff] }
 0x49c   : > { %12969 = vst [vmem:[#allocation49_spill] sm:$0xff] %v11793_v30  ;;  %v4738_v55 = vadd.f32 %v11713_v40, %v4536_v49  ;;  %v4741_v56 = vadd.f32 %v11717_v63, %v4539_v35  ;;  %v4739_v59 = vadd.f32 %v11721_v23, %v4537_v60  ;;  %v4542_v35 = vadd.f32 %v11681_v58, %v11663_v53 }
 0x49d   : > { %v11798_v25 = vpop.f32.mrf.mxu0  ;;  %v11800_v57 = vpop.f32.mrf.mxu1  ;;  %v4355_v36 = vadd.f32 %v11673_v11, %v4153_v39  ;;  %v4942_v29 = vadd.f32 %v11731_v13, %v4740_v42  ;;  %v4540_v40 = vadd.f32 %v11685_v26, %v11667_v3  ;;  %v4543_v63 = vadd.f32 %v11689_v52, %v11671_v54  ;;  %v12977_v42 = vld [vmem:[#allocation67_spill] sm:$0xff] }
 0x49e   : > { %v4940_v62 = vadd.f32 %v4877_v51, %v4738_v55  ;;  %v4943_v14 = vadd.f32 %v8202_v12, %v4741_v56  ;;  %v4941_v20 = vadd.f32 %v4880_v50, %v4739_v59  ;;  %v4546_v12 = vadd.f32 %v11697_v4, %v11679_v45  ;;  %v12978_v59 = vld [vmem:[#allocation75_spill] sm:$0xff] }
 0x49f   : > { %v11811_v30 = vpop.f32.mrf.mxu0  ;;  %v11813_v24 = vpop.f32.mrf.mxu1  ;;  %v4541_v23 = vadd.f32 %v11693_v37, %v4355_v36  ;;  %v5144_v51 = vadd.f32 %v8233_v2, %v4942_v29  ;;  %v4544_v50 = vadd.f32 %v11701_v18, %v11683_v6  ;;  %v4547_v3 = vadd.f32 %v11705_v10, %v11687_v21  ;;  %v11857_v6 = vld [vmem:[%s12364_s9] ss:$0 sm:$0xff]  ;;  %v12980_v29 = vld [vmem:[#allocation53_spill] sm:$0xff] }
 0x4a0   : > { %v5142_v49 = vadd.f32 %v5079_v47, %v4940_v62  ;;  %v5145_v1 = vadd.f32 %v8234_v8, %v4943_v14  ;;  %v5143_v53 = vadd.f32 %v5082_v28, %v4941_v20  ;;  %v4742_v54 = vadd.f32 %v11729_v31, %v4540_v40  ;;  %v12972_v31 = vld [vmem:[#allocation69_spill] sm:$0xff]  ;;  %v12979_v14 = vld [vmem:[#allocation74_spill] sm:$0xff] }
 0x4a1   : > { %v11820_v46 = vpop.f32.mrf.mxu0  ;;  %v11822_v34 = vpop.f32.mrf.mxu1  ;;  %v5346_v26 = vadd.f32 %v8265_v22, %v5144_v51  ;;  %v4545_v37 = vadd.f32 %v11711_v9, %v11691_v32  ;;  %v11851_v2 = vadd.f32 %v11715_v44, %v11695_v16  ;;  %v4745_v45 = vadd.f32 %v11733_v27, %v4543_v63  ;;  %v12970_v9 = vld [vmem:[#allocation62_spill] sm:$0xff] }
 0x4a2   : > { %v5344_v58 = vadd.f32 %v5281_v41, %v5142_v49  ;;  %v5347_v47 = vadd.f32 %v8266_v33, %v5145_v1  ;;  %v5345_v4 = vadd.f32 %v5284_v17, %v5143_v53  ;;  %v11861_v21 = vadd.f32 %v11719_v0, %v11699_v5  ;;  %v12971_v44 = vld [vmem:[#allocation66_spill] sm:$0xff]  ;;  %v12973_v0 = vld [vmem:[#allocation77_spill] sm:$0xff] }
 0x4a3   : > { %v11827_v43 = vpop.f32.mrf.mxu0  ;;  %v11838_v13 = vpop.f32.mrf.mxu1  ;;  %v4744_v22 = vadd.f32 %v11725_v61, %v4542_v35  ;;  %v4743_v32 = vadd.f32 %v11735_v38, %v4541_v23  ;;  %v4944_v18 = vadd.f32 %v11745_v48, %v4742_v54  ;;  %v11870_v17 = vadd.f32 %v12971_v44, %v12970_v9  ;;  %v12974_v61 = vld [vmem:[#allocation37_spill] sm:$0xff]  ;;  %v12975_v38 = vld [vmem:[#allocation47_spill] sm:$0xff]  ;;  %v12981_v40 = vld [vmem:[#allocation46_spill] sm:$0xff] }
 0x4a4   : > { %v4947_v27 = vadd.f32 %v12972_v31, %v4745_v45  ;;  %v5366_v41 = vadd.f32 %v11857_v6, %v5344_v58  ;;  %v5369_v5 = vadd.f32 %v11857_v6, %v5347_v47  ;;  %v5368_v48 = vadd.f32 %v11857_v6, %v5346_v26  ;;  %v11891_v53 = vld [vmem:[%s12366_s11] ss:$0 sm:$0xff]  ;;  %v12982_v47 = vld [vmem:[#allocation76_spill] sm:$0xff]  ;;  %v12984_v45 = vld [vmem:[#allocation35_spill] sm:$0xff] }
 0x4a5   : > { %v11836_v11 = vpop.f32.mrf.mxu0  ;;  %v11866_v16 = vpop.f32.mrf.mxu1  ;;  %v4946_v33 = vadd.f32 %v12973_v0, %v4744_v22  ;;  %v4945_v8 = vadd.f32 %v12974_v61, %v4743_v32  ;;  %v5146_v28 = vadd.f32 %v12975_v38, %v4944_v18  ;;  %v5367_v39 = vadd.f32 %v11857_v6, %v5345_v4  ;;  %v12985_v32 = vld [vmem:[#allocation78_spill] sm:$0xff]  ;;  %v12987_v44 = vld [vmem:[#allocation43_spill] sm:$0xff]  ;;  %v12988_v31 = vld [vmem:[#allocation56_spill] sm:$0xff] }
 0x4a6   : > { %v5149_v60 = vadd.f32 %v12976_v15, %v4947_v27  ;;  %v4549_v62 = vadd.f32 %v12978_v59, %v12977_v42  ;;  %v4748_v36 = vadd.f32 %v12979_v14, %v4546_v12  ;;  %v4746_v54 = vadd.f32 %v12982_v47, %v4544_v50  ;;  %v12983_v12 = vld [vmem:[#allocation68_spill] sm:$0xff]  ;;  %v12986_v9 = vld [vmem:[#allocation50_spill] sm:$0xff]  ;;  %v12989_v0 = vld [vmem:[#allocation45_spill] sm:$0xff] }
 0x4a7   : > { %v8297_v52 = vpop.f32.mrf.mxu0  ;;  %v5148_v35 = vadd.f32 %v12980_v29, %v4946_v33  ;;  %v5316_v49 = vpop.f32.mrf.mxu1  ;;  %v5147_v63 = vadd.f32 %v12981_v40, %v4945_v8  ;;  %v5348_v23 = vadd.f32 %v11795_v7, %v5146_v28  ;;  %v4749_v26 = vadd.f32 %v12983_v12, %v4547_v3  ;;  %v12990_v38 = vld [vmem:[#allocation31_spill] sm:$0xff]  ;;  %v12992_v59 = vld [vmem:[#allocation34_spill] sm:$0xff] }
 0x4a8   : > { %v5553_v20 = vadd.f32 %v8297_v52, %v5368_v48  ;;  %v5351_v51 = vadd.f32 %v11800_v57, %v5149_v60  ;;  %v4747_v7 = vadd.f32 %v12985_v32, %v4545_v37  ;;  %v4950_v50 = vadd.f32 %v12986_v9, %v4748_v36  ;;  %v12991_v48 = vld [vmem:[#allocation49_spill] sm:$0xff]  ;;  %v12993_v36 = vld [vmem:[#allocation60_spill] sm:$0xff]  ;;  %v12995_v47 = vld [vmem:[#allocation39_spill] sm:$0xff] }
 0x4a9   : > { %v5488_v10 = vpop.f32.mrf.mxu0  ;;  %v5350_v52 = vadd.f32 %v12984_v45, %v5148_v35  ;;  %v5349_v57 = vadd.f32 %v11813_v24, %v5147_v63  ;;  %v4948_v3 = vadd.f32 %v12987_v44, %v4746_v54  ;;  %v4951_v27 = vadd.f32 %v12988_v31, %v4749_v26  ;;  %v13001_v31 = vld [vmem:[#allocation64_spill] sm:$0xff] }
 0x4aa   : > { %v5551_v55 = vadd.f32 %v5488_v10, %v5366_v41  ;;  %v11911_v41 = vadd.f32 %v11891_v53, %v5553_v20  ;;  %v4949_v24 = vadd.f32 %v12989_v0, %v4747_v7  ;;  %v5370_v61 = vadd.f32 %v11857_v6, %v5348_v23  ;;  %v12998_v7 = vld [vmem:[#allocation48_spill] sm:$0xff] }
 0x4ab   : > { %v8298_v19 = vpop.f32.mrf.mxu0  ;;  %v5373_v8 = vadd.f32 %v11857_v6, %v5351_v51  ;;  %v5150_v28 = vadd.f32 %v12990_v38, %v4948_v3  ;;  %v5372_v60 = vadd.f32 %v11857_v6, %v5350_v52  ;;  %v5371_v42 = vadd.f32 %v11857_v6, %v5349_v57  ;;  %v12999_v57 = vld [vmem:[#allocation61_spill] sm:$0xff] }
 0x4ac   : > { %v5554_v56 = vadd.f32 %v8298_v19, %v5369_v5  ;;  %v11902_v18 = vadd.f32 %v11891_v53, %v5551_v55  ;;  %v11913_v5 = vpop.f32.mrf.mxu1  ;;  %v5153_v19 = vadd.f32 %v12991_v48, %v4951_v27  ;;  %v4752_v14 = vadd.f32 %v12992_v59, %v11851_v2  ;;  %v12996_v2 = vld [vmem:[#allocation41_spill] sm:$0xff] }
 0x4ad   : > { %v5491_v1 = vpop.f32.mrf.mxu0  ;;  %v5152_v29 = vadd.f32 %v12993_v36, %v4950_v50  ;;  %v12994_v40 = vmov 0   ;;  %v5151_v63 = vadd.f32 %v11798_v25, %v4949_v24  ;;  %v5352_v23 = vadd.f32 %v11838_v13, %v5150_v28 }
 0x4ae   : > { %v5552_v58 = vadd.f32 %v5491_v1, %v5367_v39  ;;  %v11897_v4 = vadd.f32 %v11891_v53, %v5554_v56  ;;  %v5329_v35 = vpop.f32.mrf.mxu1  ;;  %v5355_v51 = vadd.f32 %v11866_v16, %v5153_v19  ;;  %v4750_v54 = vadd.f32 %v12995_v47, %v11861_v21 }
 0x4af   : > { %v8301_v22 = vpop.f32.mrf.mxu0  ;;  %v4753_v12 = vadd.f32 %v12996_v2, %v11870_v17  ;;  %v5354_v26 = vadd.f32 %v11822_v34, %v5152_v29  ;;  %v5353_v25 = vadd.f32 %v5316_v49, %v5151_v63  ;;  %v4954_v21 = vadd.f32 %v12998_v7, %v4752_v14  ;;  %v13000_v17 = vld [vmem:[#allocation52_spill] sm:$0xff] }
 0x4b0   : > { %v11905_v10 = vadd.f32 %v11891_v53, %v5552_v58  ;;  %v5591_v15 = vpack.c.bf16 %v11897_v4, %v11911_v41  ;;  %v5557_v20 = vadd.f32 %v8301_v22, %v5372_v60  ;;  %v12997_v22 = vld [vmem:[#allocation54_spill] sm:$0xff]  ;;  %v4952_v9 = vadd.f32 %v12999_v57, %v4750_v54  ;;  %v8278_v44 = vpop.f32.mrf.mxu1  ;;  %v13002_v57 = vld [vmem:[#allocation28_spill] sm:$0xff] }
 0x4b1   : > { %v5504_v37 = vpop.f32.mrf.mxu0  ;;  %v4751_v32 = vadd.f32 %v12997_v22, %v4549_v62  ;;  %v4955_v50 = vadd.f32 %v13000_v17, %v4753_v12  ;;  %v5374_v49 = vadd.f32 %v11857_v6, %v5352_v23  ;;  %v5377_v27 = vadd.f32 %v11857_v6, %v5355_v51 }
 0x4b2   : > { %v5590_v33 = vpack.c.bf16 %v11905_v10, %v11902_v18  ;;  %v5555_v56 = vadd.f32 %v5504_v37, %v5370_v61  ;;  %v11952_v34 = vadd.f32 %v11891_v53, %v5557_v20  ;;  %v5154_v0 = vadd.f32 %v11820_v46, %v4952_v9  ;;  %v5332_v60 = vpop.f32.mrf.mxu1 }
 0x4b3   : > { %v8302_v55 = vpop.f32.mrf.mxu0  ;;  %v4953_v62 = vadd.f32 %v13001_v31, %v4751_v32  ;;  %v5157_v24 = vadd.f32 %v11827_v43, %v4955_v50  ;;  %v5376_v61 = vadd.f32 %v11857_v6, %v5354_v26  ;;  %v5375_v48 = vadd.f32 %v11857_v6, %v5353_v25  ;;  %v13003_v50 = vld [vmem:[#allocation27_spill] sm:$0xff] }
 0x4b4   : > { %v5558_v39 = vadd.f32 %v8302_v55, %v5373_v8  ;;  %5808 = vmatmul.mubr.bf16.vlgmr.msra.gmra.mxu1 %v5590_v33  ;;  %8327 = vmatprep.mubr.bf16.mxu0 %v5590_v33  ;;  %v11943_v13 = vadd.f32 %v11891_v53, %v5555_v56  ;;  %v5156_v19 = vadd.f32 %v11811_v30, %v4954_v21 }
 0x4b5   : > { %v5507_v1 = vpop.f32.mrf.mxu0  ;;  %8328 = vmatmul.mubr.bf16.vlgmr.msra.gmra.mxu0 %v5591_v15  ;;  %5817 = vmatprep.mubr.bf16.mxu1 %v12994_v40  ;;  %v5155_v46 = vadd.f32 %v11836_v11, %v4953_v62  ;;  %v5356_v43 = vadd.f32 %v5329_v35, %v5154_v0 }
 0x4b6   : > { %v5556_v58 = vadd.f32 %v5507_v1, %v5371_v42  ;;  %v11939_v45 = vadd.f32 %v11891_v53, %v5558_v39  ;;  %v5359_v39 = vadd.f32 %v8278_v44, %v5157_v24  ;;  %v5358_v59 = vadd.f32 %v11913_v5, %v5156_v19 }
 0x4b7   : > { %v8305_v52 = vpop.f32.mrf.mxu0  ;;  %v5357_v36 = vadd.f32 %v5332_v60, %v5155_v46  ;;  %v5378_v35 = vadd.f32 %v11857_v6, %v5356_v43  ;;  %v5642_v44 = vsub.s32 2, %v13003_v50 }
 0x4b8   : > { %v11946_v16 = vadd.f32 %v11891_v53, %v5556_v58  ;;  %v5593_v33 = vpack.c.bf16 %v11939_v45, %v11952_v34  ;;  %v5561_v55 = vadd.f32 %v8305_v52, %v5376_v61  ;;  %v5381_v1 = vadd.f32 %v11857_v6, %v5359_v39 }
 0x4b9   : > { %v5520_v3 = vpop.f32.mrf.mxu0  ;;  %v5380_v23 = vadd.f32 %v11857_v6, %v5358_v59  ;;  %v5379_v54 = vadd.f32 %v11857_v6, %v5357_v36 }
 0x4ba   : > { %v5592_v37 = vpack.c.bf16 %v11946_v16, %v11943_v13  ;;  %v5559_v38 = vadd.f32 %v5520_v3, %v5374_v49  ;;  %v11979_v20 = vadd.f32 %v11891_v53, %v5561_v55 }
 0x4bb   : > { %v8306_v8 = vpop.f32.mrf.mxu0 }
 0x4bc   : > { %v5562_v28 = vadd.f32 %v8306_v8, %v5377_v27  ;;  %5818 = vmatmul.mubr.bf16.gmra.mxu1 %v5591_v15  ;;  %8331 = vmatprep.mubr.bf16.mxu0 %v5592_v37  ;;  %v11973_v30 = vadd.f32 %v11891_v53, %v5559_v38 }
 0x4bd   : > { %v5523_v56 = vpop.f32.mrf.mxu0  ;;  %8332 = vmatmul.mubr.bf16.gmra.mxu0 %v5593_v33  ;;  %5827 = vmatprep.mubr.bf16.mxu1 %v12994_v40 }
 0x4be   : > { %v5560_v42 = vadd.f32 %v5523_v56, %v5375_v48  ;;  %v11970_v15 = vadd.f32 %v11891_v53, %v5562_v28 }
 0x4bf   : > { %v8309_v14 = vpop.f32.mrf.mxu0 }
 0x4c0   : > { %v11976_v29 = vadd.f32 %v11891_v53, %v5560_v42  ;;  %v5595_v63 = vpack.c.bf16 %v11970_v15, %v11979_v20  ;;  %v5565_v2 = vadd.f32 %v8309_v14, %v5380_v23 }
 0x4c1   : > { %v5536_v11 = vpop.f32.mrf.mxu0 }
 0x4c2   : > { %v5594_v5 = vpack.c.bf16 %v11976_v29, %v11973_v30  ;;  %v5563_v58 = vadd.f32 %v5536_v11, %v5378_v35  ;;  %v12000_v25 = vadd.f32 %v11891_v53, %v5565_v2 }
 0x4c3   : > { %v8310_v51 = vpop.f32.mrf.mxu0 }
 0x4c4   : > { %v5566_v47 = vadd.f32 %v8310_v51, %v5381_v1  ;;  %5828 = vmatmul.mubr.bf16.gmra.mxu1 %v5592_v37  ;;  %8335 = vmatprep.mubr.bf16.mxu0 %v5594_v5  ;;  %v11994_v22 = vadd.f32 %v11891_v53, %v5563_v58 }
 0x4c5   : > { %v5539_v12 = vpop.f32.mrf.mxu0  ;;  %8336 = vmatmul.mubr.bf16.gmra.mxu0 %v5595_v63  ;;  %5837 = vmatprep.mubr.bf16.mxu1 %v12994_v40 }
 0x4c6   : > { %v5564_v26 = vadd.f32 %v5539_v12, %v5379_v54  ;;  %v11991_v52 = vadd.f32 %v11891_v53, %v5566_v47 }
 0x4c8   : > { %v11997_v32 = vadd.f32 %v11891_v53, %v5564_v26  ;;  %v5597_v7 = vpack.c.bf16 %v11991_v52, %v12000_v25  ;;  %v5630_v53 = vld [vmem:[%s12368_s13] sm:$0x7] }
 0x4c9   : > { %v12014_v9 = vrot.slane %v5630_v53, %v13002_v57  ;;  %v12025_v37 = vrot.slane %v5630_v53, %v5642_v44 }
 0x4ca   : > { %v5596_v6 = vpack.c.bf16 %v11997_v32, %v11994_v22 }
 0x4cc   : > { %5838 = vmatmul.mubr.bf16.gmra.mxu1 %v5593_v33  ;;  %8339 = vmatprep.mubr.bf16.mxu0 %v5596_v6 }
 0x4cd   : > { %8340 = vmatmul.mubr.bf16.gmra.mxu0 %v5597_v7  ;;  %5847 = vmatprep.mubr.bf16.mxu1 %v12994_v40 }
 0x4d4   : > { %5848 = vmatmul.mubr.bf16.gmra.mxu1 %v5594_v5 }
 0x4d5   : > { %5857 = vmatprep.mubr.bf16.mxu1 %v12994_v40 }
 0x4dc   : > { %5858 = vmatmul.mubr.bf16.gmra.mxu1 %v5595_v63  ;;  %v5638_v63 = vsub.s32 1, %v13003_v50 }
 0x4dd   : > { %5867 = vmatprep.mubr.bf16.mxu1 %v12994_v40 }
 0x4de   : > { %v12054_v54 = vrot.slane %v5630_v53, %v5638_v63 }
 0x4e4   : > { %5868 = vmatmul.mubr.bf16.gmra.mxu1 %v5596_v6 }
 0x4e5   : > { %5877 = vmatprep.mubr.bf16.mxu1 %v12994_v40 }
 0x4ec   : > { %5878 = vmatmul.mubr.bf16.gmra.mxu1 %v5597_v7 }
 0x574   : > { %v5809_v21 = vpop.f32.mrf.mxu1 }
 0x575   : > { %v12016_v17 = vpop.f32.mrf.mxu0  ;;  %v5810_v49 = vadd.f32 %v5809_v21, %v12014_v9 }
 0x576   : > { %v12019_v3 = vpop.f32.mrf.mxu1 }
 0x577   : > { %v5922_v31 = vpop.f32.mrf.mxu0 }
 0x578   : > { %v5813_v62 = vpop.f32.mrf.mxu1  ;;  %v5923_v61 = vadd.f32 %v5922_v31, %v12025_v37 }
 0x579   : > { %v5814_v40 = vadd.f32 %v5813_v62, %v12014_v9  ;;  %v12023_v27 = vpop.f32.mrf.mxu0 }
 0x57a   : > { %v12027_v0 = vpop.f32.mrf.mxu1 }
 0x57b   : > { %v5985_v24 = vpack.c.bf16 %v5814_v40, %v5810_v49  ;;  %v5925_v33 = vpop.f32.mrf.mxu0 }
 0x57c   : > { %v5926_v8 = vadd.f32 %v5925_v33, %v12025_v37  ;;  %v12031_v38 = vpop.f32.mrf.mxu1 }
 0x57d   : > { %v12033_v28 = vpop.f32.mrf.mxu0  ;;  %8351 = vmatprep.mubr.bf16.mxu0 %v5985_v24 }
 0x57e   : > { %v12035_v48 = vpack.c.bf16 %v5926_v8, %v5923_v61  ;;  %v5821_v19 = vpop.f32.mrf.mxu1 }
 0x57f   : > { %v12037_v60 = vpop.f32.mrf.mxu0 }
 0x580   : > { %v12039_v55 = vpop.f32.mrf.mxu1 }
 0x581   : > { %v12041_v56 = vpop.f32.mrf.mxu0 }
 0x582   : > { %v5825_v46 = vpop.f32.mrf.mxu1 }
 0x583   : > { %v12043_v43 = vpop.f32.mrf.mxu0 }
 0x584   : > { %v12045_v39 = vpop.f32.mrf.mxu1 }
 0x585   : > { %v8337_v42 = vpop.f32.mrf.mxu0 }
 0x586   : > { %v5831_v59 = vpop.f32.mrf.mxu1 }
 0x587   : > { %v5954_v14 = vpop.f32.mrf.mxu0  ;;  %v5832_v49 = vadd.f32 %v5831_v59, %v12054_v54 }
 0x588   : > { %v12047_v36 = vpop.f32.mrf.mxu1 }
 0x589   : > { %v8338_v11 = vpop.f32.mrf.mxu0 }
 0x58a   : > { %v5835_v35 = vpop.f32.mrf.mxu1  ;;  %v5966_v33 = vadd.f32 %v8338_v11, %v12025_v37 }
 0x58b   : > { %v5957_v1 = vpop.f32.mrf.mxu0  ;;  %v5836_v7 = vadd.f32 %v5835_v35, %v12054_v54 }
 0x58c   : > { %v12049_v5 = vpop.f32.mrf.mxu1  ;;  %v5958_v11 = vadd.f32 %v5957_v1, %v12025_v37 }
 0x58d   : > { %v8341_v23 = vpop.f32.mrf.mxu0  ;;  %v5991_v35 = vpack.c.bf16 %v5836_v7, %v5832_v49 }
 0x58e   : > { %v5841_v51 = vpop.f32.mrf.mxu1  ;;  %v5979_v12 = vadd.f32 %v8341_v23, %v12025_v37  ;;  %v5963_v23 = vadd.f32 %v8337_v42, %v12025_v37  ;;  %v5955_v42 = vadd.f32 %v5954_v14, %v12025_v37 }
 0x58f   : > { %v5970_v58 = vpop.f32.mrf.mxu0  ;;  %v5842_v21 = vadd.f32 %v5841_v51, %v12054_v54 }
 0x590   : > { %v12052_v47 = vpop.f32.mrf.mxu1  ;;  %v5971_v44 = vadd.f32 %v5970_v58, %v12025_v37  ;;  %v6372_v58 = vpack.c.bf16 %v5966_v33, %v5963_v23  ;;  %v6371_v1 = vpack.c.bf16 %v5958_v11, %v5955_v42  ;;  %v5947_v42 = vadd.f32 %v12033_v28, %v12025_v37 }
 0x591   : > { %v8342_v2 = vpop.f32.mrf.mxu0  ;;  %v5820_v28 = vadd.f32 %v12031_v38, %v12014_v9  ;;  %v5931_v38 = vadd.f32 %v12016_v17, %v12025_v37 }
 0x592   : > { %v5982_v26 = vadd.f32 %v8342_v2, %v12025_v37  ;;  %v5845_v6 = vpop.f32.mrf.mxu1 }
 0x593   : > { %v5846_v57 = vadd.f32 %v5845_v6, %v12054_v54  ;;  %v5973_v50 = vpop.f32.mrf.mxu0 }
 0x594   : > { %v6374_v31 = vpack.c.bf16 %v5982_v26, %v5979_v12  ;;  %v5974_v62 = vadd.f32 %v5973_v50, %v12025_v37  ;;  %v5849_v53 = vpop.f32.mrf.mxu1  ;;  %v5826_v12 = vadd.f32 %v5825_v46, %v12054_v54 }
 0x595   : > { %v5992_v40 = vpack.c.bf16 %v5846_v57, %v5842_v21  ;;  %v12065_v24 = vadd.f32 %v5849_v53, %v12014_v9  ;;  %v5822_v21 = vadd.f32 %v5821_v19, %v12054_v54  ;;  %v5816_v19 = vadd.f32 %v12027_v0, %v12054_v54 }
 0x596   : > { %v6373_v61 = vpack.c.bf16 %v5974_v62, %v5971_v44  ;;  %v5851_v8 = vpop.f32.mrf.mxu1  ;;  %8391 = vmatprep.subr.bf16.mxu1 %v6374_v31 }
 0x597   : > { %v5852_v63 = vadd.f32 %v5851_v8, %v12054_v54  ;;  %8343 = vmatprep.subr.bf16.mxu0 %v5992_v40  ;;  %8392 = vmatpush3.bf16.msra.mxu1 %v6374_v31  ;;  %v5990_v46 = vpack.c.bf16 %v5826_v12, %v5822_v21 }
 0x598   : > { %v5853_v51 = vpop.f32.mrf.mxu1  ;;  %8344 = vmatpush3.bf16.xpose.msra.mxu0 %v5992_v40  ;;  %8393 = vmatprep.subr.bf16.mxu1 %v6373_v61 }
 0x599   : > { %v12071_v59 = vadd.f32 %v5853_v51, %v12014_v9  ;;  %8345 = vmatprep.subr.bf16.mxu0 %v5991_v35 }
 0x59a   : > { %v5855_v2 = vpop.f32.mrf.mxu1 }
 0x59b   : > { %v6219_v26 = vpack.c.bf16 %v12071_v59, %v12065_v24  ;;  %v5856_v6 = vadd.f32 %v5855_v2, %v12054_v54  ;;  %8394 = vmatpush3.bf16.msra.mxu1 %v6373_v61  ;;  %v5812_v61 = vadd.f32 %v12019_v3, %v12054_v54  ;;  %v5950_v2 = vadd.f32 %v12041_v56, %v12025_v37 }
 0x59c   : > { %v5859_v7 = vpop.f32.mrf.mxu1  ;;  %8395 = vmatprep.subr.bf16.mxu1 %v6372_v58  ;;  %v5824_v56 = vadd.f32 %v12039_v55, %v12014_v9  ;;  %v5939_v55 = vadd.f32 %v12037_v60, %v12025_v37  ;;  %v5840_v60 = vadd.f32 %v12049_v5, %v12014_v9 }
 0x59d   : > { %v12080_v57 = vpack.c.bf16 %v5856_v6, %v5852_v63  ;;  %v12083_v50 = vadd.f32 %v5859_v7, %v12014_v9  ;;  %v5989_v23 = vpack.c.bf16 %v5816_v19, %v5812_v61 }
 0x59e   : > { %v5861_v44 = vpop.f32.mrf.mxu1 }
 0x59f   : > { %v5862_v31 = vadd.f32 %v5861_v44, %v12054_v54  ;;  %8396 = vmatpush3.bf16.msra.mxu1 %v6372_v58  ;;  %v6141_v44 = vpack.c.bf16 %v5950_v2, %v5947_v42 }
 0x5a0   : > { %v5863_v62 = vpop.f32.mrf.mxu1  ;;  %8346 = vmatpush3.bf16.xpose.msra.mxu0 %v5991_v35  ;;  %8397 = vmatprep.subr.bf16.mxu1 %v6371_v1 }
 0x5a1   : > { %v12087_v14 = vadd.f32 %v5863_v62, %v12014_v9  ;;  %8347 = vmatprep.subr.bf16.mxu0 %v5990_v46  ;;  %v5834_v62 = vadd.f32 %v12047_v36, %v12014_v9  ;;  %v5934_v36 = vadd.f32 %v12023_v27, %v12025_v37 }
 0x5a2   : > { %v5865_v53 = vpop.f32.mrf.mxu1 }
 0x5a3   : > { %v5866_v40 = vadd.f32 %v5865_v53, %v12054_v54  ;;  %8398 = vmatpush3.bf16.msra.mxu1 %v6371_v1  ;;  %v5942_v53 = vadd.f32 %v12043_v43, %v12025_v37  ;;  %v5844_v43 = vadd.f32 %v12052_v47, %v12014_v9 }
 0x5a4   : > { %v5869_v33 = vpop.f32.mrf.mxu1 }
 0x5a5   : > { %v12096_v8 = vpack.c.bf16 %v5866_v40, %v5862_v31  ;;  %v12099_v35 = vadd.f32 %v5869_v33, %v12014_v9  ;;  %v5830_v40 = vadd.f32 %v12045_v39, %v12014_v9  ;;  %v5986_v33 = vpack.c.bf16 %v5824_v56, %v5820_v28 }
 0x5a6   : > { %v5871_v63 = vpop.f32.mrf.mxu1  ;;  %v6139_v39 = vpack.c.bf16 %v5934_v36, %v5931_v38 }
 0x5a7   : > { %v5872_v51 = vadd.f32 %v5871_v63, %v12054_v54  ;;  %v5987_v61 = vpack.c.bf16 %v5834_v62, %v5830_v40  ;;  %v6140_v63 = vpack.c.bf16 %v5942_v53, %v5939_v55 }
 0x5a8   : > { %v5873_v0 = vpop.f32.mrf.mxu1  ;;  %8348 = vmatpush3.bf16.xpose.msra.mxu0 %v5990_v46 }
 0x5a9   : > { %v12103_v58 = vadd.f32 %v5873_v0, %v12014_v9  ;;  %8349 = vmatprep.subr.bf16.mxu0 %v5989_v23 }
 0x5aa   : > { %v5875_v11 = vpop.f32.mrf.mxu1 }
 0x5ab   : > { %v5876_v12 = vadd.f32 %v5875_v11, %v12054_v54 }
 0x5ac   : > { %v5879_v6 = vpop.f32.mrf.mxu1 }
 0x5ad   : > { %v12112_v7 = vpack.c.bf16 %v5876_v12, %v5872_v51  ;;  %v12115_v21 = vadd.f32 %v5879_v6, %v12014_v9  ;;  %v5988_v51 = vpack.c.bf16 %v5844_v43, %v5840_v60 }
 0x5ae   : > { %v5881_v1 = vpop.f32.mrf.mxu1 }
 0x5af   : > { %v5882_v0 = vadd.f32 %v5881_v1, %v12054_v54 }
 0x5b0   : > { %v5883_v46 = vpop.f32.mrf.mxu1  ;;  %8350 = vmatpush3.bf16.xpose.msra.mxu0 %v5989_v23 }
 0x5b1   : > { %v12120_v31 = vadd.f32 %v5883_v46, %v12014_v9  ;;  %8359 = vmatprep.subr.bf16.mxu0 %v6141_v44 }
 0x5b2   : > { %v5885_v23 = vpop.f32.mrf.mxu1 }
 0x5b3   : > { %v5886_v27 = vadd.f32 %v5885_v23, %v12054_v54  ;;  %v13006_v24 = vpack.c.bf16 %v12120_v31, %v12115_v21 }
 0x5b5   : > { %v12145_v17 = vpack.c.bf16 %v5886_v27, %v5882_v0 }
 0x5b7   : > { %8352 = vmatmul.mubr.bf16.vlgmr.msra.gmra.mxu0 %v5986_v33 }
 0x5b8   : > { %8355 = vmatprep.mubr.bf16.mxu0 %v5987_v61  ;;  %8360 = vmatpush3.bf16.msra.mxu0 %v6141_v44 }
 0x5b9   : > { %8361 = vmatprep.subr.bf16.mxu0 %v6140_v63 }
 0x5bc   : > { %8362 = vmatpush3.bf16.msra.mxu0 %v6140_v63 }
 0x5bd   : > { %8363 = vmatprep.subr.bf16.mxu0 %v6139_v39 }
 0x5bf   : > { %8356 = vmatmul.mubr.bf16.gmra.mxu0 %v5988_v51 }
 0x5c0   : > { %8364 = vmatpush3.bf16.msra.mxu0 %v6139_v39 }
 0x5c1   : > { %8365 = vmatprep.subr.bf16.mxu0 %v12035_v48 }
 0x5c4   : > { %8366 = vmatpush3.bf16.msra.mxu0 %v12035_v48 }
 0x5c5   : > { %8375 = vmatprep.subr.bf16.mxu0 %v12145_v17 }
 0x677   : > { %v8353_v37 = vpop.f32.mrf.mxu0 }
 0x678   : > { %v6061_v46 = vsel %vm6058_vm8, %v8353_v37, -inf }
 0x679   : > { %v6027_v9 = vpop.f32.mrf.mxu0 }
 0x67a   : > { %v6059_v56 = vsel %vm6058_vm8, %v6027_v9, -inf }
 0x67b   : > { %v8354_v5 = vpop.f32.mrf.mxu0 }
 0x67c   : > { %v6062_v6 = vsel %vm6058_vm8, %v8354_v5, -inf }
 0x67d   : > { %v6030_v47 = vpop.f32.mrf.mxu0 }
 0x67e   : > { %v6060_v62 = vsel %vm6058_vm8, %v6030_v47, -inf }
 0x67f   : > { %v8357_v11 = vpop.f32.mrf.mxu0 }
 0x680   : > { %v6067_v54 = vsel %vm6058_vm8, %v8357_v11, -inf }
 0x681   : > { %v6043_v2 = vpop.f32.mrf.mxu0  ;;  %v6068_v53 = vmax.f32 %v6061_v46, %v6067_v54 }
 0x682   : > { %v6063_v42 = vsel %vm6058_vm8, %v6043_v2, -inf }
 0x683   : > { %v8358_v12 = vpop.f32.mrf.mxu0  ;;  %v6064_v40 = vmax.f32 %v6059_v56, %v6063_v42 }
 0x684   : > { %v6069_v1 = vsel %vm6058_vm8, %v8358_v12, -inf }
 0x685   : > { %v6070_v44 = vmax.f32 %v6062_v6, %v6069_v1  ;;  %v6046_v48 = vpop.f32.mrf.mxu0 }
 0x686   : > { %v6065_v28 = vsel %vm6058_vm8, %v6046_v48, -inf }
 0x687   : > { %v6066_v55 = vmax.f32 %v6060_v62, %v6065_v28  ;;  %v6072_v33 = vmax.f32 %v6068_v53, %v6070_v44 }
 0x689   : > { %v6071_v61 = vmax.f32 %v6064_v40, %v6066_v55 }
 0x68b   : > { %v6073_v36 = vmax.f32 %v6071_v61, %v6072_v33 }
 0x68d   : > { %v6074_v63 = vrot.slane %v6073_v36, 4 }
 0x68f   : > { %v6075_v38 = vmax.f32 %v6073_v36, %v6074_v63 }
 0x691   : > { %v6076_v43 = vrot.slane %v6075_v38, 2 }
 0x693   : > { %v6077_v39 = vmax.f32 %v6075_v38, %v6076_v43 }
 0x695   : > { %v6078_v60 = vrot.slane %v6077_v39, 1 }
 0x697   : > { %v6079_v23 = vmax.f32 %v6077_v39, %v6078_v60 }
 0x699   : > { %v6080_v51 = vsub.f32 %v6027_v9, %v6079_v23  ;;  %v6081_v27 = vsub.f32 %v6030_v47, %v6079_v23  ;;  %v6082_v0 = vsub.f32 %v8353_v37, %v6079_v23  ;;  %v6083_v6 = vsub.f32 %v8354_v5, %v6079_v23 }
 0x69a   : > { %v6084_v1 = vsub.f32 %v6043_v2, %v6079_v23  ;;  %v6085_v54 = vsub.f32 %v6046_v48, %v6079_v23  ;;  %v6086_v44 = vsub.f32 %v8357_v11, %v6079_v23  ;;  %v6087_v56 = vsub.f32 %v8358_v12, %v6079_v23 }
 0x69b   : > { %v6088_v19 = vmul.f32 1.442695, %v6080_v51  ;;  %v6090_v3 = vmul.f32 1.442695, %v6081_v27  ;;  %v6092_v49 = vmul.f32 1.442695, %v6082_v0 }
 0x69c   : > { %v6094_v42 = vmul.f32 1.442695, %v6083_v6  ;;  %v6096_v46 = vmul.f32 1.442695, %v6084_v1  ;;  %v6098_v62 = vmul.f32 1.442695, %v6085_v54 }
 0x69d   : > { %8884 = vpow2.f32 %v6088_v19  ;;  %v6100_v28 = vmul.f32 1.442695, %v6086_v44  ;;  %v6102_v9 = vmul.f32 1.442695, %v6087_v56 }
 0x69e   : > { %8886 = vpow2.f32 %v6090_v3 }
 0x69f   : > { %8888 = vpow2.f32 %v6092_v49 }
 0x6a0   : > { %8890 = vpow2.f32 %v6094_v42 }
 0x6a1   : > { %8892 = vpow2.f32 %v6096_v46 }
 0x6a2   : > { %8894 = vpow2.f32 %v6098_v62 }
 0x6a3   : > { %8896 = vpow2.f32 %v6100_v28 }
 0x6a4   : > { %8898 = vpow2.f32 %v6102_v9 }
 0x6aa   : > { %v8885_v37 = vpop.eup %8884 }
 0x6ab   : > { %v8887_v5 = vpop.eup %8886  ;;  %v6104_v47 = vsel %vm6058_vm8, %v8885_v37, 0.0 }
 0x6ac   : > { %v8889_v2 = vpop.eup %8888  ;;  %v6105_v19 = vsel %vm6058_vm8, %v8887_v5, 0.0 }
 0x6ad   : > { %v8891_v11 = vpop.eup %8890  ;;  %v6106_v3 = vadd.f32 %v6105_v19, %v6104_v47  ;;  %v6107_v49 = vsel %vm6058_vm8, %v8889_v2, 0.0 }
 0x6ae   : > { %v8893_v12 = vpop.eup %8892  ;;  %v6109_v53 = vsel %vm6058_vm8, %v8891_v11, 0.0 }
 0x6af   : > { %v6108_v48 = vadd.f32 %v6107_v49, %v6106_v3  ;;  %v8895_v40 = vpop.eup %8894  ;;  %v6111_v33 = vsel %vm6058_vm8, %v8893_v12, 0.0 }
 0x6b0   : > { %v8897_v61 = vpop.eup %8896  ;;  %v6113_v63 = vsel %vm6058_vm8, %v8895_v40, 0.0 }
 0x6b1   : > { %v6110_v55 = vadd.f32 %v6109_v53, %v6108_v48  ;;  %v8899_v38 = vpop.eup %8898  ;;  %v6115_v39 = vsel %vm6058_vm8, %v8897_v61, 0.0 }
 0x6b2   : > { %v6117_v23 = vsel %vm6058_vm8, %v8899_v38, 0.0 }
 0x6b3   : > { %v6112_v36 = vadd.f32 %v6111_v33, %v6110_v55 }
 0x6b5   : > { %v6114_v43 = vadd.f32 %v6113_v63, %v6112_v36 }
 0x6b7   : > { %v6116_v60 = vadd.f32 %v6115_v39, %v6114_v43 }
 0x6b9   : > { %v6118_v51 = vadd.f32 %v6117_v23, %v6116_v60 }
 0x6bb   : > { %v6119_v27 = vrot.slane %v6118_v51, 4 }
 0x6bd   : > { %v6120_v0 = vadd.f32 %v6119_v27, %v6118_v51 }
 0x6bf   : > { %v6121_v6 = vrot.slane %v6120_v0, 2 }
 0x6c1   : > { %v6122_v1 = vadd.f32 %v6121_v6, %v6120_v0 }
 0x6c3   : > { %v6123_v54 = vrot.slane %v6122_v1, 1 }
 0x6c5   : > { %v6124_v42 = vadd.f32 %v6123_v54, %v6122_v1 }
 0x6c7   : > { %8900 = vrcp.f32 %v6124_v42 }
 0x6d4   : > { %v8901_v44 = vpop.eup %8900 }
 0x6d5   : > { %v6126_v46 = vmul.f32 %v8901_v44, %v8885_v37  ;;  %v6127_v56 = vmul.f32 %v8901_v44, %v8887_v5  ;;  %v6128_v62 = vmul.f32 %v8901_v44, %v8889_v2  ;;  %v6129_v28 = vmul.f32 %v8901_v44, %v8891_v11 }
 0x6d6   : > { %v6130_v9 = vmul.f32 %v8901_v44, %v8893_v12  ;;  %v6131_v47 = vmul.f32 %v8901_v44, %v8895_v40  ;;  %v6132_v48 = vmul.f32 %v8901_v44, %v8897_v61  ;;  %v6133_v37 = vmul.f32 %v8901_v44, %v8899_v38 }
 0x6d7   : > { %v6134_v19 = vpack.c.bf16 %v6127_v56, %v6126_v46  ;;  %v6135_v3 = vpack.c.bf16 %v6129_v28, %v6128_v62  ;;  %v13005_v2 = vpack.c.bf16 %v12103_v58, %v12099_v35 }
 0x6d8   : > { %v6136_v49 = vpack.c.bf16 %v6131_v47, %v6130_v9  ;;  %v6137_v5 = vpack.c.bf16 %v6133_v37, %v6132_v48 }
 0x6d9   : > { %8367 = vmatprep.mubr.msk.bf16.mxu0 %vm6058_vm8, %v6134_v19 }
 0x6da   : > { %8368 = vmatmul.mubr.msk.bf16.vlgmr.msra.gmra.mxu0 %vm6058_vm8, %v6135_v3 }
 0x6db   : > { %8376 = vmatpush3.bf16.xpose.msra.mxu0 %v12145_v17  ;;  %8371 = vmatprep.mubr.msk.bf16.mxu0 %vm6058_vm8, %v6136_v49  ;;  %v13004_v17 = vpack.c.bf16 %v12087_v14, %v12083_v50 }
 0x6dc   : > { %8377 = vmatprep.subr.bf16.mxu0 %v12112_v7 }
 0x6e2   : > { %8372 = vmatmul.mubr.msk.bf16.gmra.mxu0 %vm6058_vm8, %v6137_v5 }
 0x6e3   : > { %8378 = vmatpush3.bf16.xpose.msra.mxu0 %v12112_v7  ;;  %8383 = vmatprep.mubr.bf16.mxu0 %v6219_v26 }
 0x6e4   : > { %8379 = vmatprep.subr.bf16.mxu0 %v12096_v8 }
 0x6eb   : > { %8380 = vmatpush3.bf16.xpose.msra.mxu0 %v12096_v8  ;;  %v12192_v8 = vld [vmem:[#allocation13 + $0x38] sm:$0xff]  }
 0x6ec   : > { %8381 = vmatprep.subr.bf16.mxu0 %v12080_v57  ;;  %8407 = vmatprep.subr.bf16.mxu1 %v12192_v8 }
 0x6f3   : > { %8382 = vmatpush3.bf16.xpose.msra.mxu0 %v12080_v57 }
 0x6fa   : > { %8384 = vmatmul.mubr.bf16.vlgmr.msra.gmra.mxu0 %v13004_v17 }
 0x6fb   : > { %8387 = vmatprep.mubr.bf16.mxu0 %v13005_v2 }
 0x702   : > { %8388 = vmatmul.mubr.bf16.gmra.mxu0 %v13006_v24 }
 0x79a   : > { %v12188_v59 = vpop.f32.mrf.mxu0 }
 0x79c   : > { %v12190_v26 = vpop.f32.mrf.mxu0 }
 0x79e   : > { %v12194_v7 = vpop.f32.mrf.mxu0 }
 0x79f   : > { %v6453_v57 = vpack.c.bf16 %v12194_v7, %v12188_v59 }
 0x7a0   : > { %v12199_v50 = vpop.f32.mrf.mxu0 }
 0x7a1   : > { %v6452_v14 = vpack.c.bf16 %v12199_v50, %v12190_v26 }
 0x7a2   : > { %v12203_v35 = vpop.f32.mrf.mxu0 }
 0x7a4   : > { %v12205_v58 = vpop.f32.mrf.mxu0 }
 0x7a6   : > { %v12207_v21 = vpop.f32.mrf.mxu0 }
 0x7a7   : > { %v6455_v31 = vpack.c.bf16 %v12207_v21, %v12203_v35  ;;  %v12251_v35 = vld [vmem:[%s13007_s19] ss:$0 sm:$0xff] }
 0x7a8   : > { %v12211_v11 = vpop.f32.mrf.mxu0 }
 0x7a9   : > { %v6454_v12 = vpack.c.bf16 %v12211_v11, %v12205_v58 }
 0x7ba   : > { %v8385_v53 = vpop.f32.mrf.mxu0 }
 0x7bb   : > { %v6294_v27 = vsel %vm6058_vm8, %v8385_v53, -inf }
 0x7bc   : > { %v6261_v40 = vpop.f32.mrf.mxu0 }
 0x7bd   : > { %v6292_v0 = vsel %vm6058_vm8, %v6261_v40, -inf }
 0x7be   : > { %v8386_v55 = vpop.f32.mrf.mxu0 }
 0x7bf   : > { %v6295_v38 = vsel %vm6058_vm8, %v8386_v55, -inf }
 0x7c0   : > { %v6264_v33 = vpop.f32.mrf.mxu0 }
 0x7c1   : > { %v6293_v6 = vsel %vm6058_vm8, %v6264_v33, -inf }
 0x7c2   : > { %v8389_v61 = vpop.f32.mrf.mxu0 }
 0x7c3   : > { %v6300_v43 = vsel %vm6058_vm8, %v8389_v61, -inf }
 0x7c4   : > { %v6277_v36 = vpop.f32.mrf.mxu0  ;;  %v6301_v54 = vmax.f32 %v6294_v27, %v6300_v43 }
 0x7c5   : > { %v6296_v39 = vsel %vm6058_vm8, %v6277_v36, -inf }
 0x7c6   : > { %v8390_v63 = vpop.f32.mrf.mxu0  ;;  %v6297_v42 = vmax.f32 %v6292_v0, %v6296_v39 }
 0x7c7   : > { %v6302_v60 = vsel %vm6058_vm8, %v8390_v63, -inf }
 0x7c8   : > { %v6303_v23 = vmax.f32 %v6295_v38, %v6302_v60  ;;  %v6280_v51 = vpop.f32.mrf.mxu0 }
 0x7c9   : > { %v6298_v1 = vsel %vm6058_vm8, %v6280_v51, -inf }
 0x7ca   : > { %v6299_v44 = vmax.f32 %v6293_v6, %v6298_v1  ;;  %v6305_v46 = vmax.f32 %v6301_v54, %v6303_v23 }
 0x7cc   : > { %v6304_v56 = vmax.f32 %v6297_v42, %v6299_v44 }
 0x7ce   : > { %v6306_v62 = vmax.f32 %v6304_v56, %v6305_v46 }
 0x7d0   : > { %v6307_v28 = vrot.slane %v6306_v62, 4 }
 0x7d2   : > { %v6308_v9 = vmax.f32 %v6306_v62, %v6307_v28 }
 0x7d4   : > { %v6309_v47 = vrot.slane %v6308_v9, 2 }
 0x7d6   : > { %v6310_v19 = vmax.f32 %v6308_v9, %v6309_v47 }
 0x7d8   : > { %v6311_v3 = vrot.slane %v6310_v19, 1 }
 0x7da   : > { %v6312_v49 = vmax.f32 %v6310_v19, %v6311_v3 }
 0x7dc   : > { %v6313_v48 = vsub.f32 %v6261_v40, %v6312_v49  ;;  %v6314_v37 = vsub.f32 %v6264_v33, %v6312_v49  ;;  %v6315_v5 = vsub.f32 %v8385_v53, %v6312_v49  ;;  %v6316_v17 = vsub.f32 %v8386_v55, %v6312_v49 }
 0x7dd   : > { %v6317_v2 = vsub.f32 %v6277_v36, %v6312_v49  ;;  %v6318_v43 = vsub.f32 %v6280_v51, %v6312_v49  ;;  %v6319_v23 = vsub.f32 %v8389_v61, %v6312_v49  ;;  %v6320_v0 = vsub.f32 %v8390_v63, %v6312_v49 }
 0x7de   : > { %v6321_v24 = vmul.f32 1.442695, %v6313_v48  ;;  %v6323_v38 = vmul.f32 1.442695, %v6314_v37  ;;  %v6325_v60 = vmul.f32 1.442695, %v6315_v5 }
 0x7df   : > { %v6327_v39 = vmul.f32 1.442695, %v6316_v17  ;;  %v6329_v27 = vmul.f32 1.442695, %v6317_v2  ;;  %v6331_v6 = vmul.f32 1.442695, %v6318_v43 }
 0x7e0   : > { %8902 = vpow2.f32 %v6321_v24  ;;  %v6333_v1 = vmul.f32 1.442695, %v6319_v23  ;;  %v6335_v40 = vmul.f32 1.442695, %v6320_v0 }
 0x7e1   : > { %8904 = vpow2.f32 %v6323_v38 }
 0x7e2   : > { %8906 = vpow2.f32 %v6325_v60 }
 0x7e3   : > { %8908 = vpow2.f32 %v6327_v39 }
 0x7e4   : > { %8910 = vpow2.f32 %v6329_v27 }
 0x7e5   : > { %8912 = vpow2.f32 %v6331_v6 }
 0x7e6   : > { %8914 = vpow2.f32 %v6333_v1 }
 0x7e7   : > { %8916 = vpow2.f32 %v6335_v40 }
 0x7ed   : > { %v8903_v53 = vpop.eup %8902 }
 0x7ee   : > { %v8905_v55 = vpop.eup %8904  ;;  %v6337_v33 = vsel %vm6058_vm8, %v8903_v53, 0.0 }
 0x7ef   : > { %v8907_v36 = vpop.eup %8906  ;;  %v6338_v51 = vsel %vm6058_vm8, %v8905_v55, 0.0 }
 0x7f0   : > { %v8909_v61 = vpop.eup %8908  ;;  %v6339_v54 = vadd.f32 %v6338_v51, %v6337_v33  ;;  %v6340_v42 = vsel %vm6058_vm8, %v8907_v36, 0.0 }
 0x7f1   : > { %v8911_v63 = vpop.eup %8910  ;;  %v6342_v46 = vsel %vm6058_vm8, %v8909_v61, 0.0 }
 0x7f2   : > { %v6341_v44 = vadd.f32 %v6340_v42, %v6339_v54  ;;  %v8913_v56 = vpop.eup %8912  ;;  %v6344_v28 = vsel %vm6058_vm8, %v8911_v63, 0.0  ;;  %v8741_v42 = vld [vmem:[#allocation13 + $0x30] sm:$0xff]  }
 0x7f3   : > { %v8915_v9 = vpop.eup %8914  ;;  %v6346_v19 = vsel %vm6058_vm8, %v8913_v56, 0.0 }
 0x7f4   : > { %v6343_v62 = vadd.f32 %v6342_v46, %v6341_v44  ;;  %v8917_v3 = vpop.eup %8916  ;;  %v6348_v48 = vsel %vm6058_vm8, %v8915_v9, 0.0  ;;  %v8742_v46 = vld [vmem:[#allocation13 + $0x28] sm:$0xff]  }
 0x7f5   : > { %v6350_v5 = vsel %vm6058_vm8, %v8917_v3, 0.0 }
 0x7f6   : > { %v6345_v47 = vadd.f32 %v6344_v28, %v6343_v62  ;;  %v8747_v62 = vld [vmem:[#allocation13] sm:$0xff]  }
 0x7f8   : > { %v6347_v49 = vadd.f32 %v6346_v19, %v6345_v47 }
 0x7fa   : > { %v6349_v37 = vadd.f32 %v6348_v48, %v6347_v49 }
 0x7fc   : > { %v6351_v17 = vadd.f32 %v6350_v5, %v6349_v37 }
 0x7fe   : > { %v6352_v2 = vrot.slane %v6351_v17, 4 }
 0x800   : > { %v6353_v24 = vadd.f32 %v6352_v2, %v6351_v17 }
 0x802   : > { %v6354_v38 = vrot.slane %v6353_v24, 2 }
 0x804   : > { %v6355_v60 = vadd.f32 %v6354_v38, %v6353_v24 }
 0x806   : > { %v6356_v43 = vrot.slane %v6355_v60, 1 }
 0x808   : > { %v6357_v39 = vadd.f32 %v6356_v43, %v6355_v60 }
 0x80a   : > { %8918 = vrcp.f32 %v6357_v39 }
 0x817   : > { %v8919_v23 = vpop.eup %8918 }
 0x818   : > { %v6359_v27 = vmul.f32 %v8919_v23, %v8903_v53  ;;  %v6360_v0 = vmul.f32 %v8919_v23, %v8905_v55  ;;  %v6361_v6 = vmul.f32 %v8919_v23, %v8907_v36  ;;  %v6362_v1 = vmul.f32 %v8919_v23, %v8909_v61  ;;  %v8743_v61 = vld [vmem:[#allocation13 + $0x20] sm:$0xff]  }
 0x819   : > { %v6363_v40 = vmul.f32 %v8919_v23, %v8911_v63  ;;  %v6364_v33 = vmul.f32 %v8919_v23, %v8913_v56  ;;  %v6365_v53 = vmul.f32 %v8919_v23, %v8915_v9  ;;  %v6366_v55 = vmul.f32 %v8919_v23, %v8917_v3  ;;  %v8744_v63 = vld [vmem:[#allocation13 + $0x18] sm:$0xff]   ;;  %v8746_v56 = vld [vmem:[#allocation13 + $0x8] sm:$0xff]  }
 0x81a   : > { %v6367_v51 = vpack.c.bf16 %v6360_v0, %v6359_v27  ;;  %v6368_v54 = vpack.c.bf16 %v6362_v1, %v6361_v6 }
 0x81b   : > { %v6369_v44 = vpack.c.bf16 %v6364_v33, %v6363_v40  ;;  %v6370_v36 = vpack.c.bf16 %v6366_v55, %v6365_v53 }
 0x81c   : > { %8399 = vmatprep.mubr.msk.bf16.mxu1 %vm6058_vm8, %v6367_v51 }
 0x81d   : > { %8400 = vmatmul.mubr.msk.bf16.vlgmr.msra.gmra.mxu1 %vm6058_vm8, %v6368_v54 }
 0x81e   : > { %8408 = vmatpush3.bf16.msra.mxu1 %v12192_v8  ;;  %8403 = vmatprep.mubr.msk.bf16.mxu1 %vm6058_vm8, %v6369_v44  ;;  %v8745_v8 = vld [vmem:[#allocation13 + $0x10] sm:$0xff]  }
 0x81f   : > { %8409 = vmatprep.subr.bf16.mxu1 %v8741_v42 }
 0x822   : > { %8410 = vmatpush3.bf16.msra.mxu1 %v8741_v42 }
 0x823   : > { %8411 = vmatprep.subr.bf16.mxu1 %v8742_v46 }
 0x825   : > { %8404 = vmatmul.mubr.msk.bf16.gmra.mxu1 %vm6058_vm8, %v6370_v36 }
 0x826   : > { %8412 = vmatpush3.bf16.msra.mxu1 %v8742_v46  ;;  %8423 = vmatprep.mubr.bf16.mxu1 %v6452_v14 }
 0x827   : > { %8413 = vmatprep.subr.bf16.mxu1 %v8743_v61 }
 0x82a   : > { %8414 = vmatpush3.bf16.msra.mxu1 %v8743_v61 }
 0x82b   : > { %8415 = vmatprep.subr.bf16.mxu1 %v8744_v63 }
 0x82e   : > { %8416 = vmatpush3.bf16.msra.mxu1 %v8744_v63 }
 0x82f   : > { %8417 = vmatprep.subr.bf16.mxu1 %v8745_v8 }
 0x832   : > { %8418 = vmatpush3.bf16.msra.mxu1 %v8745_v8 }
 0x833   : > { %8419 = vmatprep.subr.bf16.mxu1 %v8746_v56 }
 0x836   : > { %8420 = vmatpush3.bf16.msra.mxu1 %v8746_v56 }
 0x837   : > { %8421 = vmatprep.subr.bf16.mxu1 %v8747_v62 }
 0x83a   : > { %8422 = vmatpush3.bf16.msra.mxu1 %v8747_v62 }
 0x83d   : > { %8424 = vmatmul.mubr.bf16.vlgmr.msra.gmra.mxu1 %v6453_v57 }
 0x83e   : > { %8427 = vmatprep.mubr.bf16.mxu1 %v6454_v12 }
 0x845   : > { %8428 = vmatmul.mubr.bf16.gmra.mxu1 %v6455_v31 }
 0x8dd   : > { %v8401_v26 = vpop.f32.mrf.mxu1 }
 0x8df   : > { %v6421_v50 = vpop.f32.mrf.mxu1 }
 0x8e1   : > { %v8402_v14 = vpop.f32.mrf.mxu1 }
 0x8e2   : > { %v6457_v47 = vpack.c.bf16 %v8402_v14, %v8401_v26 }
 0x8e3   : > { %v6424_v28 = vpop.f32.mrf.mxu1 }
 0x8e4   : > { %v6456_v9 = vpack.c.bf16 %v6424_v28, %v6421_v50 }
 0x8e5   : > { %v8405_v19 = vpop.f32.mrf.mxu1 }
 0x8e6   : > { %8431 = vmatprep.mubr.bf16.mxu1 %v6456_v9 }
 0x8e7   : > { %v6437_v3 = vpop.f32.mrf.mxu1  ;;  %8432 = vmatmul.mubr.bf16.gmra.mxu1 %v6457_v47 }
 0x8e9   : > { %v8406_v59 = vpop.f32.mrf.mxu1 }
 0x8ea   : > { %v6459_v58 = vpack.c.bf16 %v8406_v59, %v8405_v19 }
 0x8eb   : > { %v6440_v7 = vpop.f32.mrf.mxu1 }
 0x8ec   : > { %v6458_v57 = vpack.c.bf16 %v6440_v7, %v6437_v3 }
 0x8ee   : > { %8435 = vmatprep.mubr.bf16.mxu1 %v6458_v57 }
 0x8ef   : > { %8436 = vmatmul.mubr.bf16.gmra.mxu1 %v6459_v58 }
 0x8fd   : > { %v8425_v21 = vpop.f32.mrf.mxu1 }
 0x8fe   : > { %v6574_v31 = vadd.f32 %v8425_v21, %v12251_v35 }
 0x8ff   : > { %v6565_v11 = vpop.f32.mrf.mxu1 }
 0x900   : > { %v6630_v12 = vadd.f32 %v6574_v31, %v11911_v41  ;;  %v6566_v49 = vadd.f32 %v12251_v35, %v6565_v11 }
 0x901   : > { %v8426_v48 = vpop.f32.mrf.mxu1 }
 0x902   : > { %6646 = vst [vmem:[%s12258_s25 + $0x10] sm:$0xff] %v6630_v12  ;;  %v6628_v37 = vadd.f32 %v6566_v49, %v11902_v18  ;;  %v6577_v5 = vadd.f32 %v8426_v48, %v12251_v35 }
 0x903   : > { %v6568_v17 = vpop.f32.mrf.mxu1 }
 0x904   : > { %6644 = vst [vmem:[%s12258_s25] sm:$0xff] %v6628_v37  ;;  %v6631_v41 = vadd.f32 %v6577_v5, %v11897_v4  ;;  %v6569_v2 = vadd.f32 %v12251_v35, %v6568_v17 }
 0x905   : > { %v8429_v24 = vpop.f32.mrf.mxu1 }
 0x906   : > { %6647 = vst [vmem:[%s12258_s25 + $0x18] sm:$0xff] %v6631_v41  ;;  %v6629_v38 = vadd.f32 %v6569_v2, %v11905_v10  ;;  %v6590_v60 = vadd.f32 %v8429_v24, %v12251_v35 }
 0x907   : > { %v6581_v43 = vpop.f32.mrf.mxu1 }
 0x908   : > { %6645 = vst [vmem:[%s12258_s25 + $0x8] sm:$0xff] %v6629_v38  ;;  %v6634_v18 = vadd.f32 %v6590_v60, %v11952_v34  ;;  %v6582_v39 = vadd.f32 %v12251_v35, %v6581_v43 }
 0x909   : > { %v8430_v23 = vpop.f32.mrf.mxu1 }
 0x90a   : > { %6650 = vst [vmem:[%s12258_s25 + $0x30] sm:$0xff] %v6634_v18  ;;  %v6632_v4 = vadd.f32 %v6582_v39, %v11943_v13  ;;  %v6593_v27 = vadd.f32 %v8430_v23, %v12251_v35 }
 0x90b   : > { %v6584_v0 = vpop.f32.mrf.mxu1 }
 0x90c   : > { %6648 = vst [vmem:[%s12258_s25 + $0x20] sm:$0xff] %v6632_v4  ;;  %v6635_v10 = vadd.f32 %v6593_v27, %v11939_v45  ;;  %v6585_v6 = vadd.f32 %v12251_v35, %v6584_v0 }
 0x90e   : > { %6651 = vst [vmem:[%s12258_s25 + $0x38] sm:$0xff] %v6635_v10  ;;  %v6633_v1 = vadd.f32 %v6585_v6, %v11946_v16 }
 0x910   : > { %6649 = vst [vmem:[%s12258_s25 + $0x28] sm:$0xff] %v6633_v1 }
 0x9a7   : > { %v8433_v34 = vpop.f32.mrf.mxu1 }
 0x9a8   : > { %v6606_v40 = vadd.f32 %v8433_v34, %v12251_v35 }
 0x9a9   : > { %v6597_v33 = vpop.f32.mrf.mxu1 }
 0x9aa   : > { %v6638_v13 = vadd.f32 %v6606_v40, %v11979_v20  ;;  %v6598_v51 = vadd.f32 %v12251_v35, %v6597_v33 }
 0x9ab   : > { %v8434_v54 = vpop.f32.mrf.mxu1 }
 0x9ac   : > { %6654 = vst [vmem:[%s12258_s25 + $0x50] sm:$0xff] %v6638_v13  ;;  %v6636_v45 = vadd.f32 %v6598_v51, %v11973_v30  ;;  %v6609_v42 = vadd.f32 %v8434_v54, %v12251_v35 }
 0x9ad   : > { %v6600_v44 = vpop.f32.mrf.mxu1 }
 0x9ae   : > { %6652 = vst [vmem:[%s12258_s25 + $0x40] sm:$0xff] %v6636_v45  ;;  %v6639_v16 = vadd.f32 %v6609_v42, %v11970_v15  ;;  %v6601_v46 = vadd.f32 %v12251_v35, %v6600_v44 }
 0x9af   : > { %v8437_v53 = vpop.f32.mrf.mxu1 }
 0x9b0   : > { %6655 = vst [vmem:[%s12258_s25 + $0x58] sm:$0xff] %v6639_v16  ;;  %v6637_v20 = vadd.f32 %v6601_v46, %v11976_v29  ;;  %v6622_v55 = vadd.f32 %v8437_v53, %v12251_v35 }
 0x9b1   : > { %v6613_v36 = vpop.f32.mrf.mxu1 }
 0x9b2   : > { %6653 = vst [vmem:[%s12258_s25 + $0x48] sm:$0xff] %v6637_v20  ;;  %v6642_v30 = vadd.f32 %v6622_v55, %v12000_v25  ;;  %v6614_v61 = vadd.f32 %v12251_v35, %v6613_v36 }
 0x9b3   : > { %v8438_v63 = vpop.f32.mrf.mxu1 }
 0x9b4   : > { %6658 = vst [vmem:[%s12258_s25 + $0x70] sm:$0xff] %v6642_v30  ;;  %v6640_v15 = vadd.f32 %v6614_v61, %v11994_v22  ;;  %v6625_v8 = vadd.f32 %v8438_v63, %v12251_v35 }
 0x9b5   : > { %v6616_v29 = vpop.f32.mrf.mxu1 }
 0x9b6   : > { %6656 = vst [vmem:[%s12258_s25 + $0x60] sm:$0xff] %v6640_v15  ;;  %v6643_v56 = vadd.f32 %v6625_v8, %v11991_v52  ;;  %v6617_v62 = vadd.f32 %v12251_v35, %v6616_v29 }
 0x9b8   : > { %6659 = vst [vmem:[%s12258_s25 + $0x78] sm:$0xff] %v6643_v56  ;;  %v6641_v22 = vadd.f32 %v6617_v62, %v11997_v32 }
 0x9ba   : > { %6657 = vst [vmem:[%s12258_s25 + $0x68] sm:$0xff] %v6641_v22 }
 0x9bb   : > { %9135 = shalt.err (!%p9132_p8)
}
 0x9bc   : > { %s9136_s28 = scalar_lea.hbm %s12307_s29, 2048  ;;  %s9140_s23 = scalar_lea.hbm %s13009_s4, 4096 }
 0x9bd   : > { %p9137_p3 = scmp.ne.s32.totalorder %s12307_s29, %s9136_s28  ;;  %p9141_p2 = scmp.lt.s32.totalorder %s12307_s29, %s13009_s4 }
 0x9be   : > { %p9142_p10 = scmp.lt.s32.totalorder %s9140_s23, %s9136_s28 }
 0x9bf   : > { %p9138_p7 = pnand %p9137_p3, %p13010_p5 }
 0x9c0   : > { %p9143_p0 = por %p9142_p10, %p9141_p2 }
 0x9c1   : > { %p9139_p12 = pneg %p9138_p7 }
 0x9c3   : > { %p9144_p13 = pnand %p9143_p0, %p9139_p12 }
 0x9c5   : > { %9147 = shalt.err (!%p9144_p13)
}
 0x9c6   : > { %s9225_s25 = smov 128   ;;  %s9226_s30 = smov 8  }
 0x9c7   : > { %8463 = dma.vmem_to_hbm [thread:$0]  (%p13010_p5), %s12309_s8, 2048, %s12307_s29, %s6661_s27, %s9225_s25, %s9225_s25, %s9226_s30  }
 0x9c8 PF: > { %s13011_s17 = sld [smem:[#allocation21_spill]]  ;;  %p13014_p11 = scmp.ge.s32.totalorder %s9202_s24, 2 }
 0x9c9   : > { %s13012_s0 = sld [smem:[#allocation26_spill]] }
 0x9ce   : > { %s6689_s10 = sand.u32 1, %s13011_s17  }
 0x9cf   : > { %p13013_p9 = scmp.ne.s32.totalorder %s13012_s0, 0  ;;  %s6690_s26 = scalar_lea.sflag [#allocation4], %s6689_s10 }
 0x9d1   : > { %p8489_p1 = pnand %p13014_p11, %p13013_p9 }
 0x9d3   : > { %p8490_p4 = pneg %p8489_p1 }
 0x9d5   : > { %9185 = dma.done.wait (%p8490_p4), %s6690_s26, 2048  }
 0x9d6   : > { %9187 = vsyncadd (%p8490_p4), %s6690_s26, 4294965248  ;;  %s13015_s24 = sld [smem:[#allocation23_spill]]  ;;  %s13018_s21 = smov %s9194_s22 }
 0x9d7   : > { %s13016_s12 = sld [smem:[#allocation22_spill]] }
 0x9d8   : > { %s13017_s23 = sld [smem:[#allocation24_spill]] }
 0x9dc   : > { %p34_p6 = scmp.ge.s32.totalorder %s13015_s24, 4  }
 0x9dd   : > { %s13019_s22 = smov %s13016_s12 }
 0x9de   :  { %36 = sbr.rel (!%p34_p6) target bundleno = 18 (0x12), region = 179 }
 0x9e3   :  { %6695 = vsyncpa [#allocation3], 1 }
 0x9e4   :  { %6697 = vsyncpa [#allocation3 + $0x1], 1 }
 0x9e5   :  { %6698 = vsyncpa [#allocation6], 1 }
 0x9e6   :  { %6700 = vsyncpa [#allocation6 + $0x1], 1 }
 0x9e7   :  { %6701 = vsyncpa [#allocation9], 1 }
 0x9e8   :  { %6702 = vsyncpa [#allocation12], 1 }
 0x9e9   :  { %6703 = vsyncpa [#allocation4], 1 }
 0x9ea   :  { %6705 = vsyncpa [#allocation4 + $0x1], 1 }

</bundles_post_ra>
